<compile_context>
chip_gen: v6e
topology: v6e:2x2x1
jax: 0.10.0
libtpu: 0.0.40
codegen_flags: <defaults>
</compile_context>

<pallas_src>
import math

import jax
import jax.numpy as jnp
from jax.experimental import pallas as pl
from jax.experimental.pallas import tpu as pltpu

# ----------------------------- small ViT config ------------------------------
B = 2              # batch
C = 3              # input channels
IMG = 16           # image H = W
PATCH = 4          # patch size
D = 32             # embed dim
HEADS = 4
HEAD_DIM = D // HEADS
MLP = 4 * D        # mlp hidden
DEPTH = 2          # number of transformer blocks
NUM_CLASSES = 10
NUM_PROMPTS = 1
N_PATCH = (IMG // PATCH) ** 2            # 16 patch tokens
PFX = 1 + NUM_PROMPTS                    # cls + prompts
T = PFX + N_PATCH                        # 18 tokens
BT = B * T                               # 36 rows in the flattened token slab
EPS = 1e-6                               # timm ViT LayerNorm eps
NEG_BIG = -1e30                          # additive mask for cross-batch attention


# ------------------------------ in-kernel math -------------------------------
def _gelu(x):
    # tanh-approximation GELU: 0.5*x*(1 + tanh(sqrt(2/pi)*(x + 0.044715*x^3))).
    # tanh lowers to the EUP (separate VLIW slot) -> nearly free vs. the VALU-heavy
    # erf polynomial.  TODO(synk): exact-erf GELU if bit-matching torch.nn.GELU is
    # required (tanh approx differs by <~1e-3 absolute).
    c = math.sqrt(2.0 / math.pi)
    return 0.5 * x * (1.0 + jnp.tanh(c * (x + 0.044715 * x * x * x)))


def _layernorm(v, w, b):
    mu = jnp.mean(v, axis=-1, keepdims=True)
    czero = v - mu
    var = jnp.mean(czero * czero, axis=-1, keepdims=True)
    return czero * jax.lax.rsqrt(var + EPS) * w + b


def _softmax(s):
    m = jnp.max(s, axis=-1, keepdims=True)
    e = jnp.exp(s - m)
    # approx reciprocal -> EUP vrcp (free slot); ~2^-12 rel err is negligible in f32 accum.
    return e * pl.reciprocal(jnp.sum(e, axis=-1, keepdims=True), approx=True)


# ------------------------------ fused Pallas kernel ---------------------------
def fused_vit_kernel(
    patches_ref,                 # (B*N_PATCH, C*P*P)
    attn_bias_ref,               # (BT, BT): 0 within batch, -1e30 across batches
    patch_w_ref, patch_b_ref,    # (C*P*P, D), (1, D)
    prefix_ref,                  # (PFX, D): [cls + pos_embed[0], prompts]
    pos_patch_ref,               # (N_PATCH, D): pos_embed for patch tokens
    ln1_w_ref, ln1_b_ref,        # (DEPTH, 1, D)
    wq_ref, wk_ref, wv_ref,      # (DEPTH, HEADS, D, HEAD_DIM)  per-head, pre-split host-side
    bq_ref, bk_ref, bv_ref,      # (DEPTH, HEADS, 1, HEAD_DIM)
    wproj_ref,                   # (DEPTH, HEADS, HEAD_DIM, D)
    bproj_ref,                   # (DEPTH, 1, D)
    ln2_w_ref, ln2_b_ref,        # (DEPTH, 1, D)
    wfc1_ref, bfc1_ref,          # (DEPTH, D, MLP), (DEPTH, 1, MLP)
    wfc2_ref, bfc2_ref,          # (DEPTH, MLP, D), (DEPTH, 1, D)
    norm_w_ref, norm_b_ref,      # (1, D)
    head_w_ref, head_b_ref,      # (D, NUM_CLASSES), (1, NUM_CLASSES)
    o_ref,                       # (B, NUM_CLASSES)
):
    # ---- patch embedding: Conv2d(k=s=patch) as one (B*N, CPP)@(CPP, D) matmul + bias ----
    tok = (jnp.dot(patches_ref[...], patch_w_ref[...],
                   preferred_element_type=jnp.float32) + patch_b_ref[...])      # (B*N, D)

    # ---- _pos_embed + prompt_injection, fused: [cls+pos0, prompts, patches+pos[1:]] ----
    prefix = prefix_ref[...]                                                    # (PFX, D)
    pos = pos_patch_ref[...]                                                    # (N, D)
    pieces = []
    for b in range(B):
        pieces.append(prefix)
        pieces.append(tok[b * N_PATCH:(b + 1) * N_PATCH, :] + pos)
    x = jnp.concatenate(pieces, axis=0)                                         # (BT, D) f32

    attn_bias = attn_bias_ref[...]                                              # (BT, BT)
    scale = HEAD_DIM ** -0.5

    for blk in range(DEPTH):
        # ---- attention branch: x + proj(attn(norm1(x))) ----
        h = _layernorm(x, ln1_w_ref[blk], ln1_b_ref[blk])                       # (BT, D)
        acc = jnp.zeros((BT, D), jnp.float32)
        for hh in range(HEADS):
            # per-head q/k/v straight out of full-slab matmuls (no 8-lane extracts)
            q = (jnp.dot(h, wq_ref[blk, hh], preferred_element_type=jnp.float32)
                 + bq_ref[blk, hh]) * scale                                     # (BT, hd)
            k = (jnp.dot(h, wk_ref[blk, hh], preferred_element_type=jnp.float32)
                 + bk_ref[blk, hh])                                             # (BT, hd)
            v = (jnp.dot(h, wv_ref[blk, hh], preferred_element_type=jnp.float32)
                 + bv_ref[blk, hh])                                             # (BT, hd)
            # whole-batch scores with block-diagonal mask (no per-batch loop)
            s = jax.lax.dot_general(q, k, (((1,), (1,)), ((), ())),
                                    preferred_element_type=jnp.float32)         # (BT, BT)
            p = _softmax(s + attn_bias)                                         # cross-batch -> 0
            o = jnp.dot(p, v, preferred_element_type=jnp.float32)               # (BT, hd)
            # concat-free output projection: sum_h o_h @ Wproj[h]
            acc = acc + jnp.dot(o, wproj_ref[blk, hh],
                                preferred_element_type=jnp.float32)             # (BT, D)
        x = x + acc + bproj_ref[blk]

        # ---- MLP branch: x + fc2(gelu(fc1(norm2(x)))) ----
        h2 = _layernorm(x, ln2_w_ref[blk], ln2_b_ref[blk])
        h2 = jnp.dot(h2, wfc1_ref[blk], preferred_element_type=jnp.float32) + bfc1_ref[blk]
        h2 = _gelu(h2)
        h2 = jnp.dot(h2, wfc2_ref[blk], preferred_element_type=jnp.float32) + bfc2_ref[blk]
        x = x + h2

    # ---- vit.norm (per-token LN, applied to the cls rows only) + forward_head ----
    cls_rows = jnp.concatenate([x[b * T:b * T + 1, :] for b in range(B)], axis=0)   # (B, D)
    xn = _layernorm(cls_rows, norm_w_ref[...], norm_b_ref[...])
    o_ref[...] = (jnp.dot(xn, head_w_ref[...], preferred_element_type=jnp.float32)
                  + head_b_ref[...]).astype(o_ref.dtype)


# ------------------------------ wrapper ---------------------------------------
def prompt_vit_forward(x_nchw, params):
    """PromptViT.forward: patch_embed -> _pos_embed -> prompt_injection -> blocks -> norm -> head.

    Everything runs inside ONE pallas_call; the wrapper only does layout plumbing
    (patchification reshape, per-head weight splitting, DEPTH stacking, attention mask).
    """
    b_, c_, h_, w_ = x_nchw.shape
    gh, gw = h_ // PATCH, w_ // PATCH

    # patch_embed (Conv2d k=s=patch) as matmul: patches flattened in (C, ph, pw) order
    patches = x_nchw.reshape(b_, c_, gh, PATCH, gw, PATCH)
    patches = patches.transpose(0, 2, 4, 1, 3, 5).reshape(b_ * gh * gw, c_ * PATCH * PATCH)

    # block-diagonal additive attention bias (constant-folded under jit; ~5 KB)
    tok_batch = jnp.arange(b_ * T, dtype=jnp.int32) // T
    attn_bias = jnp.where(tok_batch[:, None] == tok_batch[None, :],
                          jnp.float32(0.0), jnp.float32(NEG_BIG))

    # fused prefix table: cls token gets pos_embed[0]; prompts (injected after pos add) don't
    prefix = jnp.concatenate(
        [params["cls_token"][0] + params["pos_embed"][0, :1, :], params["prompts"][0]], axis=0)
    pos_patch = params["pos_embed"][0, 1:, :]

    blocks = params["blocks"]

    def stack(key):
        return jnp.stack([blk[key] for blk in blocks], axis=0)

    def split_heads_w(col):
        # per-head (D, HEAD_DIM) slices of w_qkv[:, col*D:(col+1)*D], stacked over DEPTH
        return jnp.stack(
            [blk["w_qkv"][:, col * D:(col + 1) * D]
             .reshape(D, HEADS, HEAD_DIM).transpose(1, 0, 2) for blk in blocks], axis=0)

    def split_heads_b(col):
        return jnp.stack(
            [blk["b_qkv"][0, col * D:(col + 1) * D]
             .reshape(HEADS, 1, HEAD_DIM) for blk in blocks], axis=0)

    args = (
        patches, attn_bias, params["patch_w"], params["patch_b"], prefix, pos_patch,
        stack("ln1_w"), stack("ln1_b"),
        split_heads_w(0), split_heads_w(1), split_heads_w(2),
        split_heads_b(0), split_heads_b(1), split_heads_b(2),
        jnp.stack([blk["w_proj"].reshape(HEADS, HEAD_DIM, D) for blk in blocks], axis=0),
        stack("b_proj"), stack("ln2_w"), stack("ln2_b"),
        stack("w_fc1"), stack("b_fc1"), stack("w_fc2"), stack("b_fc2"),
        params["norm_w"], params["norm_b"], params["head_w"], params["head_b"],
    )

    vmem = pl.BlockSpec(memory_space=pltpu.MemorySpace.VMEM)
    # NOTE: at production ViT sizes (D=768, T=197) an "all weights resident" kernel would
    # exceed v7x's 64 MiB VMEM; there, stream per-block weights (emit_pipeline / manual
    # double-buffer) and raise vmem_limit_bytes.  At this toy size everything fits trivially.
    return pl.pallas_call(
        fused_vit_kernel,
        out_shape=jax.ShapeDtypeStruct((b_, NUM_CLASSES), jnp.float32),
        in_specs=[vmem] * len(args),
        out_specs=vmem,
    )(*args)


# ------------------------------ parameter init --------------------------------
def init_params(key):
    keys = list(jax.random.split(key, 64))
    it = iter(keys)

    def nrm(shape, std=0.05):
        return jax.random.normal(next(it), shape, jnp.float32) * std

    params = {
        "patch_w": nrm((C * PATCH * PATCH, D)),
        "patch_b": jnp.zeros((1, D), jnp.float32),
        "cls_token": nrm((1, 1, D), 0.02),
        "pos_embed": nrm((1, 1 + N_PATCH, D), 0.02),
        "norm_w": jnp.ones((1, D), jnp.float32),
        "norm_b": jnp.zeros((1, D), jnp.float32),
        "head_w": nrm((D, NUM_CLASSES)),
        "head_b": jnp.zeros((1, NUM_CLASSES), jnp.float32),
    }
    # prompts: uniform(-val, val), val = sqrt(6 / (3 * prod(patch_size) + embed_dim))
    val = math.sqrt(6.0 / float(3 * PATCH * PATCH + D))
    params["prompts"] = jax.random.uniform(next(it), (1, NUM_PROMPTS, D), jnp.float32,
                                           minval=-val, maxval=val)
    blocks = []
    for _ in range(DEPTH):
        blocks.append({
            "ln1_w": jnp.ones((1, D), jnp.float32), "ln1_b": jnp.zeros((1, D), jnp.float32),
            "w_qkv": nrm((D, 3 * D)), "b_qkv": jnp.zeros((1, 3 * D), jnp.float32),
            "w_proj": nrm((D, D)), "b_proj": jnp.zeros((1, D), jnp.float32),
            "ln2_w": jnp.ones((1, D), jnp.float32), "ln2_b": jnp.zeros((1, D), jnp.float32),
            "w_fc1": nrm((D, MLP)), "b_fc1": jnp.zeros((1, MLP), jnp.float32),
            "w_fc2": nrm((MLP, D)), "b_fc2": jnp.zeros((1, D), jnp.float32),
        })
    params["blocks"] = blocks
    return params


# ----------------------------------- main --------------------------------------
if __name__ == "__main__":
    key = jax.random.PRNGKey(0)
    kx, kp = jax.random.split(key)
    x = jax.random.normal(kx, (B, C, IMG, IMG), jnp.float32)   # NCHW, like PyTorch
    params = init_params(kp)

    fwd = jax.jit(prompt_vit_forward)
    logits = jax.block_until_ready(fwd(x, params))

    assert logits.shape == (B, NUM_CLASSES), logits.shape
    assert bool(jnp.all(jnp.isfinite(logits)))
    print("KERNEL_OK")
</pallas_src>

<mosaic_0001>
module attributes {stable_mosaic.version = 11 : i64} {
  func.func @fused_vit_kernel(%arg0: memref<32x48xf32, #tpu.memory_space<vmem>>, %arg1: memref<36x36xf32, #tpu.memory_space<vmem>>, %arg2: memref<48x32xf32, #tpu.memory_space<vmem>>, %arg3: memref<1x32xf32, #tpu.memory_space<vmem>>, %arg4: memref<2x32xf32, #tpu.memory_space<vmem>>, %arg5: memref<16x32xf32, #tpu.memory_space<vmem>>, %arg6: memref<2x1x32xf32, #tpu.memory_space<vmem>>, %arg7: memref<2x1x32xf32, #tpu.memory_space<vmem>>, %arg8: memref<2x4x32x8xf32, #tpu.memory_space<vmem>>, %arg9: memref<2x4x32x8xf32, #tpu.memory_space<vmem>>, %arg10: memref<2x4x32x8xf32, #tpu.memory_space<vmem>>, %arg11: memref<2x4x1x8xf32, #tpu.memory_space<vmem>>, %arg12: memref<2x4x1x8xf32, #tpu.memory_space<vmem>>, %arg13: memref<2x4x1x8xf32, #tpu.memory_space<vmem>>, %arg14: memref<2x4x8x32xf32, #tpu.memory_space<vmem>>, %arg15: memref<2x1x32xf32, #tpu.memory_space<vmem>>, %arg16: memref<2x1x32xf32, #tpu.memory_space<vmem>>, %arg17: memref<2x1x32xf32, #tpu.memory_space<vmem>>, %arg18: memref<2x32x128xf32, #tpu.memory_space<vmem>>, %arg19: memref<2x1x128xf32, #tpu.memory_space<vmem>>, %arg20: memref<2x128x32xf32, #tpu.memory_space<vmem>>, %arg21: memref<2x1x32xf32, #tpu.memory_space<vmem>>, %arg22: memref<1x32xf32, #tpu.memory_space<vmem>>, %arg23: memref<1x32xf32, #tpu.memory_space<vmem>>, %arg24: memref<32x10xf32, #tpu.memory_space<vmem>>, %arg25: memref<1x10xf32, #tpu.memory_space<vmem>>, %arg26: memref<2x10xf32, #tpu.memory_space<vmem>>) attributes {dimension_semantics = [], scalar_prefetch = 0 : i64, scratch_operands = 0 : i64, tpu.core_type = #tpu.core_type<tc>} {
    %c0 = arith.constant 0 : index
    %c0_0 = arith.constant 0 : index
    %0 = vector.load %arg0[%c0, %c0_0] : memref<32x48xf32, #tpu.memory_space<vmem>>, vector<32x48xf32>
    %c0_1 = arith.constant 0 : index
    %c0_2 = arith.constant 0 : index
    %1 = vector.load %arg2[%c0_1, %c0_2] : memref<48x32xf32, #tpu.memory_space<vmem>>, vector<48x32xf32>
    %cst = arith.constant dense<0.000000e+00> : vector<32x32xf32>
    %2 = tpu.matmul %0, %1, %cst {dimension_numbers = #tpu.dot_dimension_numbers<[1], [0], [0], [1], [0, 0, 1, 1], [], []>} : vector<32x48xf32>, vector<48x32xf32>, vector<32x32xf32> -> vector<32x32xf32>
    %c0_3 = arith.constant 0 : index
    %c0_4 = arith.constant 0 : index
    %3 = vector.load %arg3[%c0_3, %c0_4] : memref<1x32xf32, #tpu.memory_space<vmem>>, vector<1x32xf32>
    %4 = vector.broadcast %3 : vector<1x32xf32> to vector<32x32xf32>
    %5 = arith.addf %2, %4 : vector<32x32xf32>
    %c0_5 = arith.constant 0 : index
    %c0_6 = arith.constant 0 : index
    %6 = vector.load %arg4[%c0_5, %c0_6] : memref<2x32xf32, #tpu.memory_space<vmem>>, vector<2x32xf32>
    %c0_7 = arith.constant 0 : index
    %c0_8 = arith.constant 0 : index
    %7 = vector.load %arg5[%c0_7, %c0_8] : memref<16x32xf32, #tpu.memory_space<vmem>>, vector<16x32xf32>
    %8 = vector.extract_strided_slice %5 {offsets = [0, 0], sizes = [16, 32], strides = [1, 1]} : vector<32x32xf32> to vector<16x32xf32>
    %9 = arith.addf %8, %7 : vector<16x32xf32>
    %10 = vector.extract_strided_slice %5 {offsets = [16, 0], sizes = [16, 32], strides = [1, 1]} : vector<32x32xf32> to vector<16x32xf32>
    %11 = arith.addf %10, %7 : vector<16x32xf32>
    %12 = tpu.concatenate %6, %9, %6, %11 in 0 : vector<2x32xf32>, vector<16x32xf32>, vector<2x32xf32>, vector<16x32xf32> -> vector<36x32xf32>
    %c0_9 = arith.constant 0 : index
    %c0_10 = arith.constant 0 : index
    %13 = vector.load %arg1[%c0_9, %c0_10] : memref<36x36xf32, #tpu.memory_space<vmem>>, vector<36x36xf32>
    %c0_11 = arith.constant 0 : index
    %c0_12 = arith.constant 0 : index
    %c0_13 = arith.constant 0 : index
    %14 = vector.load %arg6[%c0_11, %c0_12, %c0_13] : memref<2x1x32xf32, #tpu.memory_space<vmem>>, vector<1x1x32xf32>
    %15 = vector.shape_cast %14 : vector<1x1x32xf32> to vector<1x32xf32>
    %c0_14 = arith.constant 0 : index
    %c0_15 = arith.constant 0 : index
    %c0_16 = arith.constant 0 : index
    %16 = vector.load %arg7[%c0_14, %c0_15, %c0_16] : memref<2x1x32xf32, #tpu.memory_space<vmem>>, vector<1x1x32xf32>
    %17 = vector.shape_cast %16 : vector<1x1x32xf32> to vector<1x32xf32>
    %cst_17 = arith.constant dense<0.000000e+00> : vector<36xf32>
    %18 = vector.multi_reduction <add>, %12, %cst_17 [1] : vector<36x32xf32> to vector<36xf32>
    %19 = vector.shape_cast %18 : vector<36xf32> to vector<36x1xf32>
    %cst_18 = arith.constant 3.200000e+01 : f32
    %20 = vector.broadcast %cst_18 : f32 to vector<36x1xf32>
    %21 = arith.divf %19, %20 : vector<36x1xf32>
    %22 = vector.broadcast %21 : vector<36x1xf32> to vector<36x32xf32>
    %23 = arith.subf %12, %22 : vector<36x32xf32>
    %24 = arith.mulf %23, %23 : vector<36x32xf32>
    %cst_19 = arith.constant dense<0.000000e+00> : vector<36xf32>
    %25 = vector.multi_reduction <add>, %24, %cst_19 [1] : vector<36x32xf32> to vector<36xf32>
    %26 = vector.shape_cast %25 : vector<36xf32> to vector<36x1xf32>
    %cst_20 = arith.constant 3.200000e+01 : f32
    %27 = vector.broadcast %cst_20 : f32 to vector<36x1xf32>
    %28 = arith.divf %26, %27 : vector<36x1xf32>
    %cst_21 = arith.constant 9.99999997E-7 : f32
    %29 = vector.broadcast %cst_21 : f32 to vector<36x1xf32>
    %30 = arith.addf %28, %29 : vector<36x1xf32>
    %31 = math.rsqrt %30 : vector<36x1xf32>
    %32 = vector.broadcast %31 : vector<36x1xf32> to vector<36x32xf32>
    %33 = arith.mulf %23, %32 : vector<36x32xf32>
    %34 = vector.broadcast %15 : vector<1x32xf32> to vector<36x32xf32>
    %35 = arith.mulf %33, %34 : vector<36x32xf32>
    %36 = vector.broadcast %17 : vector<1x32xf32> to vector<36x32xf32>
    %37 = arith.addf %35, %36 : vector<36x32xf32>
    %cst_22 = arith.constant 0.000000e+00 : f32
    %38 = vector.broadcast %cst_22 : f32 to vector<36x32xf32>
    %c0_23 = arith.constant 0 : index
    %c0_24 = arith.constant 0 : index
    %c0_25 = arith.constant 0 : index
    %c0_26 = arith.constant 0 : index
    %39 = vector.load %arg8[%c0_23, %c0_24, %c0_25, %c0_26] : memref<2x4x32x8xf32, #tpu.memory_space<vmem>>, vector<1x1x32x8xf32>
    %40 = vector.shape_cast %39 : vector<1x1x32x8xf32> to vector<32x8xf32>
    %cst_27 = arith.constant dense<0.000000e+00> : vector<36x8xf32>
    %41 = tpu.matmul %37, %40, %cst_27 {dimension_numbers = #tpu.dot_dimension_numbers<[1], [0], [0], [1], [0, 0, 1, 1], [], []>} : vector<36x32xf32>, vector<32x8xf32>, vector<36x8xf32> -> vector<36x8xf32>
    %c0_28 = arith.constant 0 : index
    %c0_29 = arith.constant 0 : index
    %c0_30 = arith.constant 0 : index
    %c0_31 = arith.constant 0 : index
    %42 = vector.load %arg11[%c0_28, %c0_29, %c0_30, %c0_31] : memref<2x4x1x8xf32, #tpu.memory_space<vmem>>, vector<1x1x1x8xf32>
    %43 = vector.shape_cast %42 : vector<1x1x1x8xf32> to vector<1x8xf32>
    %44 = vector.broadcast %43 : vector<1x8xf32> to vector<36x8xf32>
    %45 = arith.addf %41, %44 : vector<36x8xf32>
    %cst_32 = arith.constant 0.353553385 : f32
    %46 = vector.broadcast %cst_32 : f32 to vector<36x8xf32>
    %47 = arith.mulf %45, %46 : vector<36x8xf32>
    %c0_33 = arith.constant 0 : index
    %c0_34 = arith.constant 0 : index
    %c0_35 = arith.constant 0 : index
    %c0_36 = arith.constant 0 : index
    %48 = vector.load %arg9[%c0_33, %c0_34, %c0_35, %c0_36] : memref<2x4x32x8xf32, #tpu.memory_space<vmem>>, vector<1x1x32x8xf32>
    %49 = vector.shape_cast %48 : vector<1x1x32x8xf32> to vector<32x8xf32>
    %cst_37 = arith.constant dense<0.000000e+00> : vector<36x8xf32>
    %50 = tpu.matmul %37, %49, %cst_37 {dimension_numbers = #tpu.dot_dimension_numbers<[1], [0], [0], [1], [0, 0, 1, 1], [], []>} : vector<36x32xf32>, vector<32x8xf32>, vector<36x8xf32> -> vector<36x8xf32>
    %c0_38 = arith.constant 0 : index
    %c0_39 = arith.constant 0 : index
    %c0_40 = arith.constant 0 : index
    %c0_41 = arith.constant 0 : index
    %51 = vector.load %arg12[%c0_38, %c0_39, %c0_40, %c0_41] : memref<2x4x1x8xf32, #tpu.memory_space<vmem>>, vector<1x1x1x8xf32>
    %52 = vector.shape_cast %51 : vector<1x1x1x8xf32> to vector<1x8xf32>
    %53 = vector.broadcast %52 : vector<1x8xf32> to vector<36x8xf32>
    %54 = arith.addf %50, %53 : vector<36x8xf32>
    %c0_42 = arith.constant 0 : index
    %c0_43 = arith.constant 0 : index
    %c0_44 = arith.constant 0 : index
    %c0_45 = arith.constant 0 : index
    %55 = vector.load %arg10[%c0_42, %c0_43, %c0_44, %c0_45] : memref<2x4x32x8xf32, #tpu.memory_space<vmem>>, vector<1x1x32x8xf32>
    %56 = vector.shape_cast %55 : vector<1x1x32x8xf32> to vector<32x8xf32>
    %cst_46 = arith.constant dense<0.000000e+00> : vector<36x8xf32>
    %57 = tpu.matmul %37, %56, %cst_46 {dimension_numbers = #tpu.dot_dimension_numbers<[1], [0], [0], [1], [0, 0, 1, 1], [], []>} : vector<36x32xf32>, vector<32x8xf32>, vector<36x8xf32> -> vector<36x8xf32>
    %c0_47 = arith.constant 0 : index
    %c0_48 = arith.constant 0 : index
    %c0_49 = arith.constant 0 : index
    %c0_50 = arith.constant 0 : index
    %58 = vector.load %arg13[%c0_47, %c0_48, %c0_49, %c0_50] : memref<2x4x1x8xf32, #tpu.memory_space<vmem>>, vector<1x1x1x8xf32>
    %59 = vector.shape_cast %58 : vector<1x1x1x8xf32> to vector<1x8xf32>
    %60 = vector.broadcast %59 : vector<1x8xf32> to vector<36x8xf32>
    %61 = arith.addf %57, %60 : vector<36x8xf32>
    %cst_51 = arith.constant dense<0.000000e+00> : vector<36x36xf32>
    %62 = tpu.matmul %47, %54, %cst_51 {dimension_numbers = #tpu.dot_dimension_numbers<[1], [1], [0], [0], [0, 0, 1, 0], [], []>} : vector<36x8xf32>, vector<36x8xf32>, vector<36x36xf32> -> vector<36x36xf32>
    %63 = arith.addf %62, %13 : vector<36x36xf32>
    %cst_52 = arith.constant dense<0xFF800000> : vector<36xf32>
    %64 = vector.multi_reduction <maximumf>, %63, %cst_52 [1] : vector<36x36xf32> to vector<36xf32>
    %65 = vector.shape_cast %64 : vector<36xf32> to vector<36x1xf32>
    %66 = vector.broadcast %65 : vector<36x1xf32> to vector<36x36xf32>
    %67 = arith.subf %63, %66 : vector<36x36xf32>
    %68 = math.exp %67 : vector<36x36xf32>
    %cst_53 = arith.constant dense<0.000000e+00> : vector<36xf32>
    %69 = vector.multi_reduction <add>, %68, %cst_53 [1] : vector<36x36xf32> to vector<36xf32>
    %70 = vector.shape_cast %69 : vector<36xf32> to vector<36x1xf32>
    %71 = tpu.reciprocal %70 {approx = true} : vector<36x1xf32> -> vector<36x1xf32>
    %72 = vector.broadcast %71 : vector<36x1xf32> to vector<36x36xf32>
    %73 = arith.mulf %68, %72 : vector<36x36xf32>
    %cst_54 = arith.constant dense<0.000000e+00> : vector<36x8xf32>
    %74 = tpu.matmul %73, %61, %cst_54 {dimension_numbers = #tpu.dot_dimension_numbers<[1], [0], [0], [1], [0, 0, 1, 1], [], []>} : vector<36x36xf32>, vector<36x8xf32>, vector<36x8xf32> -> vector<36x8xf32>
    %c0_55 = arith.constant 0 : index
    %c0_56 = arith.constant 0 : index
    %c0_57 = arith.constant 0 : index
    %c0_58 = arith.constant 0 : index
    %75 = vector.load %arg14[%c0_55, %c0_56, %c0_57, %c0_58] : memref<2x4x8x32xf32, #tpu.memory_space<vmem>>, vector<1x1x8x32xf32>
    %76 = vector.shape_cast %75 : vector<1x1x8x32xf32> to vector<8x32xf32>
    %cst_59 = arith.constant dense<0.000000e+00> : vector<36x32xf32>
    %77 = tpu.matmul %74, %76, %cst_59 {dimension_numbers = #tpu.dot_dimension_numbers<[1], [0], [0], [1], [0, 0, 1, 1], [], []>} : vector<36x8xf32>, vector<8x32xf32>, vector<36x32xf32> -> vector<36x32xf32>
    %78 = arith.addf %38, %77 : vector<36x32xf32>
    %c0_60 = arith.constant 0 : index
    %c1 = arith.constant 1 : index
    %c0_61 = arith.constant 0 : index
    %c0_62 = arith.constant 0 : index
    %79 = vector.load %arg8[%c0_60, %c1, %c0_61, %c0_62] : memref<2x4x32x8xf32, #tpu.memory_space<vmem>>, vector<1x1x32x8xf32>
    %80 = vector.shape_cast %79 : vector<1x1x32x8xf32> to vector<32x8xf32>
    %cst_63 = arith.constant dense<0.000000e+00> : vector<36x8xf32>
    %81 = tpu.matmul %37, %80, %cst_63 {dimension_numbers = #tpu.dot_dimension_numbers<[1], [0], [0], [1], [0, 0, 1, 1], [], []>} : vector<36x32xf32>, vector<32x8xf32>, vector<36x8xf32> -> vector<36x8xf32>
    %c0_64 = arith.constant 0 : index
    %c1_65 = arith.constant 1 : index
    %c0_66 = arith.constant 0 : index
    %c0_67 = arith.constant 0 : index
    %82 = vector.load %arg11[%c0_64, %c1_65, %c0_66, %c0_67] : memref<2x4x1x8xf32, #tpu.memory_space<vmem>>, vector<1x1x1x8xf32>
    %83 = vector.shape_cast %82 : vector<1x1x1x8xf32> to vector<1x8xf32>
    %84 = vector.broadcast %83 : vector<1x8xf32> to vector<36x8xf32>
    %85 = arith.addf %81, %84 : vector<36x8xf32>
    %cst_68 = arith.constant 0.353553385 : f32
    %86 = vector.broadcast %cst_68 : f32 to vector<36x8xf32>
    %87 = arith.mulf %85, %86 : vector<36x8xf32>
    %c0_69 = arith.constant 0 : index
    %c1_70 = arith.constant 1 : index
    %c0_71 = arith.constant 0 : index
    %c0_72 = arith.constant 0 : index
    %88 = vector.load %arg9[%c0_69, %c1_70, %c0_71, %c0_72] : memref<2x4x32x8xf32, #tpu.memory_space<vmem>>, vector<1x1x32x8xf32>
    %89 = vector.shape_cast %88 : vector<1x1x32x8xf32> to vector<32x8xf32>
    %cst_73 = arith.constant dense<0.000000e+00> : vector<36x8xf32>
    %90 = tpu.matmul %37, %89, %cst_73 {dimension_numbers = #tpu.dot_dimension_numbers<[1], [0], [0], [1], [0, 0, 1, 1], [], []>} : vector<36x32xf32>, vector<32x8xf32>, vector<36x8xf32> -> vector<36x8xf32>
    %c0_74 = arith.constant 0 : index
    %c1_75 = arith.constant 1 : index
    %c0_76 = arith.constant 0 : index
    %c0_77 = arith.constant 0 : index
    %91 = vector.load %arg12[%c0_74, %c1_75, %c0_76, %c0_77] : memref<2x4x1x8xf32, #tpu.memory_space<vmem>>, vector<1x1x1x8xf32>
    %92 = vector.shape_cast %91 : vector<1x1x1x8xf32> to vector<1x8xf32>
    %93 = vector.broadcast %92 : vector<1x8xf32> to vector<36x8xf32>
    %94 = arith.addf %90, %93 : vector<36x8xf32>
    %c0_78 = arith.constant 0 : index
    %c1_79 = arith.constant 1 : index
    %c0_80 = arith.constant 0 : index
    %c0_81 = arith.constant 0 : index
    %95 = vector.load %arg10[%c0_78, %c1_79, %c0_80, %c0_81] : memref<2x4x32x8xf32, #tpu.memory_space<vmem>>, vector<1x1x32x8xf32>
    %96 = vector.shape_cast %95 : vector<1x1x32x8xf32> to vector<32x8xf32>
    %cst_82 = arith.constant dense<0.000000e+00> : vector<36x8xf32>
    %97 = tpu.matmul %37, %96, %cst_82 {dimension_numbers = #tpu.dot_dimension_numbers<[1], [0], [0], [1], [0, 0, 1, 1], [], []>} : vector<36x32xf32>, vector<32x8xf32>, vector<36x8xf32> -> vector<36x8xf32>
    %c0_83 = arith.constant 0 : index
    %c1_84 = arith.constant 1 : index
    %c0_85 = arith.constant 0 : index
    %c0_86 = arith.constant 0 : index
    %98 = vector.load %arg13[%c0_83, %c1_84, %c0_85, %c0_86] : memref<2x4x1x8xf32, #tpu.memory_space<vmem>>, vector<1x1x1x8xf32>
    %99 = vector.shape_cast %98 : vector<1x1x1x8xf32> to vector<1x8xf32>
    %100 = vector.broadcast %99 : vector<1x8xf32> to vector<36x8xf32>
    %101 = arith.addf %97, %100 : vector<36x8xf32>
    %cst_87 = arith.constant dense<0.000000e+00> : vector<36x36xf32>
    %102 = tpu.matmul %87, %94, %cst_87 {dimension_numbers = #tpu.dot_dimension_numbers<[1], [1], [0], [0], [0, 0, 1, 0], [], []>} : vector<36x8xf32>, vector<36x8xf32>, vector<36x36xf32> -> vector<36x36xf32>
    %103 = arith.addf %102, %13 : vector<36x36xf32>
    %cst_88 = arith.constant dense<0xFF800000> : vector<36xf32>
    %104 = vector.multi_reduction <maximumf>, %103, %cst_88 [1] : vector<36x36xf32> to vector<36xf32>
    %105 = vector.shape_cast %104 : vector<36xf32> to vector<36x1xf32>
    %106 = vector.broadcast %105 : vector<36x1xf32> to vector<36x36xf32>
    %107 = arith.subf %103, %106 : vector<36x36xf32>
    %108 = math.exp %107 : vector<36x36xf32>
    %cst_89 = arith.constant dense<0.000000e+00> : vector<36xf32>
    %109 = vector.multi_reduction <add>, %108, %cst_89 [1] : vector<36x36xf32> to vector<36xf32>
    %110 = vector.shape_cast %109 : vector<36xf32> to vector<36x1xf32>
    %111 = tpu.reciprocal %110 {approx = true} : vector<36x1xf32> -> vector<36x1xf32>
    %112 = vector.broadcast %111 : vector<36x1xf32> to vector<36x36xf32>
    %113 = arith.mulf %108, %112 : vector<36x36xf32>
    %cst_90 = arith.constant dense<0.000000e+00> : vector<36x8xf32>
    %114 = tpu.matmul %113, %101, %cst_90 {dimension_numbers = #tpu.dot_dimension_numbers<[1], [0], [0], [1], [0, 0, 1, 1], [], []>} : vector<36x36xf32>, vector<36x8xf32>, vector<36x8xf32> -> vector<36x8xf32>
    %c0_91 = arith.constant 0 : index
    %c1_92 = arith.constant 1 : index
    %c0_93 = arith.constant 0 : index
    %c0_94 = arith.constant 0 : index
    %115 = vector.load %arg14[%c0_91, %c1_92, %c0_93, %c0_94] : memref<2x4x8x32xf32, #tpu.memory_space<vmem>>, vector<1x1x8x32xf32>
    %116 = vector.shape_cast %115 : vector<1x1x8x32xf32> to vector<8x32xf32>
    %cst_95 = arith.constant dense<0.000000e+00> : vector<36x32xf32>
    %117 = tpu.matmul %114, %116, %cst_95 {dimension_numbers = #tpu.dot_dimension_numbers<[1], [0], [0], [1], [0, 0, 1, 1], [], []>} : vector<36x8xf32>, vector<8x32xf32>, vector<36x32xf32> -> vector<36x32xf32>
    %118 = arith.addf %78, %117 : vector<36x32xf32>
    %c0_96 = arith.constant 0 : index
    %c2 = arith.constant 2 : index
    %c0_97 = arith.constant 0 : index
    %c0_98 = arith.constant 0 : index
    %119 = vector.load %arg8[%c0_96, %c2, %c0_97, %c0_98] : memref<2x4x32x8xf32, #tpu.memory_space<vmem>>, vector<1x1x32x8xf32>
    %120 = vector.shape_cast %119 : vector<1x1x32x8xf32> to vector<32x8xf32>
    %cst_99 = arith.constant dense<0.000000e+00> : vector<36x8xf32>
    %121 = tpu.matmul %37, %120, %cst_99 {dimension_numbers = #tpu.dot_dimension_numbers<[1], [0], [0], [1], [0, 0, 1, 1], [], []>} : vector<36x32xf32>, vector<32x8xf32>, vector<36x8xf32> -> vector<36x8xf32>
    %c0_100 = arith.constant 0 : index
    %c2_101 = arith.constant 2 : index
    %c0_102 = arith.constant 0 : index
    %c0_103 = arith.constant 0 : index
    %122 = vector.load %arg11[%c0_100, %c2_101, %c0_102, %c0_103] : memref<2x4x1x8xf32, #tpu.memory_space<vmem>>, vector<1x1x1x8xf32>
    %123 = vector.shape_cast %122 : vector<1x1x1x8xf32> to vector<1x8xf32>
    %124 = vector.broadcast %123 : vector<1x8xf32> to vector<36x8xf32>
    %125 = arith.addf %121, %124 : vector<36x8xf32>
    %cst_104 = arith.constant 0.353553385 : f32
    %126 = vector.broadcast %cst_104 : f32 to vector<36x8xf32>
    %127 = arith.mulf %125, %126 : vector<36x8xf32>
    %c0_105 = arith.constant 0 : index
    %c2_106 = arith.constant 2 : index
    %c0_107 = arith.constant 0 : index
    %c0_108 = arith.constant 0 : index
    %128 = vector.load %arg9[%c0_105, %c2_106, %c0_107, %c0_108] : memref<2x4x32x8xf32, #tpu.memory_space<vmem>>, vector<1x1x32x8xf32>
    %129 = vector.shape_cast %128 : vector<1x1x32x8xf32> to vector<32x8xf32>
    %cst_109 = arith.constant dense<0.000000e+00> : vector<36x8xf32>
    %130 = tpu.matmul %37, %129, %cst_109 {dimension_numbers = #tpu.dot_dimension_numbers<[1], [0], [0], [1], [0, 0, 1, 1], [], []>} : vector<36x32xf32>, vector<32x8xf32>, vector<36x8xf32> -> vector<36x8xf32>
    %c0_110 = arith.constant 0 : index
    %c2_111 = arith.constant 2 : index
    %c0_112 = arith.constant 0 : index
    %c0_113 = arith.constant 0 : index
    %131 = vector.load %arg12[%c0_110, %c2_111, %c0_112, %c0_113] : memref<2x4x1x8xf32, #tpu.memory_space<vmem>>, vector<1x1x1x8xf32>
    %132 = vector.shape_cast %131 : vector<1x1x1x8xf32> to vector<1x8xf32>
    %133 = vector.broadcast %132 : vector<1x8xf32> to vector<36x8xf32>
    %134 = arith.addf %130, %133 : vector<36x8xf32>
    %c0_114 = arith.constant 0 : index
    %c2_115 = arith.constant 2 : index
    %c0_116 = arith.constant 0 : index
    %c0_117 = arith.constant 0 : index
    %135 = vector.load %arg10[%c0_114, %c2_115, %c0_116, %c0_117] : memref<2x4x32x8xf32, #tpu.memory_space<vmem>>, vector<1x1x32x8xf32>
    %136 = vector.shape_cast %135 : vector<1x1x32x8xf32> to vector<32x8xf32>
    %cst_118 = arith.constant dense<0.000000e+00> : vector<36x8xf32>
    %137 = tpu.matmul %37, %136, %cst_118 {dimension_numbers = #tpu.dot_dimension_numbers<[1], [0], [0], [1], [0, 0, 1, 1], [], []>} : vector<36x32xf32>, vector<32x8xf32>, vector<36x8xf32> -> vector<36x8xf32>
    %c0_119 = arith.constant 0 : index
    %c2_120 = arith.constant 2 : index
    %c0_121 = arith.constant 0 : index
    %c0_122 = arith.constant 0 : index
    %138 = vector.load %arg13[%c0_119, %c2_120, %c0_121, %c0_122] : memref<2x4x1x8xf32, #tpu.memory_space<vmem>>, vector<1x1x1x8xf32>
    %139 = vector.shape_cast %138 : vector<1x1x1x8xf32> to vector<1x8xf32>
    %140 = vector.broadcast %139 : vector<1x8xf32> to vector<36x8xf32>
    %141 = arith.addf %137, %140 : vector<36x8xf32>
    %cst_123 = arith.constant dense<0.000000e+00> : vector<36x36xf32>
    %142 = tpu.matmul %127, %134, %cst_123 {dimension_numbers = #tpu.dot_dimension_numbers<[1], [1], [0], [0], [0, 0, 1, 0], [], []>} : vector<36x8xf32>, vector<36x8xf32>, vector<36x36xf32> -> vector<36x36xf32>
    %143 = arith.addf %142, %13 : vector<36x36xf32>
    %cst_124 = arith.constant dense<0xFF800000> : vector<36xf32>
    %144 = vector.multi_reduction <maximumf>, %143, %cst_124 [1] : vector<36x36xf32> to vector<36xf32>
    %145 = vector.shape_cast %144 : vector<36xf32> to vector<36x1xf32>
    %146 = vector.broadcast %145 : vector<36x1xf32> to vector<36x36xf32>
    %147 = arith.subf %143, %146 : vector<36x36xf32>
    %148 = math.exp %147 : vector<36x36xf32>
    %cst_125 = arith.constant dense<0.000000e+00> : vector<36xf32>
    %149 = vector.multi_reduction <add>, %148, %cst_125 [1] : vector<36x36xf32> to vector<36xf32>
    %150 = vector.shape_cast %149 : vector<36xf32> to vector<36x1xf32>
    %151 = tpu.reciprocal %150 {approx = true} : vector<36x1xf32> -> vector<36x1xf32>
    %152 = vector.broadcast %151 : vector<36x1xf32> to vector<36x36xf32>
    %153 = arith.mulf %148, %152 : vector<36x36xf32>
    %cst_126 = arith.constant dense<0.000000e+00> : vector<36x8xf32>
    %154 = tpu.matmul %153, %141, %cst_126 {dimension_numbers = #tpu.dot_dimension_numbers<[1], [0], [0], [1], [0, 0, 1, 1], [], []>} : vector<36x36xf32>, vector<36x8xf32>, vector<36x8xf32> -> vector<36x8xf32>
    %c0_127 = arith.constant 0 : index
    %c2_128 = arith.constant 2 : index
    %c0_129 = arith.constant 0 : index
    %c0_130 = arith.constant 0 : index
    %155 = vector.load %arg14[%c0_127, %c2_128, %c0_129, %c0_130] : memref<2x4x8x32xf32, #tpu.memory_space<vmem>>, vector<1x1x8x32xf32>
    %156 = vector.shape_cast %155 : vector<1x1x8x32xf32> to vector<8x32xf32>
    %cst_131 = arith.constant dense<0.000000e+00> : vector<36x32xf32>
    %157 = tpu.matmul %154, %156, %cst_131 {dimension_numbers = #tpu.dot_dimension_numbers<[1], [0], [0], [1], [0, 0, 1, 1], [], []>} : vector<36x8xf32>, vector<8x32xf32>, vector<36x32xf32> -> vector<36x32xf32>
    %158 = arith.addf %118, %157 : vector<36x32xf32>
    %c0_132 = arith.constant 0 : index
    %c3 = arith.constant 3 : index
    %c0_133 = arith.constant 0 : index
    %c0_134 = arith.constant 0 : index
    %159 = vector.load %arg8[%c0_132, %c3, %c0_133, %c0_134] : memref<2x4x32x8xf32, #tpu.memory_space<vmem>>, vector<1x1x32x8xf32>
    %160 = vector.shape_cast %159 : vector<1x1x32x8xf32> to vector<32x8xf32>
    %cst_135 = arith.constant dense<0.000000e+00> : vector<36x8xf32>
    %161 = tpu.matmul %37, %160, %cst_135 {dimension_numbers = #tpu.dot_dimension_numbers<[1], [0], [0], [1], [0, 0, 1, 1], [], []>} : vector<36x32xf32>, vector<32x8xf32>, vector<36x8xf32> -> vector<36x8xf32>
    %c0_136 = arith.constant 0 : index
    %c3_137 = arith.constant 3 : index
    %c0_138 = arith.constant 0 : index
    %c0_139 = arith.constant 0 : index
    %162 = vector.load %arg11[%c0_136, %c3_137, %c0_138, %c0_139] : memref<2x4x1x8xf32, #tpu.memory_space<vmem>>, vector<1x1x1x8xf32>
    %163 = vector.shape_cast %162 : vector<1x1x1x8xf32> to vector<1x8xf32>
    %164 = vector.broadcast %163 : vector<1x8xf32> to vector<36x8xf32>
    %165 = arith.addf %161, %164 : vector<36x8xf32>
    %cst_140 = arith.constant 0.353553385 : f32
    %166 = vector.broadcast %cst_140 : f32 to vector<36x8xf32>
    %167 = arith.mulf %165, %166 : vector<36x8xf32>
    %c0_141 = arith.constant 0 : index
    %c3_142 = arith.constant 3 : index
    %c0_143 = arith.constant 0 : index
    %c0_144 = arith.constant 0 : index
    %168 = vector.load %arg9[%c0_141, %c3_142, %c0_143, %c0_144] : memref<2x4x32x8xf32, #tpu.memory_space<vmem>>, vector<1x1x32x8xf32>
    %169 = vector.shape_cast %168 : vector<1x1x32x8xf32> to vector<32x8xf32>
    %cst_145 = arith.constant dense<0.000000e+00> : vector<36x8xf32>
    %170 = tpu.matmul %37, %169, %cst_145 {dimension_numbers = #tpu.dot_dimension_numbers<[1], [0], [0], [1], [0, 0, 1, 1], [], []>} : vector<36x32xf32>, vector<32x8xf32>, vector<36x8xf32> -> vector<36x8xf32>
    %c0_146 = arith.constant 0 : index
    %c3_147 = arith.constant 3 : index
    %c0_148 = arith.constant 0 : index
    %c0_149 = arith.constant 0 : index
    %171 = vector.load %arg12[%c0_146, %c3_147, %c0_148, %c0_149] : memref<2x4x1x8xf32, #tpu.memory_space<vmem>>, vector<1x1x1x8xf32>
    %172 = vector.shape_cast %171 : vector<1x1x1x8xf32> to vector<1x8xf32>
    %173 = vector.broadcast %172 : vector<1x8xf32> to vector<36x8xf32>
    %174 = arith.addf %170, %173 : vector<36x8xf32>
    %c0_150 = arith.constant 0 : index
    %c3_151 = arith.constant 3 : index
    %c0_152 = arith.constant 0 : index
    %c0_153 = arith.constant 0 : index
    %175 = vector.load %arg10[%c0_150, %c3_151, %c0_152, %c0_153] : memref<2x4x32x8xf32, #tpu.memory_space<vmem>>, vector<1x1x32x8xf32>
    %176 = vector.shape_cast %175 : vector<1x1x32x8xf32> to vector<32x8xf32>
    %cst_154 = arith.constant dense<0.000000e+00> : vector<36x8xf32>
    %177 = tpu.matmul %37, %176, %cst_154 {dimension_numbers = #tpu.dot_dimension_numbers<[1], [0], [0], [1], [0, 0, 1, 1], [], []>} : vector<36x32xf32>, vector<32x8xf32>, vector<36x8xf32> -> vector<36x8xf32>
    %c0_155 = arith.constant 0 : index
    %c3_156 = arith.constant 3 : index
    %c0_157 = arith.constant 0 : index
    %c0_158 = arith.constant 0 : index
    %178 = vector.load %arg13[%c0_155, %c3_156, %c0_157, %c0_158] : memref<2x4x1x8xf32, #tpu.memory_space<vmem>>, vector<1x1x1x8xf32>
    %179 = vector.shape_cast %178 : vector<1x1x1x8xf32> to vector<1x8xf32>
    %180 = vector.broadcast %179 : vector<1x8xf32> to vector<36x8xf32>
    %181 = arith.addf %177, %180 : vector<36x8xf32>
    %cst_159 = arith.constant dense<0.000000e+00> : vector<36x36xf32>
    %182 = tpu.matmul %167, %174, %cst_159 {dimension_numbers = #tpu.dot_dimension_numbers<[1], [1], [0], [0], [0, 0, 1, 0], [], []>} : vector<36x8xf32>, vector<36x8xf32>, vector<36x36xf32> -> vector<36x36xf32>
    %183 = arith.addf %182, %13 : vector<36x36xf32>
    %cst_160 = arith.constant dense<0xFF800000> : vector<36xf32>
    %184 = vector.multi_reduction <maximumf>, %183, %cst_160 [1] : vector<36x36xf32> to vector<36xf32>
    %185 = vector.shape_cast %184 : vector<36xf32> to vector<36x1xf32>
    %186 = vector.broadcast %185 : vector<36x1xf32> to vector<36x36xf32>
    %187 = arith.subf %183, %186 : vector<36x36xf32>
    %188 = math.exp %187 : vector<36x36xf32>
    %cst_161 = arith.constant dense<0.000000e+00> : vector<36xf32>
    %189 = vector.multi_reduction <add>, %188, %cst_161 [1] : vector<36x36xf32> to vector<36xf32>
    %190 = vector.shape_cast %189 : vector<36xf32> to vector<36x1xf32>
    %191 = tpu.reciprocal %190 {approx = true} : vector<36x1xf32> -> vector<36x1xf32>
    %192 = vector.broadcast %191 : vector<36x1xf32> to vector<36x36xf32>
    %193 = arith.mulf %188, %192 : vector<36x36xf32>
    %cst_162 = arith.constant dense<0.000000e+00> : vector<36x8xf32>
    %194 = tpu.matmul %193, %181, %cst_162 {dimension_numbers = #tpu.dot_dimension_numbers<[1], [0], [0], [1], [0, 0, 1, 1], [], []>} : vector<36x36xf32>, vector<36x8xf32>, vector<36x8xf32> -> vector<36x8xf32>
    %c0_163 = arith.constant 0 : index
    %c3_164 = arith.constant 3 : index
    %c0_165 = arith.constant 0 : index
    %c0_166 = arith.constant 0 : index
    %195 = vector.load %arg14[%c0_163, %c3_164, %c0_165, %c0_166] : memref<2x4x8x32xf32, #tpu.memory_space<vmem>>, vector<1x1x8x32xf32>
    %196 = vector.shape_cast %195 : vector<1x1x8x32xf32> to vector<8x32xf32>
    %cst_167 = arith.constant dense<0.000000e+00> : vector<36x32xf32>
    %197 = tpu.matmul %194, %196, %cst_167 {dimension_numbers = #tpu.dot_dimension_numbers<[1], [0], [0], [1], [0, 0, 1, 1], [], []>} : vector<36x8xf32>, vector<8x32xf32>, vector<36x32xf32> -> vector<36x32xf32>
    %198 = arith.addf %158, %197 : vector<36x32xf32>
    %199 = arith.addf %12, %198 : vector<36x32xf32>
    %c0_168 = arith.constant 0 : index
    %c0_169 = arith.constant 0 : index
    %c0_170 = arith.constant 0 : index
    %200 = vector.load %arg15[%c0_168, %c0_169, %c0_170] : memref<2x1x32xf32, #tpu.memory_space<vmem>>, vector<1x1x32xf32>
    %201 = vector.shape_cast %200 : vector<1x1x32xf32> to vector<1x32xf32>
    %202 = vector.broadcast %201 : vector<1x32xf32> to vector<36x32xf32>
    %203 = arith.addf %199, %202 : vector<36x32xf32>
    %c0_171 = arith.constant 0 : index
    %c0_172 = arith.constant 0 : index
    %c0_173 = arith.constant 0 : index
    %204 = vector.load %arg16[%c0_171, %c0_172, %c0_173] : memref<2x1x32xf32, #tpu.memory_space<vmem>>, vector<1x1x32xf32>
    %205 = vector.shape_cast %204 : vector<1x1x32xf32> to vector<1x32xf32>
    %c0_174 = arith.constant 0 : index
    %c0_175 = arith.constant 0 : index
    %c0_176 = arith.constant 0 : index
    %206 = vector.load %arg17[%c0_174, %c0_175, %c0_176] : memref<2x1x32xf32, #tpu.memory_space<vmem>>, vector<1x1x32xf32>
    %207 = vector.shape_cast %206 : vector<1x1x32xf32> to vector<1x32xf32>
    %cst_177 = arith.constant dense<0.000000e+00> : vector<36xf32>
    %208 = vector.multi_reduction <add>, %203, %cst_177 [1] : vector<36x32xf32> to vector<36xf32>
    %209 = vector.shape_cast %208 : vector<36xf32> to vector<36x1xf32>
    %cst_178 = arith.constant 3.200000e+01 : f32
    %210 = vector.broadcast %cst_178 : f32 to vector<36x1xf32>
    %211 = arith.divf %209, %210 : vector<36x1xf32>
    %212 = vector.broadcast %211 : vector<36x1xf32> to vector<36x32xf32>
    %213 = arith.subf %203, %212 : vector<36x32xf32>
    %214 = arith.mulf %213, %213 : vector<36x32xf32>
    %cst_179 = arith.constant dense<0.000000e+00> : vector<36xf32>
    %215 = vector.multi_reduction <add>, %214, %cst_179 [1] : vector<36x32xf32> to vector<36xf32>
    %216 = vector.shape_cast %215 : vector<36xf32> to vector<36x1xf32>
    %cst_180 = arith.constant 3.200000e+01 : f32
    %217 = vector.broadcast %cst_180 : f32 to vector<36x1xf32>
    %218 = arith.divf %216, %217 : vector<36x1xf32>
    %cst_181 = arith.constant 9.99999997E-7 : f32
    %219 = vector.broadcast %cst_181 : f32 to vector<36x1xf32>
    %220 = arith.addf %218, %219 : vector<36x1xf32>
    %221 = math.rsqrt %220 : vector<36x1xf32>
    %222 = vector.broadcast %221 : vector<36x1xf32> to vector<36x32xf32>
    %223 = arith.mulf %213, %222 : vector<36x32xf32>
    %224 = vector.broadcast %205 : vector<1x32xf32> to vector<36x32xf32>
    %225 = arith.mulf %223, %224 : vector<36x32xf32>
    %226 = vector.broadcast %207 : vector<1x32xf32> to vector<36x32xf32>
    %227 = arith.addf %225, %226 : vector<36x32xf32>
    %c0_182 = arith.constant 0 : index
    %c0_183 = arith.constant 0 : index
    %c0_184 = arith.constant 0 : index
    %228 = vector.load %arg18[%c0_182, %c0_183, %c0_184] : memref<2x32x128xf32, #tpu.memory_space<vmem>>, vector<1x32x128xf32>
    %229 = vector.shape_cast %228 : vector<1x32x128xf32> to vector<32x128xf32>
    %cst_185 = arith.constant dense<0.000000e+00> : vector<36x128xf32>
    %230 = tpu.matmul %227, %229, %cst_185 {dimension_numbers = #tpu.dot_dimension_numbers<[1], [0], [0], [1], [0, 0, 1, 1], [], []>} : vector<36x32xf32>, vector<32x128xf32>, vector<36x128xf32> -> vector<36x128xf32>
    %c0_186 = arith.constant 0 : index
    %c0_187 = arith.constant 0 : index
    %c0_188 = arith.constant 0 : index
    %231 = vector.load %arg19[%c0_186, %c0_187, %c0_188] : memref<2x1x128xf32, #tpu.memory_space<vmem>>, vector<1x1x128xf32>
    %232 = vector.shape_cast %231 : vector<1x1x128xf32> to vector<1x128xf32>
    %233 = vector.broadcast %232 : vector<1x128xf32> to vector<36x128xf32>
    %234 = arith.addf %230, %233 : vector<36x128xf32>
    %cst_189 = arith.constant 5.000000e-01 : f32
    %235 = vector.broadcast %cst_189 : f32 to vector<36x128xf32>
    %236 = arith.mulf %235, %234 : vector<36x128xf32>
    %cst_190 = arith.constant 4.471500e-02 : f32
    %237 = vector.broadcast %cst_190 : f32 to vector<36x128xf32>
    %238 = arith.mulf %237, %234 : vector<36x128xf32>
    %239 = arith.mulf %238, %234 : vector<36x128xf32>
    %240 = arith.mulf %239, %234 : vector<36x128xf32>
    %241 = arith.addf %234, %240 : vector<36x128xf32>
    %cst_191 = arith.constant 0.797884583 : f32
    %242 = vector.broadcast %cst_191 : f32 to vector<36x128xf32>
    %243 = arith.mulf %242, %241 : vector<36x128xf32>
    %244 = math.tanh %243 : vector<36x128xf32>
    %cst_192 = arith.constant 1.000000e+00 : f32
    %245 = vector.broadcast %cst_192 : f32 to vector<36x128xf32>
    %246 = arith.addf %245, %244 : vector<36x128xf32>
    %247 = arith.mulf %236, %246 : vector<36x128xf32>
    %c0_193 = arith.constant 0 : index
    %c0_194 = arith.constant 0 : index
    %c0_195 = arith.constant 0 : index
    %248 = vector.load %arg20[%c0_193, %c0_194, %c0_195] : memref<2x128x32xf32, #tpu.memory_space<vmem>>, vector<1x128x32xf32>
    %249 = vector.shape_cast %248 : vector<1x128x32xf32> to vector<128x32xf32>
    %cst_196 = arith.constant dense<0.000000e+00> : vector<36x32xf32>
    %250 = tpu.matmul %247, %249, %cst_196 {dimension_numbers = #tpu.dot_dimension_numbers<[1], [0], [0], [1], [0, 0, 1, 1], [], []>} : vector<36x128xf32>, vector<128x32xf32>, vector<36x32xf32> -> vector<36x32xf32>
    %c0_197 = arith.constant 0 : index
    %c0_198 = arith.constant 0 : index
    %c0_199 = arith.constant 0 : index
    %251 = vector.load %arg21[%c0_197, %c0_198, %c0_199] : memref<2x1x32xf32, #tpu.memory_space<vmem>>, vector<1x1x32xf32>
    %252 = vector.shape_cast %251 : vector<1x1x32xf32> to vector<1x32xf32>
    %253 = vector.broadcast %252 : vector<1x32xf32> to vector<36x32xf32>
    %254 = arith.addf %250, %253 : vector<36x32xf32>
    %255 = arith.addf %203, %254 : vector<36x32xf32>
    %c1_200 = arith.constant 1 : index
    %c0_201 = arith.constant 0 : index
    %c0_202 = arith.constant 0 : index
    %256 = vector.load %arg6[%c1_200, %c0_201, %c0_202] : memref<2x1x32xf32, #tpu.memory_space<vmem>>, vector<1x1x32xf32>
    %257 = vector.shape_cast %256 : vector<1x1x32xf32> to vector<1x32xf32>
    %c1_203 = arith.constant 1 : index
    %c0_204 = arith.constant 0 : index
    %c0_205 = arith.constant 0 : index
    %258 = vector.load %arg7[%c1_203, %c0_204, %c0_205] : memref<2x1x32xf32, #tpu.memory_space<vmem>>, vector<1x1x32xf32>
    %259 = vector.shape_cast %258 : vector<1x1x32xf32> to vector<1x32xf32>
    %cst_206 = arith.constant dense<0.000000e+00> : vector<36xf32>
    %260 = vector.multi_reduction <add>, %255, %cst_206 [1] : vector<36x32xf32> to vector<36xf32>
    %261 = vector.shape_cast %260 : vector<36xf32> to vector<36x1xf32>
    %cst_207 = arith.constant 3.200000e+01 : f32
    %262 = vector.broadcast %cst_207 : f32 to vector<36x1xf32>
    %263 = arith.divf %261, %262 : vector<36x1xf32>
    %264 = vector.broadcast %263 : vector<36x1xf32> to vector<36x32xf32>
    %265 = arith.subf %255, %264 : vector<36x32xf32>
    %266 = arith.mulf %265, %265 : vector<36x32xf32>
    %cst_208 = arith.constant dense<0.000000e+00> : vector<36xf32>
    %267 = vector.multi_reduction <add>, %266, %cst_208 [1] : vector<36x32xf32> to vector<36xf32>
    %268 = vector.shape_cast %267 : vector<36xf32> to vector<36x1xf32>
    %cst_209 = arith.constant 3.200000e+01 : f32
    %269 = vector.broadcast %cst_209 : f32 to vector<36x1xf32>
    %270 = arith.divf %268, %269 : vector<36x1xf32>
    %cst_210 = arith.constant 9.99999997E-7 : f32
    %271 = vector.broadcast %cst_210 : f32 to vector<36x1xf32>
    %272 = arith.addf %270, %271 : vector<36x1xf32>
    %273 = math.rsqrt %272 : vector<36x1xf32>
    %274 = vector.broadcast %273 : vector<36x1xf32> to vector<36x32xf32>
    %275 = arith.mulf %265, %274 : vector<36x32xf32>
    %276 = vector.broadcast %257 : vector<1x32xf32> to vector<36x32xf32>
    %277 = arith.mulf %275, %276 : vector<36x32xf32>
    %278 = vector.broadcast %259 : vector<1x32xf32> to vector<36x32xf32>
    %279 = arith.addf %277, %278 : vector<36x32xf32>
    %cst_211 = arith.constant 0.000000e+00 : f32
    %280 = vector.broadcast %cst_211 : f32 to vector<36x32xf32>
    %c1_212 = arith.constant 1 : index
    %c0_213 = arith.constant 0 : index
    %c0_214 = arith.constant 0 : index
    %c0_215 = arith.constant 0 : index
    %281 = vector.load %arg8[%c1_212, %c0_213, %c0_214, %c0_215] : memref<2x4x32x8xf32, #tpu.memory_space<vmem>>, vector<1x1x32x8xf32>
    %282 = vector.shape_cast %281 : vector<1x1x32x8xf32> to vector<32x8xf32>
    %cst_216 = arith.constant dense<0.000000e+00> : vector<36x8xf32>
    %283 = tpu.matmul %279, %282, %cst_216 {dimension_numbers = #tpu.dot_dimension_numbers<[1], [0], [0], [1], [0, 0, 1, 1], [], []>} : vector<36x32xf32>, vector<32x8xf32>, vector<36x8xf32> -> vector<36x8xf32>
    %c1_217 = arith.constant 1 : index
    %c0_218 = arith.constant 0 : index
    %c0_219 = arith.constant 0 : index
    %c0_220 = arith.constant 0 : index
    %284 = vector.load %arg11[%c1_217, %c0_218, %c0_219, %c0_220] : memref<2x4x1x8xf32, #tpu.memory_space<vmem>>, vector<1x1x1x8xf32>
    %285 = vector.shape_cast %284 : vector<1x1x1x8xf32> to vector<1x8xf32>
    %286 = vector.broadcast %285 : vector<1x8xf32> to vector<36x8xf32>
    %287 = arith.addf %283, %286 : vector<36x8xf32>
    %cst_221 = arith.constant 0.353553385 : f32
    %288 = vector.broadcast %cst_221 : f32 to vector<36x8xf32>
    %289 = arith.mulf %287, %288 : vector<36x8xf32>
    %c1_222 = arith.constant 1 : index
    %c0_223 = arith.constant 0 : index
    %c0_224 = arith.constant 0 : index
    %c0_225 = arith.constant 0 : index
    %290 = vector.load %arg9[%c1_222, %c0_223, %c0_224, %c0_225] : memref<2x4x32x8xf32, #tpu.memory_space<vmem>>, vector<1x1x32x8xf32>
    %291 = vector.shape_cast %290 : vector<1x1x32x8xf32> to vector<32x8xf32>
    %cst_226 = arith.constant dense<0.000000e+00> : vector<36x8xf32>
    %292 = tpu.matmul %279, %291, %cst_226 {dimension_numbers = #tpu.dot_dimension_numbers<[1], [0], [0], [1], [0, 0, 1, 1], [], []>} : vector<36x32xf32>, vector<32x8xf32>, vector<36x8xf32> -> vector<36x8xf32>
    %c1_227 = arith.constant 1 : index
    %c0_228 = arith.constant 0 : index
    %c0_229 = arith.constant 0 : index
    %c0_230 = arith.constant 0 : index
    %293 = vector.load %arg12[%c1_227, %c0_228, %c0_229, %c0_230] : memref<2x4x1x8xf32, #tpu.memory_space<vmem>>, vector<1x1x1x8xf32>
    %294 = vector.shape_cast %293 : vector<1x1x1x8xf32> to vector<1x8xf32>
    %295 = vector.broadcast %294 : vector<1x8xf32> to vector<36x8xf32>
    %296 = arith.addf %292, %295 : vector<36x8xf32>
    %c1_231 = arith.constant 1 : index
    %c0_232 = arith.constant 0 : index
    %c0_233 = arith.constant 0 : index
    %c0_234 = arith.constant 0 : index
    %297 = vector.load %arg10[%c1_231, %c0_232, %c0_233, %c0_234] : memref<2x4x32x8xf32, #tpu.memory_space<vmem>>, vector<1x1x32x8xf32>
    %298 = vector.shape_cast %297 : vector<1x1x32x8xf32> to vector<32x8xf32>
    %cst_235 = arith.constant dense<0.000000e+00> : vector<36x8xf32>
    %299 = tpu.matmul %279, %298, %cst_235 {dimension_numbers = #tpu.dot_dimension_numbers<[1], [0], [0], [1], [0, 0, 1, 1], [], []>} : vector<36x32xf32>, vector<32x8xf32>, vector<36x8xf32> -> vector<36x8xf32>
    %c1_236 = arith.constant 1 : index
    %c0_237 = arith.constant 0 : index
    %c0_238 = arith.constant 0 : index
    %c0_239 = arith.constant 0 : index
    %300 = vector.load %arg13[%c1_236, %c0_237, %c0_238, %c0_239] : memref<2x4x1x8xf32, #tpu.memory_space<vmem>>, vector<1x1x1x8xf32>
    %301 = vector.shape_cast %300 : vector<1x1x1x8xf32> to vector<1x8xf32>
    %302 = vector.broadcast %301 : vector<1x8xf32> to vector<36x8xf32>
    %303 = arith.addf %299, %302 : vector<36x8xf32>
    %cst_240 = arith.constant dense<0.000000e+00> : vector<36x36xf32>
    %304 = tpu.matmul %289, %296, %cst_240 {dimension_numbers = #tpu.dot_dimension_numbers<[1], [1], [0], [0], [0, 0, 1, 0], [], []>} : vector<36x8xf32>, vector<36x8xf32>, vector<36x36xf32> -> vector<36x36xf32>
    %305 = arith.addf %304, %13 : vector<36x36xf32>
    %cst_241 = arith.constant dense<0xFF800000> : vector<36xf32>
    %306 = vector.multi_reduction <maximumf>, %305, %cst_241 [1] : vector<36x36xf32> to vector<36xf32>
    %307 = vector.shape_cast %306 : vector<36xf32> to vector<36x1xf32>
    %308 = vector.broadcast %307 : vector<36x1xf32> to vector<36x36xf32>
    %309 = arith.subf %305, %308 : vector<36x36xf32>
    %310 = math.exp %309 : vector<36x36xf32>
    %cst_242 = arith.constant dense<0.000000e+00> : vector<36xf32>
    %311 = vector.multi_reduction <add>, %310, %cst_242 [1] : vector<36x36xf32> to vector<36xf32>
    %312 = vector.shape_cast %311 : vector<36xf32> to vector<36x1xf32>
    %313 = tpu.reciprocal %312 {approx = true} : vector<36x1xf32> -> vector<36x1xf32>
    %314 = vector.broadcast %313 : vector<36x1xf32> to vector<36x36xf32>
    %315 = arith.mulf %310, %314 : vector<36x36xf32>
    %cst_243 = arith.constant dense<0.000000e+00> : vector<36x8xf32>
    %316 = tpu.matmul %315, %303, %cst_243 {dimension_numbers = #tpu.dot_dimension_numbers<[1], [0], [0], [1], [0, 0, 1, 1], [], []>} : vector<36x36xf32>, vector<36x8xf32>, vector<36x8xf32> -> vector<36x8xf32>
    %c1_244 = arith.constant 1 : index
    %c0_245 = arith.constant 0 : index
    %c0_246 = arith.constant 0 : index
    %c0_247 = arith.constant 0 : index
    %317 = vector.load %arg14[%c1_244, %c0_245, %c0_246, %c0_247] : memref<2x4x8x32xf32, #tpu.memory_space<vmem>>, vector<1x1x8x32xf32>
    %318 = vector.shape_cast %317 : vector<1x1x8x32xf32> to vector<8x32xf32>
    %cst_248 = arith.constant dense<0.000000e+00> : vector<36x32xf32>
    %319 = tpu.matmul %316, %318, %cst_248 {dimension_numbers = #tpu.dot_dimension_numbers<[1], [0], [0], [1], [0, 0, 1, 1], [], []>} : vector<36x8xf32>, vector<8x32xf32>, vector<36x32xf32> -> vector<36x32xf32>
    %320 = arith.addf %280, %319 : vector<36x32xf32>
    %c1_249 = arith.constant 1 : index
    %c1_250 = arith.constant 1 : index
    %c0_251 = arith.constant 0 : index
    %c0_252 = arith.constant 0 : index
    %321 = vector.load %arg8[%c1_249, %c1_250, %c0_251, %c0_252] : memref<2x4x32x8xf32, #tpu.memory_space<vmem>>, vector<1x1x32x8xf32>
    %322 = vector.shape_cast %321 : vector<1x1x32x8xf32> to vector<32x8xf32>
    %cst_253 = arith.constant dense<0.000000e+00> : vector<36x8xf32>
    %323 = tpu.matmul %279, %322, %cst_253 {dimension_numbers = #tpu.dot_dimension_numbers<[1], [0], [0], [1], [0, 0, 1, 1], [], []>} : vector<36x32xf32>, vector<32x8xf32>, vector<36x8xf32> -> vector<36x8xf32>
    %c1_254 = arith.constant 1 : index
    %c1_255 = arith.constant 1 : index
    %c0_256 = arith.constant 0 : index
    %c0_257 = arith.constant 0 : index
    %324 = vector.load %arg11[%c1_254, %c1_255, %c0_256, %c0_257] : memref<2x4x1x8xf32, #tpu.memory_space<vmem>>, vector<1x1x1x8xf32>
    %325 = vector.shape_cast %324 : vector<1x1x1x8xf32> to vector<1x8xf32>
    %326 = vector.broadcast %325 : vector<1x8xf32> to vector<36x8xf32>
    %327 = arith.addf %323, %326 : vector<36x8xf32>
    %cst_258 = arith.constant 0.353553385 : f32
    %328 = vector.broadcast %cst_258 : f32 to vector<36x8xf32>
    %329 = arith.mulf %327, %328 : vector<36x8xf32>
    %c1_259 = arith.constant 1 : index
    %c1_260 = arith.constant 1 : index
    %c0_261 = arith.constant 0 : index
    %c0_262 = arith.constant 0 : index
    %330 = vector.load %arg9[%c1_259, %c1_260, %c0_261, %c0_262] : memref<2x4x32x8xf32, #tpu.memory_space<vmem>>, vector<1x1x32x8xf32>
    %331 = vector.shape_cast %330 : vector<1x1x32x8xf32> to vector<32x8xf32>
    %cst_263 = arith.constant dense<0.000000e+00> : vector<36x8xf32>
    %332 = tpu.matmul %279, %331, %cst_263 {dimension_numbers = #tpu.dot_dimension_numbers<[1], [0], [0], [1], [0, 0, 1, 1], [], []>} : vector<36x32xf32>, vector<32x8xf32>, vector<36x8xf32> -> vector<36x8xf32>
    %c1_264 = arith.constant 1 : index
    %c1_265 = arith.constant 1 : index
    %c0_266 = arith.constant 0 : index
    %c0_267 = arith.constant 0 : index
    %333 = vector.load %arg12[%c1_264, %c1_265, %c0_266, %c0_267] : memref<2x4x1x8xf32, #tpu.memory_space<vmem>>, vector<1x1x1x8xf32>
    %334 = vector.shape_cast %333 : vector<1x1x1x8xf32> to vector<1x8xf32>
    %335 = vector.broadcast %334 : vector<1x8xf32> to vector<36x8xf32>
    %336 = arith.addf %332, %335 : vector<36x8xf32>
    %c1_268 = arith.constant 1 : index
    %c1_269 = arith.constant 1 : index
    %c0_270 = arith.constant 0 : index
    %c0_271 = arith.constant 0 : index
    %337 = vector.load %arg10[%c1_268, %c1_269, %c0_270, %c0_271] : memref<2x4x32x8xf32, #tpu.memory_space<vmem>>, vector<1x1x32x8xf32>
    %338 = vector.shape_cast %337 : vector<1x1x32x8xf32> to vector<32x8xf32>
    %cst_272 = arith.constant dense<0.000000e+00> : vector<36x8xf32>
    %339 = tpu.matmul %279, %338, %cst_272 {dimension_numbers = #tpu.dot_dimension_numbers<[1], [0], [0], [1], [0, 0, 1, 1], [], []>} : vector<36x32xf32>, vector<32x8xf32>, vector<36x8xf32> -> vector<36x8xf32>
    %c1_273 = arith.constant 1 : index
    %c1_274 = arith.constant 1 : index
    %c0_275 = arith.constant 0 : index
    %c0_276 = arith.constant 0 : index
    %340 = vector.load %arg13[%c1_273, %c1_274, %c0_275, %c0_276] : memref<2x4x1x8xf32, #tpu.memory_space<vmem>>, vector<1x1x1x8xf32>
    %341 = vector.shape_cast %340 : vector<1x1x1x8xf32> to vector<1x8xf32>
    %342 = vector.broadcast %341 : vector<1x8xf32> to vector<36x8xf32>
    %343 = arith.addf %339, %342 : vector<36x8xf32>
    %cst_277 = arith.constant dense<0.000000e+00> : vector<36x36xf32>
    %344 = tpu.matmul %329, %336, %cst_277 {dimension_numbers = #tpu.dot_dimension_numbers<[1], [1], [0], [0], [0, 0, 1, 0], [], []>} : vector<36x8xf32>, vector<36x8xf32>, vector<36x36xf32> -> vector<36x36xf32>
    %345 = arith.addf %344, %13 : vector<36x36xf32>
    %cst_278 = arith.constant dense<0xFF800000> : vector<36xf32>
    %346 = vector.multi_reduction <maximumf>, %345, %cst_278 [1] : vector<36x36xf32> to vector<36xf32>
    %347 = vector.shape_cast %346 : vector<36xf32> to vector<36x1xf32>
    %348 = vector.broadcast %347 : vector<36x1xf32> to vector<36x36xf32>
    %349 = arith.subf %345, %348 : vector<36x36xf32>
    %350 = math.exp %349 : vector<36x36xf32>
    %cst_279 = arith.constant dense<0.000000e+00> : vector<36xf32>
    %351 = vector.multi_reduction <add>, %350, %cst_279 [1] : vector<36x36xf32> to vector<36xf32>
    %352 = vector.shape_cast %351 : vector<36xf32> to vector<36x1xf32>
    %353 = tpu.reciprocal %352 {approx = true} : vector<36x1xf32> -> vector<36x1xf32>
    %354 = vector.broadcast %353 : vector<36x1xf32> to vector<36x36xf32>
    %355 = arith.mulf %350, %354 : vector<36x36xf32>
    %cst_280 = arith.constant dense<0.000000e+00> : vector<36x8xf32>
    %356 = tpu.matmul %355, %343, %cst_280 {dimension_numbers = #tpu.dot_dimension_numbers<[1], [0], [0], [1], [0, 0, 1, 1], [], []>} : vector<36x36xf32>, vector<36x8xf32>, vector<36x8xf32> -> vector<36x8xf32>
    %c1_281 = arith.constant 1 : index
    %c1_282 = arith.constant 1 : index
    %c0_283 = arith.constant 0 : index
    %c0_284 = arith.constant 0 : index
    %357 = vector.load %arg14[%c1_281, %c1_282, %c0_283, %c0_284] : memref<2x4x8x32xf32, #tpu.memory_space<vmem>>, vector<1x1x8x32xf32>
    %358 = vector.shape_cast %357 : vector<1x1x8x32xf32> to vector<8x32xf32>
    %cst_285 = arith.constant dense<0.000000e+00> : vector<36x32xf32>
    %359 = tpu.matmul %356, %358, %cst_285 {dimension_numbers = #tpu.dot_dimension_numbers<[1], [0], [0], [1], [0, 0, 1, 1], [], []>} : vector<36x8xf32>, vector<8x32xf32>, vector<36x32xf32> -> vector<36x32xf32>
    %360 = arith.addf %320, %359 : vector<36x32xf32>
    %c1_286 = arith.constant 1 : index
    %c2_287 = arith.constant 2 : index
    %c0_288 = arith.constant 0 : index
    %c0_289 = arith.constant 0 : index
    %361 = vector.load %arg8[%c1_286, %c2_287, %c0_288, %c0_289] : memref<2x4x32x8xf32, #tpu.memory_space<vmem>>, vector<1x1x32x8xf32>
    %362 = vector.shape_cast %361 : vector<1x1x32x8xf32> to vector<32x8xf32>
    %cst_290 = arith.constant dense<0.000000e+00> : vector<36x8xf32>
    %363 = tpu.matmul %279, %362, %cst_290 {dimension_numbers = #tpu.dot_dimension_numbers<[1], [0], [0], [1], [0, 0, 1, 1], [], []>} : vector<36x32xf32>, vector<32x8xf32>, vector<36x8xf32> -> vector<36x8xf32>
    %c1_291 = arith.constant 1 : index
    %c2_292 = arith.constant 2 : index
    %c0_293 = arith.constant 0 : index
    %c0_294 = arith.constant 0 : index
    %364 = vector.load %arg11[%c1_291, %c2_292, %c0_293, %c0_294] : memref<2x4x1x8xf32, #tpu.memory_space<vmem>>, vector<1x1x1x8xf32>
    %365 = vector.shape_cast %364 : vector<1x1x1x8xf32> to vector<1x8xf32>
    %366 = vector.broadcast %365 : vector<1x8xf32> to vector<36x8xf32>
    %367 = arith.addf %363, %366 : vector<36x8xf32>
    %cst_295 = arith.constant 0.353553385 : f32
    %368 = vector.broadcast %cst_295 : f32 to vector<36x8xf32>
    %369 = arith.mulf %367, %368 : vector<36x8xf32>
    %c1_296 = arith.constant 1 : index
    %c2_297 = arith.constant 2 : index
    %c0_298 = arith.constant 0 : index
    %c0_299 = arith.constant 0 : index
    %370 = vector.load %arg9[%c1_296, %c2_297, %c0_298, %c0_299] : memref<2x4x32x8xf32, #tpu.memory_space<vmem>>, vector<1x1x32x8xf32>
    %371 = vector.shape_cast %370 : vector<1x1x32x8xf32> to vector<32x8xf32>
    %cst_300 = arith.constant dense<0.000000e+00> : vector<36x8xf32>
    %372 = tpu.matmul %279, %371, %cst_300 {dimension_numbers = #tpu.dot_dimension_numbers<[1], [0], [0], [1], [0, 0, 1, 1], [], []>} : vector<36x32xf32>, vector<32x8xf32>, vector<36x8xf32> -> vector<36x8xf32>
    %c1_301 = arith.constant 1 : index
    %c2_302 = arith.constant 2 : index
    %c0_303 = arith.constant 0 : index
    %c0_304 = arith.constant 0 : index
    %373 = vector.load %arg12[%c1_301, %c2_302, %c0_303, %c0_304] : memref<2x4x1x8xf32, #tpu.memory_space<vmem>>, vector<1x1x1x8xf32>
    %374 = vector.shape_cast %373 : vector<1x1x1x8xf32> to vector<1x8xf32>
    %375 = vector.broadcast %374 : vector<1x8xf32> to vector<36x8xf32>
    %376 = arith.addf %372, %375 : vector<36x8xf32>
    %c1_305 = arith.constant 1 : index
    %c2_306 = arith.constant 2 : index
    %c0_307 = arith.constant 0 : index
    %c0_308 = arith.constant 0 : index
    %377 = vector.load %arg10[%c1_305, %c2_306, %c0_307, %c0_308] : memref<2x4x32x8xf32, #tpu.memory_space<vmem>>, vector<1x1x32x8xf32>
    %378 = vector.shape_cast %377 : vector<1x1x32x8xf32> to vector<32x8xf32>
    %cst_309 = arith.constant dense<0.000000e+00> : vector<36x8xf32>
    %379 = tpu.matmul %279, %378, %cst_309 {dimension_numbers = #tpu.dot_dimension_numbers<[1], [0], [0], [1], [0, 0, 1, 1], [], []>} : vector<36x32xf32>, vector<32x8xf32>, vector<36x8xf32> -> vector<36x8xf32>
    %c1_310 = arith.constant 1 : index
    %c2_311 = arith.constant 2 : index
    %c0_312 = arith.constant 0 : index
    %c0_313 = arith.constant 0 : index
    %380 = vector.load %arg13[%c1_310, %c2_311, %c0_312, %c0_313] : memref<2x4x1x8xf32, #tpu.memory_space<vmem>>, vector<1x1x1x8xf32>
    %381 = vector.shape_cast %380 : vector<1x1x1x8xf32> to vector<1x8xf32>
    %382 = vector.broadcast %381 : vector<1x8xf32> to vector<36x8xf32>
    %383 = arith.addf %379, %382 : vector<36x8xf32>
    %cst_314 = arith.constant dense<0.000000e+00> : vector<36x36xf32>
    %384 = tpu.matmul %369, %376, %cst_314 {dimension_numbers = #tpu.dot_dimension_numbers<[1], [1], [0], [0], [0, 0, 1, 0], [], []>} : vector<36x8xf32>, vector<36x8xf32>, vector<36x36xf32> -> vector<36x36xf32>
    %385 = arith.addf %384, %13 : vector<36x36xf32>
    %cst_315 = arith.constant dense<0xFF800000> : vector<36xf32>
    %386 = vector.multi_reduction <maximumf>, %385, %cst_315 [1] : vector<36x36xf32> to vector<36xf32>
    %387 = vector.shape_cast %386 : vector<36xf32> to vector<36x1xf32>
    %388 = vector.broadcast %387 : vector<36x1xf32> to vector<36x36xf32>
    %389 = arith.subf %385, %388 : vector<36x36xf32>
    %390 = math.exp %389 : vector<36x36xf32>
    %cst_316 = arith.constant dense<0.000000e+00> : vector<36xf32>
    %391 = vector.multi_reduction <add>, %390, %cst_316 [1] : vector<36x36xf32> to vector<36xf32>
    %392 = vector.shape_cast %391 : vector<36xf32> to vector<36x1xf32>
    %393 = tpu.reciprocal %392 {approx = true} : vector<36x1xf32> -> vector<36x1xf32>
    %394 = vector.broadcast %393 : vector<36x1xf32> to vector<36x36xf32>
    %395 = arith.mulf %390, %394 : vector<36x36xf32>
    %cst_317 = arith.constant dense<0.000000e+00> : vector<36x8xf32>
    %396 = tpu.matmul %395, %383, %cst_317 {dimension_numbers = #tpu.dot_dimension_numbers<[1], [0], [0], [1], [0, 0, 1, 1], [], []>} : vector<36x36xf32>, vector<36x8xf32>, vector<36x8xf32> -> vector<36x8xf32>
    %c1_318 = arith.constant 1 : index
    %c2_319 = arith.constant 2 : index
    %c0_320 = arith.constant 0 : index
    %c0_321 = arith.constant 0 : index
    %397 = vector.load %arg14[%c1_318, %c2_319, %c0_320, %c0_321] : memref<2x4x8x32xf32, #tpu.memory_space<vmem>>, vector<1x1x8x32xf32>
    %398 = vector.shape_cast %397 : vector<1x1x8x32xf32> to vector<8x32xf32>
    %cst_322 = arith.constant dense<0.000000e+00> : vector<36x32xf32>
    %399 = tpu.matmul %396, %398, %cst_322 {dimension_numbers = #tpu.dot_dimension_numbers<[1], [0], [0], [1], [0, 0, 1, 1], [], []>} : vector<36x8xf32>, vector<8x32xf32>, vector<36x32xf32> -> vector<36x32xf32>
    %400 = arith.addf %360, %399 : vector<36x32xf32>
    %c1_323 = arith.constant 1 : index
    %c3_324 = arith.constant 3 : index
    %c0_325 = arith.constant 0 : index
    %c0_326 = arith.constant 0 : index
    %401 = vector.load %arg8[%c1_323, %c3_324, %c0_325, %c0_326] : memref<2x4x32x8xf32, #tpu.memory_space<vmem>>, vector<1x1x32x8xf32>
    %402 = vector.shape_cast %401 : vector<1x1x32x8xf32> to vector<32x8xf32>
    %cst_327 = arith.constant dense<0.000000e+00> : vector<36x8xf32>
    %403 = tpu.matmul %279, %402, %cst_327 {dimension_numbers = #tpu.dot_dimension_numbers<[1], [0], [0], [1], [0, 0, 1, 1], [], []>} : vector<36x32xf32>, vector<32x8xf32>, vector<36x8xf32> -> vector<36x8xf32>
    %c1_328 = arith.constant 1 : index
    %c3_329 = arith.constant 3 : index
    %c0_330 = arith.constant 0 : index
    %c0_331 = arith.constant 0 : index
    %404 = vector.load %arg11[%c1_328, %c3_329, %c0_330, %c0_331] : memref<2x4x1x8xf32, #tpu.memory_space<vmem>>, vector<1x1x1x8xf32>
    %405 = vector.shape_cast %404 : vector<1x1x1x8xf32> to vector<1x8xf32>
    %406 = vector.broadcast %405 : vector<1x8xf32> to vector<36x8xf32>
    %407 = arith.addf %403, %406 : vector<36x8xf32>
    %cst_332 = arith.constant 0.353553385 : f32
    %408 = vector.broadcast %cst_332 : f32 to vector<36x8xf32>
    %409 = arith.mulf %407, %408 : vector<36x8xf32>
    %c1_333 = arith.constant 1 : index
    %c3_334 = arith.constant 3 : index
    %c0_335 = arith.constant 0 : index
    %c0_336 = arith.constant 0 : index
    %410 = vector.load %arg9[%c1_333, %c3_334, %c0_335, %c0_336] : memref<2x4x32x8xf32, #tpu.memory_space<vmem>>, vector<1x1x32x8xf32>
    %411 = vector.shape_cast %410 : vector<1x1x32x8xf32> to vector<32x8xf32>
    %cst_337 = arith.constant dense<0.000000e+00> : vector<36x8xf32>
    %412 = tpu.matmul %279, %411, %cst_337 {dimension_numbers = #tpu.dot_dimension_numbers<[1], [0], [0], [1], [0, 0, 1, 1], [], []>} : vector<36x32xf32>, vector<32x8xf32>, vector<36x8xf32> -> vector<36x8xf32>
    %c1_338 = arith.constant 1 : index
    %c3_339 = arith.constant 3 : index
    %c0_340 = arith.constant 0 : index
    %c0_341 = arith.constant 0 : index
    %413 = vector.load %arg12[%c1_338, %c3_339, %c0_340, %c0_341] : memref<2x4x1x8xf32, #tpu.memory_space<vmem>>, vector<1x1x1x8xf32>
    %414 = vector.shape_cast %413 : vector<1x1x1x8xf32> to vector<1x8xf32>
    %415 = vector.broadcast %414 : vector<1x8xf32> to vector<36x8xf32>
    %416 = arith.addf %412, %415 : vector<36x8xf32>
    %c1_342 = arith.constant 1 : index
    %c3_343 = arith.constant 3 : index
    %c0_344 = arith.constant 0 : index
    %c0_345 = arith.constant 0 : index
    %417 = vector.load %arg10[%c1_342, %c3_343, %c0_344, %c0_345] : memref<2x4x32x8xf32, #tpu.memory_space<vmem>>, vector<1x1x32x8xf32>
    %418 = vector.shape_cast %417 : vector<1x1x32x8xf32> to vector<32x8xf32>
    %cst_346 = arith.constant dense<0.000000e+00> : vector<36x8xf32>
    %419 = tpu.matmul %279, %418, %cst_346 {dimension_numbers = #tpu.dot_dimension_numbers<[1], [0], [0], [1], [0, 0, 1, 1], [], []>} : vector<36x32xf32>, vector<32x8xf32>, vector<36x8xf32> -> vector<36x8xf32>
    %c1_347 = arith.constant 1 : index
    %c3_348 = arith.constant 3 : index
    %c0_349 = arith.constant 0 : index
    %c0_350 = arith.constant 0 : index
    %420 = vector.load %arg13[%c1_347, %c3_348, %c0_349, %c0_350] : memref<2x4x1x8xf32, #tpu.memory_space<vmem>>, vector<1x1x1x8xf32>
    %421 = vector.shape_cast %420 : vector<1x1x1x8xf32> to vector<1x8xf32>
    %422 = vector.broadcast %421 : vector<1x8xf32> to vector<36x8xf32>
    %423 = arith.addf %419, %422 : vector<36x8xf32>
    %cst_351 = arith.constant dense<0.000000e+00> : vector<36x36xf32>
    %424 = tpu.matmul %409, %416, %cst_351 {dimension_numbers = #tpu.dot_dimension_numbers<[1], [1], [0], [0], [0, 0, 1, 0], [], []>} : vector<36x8xf32>, vector<36x8xf32>, vector<36x36xf32> -> vector<36x36xf32>
    %425 = arith.addf %424, %13 : vector<36x36xf32>
    %cst_352 = arith.constant dense<0xFF800000> : vector<36xf32>
    %426 = vector.multi_reduction <maximumf>, %425, %cst_352 [1] : vector<36x36xf32> to vector<36xf32>
    %427 = vector.shape_cast %426 : vector<36xf32> to vector<36x1xf32>
    %428 = vector.broadcast %427 : vector<36x1xf32> to vector<36x36xf32>
    %429 = arith.subf %425, %428 : vector<36x36xf32>
    %430 = math.exp %429 : vector<36x36xf32>
    %cst_353 = arith.constant dense<0.000000e+00> : vector<36xf32>
    %431 = vector.multi_reduction <add>, %430, %cst_353 [1] : vector<36x36xf32> to vector<36xf32>
    %432 = vector.shape_cast %431 : vector<36xf32> to vector<36x1xf32>
    %433 = tpu.reciprocal %432 {approx = true} : vector<36x1xf32> -> vector<36x1xf32>
    %434 = vector.broadcast %433 : vector<36x1xf32> to vector<36x36xf32>
    %435 = arith.mulf %430, %434 : vector<36x36xf32>
    %cst_354 = arith.constant dense<0.000000e+00> : vector<36x8xf32>
    %436 = tpu.matmul %435, %423, %cst_354 {dimension_numbers = #tpu.dot_dimension_numbers<[1], [0], [0], [1], [0, 0, 1, 1], [], []>} : vector<36x36xf32>, vector<36x8xf32>, vector<36x8xf32> -> vector<36x8xf32>
    %c1_355 = arith.constant 1 : index
    %c3_356 = arith.constant 3 : index
    %c0_357 = arith.constant 0 : index
    %c0_358 = arith.constant 0 : index
    %437 = vector.load %arg14[%c1_355, %c3_356, %c0_357, %c0_358] : memref<2x4x8x32xf32, #tpu.memory_space<vmem>>, vector<1x1x8x32xf32>
    %438 = vector.shape_cast %437 : vector<1x1x8x32xf32> to vector<8x32xf32>
    %cst_359 = arith.constant dense<0.000000e+00> : vector<36x32xf32>
    %439 = tpu.matmul %436, %438, %cst_359 {dimension_numbers = #tpu.dot_dimension_numbers<[1], [0], [0], [1], [0, 0, 1, 1], [], []>} : vector<36x8xf32>, vector<8x32xf32>, vector<36x32xf32> -> vector<36x32xf32>
    %440 = arith.addf %400, %439 : vector<36x32xf32>
    %441 = arith.addf %255, %440 : vector<36x32xf32>
    %c1_360 = arith.constant 1 : index
    %c0_361 = arith.constant 0 : index
    %c0_362 = arith.constant 0 : index
    %442 = vector.load %arg15[%c1_360, %c0_361, %c0_362] : memref<2x1x32xf32, #tpu.memory_space<vmem>>, vector<1x1x32xf32>
    %443 = vector.shape_cast %442 : vector<1x1x32xf32> to vector<1x32xf32>
    %444 = vector.broadcast %443 : vector<1x32xf32> to vector<36x32xf32>
    %445 = arith.addf %441, %444 : vector<36x32xf32>
    %c1_363 = arith.constant 1 : index
    %c0_364 = arith.constant 0 : index
    %c0_365 = arith.constant 0 : index
    %446 = vector.load %arg16[%c1_363, %c0_364, %c0_365] : memref<2x1x32xf32, #tpu.memory_space<vmem>>, vector<1x1x32xf32>
    %447 = vector.shape_cast %446 : vector<1x1x32xf32> to vector<1x32xf32>
    %c1_366 = arith.constant 1 : index
    %c0_367 = arith.constant 0 : index
    %c0_368 = arith.constant 0 : index
    %448 = vector.load %arg17[%c1_366, %c0_367, %c0_368] : memref<2x1x32xf32, #tpu.memory_space<vmem>>, vector<1x1x32xf32>
    %449 = vector.shape_cast %448 : vector<1x1x32xf32> to vector<1x32xf32>
    %cst_369 = arith.constant dense<0.000000e+00> : vector<36xf32>
    %450 = vector.multi_reduction <add>, %445, %cst_369 [1] : vector<36x32xf32> to vector<36xf32>
    %451 = vector.shape_cast %450 : vector<36xf32> to vector<36x1xf32>
    %cst_370 = arith.constant 3.200000e+01 : f32
    %452 = vector.broadcast %cst_370 : f32 to vector<36x1xf32>
    %453 = arith.divf %451, %452 : vector<36x1xf32>
    %454 = vector.broadcast %453 : vector<36x1xf32> to vector<36x32xf32>
    %455 = arith.subf %445, %454 : vector<36x32xf32>
    %456 = arith.mulf %455, %455 : vector<36x32xf32>
    %cst_371 = arith.constant dense<0.000000e+00> : vector<36xf32>
    %457 = vector.multi_reduction <add>, %456, %cst_371 [1] : vector<36x32xf32> to vector<36xf32>
    %458 = vector.shape_cast %457 : vector<36xf32> to vector<36x1xf32>
    %cst_372 = arith.constant 3.200000e+01 : f32
    %459 = vector.broadcast %cst_372 : f32 to vector<36x1xf32>
    %460 = arith.divf %458, %459 : vector<36x1xf32>
    %cst_373 = arith.constant 9.99999997E-7 : f32
    %461 = vector.broadcast %cst_373 : f32 to vector<36x1xf32>
    %462 = arith.addf %460, %461 : vector<36x1xf32>
    %463 = math.rsqrt %462 : vector<36x1xf32>
    %464 = vector.broadcast %463 : vector<36x1xf32> to vector<36x32xf32>
    %465 = arith.mulf %455, %464 : vector<36x32xf32>
    %466 = vector.broadcast %447 : vector<1x32xf32> to vector<36x32xf32>
    %467 = arith.mulf %465, %466 : vector<36x32xf32>
    %468 = vector.broadcast %449 : vector<1x32xf32> to vector<36x32xf32>
    %469 = arith.addf %467, %468 : vector<36x32xf32>
    %c1_374 = arith.constant 1 : index
    %c0_375 = arith.constant 0 : index
    %c0_376 = arith.constant 0 : index
    %470 = vector.load %arg18[%c1_374, %c0_375, %c0_376] : memref<2x32x128xf32, #tpu.memory_space<vmem>>, vector<1x32x128xf32>
    %471 = vector.shape_cast %470 : vector<1x32x128xf32> to vector<32x128xf32>
    %cst_377 = arith.constant dense<0.000000e+00> : vector<36x128xf32>
    %472 = tpu.matmul %469, %471, %cst_377 {dimension_numbers = #tpu.dot_dimension_numbers<[1], [0], [0], [1], [0, 0, 1, 1], [], []>} : vector<36x32xf32>, vector<32x128xf32>, vector<36x128xf32> -> vector<36x128xf32>
    %c1_378 = arith.constant 1 : index
    %c0_379 = arith.constant 0 : index
    %c0_380 = arith.constant 0 : index
    %473 = vector.load %arg19[%c1_378, %c0_379, %c0_380] : memref<2x1x128xf32, #tpu.memory_space<vmem>>, vector<1x1x128xf32>
    %474 = vector.shape_cast %473 : vector<1x1x128xf32> to vector<1x128xf32>
    %475 = vector.broadcast %474 : vector<1x128xf32> to vector<36x128xf32>
    %476 = arith.addf %472, %475 : vector<36x128xf32>
    %cst_381 = arith.constant 5.000000e-01 : f32
    %477 = vector.broadcast %cst_381 : f32 to vector<36x128xf32>
    %478 = arith.mulf %477, %476 : vector<36x128xf32>
    %cst_382 = arith.constant 4.471500e-02 : f32
    %479 = vector.broadcast %cst_382 : f32 to vector<36x128xf32>
    %480 = arith.mulf %479, %476 : vector<36x128xf32>
    %481 = arith.mulf %480, %476 : vector<36x128xf32>
    %482 = arith.mulf %481, %476 : vector<36x128xf32>
    %483 = arith.addf %476, %482 : vector<36x128xf32>
    %cst_383 = arith.constant 0.797884583 : f32
    %484 = vector.broadcast %cst_383 : f32 to vector<36x128xf32>
    %485 = arith.mulf %484, %483 : vector<36x128xf32>
    %486 = math.tanh %485 : vector<36x128xf32>
    %cst_384 = arith.constant 1.000000e+00 : f32
    %487 = vector.broadcast %cst_384 : f32 to vector<36x128xf32>
    %488 = arith.addf %487, %486 : vector<36x128xf32>
    %489 = arith.mulf %478, %488 : vector<36x128xf32>
    %c1_385 = arith.constant 1 : index
    %c0_386 = arith.constant 0 : index
    %c0_387 = arith.constant 0 : index
    %490 = vector.load %arg20[%c1_385, %c0_386, %c0_387] : memref<2x128x32xf32, #tpu.memory_space<vmem>>, vector<1x128x32xf32>
    %491 = vector.shape_cast %490 : vector<1x128x32xf32> to vector<128x32xf32>
    %cst_388 = arith.constant dense<0.000000e+00> : vector<36x32xf32>
    %492 = tpu.matmul %489, %491, %cst_388 {dimension_numbers = #tpu.dot_dimension_numbers<[1], [0], [0], [1], [0, 0, 1, 1], [], []>} : vector<36x128xf32>, vector<128x32xf32>, vector<36x32xf32> -> vector<36x32xf32>
    %c1_389 = arith.constant 1 : index
    %c0_390 = arith.constant 0 : index
    %c0_391 = arith.constant 0 : index
    %493 = vector.load %arg21[%c1_389, %c0_390, %c0_391] : memref<2x1x32xf32, #tpu.memory_space<vmem>>, vector<1x1x32xf32>
    %494 = vector.shape_cast %493 : vector<1x1x32xf32> to vector<1x32xf32>
    %495 = vector.broadcast %494 : vector<1x32xf32> to vector<36x32xf32>
    %496 = arith.addf %492, %495 : vector<36x32xf32>
    %497 = arith.addf %445, %496 : vector<36x32xf32>
    %498 = vector.extract_strided_slice %497 {offsets = [0, 0], sizes = [1, 32], strides = [1, 1]} : vector<36x32xf32> to vector<1x32xf32>
    %499 = vector.extract_strided_slice %497 {offsets = [18, 0], sizes = [1, 32], strides = [1, 1]} : vector<36x32xf32> to vector<1x32xf32>
    %500 = tpu.concatenate %498, %499 in 0 : vector<1x32xf32>, vector<1x32xf32> -> vector<2x32xf32>
    %c0_392 = arith.constant 0 : index
    %c0_393 = arith.constant 0 : index
    %501 = vector.load %arg22[%c0_392, %c0_393] : memref<1x32xf32, #tpu.memory_space<vmem>>, vector<1x32xf32>
    %c0_394 = arith.constant 0 : index
    %c0_395 = arith.constant 0 : index
    %502 = vector.load %arg23[%c0_394, %c0_395] : memref<1x32xf32, #tpu.memory_space<vmem>>, vector<1x32xf32>
    %cst_396 = arith.constant dense<0.000000e+00> : vector<2xf32>
    %503 = vector.multi_reduction <add>, %500, %cst_396 [1] : vector<2x32xf32> to vector<2xf32>
    %504 = vector.shape_cast %503 : vector<2xf32> to vector<2x1xf32>
    %cst_397 = arith.constant 3.200000e+01 : f32
    %505 = vector.broadcast %cst_397 : f32 to vector<2x1xf32>
    %506 = arith.divf %504, %505 : vector<2x1xf32>
    %507 = vector.broadcast %506 : vector<2x1xf32> to vector<2x32xf32>
    %508 = arith.subf %500, %507 : vector<2x32xf32>
    %509 = arith.mulf %508, %508 : vector<2x32xf32>
    %cst_398 = arith.constant dense<0.000000e+00> : vector<2xf32>
    %510 = vector.multi_reduction <add>, %509, %cst_398 [1] : vector<2x32xf32> to vector<2xf32>
    %511 = vector.shape_cast %510 : vector<2xf32> to vector<2x1xf32>
    %cst_399 = arith.constant 3.200000e+01 : f32
    %512 = vector.broadcast %cst_399 : f32 to vector<2x1xf32>
    %513 = arith.divf %511, %512 : vector<2x1xf32>
    %cst_400 = arith.constant 9.99999997E-7 : f32
    %514 = vector.broadcast %cst_400 : f32 to vector<2x1xf32>
    %515 = arith.addf %513, %514 : vector<2x1xf32>
    %516 = math.rsqrt %515 : vector<2x1xf32>
    %517 = vector.broadcast %516 : vector<2x1xf32> to vector<2x32xf32>
    %518 = arith.mulf %508, %517 : vector<2x32xf32>
    %519 = vector.broadcast %501 : vector<1x32xf32> to vector<2x32xf32>
    %520 = arith.mulf %518, %519 : vector<2x32xf32>
    %521 = vector.broadcast %502 : vector<1x32xf32> to vector<2x32xf32>
    %522 = arith.addf %520, %521 : vector<2x32xf32>
    %c0_401 = arith.constant 0 : index
    %c0_402 = arith.constant 0 : index
    %523 = vector.load %arg24[%c0_401, %c0_402] : memref<32x10xf32, #tpu.memory_space<vmem>>, vector<32x10xf32>
    %cst_403 = arith.constant dense<0.000000e+00> : vector<2x10xf32>
    %524 = tpu.matmul %522, %523, %cst_403 {dimension_numbers = #tpu.dot_dimension_numbers<[1], [0], [0], [1], [0, 0, 1, 1], [], []>} : vector<2x32xf32>, vector<32x10xf32>, vector<2x10xf32> -> vector<2x10xf32>
    %c0_404 = arith.constant 0 : index
    %c0_405 = arith.constant 0 : index
    %525 = vector.load %arg25[%c0_404, %c0_405] : memref<1x10xf32, #tpu.memory_space<vmem>>, vector<1x10xf32>
    %526 = vector.broadcast %525 : vector<1x10xf32> to vector<2x10xf32>
    %527 = arith.addf %524, %526 : vector<2x10xf32>
    %c0_406 = arith.constant 0 : index
    %c0_407 = arith.constant 0 : index
    %528 = vector.load %arg26[%c0_406, %c0_407] : memref<2x10xf32, #tpu.memory_space<vmem>>, vector<2x10xf32>
    tpu.vector_store %arg26[%c0_406, %c0_407], %527 {strides = array<i32>} : memref<2x10xf32, #tpu.memory_space<vmem>>, vector<2x10xf32>,
    return
  }
}

</mosaic_0001>

<bundles_post_ra>
// kernel: squeeze.15
= control target key start
LH: loop header
LB: loop body
LE: loop exit
PB: predicated region body
PF: predicated region fallthrough
CT: control target
= control target key end

     0   :  { %s40_s8 = smov 104   ;;  %vm8_vm0 = vcmask 64512   ;;  %s41_s9 = smov 112   ;;  %s58_s0 = inlined_call_operand.vmem [shape: f32[32], index: 0, kind: input, shape index: {}]   ;;  %s59_s1 = inlined_call_operand.vmem [shape: f32[1,4,1,8], index: 1, kind: output, shape index: {}]  }
   0x1   :  { %v5_v0 = vld [vmem:[%s58_s0] sm:$0x1]  ;;  %s39_s0 = smov 120  }
   0x2   :  { %6 = vst [vmem:[#allocation1] sm:$0x1] %v5_v0 }
   0x9   :  { %v10_v1 = vld [vmem:[#allocation1] sm:$0x1]  }
   0xa   :  { %v22_v2 = vld [vmem:[#allocation1] sm:$0x1]   ;;  %11 = vrot.lane.b32.xlu0 %v10_v1, %s39_s0 }
   0xb   :  { %23 = vrot.lane.b32.xlu1 %v22_v2, %s40_s8  ;;  %v7_v3 = vld [vmem:[#allocation1] sm:$0x1]  }
   0xc   :  { %v16_v4 = vld [vmem:[#allocation1] sm:$0x1]   ;;  %9 = vst.msk [vmem:[#allocation0] sm:$0x1] %vm8_vm0, %v7_v3  }
   0xe   :  { %17 = vrot.lane.b32.xlu0 %v16_v4, %s41_s9 }
  0x7c   :  { %v12_v5 = vpop.permute.xlu0 %11  }
  0x7d   :  { %v24_v6 = vpop.permute.xlu1 %23   ;;  %15 = vst.msk [vmem:[#allocation0 + $0x1] sm:$0x1] %vm8_vm0, %v12_v5  }
  0x7e   :  { %27 = vst.msk [vmem:[#allocation0 + $0x3] sm:$0x1] %vm8_vm0, %v24_v6  }
  0x80   :  { %v18_v7 = vpop.permute.xlu0 %17  }
  0x81   :  { %21 = vst.msk [vmem:[#allocation0 + $0x2] sm:$0x1] %vm8_vm0, %v18_v7  }
  0x88   :  { %v32_v8 = vld [vmem:[#allocation0] sm:$0xf] }
  0x89   :  { %35 = vst [vmem:[%s59_s1] sm:$0xf] %v32_v8 }

// kernel: prompt_vit_forward.1
= control target key start
LH: loop header
LB: loop body
LE: loop exit
PB: predicated region body
PF: predicated region fallthrough
CT: control target
= control target key end

     0   :  { %s12077_s0 = inlined_call_operand.vmem [shape: f32[32,48], index: 0, kind: input, shape index: {}]   ;;  %s12078_s1 = inlined_call_operand.vmem [shape: f32[36,36], index: 1, kind: input, shape index: {}]   ;;  %s12079_s2 = inlined_call_operand.vmem [shape: f32[48,32], index: 2, kind: input, shape index: {}]   ;;  %s12080_s3 = inlined_call_operand.vmem [shape: f32[1,32], index: 3, kind: input, shape index: {}]   ;;  %s12081_s4 = inlined_call_operand.vmem [shape: f32[2,32], index: 4, kind: input, shape index: {}]   ;;  %s12082_s5 = inlined_call_operand.vmem [shape: f32[16,32], index: 5, kind: input, shape index: {}]   ;;  %s12083_s6 = inlined_call_operand.vmem [shape: f32[2,1,32], index: 6, kind: input, shape index: {}]   ;;  %s12084_s7 = inlined_call_operand.vmem [shape: f32[2,1,32], index: 7, kind: input, shape index: {}]   ;;  %s12085_s8 = inlined_call_operand.vmem [shape: f32[2,4,32,8], index: 8, kind: input, shape index: {}]   ;;  %s12086_s9 = inlined_call_operand.vmem [shape: f32[2,4,32,8], index: 9, kind: input, shape index: {}]   ;;  %s12087_s10 = inlined_call_operand.vmem [shape: f32[2,4,32,8], index: 10, kind: input, shape index: {}]   ;;  %s12088_s11 = inlined_call_operand.vmem [shape: f32[2,4,1,8], index: 11, kind: input, shape index: {}]   ;;  %s12089_s12 = inlined_call_operand.vmem [shape: f32[2,4,1,8], index: 12, kind: input, shape index: {}]   ;;  %s12090_s13 = inlined_call_operand.vmem [shape: f32[2,4,1,8], index: 13, kind: input, shape index: {}]   ;;  %s12091_s14 = inlined_call_operand.vmem [shape: f32[2,4,8,32], index: 14, kind: input, shape index: {}]   ;;  %s12092_s15 = inlined_call_operand.vmem [shape: f32[2,1,32], index: 15, kind: input, shape index: {}]   ;;  %s12093_s16 = inlined_call_operand.vmem [shape: f32[2,1,32], index: 16, kind: input, shape index: {}]   ;;  %s12094_s17 = inlined_call_operand.vmem [shape: f32[2,1,32], index: 17, kind: input, shape index: {}]   ;;  %s12095_s18 = inlined_call_operand.vmem [shape: f32[2,32,128], index: 18, kind: input, shape index: {}]   ;;  %s12096_s19 = inlined_call_operand.vmem [shape: f32[2,1,128], index: 19, kind: input, shape index: {}]   ;;  %s12097_s20 = inlined_call_operand.vmem [shape: f32[2,128,32], index: 20, kind: input, shape index: {}]   ;;  %s12098_s21 = inlined_call_operand.vmem [shape: f32[2,1,32], index: 21, kind: input, shape index: {}]   ;;  %s12099_s22 = inlined_call_operand.vmem [shape: f32[1,32], index: 22, kind: input, shape index: {}]   ;;  %s12100_s23 = inlined_call_operand.vmem [shape: f32[1,32], index: 23, kind: input, shape index: {}]   ;;  %s12101_s24 = inlined_call_operand.vmem [shape: f32[32,10], index: 24, kind: input, shape index: {}]   ;;  %s12102_s25 = inlined_call_operand.vmem [shape: f32[1,10], index: 25, kind: input, shape index: {}]   ;;  %s12103_s26 = inlined_call_operand.hbm [shape: f32[2,10], index: 26, kind: output, shape index: {}]  }
   0x1   :  { %12113 = sst [smem:[#allocation5_spill]] %s12077_s0 }
   0x2   :  { %12114 = sst [smem:[#allocation6_spill]] %s12078_s1 }
   0x3   :  { %12115 = sst [smem:[#allocation7_spill]] %s12079_s2 }
   0x4   :  { %12116 = sst [smem:[#allocation8_spill]] %s12080_s3 }
   0x5   :  { %12117 = sst [smem:[#allocation9_spill]] %s12081_s4 }
   0x6   :  { %12118 = sst [smem:[#allocation10_spill]] %s12082_s5 }
   0x7   :  { %12119 = sst [smem:[#allocation11_spill]] %s12083_s6 }
   0x8   :  { %12120 = sst [smem:[#allocation12_spill]] %s12084_s7 }
   0x9   :  { %12121 = sst [smem:[#allocation13_spill]] %s12085_s8 }
   0xa   :  { %12122 = sst [smem:[#allocation14_spill]] %s12086_s9 }
   0xb   :  { %12123 = sst [smem:[#allocation15_spill]] %s12087_s10 }
   0xc   :  { %s12124_s7 = sld [smem:[#allocation7_spill]]  ;;  %vm101_vm0 = vcmask 392192  }
   0xd   :  { %s12125_s30 = sld [smem:[#allocation5_spill]] }
  0x12   :  { %v93_v0 = vld [vmem:[%s12124_s7 + $0x28] sm:$0xff]  ;;  %v92_v1 = vld [vmem:[%s12124_s7 + $0x20] sm:$0xff]  ;;  %v91_v2 = vld [vmem:[%s12124_s7 + $0x18] sm:$0xff] }
  0x13   :  { %7985 = vmatprep.subr.mxu0 %v93_v0  ;;  %v84_v3 = vld [vmem:[%s12125_s30] sm:$0xff] }
  0x14   :  { %7986 = vmatpush3.msra.mxu0 %v93_v0  ;;  %7997 = vmatprep.mubr.msk.f32.mxu0 %vm101_vm0, %v84_v3 }
  0x15   :  { %7987 = vmatprep.subr.mxu0 %v92_v1 }
  0x16   :  { %31 = vsyncpa [#allocation3], 0  ;;  %7988 = vmatpush3.msra.mxu0 %v92_v1  ;;  %v90_v4 = vld [vmem:[%s12124_s7 + $0x10] sm:$0xff]  ;;  %v89_v5 = vld [vmem:[%s12124_s7 + $0x8] sm:$0xff]  ;;  %s12126_s2 = sld [smem:[#allocation8_spill]]  ;;  %vm237_vm1 = vcmask 261120  }
  0x17   :  { %7989 = vmatprep.subr.mxu0 %v91_v2  ;;  %v88_v6 = vld [vmem:[%s12124_s7] sm:$0xff]  ;;  %v85_v7 = vld [vmem:[%s12125_s30 + $0x8] sm:$0xff]  ;;  %v86_v8 = vld [vmem:[%s12125_s30 + $0x10] sm:$0xff]  ;;  %s12127_s6 = sld [smem:[#allocation10_spill]]  ;;  %vm208_vm2 = vcmask 1041408   ;;  %vm220_vm3 = vcmask 1043456  }
  0x18   :  { %7990 = vmatpush3.msra.mxu0 %v91_v2  ;;  %v87_v9 = vld [vmem:[%s12125_s30 + $0x18] sm:$0xff]  ;;  %s12128_s28 = sld [smem:[#allocation9_spill]]  ;;  %vm250_vm4 = vcmask 257024   ;;  %v9512_v2 = vmov 0.0   ;;  %vm9513_vm5 = vmmov 0   ;;  %vm650_vm6 = vcmask 64512  }
  0x19   :  { %7991 = vmatprep.subr.mxu0 %v90_v4  ;;  %s12129_s29 = sld [smem:[#allocation13_spill]]  ;;  %9242 = vmatprep.subr.mxu1 %v9512_v2  ;;  %vm771_vm7 = vcmask 293888   ;;  %vm784_vm8 = vcmask 289792   ;;  %vm6870_vm9 = vcmask 1040384   ;;  %vm6874_vm10 = vcmask 254976  }
  0x1a   :  { %7992 = vmatpush3.msra.mxu0 %v90_v4  ;;  %8020 = vmatprep.mubr.msk.f32.mxu1 %vm9513_vm5, %v9512_v2  ;;  %s12130_s27 = sld [smem:[#allocation11_spill]]  ;;  %vm6986_vm11 = vcmask 74752  }
  0x1b   :  { %7993 = vmatprep.subr.mxu0 %v89_v5  ;;  %s12132_s0 = sld [smem:[#allocation14_spill]] }
  0x1c   :  { %7994 = vmatpush3.msra.mxu0 %v89_v5  ;;  %v7002_v10 = vld [vmem:[%s12126_s2] ss:$0 sm:$0xff]  ;;  %s12133_s3 = sld [smem:[#allocation15_spill]] }
  0x1d   :  { %7995 = vmatprep.subr.mxu0 %v88_v6  ;;  %v201_v13 = vld [vmem:[%s12127_s6 + $0x8] sm:$0xff]  ;;  %v200_v15 = vld [vmem:[%s12127_s6] sm:$0xff]  ;;  %s12134_s8 = sld [smem:[#allocation6_spill]] }
  0x1e   :  { %7996 = vmatpush3.msra.mxu0 %v88_v6  ;;  %v199_v21 = vld [vmem:[%s12128_s28] sm:$0x3]  ;;  %s12131_s28 = sld [smem:[#allocation12_spill]] }
  0x1f   :  { %7998 = vmatmul.mubr.msk.f32.vlgmr.msra.gmra.mxu0 %vm101_vm0, %v85_v7  ;;  %v216_v27 = vrot.slane %v199_v21, 6  ;;  %8003 = vmatprep.subr.mxu0 %v9512_v2  ;;  %v330_v3 = vld [vmem:[%s12129_s29 + $0x18] sm:$0xff]  ;;  %v329_v4 = vld [vmem:[%s12129_s29 + $0x10] sm:$0xff]  ;;  %v328_v5 = vld [vmem:[%s12129_s29 + $0x8] sm:$0xff] }
  0x20   :  { %8000 = vmatprep.mubr.msk.f32.mxu0 %vm101_vm0, %v86_v8  ;;  %8004 = vmatpush3.msra.mxu0 %v330_v3  ;;  %v327_v6 = vld [vmem:[%s12129_s29] sm:$0xff] }
  0x21   :  { %9246 = vmatpush3.msra.mxu1 %v330_v3  ;;  %8005 = vmatprep.subr.mxu0 %v9512_v2 }
  0x22   :  { %9243 = vmatprep.subr.mxu1 %v9512_v2  ;;  %8006 = vmatpush3.msra.mxu0 %v329_v4 }
  0x23   :  { %8001 = vmatmul.mubr.msk.f32.gmra.mxu0 %vm101_vm0, %v87_v9  ;;  %9247 = vmatpush3.msra.mxu1 %v329_v4 }
  0x24   :  { %8007 = vmatprep.subr.mxu0 %v9512_v2  ;;  %9244 = vmatprep.subr.mxu1 %v9512_v2 }
  0x25   :  { %8008 = vmatpush3.msra.mxu0 %v328_v5  ;;  %9248 = vmatpush3.msra.mxu1 %v328_v5 }
  0x26   :  { %8009 = vmatprep.subr.mxu0 %v9512_v2  ;;  %9245 = vmatprep.subr.mxu1 %v9512_v2 }
  0x27   :  { %8010 = vmatpush3.msra.mxu0 %v327_v6  ;;  %8011 = vmatprep.mubr.msk.f32.mxu0 %vm9513_vm5, %v9512_v2 }
  0x28   :  { %8026 = vmatprep.subr.mxu0 %v9512_v2  ;;  %9249 = vmatpush3.msra.mxu1 %v327_v6 }
  0x29   :  { %8049 = vmatprep.subr.mxu1 %v9512_v2 }
  0xdf   :  { %v7999_v11 = vpop.f32.mrf.mxu0 }
  0xe0   :  { %v186_v12 = vadd.f32 %v7999_v11, %v7002_v10 }
  0xe1   :  { %v180_v14 = vpop.f32.mrf.mxu0 }
  0xe2   :  { %v181_v16 = vadd.f32 %v7002_v10, %v180_v14  ;;  %v203_v17 = vadd.f32 %v201_v13, %v186_v12 }
  0xe3   :  { %v8002_v18 = vpop.f32.mrf.mxu0 }
  0xe4   :  { %v202_v19 = vadd.f32 %v200_v15, %v181_v16  ;;  %v196_v20 = vadd.f32 %v8002_v18, %v7002_v10  ;;  %v210_v26 = vrot.slane %v203_v17, 6 }
  0xe5   :  { %v190_v22 = vpop.f32.mrf.mxu0 }
  0xe6   :  { %v209_v23 = vrot.slane %v202_v19, 6  ;;  %v205_v24 = vadd.f32 %v201_v13, %v196_v20  ;;  %v191_v25 = vadd.f32 %v7002_v10, %v190_v22  ;;  %v228_v34 = vsel %vm208_vm2, %v210_v26, %v216_v27 }
  0xe8   :  { %v204_v28 = vadd.f32 %v200_v15, %v191_v25  ;;  %v9696_v29 = vsel %vm208_vm2, %v199_v21, %v209_v23  ;;  %v9700_v31 = vrot.slane %v205_v24, 4  ;;  %v9702_v33 = vsel %vm208_vm2, %v209_v23, %v210_v26  ;;  %v7007_v23 = vld [vmem:[%s12130_s27] ss:$0 sm:$0xff] }
  0xe9   :  { %v238_v30 = vsel %vm237_vm1, %v9696_v29, 0.0  ;;  %v241_v37 = vsel %vm237_vm1, %v9702_v33, 0.0  ;;  %v7008_v25 = vld [vmem:[%s12131_s28] ss:$0 sm:$0xff] }
  0xea   :  { %v221_v32 = vrot.slane %v204_v28, 4  ;;  %239 = vadd.xlane.f32.xlu0 %v238_v30  ;;  %v251_v40 = vsel %vm250_vm4, %v9700_v31, 0.0 }
  0xec   :  { %v9705_v35 = vsel %vm220_vm3, %v228_v34, %v221_v32  ;;  %v9713_v38 = vsel %vm220_vm3, %v221_v32, %v9700_v31  ;;  %v451_v32 = vld [vmem:[%s12132_s0 + $0x18] sm:$0xff] }
  0xed   :  { %v244_v36 = vsel %vm237_vm1, %v9705_v35, 0.0  ;;  %v247_v39 = vsel %vm237_vm1, %v9713_v38, 0.0 }
  0xee   :  { %245 = vadd.xlane.f32.xlu1 %v244_v36  ;;  %242 = vadd.xlane.f32.xlu0 %v241_v37  ;;  %v450_v37 = vld [vmem:[%s12132_s0 + $0x10] sm:$0xff] }
  0xf2   :  { %248 = vadd.xlane.f32.xlu1 %v247_v39  ;;  %252 = vadd.xlane.f32.xlu0 %v251_v40 }
 0x173   :  { %v240_v41 = vpop.xlane.xlu0 %239 }
 0x174   :  { %v255_v42 = vmul.f32 0.03125, %v240_v41 }
 0x176   :  { %v9720_v43 = vsub.f32 %v9696_v29, %v255_v42 }
 0x177   :  { %v246_v44 = vpop.xlane.xlu1 %245  ;;  %v243_v45 = vpop.xlane.xlu0 %242 }
 0x178   :  { %v257_v46 = vmul.f32 0.03125, %v246_v44  ;;  %v256_v47 = vmul.f32 0.03125, %v243_v45  ;;  %v265_v48 = vmul.f32 %v9720_v43, %v9720_v43 }
 0x17a   :  { %v9725_v49 = vsub.f32 %v9705_v35, %v257_v46  ;;  %v9728_v50 = vsub.f32 %v9702_v33, %v256_v47  ;;  %v270_v51 = vsel %vm237_vm1, %v265_v48, 0.0  ;;  %v449_v46 = vld [vmem:[%s12132_s0 + $0x8] sm:$0xff]  ;;  %v448_v48 = vld [vmem:[%s12132_s0] sm:$0xff] }
 0x17b   :  { %v249_v52 = vpop.xlane.xlu1 %248  ;;  %271 = vadd.xlane.f32.xlu1 %v270_v51  ;;  %v253_v53 = vpop.xlane.xlu0 %252 }
 0x17c   :  { %v258_v54 = vmul.f32 0.03125, %v249_v52  ;;  %v259_v55 = vmul.f32 0.03125, %v253_v53  ;;  %v267_v56 = vmul.f32 %v9725_v49, %v9725_v49  ;;  %v266_v57 = vmul.f32 %v9728_v50, %v9728_v50  ;;  %v552_v52 = vld [vmem:[%s12133_s3 + $0x18] sm:$0xff]  ;;  %v551_v53 = vld [vmem:[%s12133_s3 + $0x10] sm:$0xff] }
 0x17e   :  { %v9736_v58 = vsub.f32 %v9713_v38, %v258_v54  ;;  %v9739_v59 = vsub.f32 %v9700_v31, %v259_v55  ;;  %v276_v60 = vsel %vm237_vm1, %v267_v56, 0.0  ;;  %v273_v61 = vsel %vm237_vm1, %v266_v57, 0.0  ;;  %v550_v55 = vld [vmem:[%s12133_s3 + $0x8] sm:$0xff]  ;;  %v549_v56 = vld [vmem:[%s12133_s3] sm:$0xff] }
 0x17f   :  { %277 = vadd.xlane.f32.xlu1 %v276_v60  ;;  %274 = vadd.xlane.f32.xlu0 %v273_v61 }
 0x180   :  { %v268_v62 = vmul.f32 %v9736_v58, %v9736_v58  ;;  %v269_v63 = vmul.f32 %v9739_v59, %v9739_v59 }
 0x182   :  { %v279_v0 = vsel %vm237_vm1, %v268_v62, 0.0  ;;  %v282_v1 = vsel %vm250_vm4, %v269_v63, 0.0 }
 0x183   :  { %280 = vadd.xlane.f32.xlu0 %v279_v0  ;;  %283 = vadd.xlane.f32.xlu1 %v282_v1 }
 0x204   :  { %v272_v7 = vpop.xlane.xlu1 %271 }
 0x205   :  { %v285_v8 = vmul.f32 0.03125, %v272_v7 }
 0x207   :  { %v290_v9 = vadd.f32 1e-06, %v285_v8 }
 0x208   :  { %v278_v10 = vpop.xlane.xlu1 %277  ;;  %v275_v11 = vpop.xlane.xlu0 %274 }
 0x209   :  { %9253 = vrsqrt.f32 %v290_v9  ;;  %v287_v12 = vmul.f32 0.03125, %v278_v10  ;;  %v286_v13 = vmul.f32 0.03125, %v275_v11 }
 0x20b   :  { %v292_v14 = vadd.f32 1e-06, %v287_v12  ;;  %v291_v15 = vadd.f32 1e-06, %v286_v13 }
 0x20c   :  { %v284_v16 = vpop.xlane.xlu1 %283  ;;  %v281_v17 = vpop.xlane.xlu0 %280 }
 0x20d   :  { %9255 = vrsqrt.f32 %v292_v14  ;;  %v289_v18 = vmul.f32 0.03125, %v284_v16  ;;  %v288_v19 = vmul.f32 0.03125, %v281_v17 }
 0x20e   :  { %9257 = vrsqrt.f32 %v291_v15 }
 0x20f   :  { %v294_v20 = vadd.f32 1e-06, %v289_v18  ;;  %v293_v21 = vadd.f32 1e-06, %v288_v19  ;;  %v7015_v18 = vld [vmem:[%s12089_s12] ss:$0 sm:$0xff] }
 0x211   :  { %9259 = vrsqrt.f32 %v294_v20 }
 0x212   :  { %9261 = vrsqrt.f32 %v293_v21 }
 0x216   :  { %v9254_v22 = vpop.eup %9253 }
 0x217   :  { %v300_v24 = vmul.f32 %v9254_v22, %v9720_v43 }
 0x219   :  { %v311_v26 = vmul.f32 %v7007_v23, %v300_v24  ;;  %v7021_v24 = vld [vmem:[%s12090_s13] ss:$0 sm:$0xff] }
 0x21a   :  { %v9256_v27 = vpop.eup %9255 }
 0x21b   :  { %v9258_v28 = vpop.eup %9257  ;;  %v9782_v30 = vadd.f32 %v7008_v25, %v311_v26  ;;  %v302_v34 = vmul.f32 %v9256_v27, %v9725_v49 }
 0x21c   :  { %v301_v36 = vmul.f32 %v9258_v28, %v9728_v50 }
 0x21d   :  { %8012 = vmatmul.mubr.msk.f32.vlgmr.msra.gmra.mxu0 %vm237_vm1, %v9782_v30  ;;  %v313_v42 = vmul.f32 %v7007_v23, %v302_v34 }
 0x21e   :  { %v9260_v39 = vpop.eup %9259  ;;  %v312_v40 = vmul.f32 %v7007_v23, %v301_v36  ;;  %8027 = vmatpush3.msra.mxu0 %v451_v32  ;;  %8014 = vmatprep.mubr.msk.f32.mxu0 %vm9513_vm5, %v9512_v2 }
 0x21f   :  { %v9262_v41 = vpop.eup %9261  ;;  %8028 = vmatprep.subr.mxu0 %v9512_v2  ;;  %v304_v44 = vmul.f32 %v9260_v39, %v9739_v59  ;;  %v9812_v49 = vadd.f32 %v7008_v25, %v313_v42  ;;  %v7009_v39 = vld [vmem:[%s12088_s11] ss:$0 sm:$0xff] }
 0x220   :  { %v9797_v43 = vadd.f32 %v7008_v25, %v312_v40  ;;  %v303_v45 = vmul.f32 %v9262_v41, %v9736_v58  ;;  %8029 = vmatpush3.msra.mxu0 %v450_v37 }
 0x221   :  { %8030 = vmatprep.subr.mxu0 %v9512_v2  ;;  %v315_v50 = vmul.f32 %v7007_v23, %v304_v44 }
 0x222   :  { %v314_v47 = vmul.f32 %v7007_v23, %v303_v45  ;;  %8015 = vmatmul.mubr.msk.f32.gmra.mxu0 %vm237_vm1, %v9797_v43 }
 0x223   :  { %8017 = vmatprep.mubr.msk.f32.mxu0 %vm9513_vm5, %v9512_v2  ;;  %8031 = vmatpush3.msra.mxu0 %v449_v46  ;;  %v9829_v54 = vadd.f32 %v7008_v25, %v315_v50 }
 0x224   :  { %v9814_v51 = vadd.f32 %v7008_v25, %v314_v47  ;;  %8032 = vmatprep.subr.mxu0 %v9512_v2  ;;  %v7046_v47 = vld [vmem:[%s12129_s29 + $0x38] sm:$0xff] }
 0x225   :  { %8033 = vmatpush3.msra.mxu0 %v448_v48  ;;  %v7045_v48 = vld [vmem:[%s12129_s29 + $0x30] sm:$0xff] }
 0x226   :  { %8018 = vmatmul.mubr.msk.f32.gmra.mxu0 %vm237_vm1, %v9812_v49  ;;  %8021 = vmatmul.mubr.msk.f32.vlgmr.msra.gmra.mxu1 %vm237_vm1, %v9814_v51 }
 0x227   :  { %8050 = vmatpush3.msra.mxu1 %v552_v52  ;;  %8023 = vmatprep.mubr.msk.f32.mxu1 %vm9513_vm5, %v9512_v2 }
 0x228   :  { %8051 = vmatprep.subr.mxu1 %v9512_v2  ;;  %8034 = vmatprep.mubr.msk.f32.mxu0 %vm9513_vm5, %v9512_v2 }
 0x229   :  { %8052 = vmatpush3.msra.mxu1 %v551_v53  ;;  %8072 = vmatprep.subr.mxu0 %v9512_v2  ;;  %v7044_v53 = vld [vmem:[%s12129_s29 + $0x28] sm:$0xff] }
 0x22a   :  { %8024 = vmatmul.mubr.msk.f32.gmra.mxu1 %vm237_vm1, %v9829_v54  ;;  %8035 = vmatmul.mubr.msk.f32.vlgmr.msra.gmra.mxu0 %vm237_vm1, %v9782_v30 }
 0x22b   :  { %8053 = vmatprep.subr.mxu1 %v9512_v2  ;;  %8037 = vmatprep.mubr.msk.f32.mxu0 %vm9513_vm5, %v9512_v2 }
 0x22c   :  { %8054 = vmatpush3.msra.mxu1 %v550_v55  ;;  %8057 = vmatprep.mubr.msk.f32.mxu1 %vm9513_vm5, %v9512_v2  ;;  %v7043_v55 = vld [vmem:[%s12129_s29 + $0x20] sm:$0xff] }
 0x22d   :  { %8055 = vmatprep.subr.mxu1 %v9512_v2 }
 0x22e   :  { %8056 = vmatpush3.msra.mxu1 %v549_v56  ;;  %8038 = vmatmul.mubr.msk.f32.gmra.mxu0 %vm237_vm1, %v9797_v43 }
 0x22f   :  { %8058 = vmatmul.mubr.msk.f32.vlgmr.msra.gmra.mxu1 %vm237_vm1, %v9782_v30  ;;  %8040 = vmatprep.mubr.msk.f32.mxu0 %vm9513_vm5, %v9512_v2 }
 0x230   :  { %8060 = vmatprep.mubr.msk.f32.mxu1 %vm9513_vm5, %v9512_v2  ;;  %8097 = vmatprep.subr.mxu1 %v9512_v2 }
 0x232   :  { %8041 = vmatmul.mubr.msk.f32.gmra.mxu0 %vm237_vm1, %v9812_v49 }
 0x233   :  { %8061 = vmatmul.mubr.msk.f32.gmra.mxu1 %vm237_vm1, %v9797_v43  ;;  %8043 = vmatprep.mubr.msk.f32.mxu0 %vm9513_vm5, %v9512_v2 }
 0x234   :  { %8063 = vmatprep.mubr.msk.f32.mxu1 %vm9513_vm5, %v9512_v2 }
 0x236   :  { %8044 = vmatmul.mubr.msk.f32.gmra.mxu0 %vm237_vm1, %v9814_v51 }
 0x237   :  { %8064 = vmatmul.mubr.msk.f32.gmra.mxu1 %vm237_vm1, %v9812_v49  ;;  %8046 = vmatprep.mubr.msk.f32.mxu0 %vm9513_vm5, %v9512_v2 }
 0x238   :  { %8066 = vmatprep.mubr.msk.f32.mxu1 %vm9513_vm5, %v9512_v2 }
 0x23a   :  { %8047 = vmatmul.mubr.msk.f32.gmra.mxu0 %vm237_vm1, %v9829_v54 }
 0x23b   :  { %8067 = vmatmul.mubr.msk.f32.gmra.mxu1 %vm237_vm1, %v9814_v51  ;;  %8082 = vmatprep.mubr.msk.f32.mxu0 %vm9513_vm5, %v9512_v2 }
 0x23c   :  { %8069 = vmatprep.mubr.msk.f32.mxu1 %vm9513_vm5, %v9512_v2 }
 0x23f   :  { %8070 = vmatmul.mubr.msk.f32.gmra.mxu1 %vm237_vm1, %v9829_v54 }
 0x240   :  { %8107 = vmatprep.mubr.msk.f32.mxu1 %vm9513_vm5, %v9512_v2 }
 0x2dd   :  { %v419_v57 = vpop.f32.mrf.mxu0 }
 0x2de   :  { %v420_v42 = vadd.f32 %v7009_v39, %v419_v57 }
 0x2df   :  { %v8013_v58 = vpop.f32.mrf.mxu0 }
 0x2e0   :  { %v443_v45 = vmul.f32 0.35355338, %v420_v42 }
 0x2e2   :  { %v9888_v59 = vpop.f32.mrf.mxu0 }
 0x2e3   :  { %v425_v46 = vadd.f32 %v7009_v39, %v9888_v59 }
 0x2e4   :  { %v8016_v60 = vpop.f32.mrf.mxu0 }
 0x2e5   :  { %v444_v50 = vmul.f32 0.35355338, %v425_v46 }
 0x2e6   :  { %v9890_v61 = vpop.f32.mrf.mxu0  ;;  %v9892_v62 = vpop.f32.mrf.mxu1 }
 0x2e7   :  { %v430_v52 = vadd.f32 %v7009_v39, %v9890_v61  ;;  %v435_v57 = vadd.f32 %v7009_v39, %v9892_v62  ;;  %v7068_v61 = vld [vmem:[%s12133_s3 + $0x38] sm:$0xff]  ;;  %v7067_v62 = vld [vmem:[%s12133_s3 + $0x30] sm:$0xff] }
 0x2e8   :  { %v8019_v63 = vpop.f32.mrf.mxu0  ;;  %v8022_v0 = vpop.f32.mrf.mxu1 }
 0x2e9   :  { %v445_v56 = vmul.f32 0.35355338, %v430_v52  ;;  %v446_v58 = vmul.f32 0.35355338, %v435_v57  ;;  %v7066_v63 = vld [vmem:[%s12133_s3 + $0x28] sm:$0xff]  ;;  %v7065_v0 = vld [vmem:[%s12133_s3 + $0x20] sm:$0xff] }
 0x2ea   :  { %v9894_v1 = vpop.f32.mrf.mxu1  ;;  %v525_v3 = vpop.f32.mrf.mxu0 }
 0x2eb   :  { %v526_v44 = vadd.f32 %v7015_v18, %v525_v3  ;;  %v440_v59 = vadd.f32 %v7009_v39, %v9894_v1  ;;  %v10015_v1 = vld [vmem:[%s12134_s8] sm:$0xff] }
 0x2ec   :  { %v8025_v4 = vpop.f32.mrf.mxu1  ;;  %v8036_v5 = vpop.f32.mrf.mxu0 }
 0x2ed   :  { %v447_v60 = vmul.f32 0.35355338, %v440_v59 }
 0x2ee   :  { %v530_v6 = vpop.f32.mrf.mxu0 }
 0x2ef   :  { %v626_v7 = vpop.f32.mrf.mxu1  ;;  %v531_v40 = vadd.f32 %v7015_v18, %v530_v6  ;;  %v10023_v6 = vld [vmem:[%s12134_s8 + $0x8] sm:$0xff] }
 0x2f0   :  { %v8039_v8 = vpop.f32.mrf.mxu0  ;;  %v627_v41 = vadd.f32 %v7021_v24, %v626_v7 }
 0x2f1   :  { %v8059_v9 = vpop.f32.mrf.mxu1 }
 0x2f2   :  { %v535_v10 = vpop.f32.mrf.mxu0 }
 0x2f3   :  { %v631_v11 = vpop.f32.mrf.mxu1  ;;  %v536_v34 = vadd.f32 %v7015_v18, %v535_v10 }
 0x2f4   :  { %v8042_v12 = vpop.f32.mrf.mxu0  ;;  %v632_v37 = vadd.f32 %v7021_v24, %v631_v11  ;;  %v10033_v11 = vld [vmem:[%s12134_s8 + $0x10] sm:$0xff] }
 0x2f5   :  { %v8062_v13 = vpop.f32.mrf.mxu1 }
 0x2f6   :  { %v540_v14 = vpop.f32.mrf.mxu0 }
 0x2f7   :  { %v636_v15 = vpop.f32.mrf.mxu1  ;;  %v541_v25 = vadd.f32 %v7015_v18, %v540_v14 }
 0x2f8   :  { %v8045_v16 = vpop.f32.mrf.mxu0  ;;  %v637_v36 = vadd.f32 %v7021_v24, %v636_v15 }
 0x2f9   :  { %v8065_v17 = vpop.f32.mrf.mxu1  ;;  %v10043_v16 = vld [vmem:[%s12134_s8 + $0x18] sm:$0xff] }
 0x2fa   :  { %v545_v19 = vpop.f32.mrf.mxu0 }
 0x2fb   :  { %v546_v20 = vadd.f32 %v7015_v18, %v545_v19  ;;  %v641_v21 = vpop.f32.mrf.mxu1 }
 0x2fc   :  { %v8048_v22 = vpop.f32.mrf.mxu0  ;;  %v642_v32 = vadd.f32 %v7021_v24, %v641_v21  ;;  %v10051_v21 = vld [vmem:[%s12134_s8 + $0x20] sm:$0xf] }
 0x2fd   :  { %v8068_v23 = vpop.f32.mrf.mxu1  ;;  %8073 = vmatpush3.xpose.msk.msra.mxu0 %vm650_vm6, %v546_v20 }
 0x2fe   :  { %8074 = vmatprep.subr.mxu0 %v9512_v2 }
 0x2ff   :  { %v646_v26 = vpop.f32.mrf.mxu1 }
 0x300   :  { %v647_v27 = vadd.f32 %v7021_v24, %v646_v26 }
 0x301   :  { %v8071_v28 = vpop.f32.mrf.mxu1  ;;  %8075 = vmatpush3.xpose.msk.msra.mxu0 %vm650_vm6, %v541_v25 }
 0x302   :  { %8098 = vmatpush3.msk.msra.mxu1 %vm220_vm3, %v647_v27  ;;  %8076 = vmatprep.subr.mxu0 %v9512_v2 }
 0x303   :  { %8099 = vmatprep.subr.mxu1 %v9512_v2 }
 0x304   :  { %8100 = vmatpush3.msra.mxu1 %v642_v32 }
 0x305   :  { %8101 = vmatprep.subr.mxu1 %v9512_v2  ;;  %8077 = vmatpush3.xpose.msk.msra.mxu0 %vm650_vm6, %v536_v34 }
 0x306   :  { %8102 = vmatpush3.msra.mxu1 %v637_v36  ;;  %8078 = vmatprep.subr.mxu0 %v9512_v2 }
 0x307   :  { %8103 = vmatprep.subr.mxu1 %v9512_v2 }
 0x308   :  { %8104 = vmatpush3.msra.mxu1 %v632_v37 }
 0x309   :  { %8105 = vmatprep.subr.mxu1 %v9512_v2  ;;  %8079 = vmatpush3.xpose.msk.msra.mxu0 %vm650_vm6, %v531_v40 }
 0x30a   :  { %8106 = vmatpush3.msra.mxu1 %v627_v41  ;;  %8080 = vmatprep.subr.mxu0 %v9512_v2 }
 0x30b   :  { %8145 = vmatprep.subr.mxu1 %v9512_v2 }
 0x30d   :  { %8081 = vmatpush3.xpose.msk.msra.mxu0 %vm650_vm6, %v526_v44 }
 0x30e   :  { %8122 = vmatprep.subr.mxu0 %v9512_v2 }
 0x310   :  { %8083 = vmatmul.mubr.msk.f32.vlgmr.msra.gmra.mxu0 %vm650_vm6, %v443_v45 }
 0x311   :  { %8085 = vmatprep.mubr.msk.f32.mxu0 %vm9513_vm5, %v9512_v2  ;;  %8123 = vmatpush3.msra.mxu0 %v7046_v47 }
 0x312   :  { %8124 = vmatprep.subr.mxu0 %v9512_v2 }
 0x313   :  { %8125 = vmatpush3.msra.mxu0 %v7045_v48 }
 0x314   :  { %8086 = vmatmul.mubr.msk.f32.gmra.mxu0 %vm650_vm6, %v444_v50  ;;  %8126 = vmatprep.subr.mxu0 %v9512_v2 }
 0x315   :  { %8088 = vmatprep.mubr.msk.f32.mxu0 %vm9513_vm5, %v9512_v2  ;;  %8127 = vmatpush3.msra.mxu0 %v7044_v53 }
 0x316   :  { %8128 = vmatprep.subr.mxu0 %v9512_v2 }
 0x317   :  { %8129 = vmatpush3.msra.mxu0 %v7043_v55  ;;  %v7070_v55 = vld [vmem:[%s12090_s13 + $0x1] ss:$0 sm:$0xff] }
 0x318   :  { %8089 = vmatmul.mubr.msk.f32.gmra.mxu0 %vm650_vm6, %v445_v56  ;;  %8168 = vmatprep.subr.mxu0 %v9512_v2 }
 0x319   :  { %8091 = vmatprep.mubr.msk.f32.mxu0 %vm9513_vm5, %v9512_v2 }
 0x31c   :  { %8092 = vmatmul.mubr.msk.f32.gmra.mxu0 %vm650_vm6, %v446_v58 }
 0x31d   :  { %8094 = vmatprep.mubr.msk.f32.mxu0 %vm9513_vm5, %v9512_v2 }
 0x320   :  { %8095 = vmatmul.mubr.msk.f32.gmra.mxu0 %vm650_vm6, %v447_v60 }
 0x321   :  { %8130 = vmatprep.mubr.msk.f32.mxu0 %vm9513_vm5, %v9512_v2 }
 0x324   :  { %8131 = vmatmul.mubr.msk.f32.vlgmr.msra.gmra.mxu0 %vm237_vm1, %v9782_v30 }
 0x325   :  { %8133 = vmatprep.mubr.msk.f32.mxu0 %vm9513_vm5, %v9512_v2  ;;  %8169 = vmatpush3.msra.mxu0 %v7068_v61 }
 0x326   :  { %8170 = vmatprep.subr.mxu0 %v9512_v2 }
 0x327   :  { %8171 = vmatpush3.msra.mxu0 %v7067_v62 }
 0x328   :  { %8134 = vmatmul.mubr.msk.f32.gmra.mxu0 %vm237_vm1, %v9797_v43  ;;  %8172 = vmatprep.subr.mxu0 %v9512_v2 }
 0x329   :  { %8136 = vmatprep.mubr.msk.f32.mxu0 %vm9513_vm5, %v9512_v2  ;;  %8173 = vmatpush3.msra.mxu0 %v7066_v63 }
 0x32a   :  { %8174 = vmatprep.subr.mxu0 %v9512_v2 }
 0x32b   :  { %8175 = vmatpush3.msra.mxu0 %v7065_v0 }
 0x32c   :  { %8137 = vmatmul.mubr.msk.f32.gmra.mxu0 %vm237_vm1, %v9812_v49  ;;  %8216 = vmatprep.subr.mxu0 %v9512_v2 }
 0x32d   :  { %8139 = vmatprep.mubr.msk.f32.mxu0 %vm9513_vm5, %v9512_v2 }
 0x330   :  { %8140 = vmatmul.mubr.msk.f32.gmra.mxu0 %vm237_vm1, %v9814_v51 }
 0x331   :  { %8142 = vmatprep.mubr.msk.f32.mxu0 %vm9513_vm5, %v9512_v2 }
 0x334   :  { %8143 = vmatmul.mubr.msk.f32.gmra.mxu0 %vm237_vm1, %v9829_v54 }
 0x335   :  { %8176 = vmatprep.mubr.msk.f32.mxu0 %vm9513_vm5, %v9512_v2 }
 0x338   :  { %8177 = vmatmul.mubr.msk.f32.vlgmr.msra.gmra.mxu0 %vm237_vm1, %v9782_v30 }
 0x339   :  { %8179 = vmatprep.mubr.msk.f32.mxu0 %vm9513_vm5, %v9512_v2 }
 0x33c   :  { %8180 = vmatmul.mubr.msk.f32.gmra.mxu0 %vm237_vm1, %v9797_v43 }
 0x33d   :  { %8182 = vmatprep.mubr.msk.f32.mxu0 %vm9513_vm5, %v9512_v2 }
 0x340   :  { %8183 = vmatmul.mubr.msk.f32.gmra.mxu0 %vm237_vm1, %v9812_v49 }
 0x341   :  { %8185 = vmatprep.mubr.msk.f32.mxu0 %vm9513_vm5, %v9512_v2 }
 0x344   :  { %8186 = vmatmul.mubr.msk.f32.gmra.mxu0 %vm237_vm1, %v9814_v51 }
 0x345   :  { %8188 = vmatprep.mubr.msk.f32.mxu0 %vm9513_vm5, %v9512_v2 }
 0x348   :  { %8189 = vmatmul.mubr.msk.f32.gmra.mxu0 %vm237_vm1, %v9829_v54 }
 0x349   :  { %8226 = vmatprep.mubr.msk.f32.mxu0 %vm9513_vm5, %v9512_v2 }
 0x3d0   :  { %v747_v3 = vpop.f32.mrf.mxu0 }
 0x3d1   :  { %v10018_v4 = vadd.f32 %v747_v3, %v10015_v1 }
 0x3d2   :  { %v8084_v5 = vpop.f32.mrf.mxu0 }
 0x3d3   :  { %v772_v7 = vsel %vm771_vm7, %v10018_v4, -inf }
 0x3d4   :  { %773 = vmax.xlane.f32.xlu0 %v772_v7  ;;  %v752_v8 = vpop.f32.mrf.mxu0 }
 0x3d5   :  { %v10028_v9 = vadd.f32 %v752_v8, %v10023_v6 }
 0x3d6   :  { %v8087_v10 = vpop.f32.mrf.mxu0 }
 0x3d7   :  { %v775_v12 = vsel %vm771_vm7, %v10028_v9, -inf }
 0x3d8   :  { %776 = vmax.xlane.f32.xlu1 %v775_v12  ;;  %v757_v13 = vpop.f32.mrf.mxu0 }
 0x3d9   :  { %v10038_v14 = vadd.f32 %v757_v13, %v10033_v11 }
 0x3da   :  { %v8090_v15 = vpop.f32.mrf.mxu0 }
 0x3db   :  { %v778_v17 = vsel %vm771_vm7, %v10038_v14, -inf }
 0x3dc   :  { %779 = vmax.xlane.f32.xlu0 %v778_v17  ;;  %v762_v18 = vpop.f32.mrf.mxu0 }
 0x3dd   :  { %v763_v19 = vadd.f32 %v762_v18, %v10043_v16 }
 0x3de   :  { %v8093_v20 = vpop.f32.mrf.mxu0 }
 0x3df   :  { %v781_v22 = vsel %vm771_vm7, %v763_v19, -inf }
 0x3e0   :  { %782 = vmax.xlane.f32.xlu1 %v781_v22  ;;  %v767_v23 = vpop.f32.mrf.mxu0 }
 0x3e1   :  { %v768_v24 = vadd.f32 %v767_v23, %v10051_v21 }
 0x3e2   :  { %v8096_v25 = vpop.f32.mrf.mxu0 }
 0x3e3   :  { %v785_v26 = vsel %vm784_vm8, %v768_v24, -inf }
 0x3e4   :  { %786 = vmax.xlane.f32.xlu0 %v785_v26  ;;  %v10056_v27 = vpop.f32.mrf.mxu0 }
 0x3e6   :  { %v8132_v28 = vpop.f32.mrf.mxu0 }
 0x3e8   :  { %v10058_v32 = vpop.f32.mrf.mxu0 }
 0x3ea   :  { %v8135_v34 = vpop.f32.mrf.mxu0 }
 0x3ec   :  { %v10060_v36 = vpop.f32.mrf.mxu0 }
 0x3ee   :  { %v8138_v37 = vpop.f32.mrf.mxu0 }
 0x3f0   :  { %v10062_v39 = vpop.f32.mrf.mxu0 }
 0x3f2   :  { %v8141_v40 = vpop.f32.mrf.mxu0 }
 0x3f4   :  { %v10064_v41 = vpop.f32.mrf.mxu0 }
 0x3f6   :  { %v8144_v42 = vpop.f32.mrf.mxu0 }
 0x3f8   :  { %v1227_v44 = vpop.f32.mrf.mxu0 }
 0x3f9   :  { %v1228_v62 = vadd.f32 %v7070_v55, %v1227_v44 }
 0x3fa   :  { %v8178_v45 = vpop.f32.mrf.mxu0 }
 0x3fc   :  { %v1232_v46 = vpop.f32.mrf.mxu0 }
 0x3fd   :  { %v1233_v61 = vadd.f32 %v7070_v55, %v1232_v46 }
 0x3fe   :  { %v8181_v47 = vpop.f32.mrf.mxu0 }
 0x400   :  { %v1237_v48 = vpop.f32.mrf.mxu0 }
 0x401   :  { %v1238_v60 = vadd.f32 %v7070_v55, %v1237_v48  ;;  %v7057_v48 = vld [vmem:[%s12132_s0 + $0x38] sm:$0xff] }
 0x402   :  { %v8184_v50 = vpop.f32.mrf.mxu0 }
 0x404   :  { %v1242_v52 = vpop.f32.mrf.mxu0 }
 0x405   :  { %v1243_v59 = vadd.f32 %v7070_v55, %v1242_v52  ;;  %v7056_v52 = vld [vmem:[%s12132_s0 + $0x30] sm:$0xff] }
 0x406   :  { %v8187_v53 = vpop.f32.mrf.mxu0 }
 0x408   :  { %v1247_v56 = vpop.f32.mrf.mxu0 }
 0x409   :  { %v1248_v57 = vadd.f32 %v7070_v55, %v1247_v56  ;;  %v7055_v56 = vld [vmem:[%s12132_s0 + $0x28] sm:$0xff] }
 0x40a   :  { %v8190_v58 = vpop.f32.mrf.mxu0 }
 0x40b   :  { %8217 = vmatpush3.msk.msra.mxu0 %vm220_vm3, %v1248_v57  ;;  %v7054_v57 = vld [vmem:[%s12132_s0 + $0x20] sm:$0xff] }
 0x40c   :  { %8218 = vmatprep.subr.mxu0 %v9512_v2 }
 0x40d   :  { %8219 = vmatpush3.msra.mxu0 %v1243_v59 }
 0x40e   :  { %8220 = vmatprep.subr.mxu0 %v9512_v2 }
 0x40f   :  { %8221 = vmatpush3.msra.mxu0 %v1238_v60 }
 0x410   :  { %8222 = vmatprep.subr.mxu0 %v9512_v2 }
 0x411   :  { %8223 = vmatpush3.msra.mxu0 %v1233_v61 }
 0x412   :  { %8224 = vmatprep.subr.mxu0 %v9512_v2 }
 0x413   :  { %8225 = vmatpush3.msra.mxu0 %v1228_v62 }
 0x414   :  { %8258 = vmatprep.subr.mxu0 %v9512_v2 }
 0x45d   :  { %v774_v63 = vpop.xlane.xlu0 %773 }
 0x45e   :  { %v788_v0 = vsub.f32 %v10018_v4, %v774_v63 }
 0x460   :  { %v793_v3 = vmul.f32 1.442695, %v788_v0 }
 0x461   :  { %v777_v5 = vpop.xlane.xlu1 %776 }
 0x462   :  { %9263 = vpow2.f32 %v793_v3  ;;  %v789_v7 = vsub.f32 %v10028_v9, %v777_v5 }
 0x464   :  { %v795_v8 = vmul.f32 1.442695, %v789_v7 }
 0x465   :  { %v780_v10 = vpop.xlane.xlu0 %779 }
 0x466   :  { %9265 = vpow2.f32 %v795_v8  ;;  %v790_v12 = vsub.f32 %v10038_v14, %v780_v10 }
 0x468   :  { %v797_v13 = vmul.f32 1.442695, %v790_v12 }
 0x469   :  { %v783_v15 = vpop.xlane.xlu1 %782 }
 0x46a   :  { %9267 = vpow2.f32 %v797_v13  ;;  %v791_v17 = vsub.f32 %v763_v19, %v783_v15 }
 0x46c   :  { %v799_v18 = vmul.f32 1.442695, %v791_v17 }
 0x46d   :  { %v787_v20 = vpop.xlane.xlu0 %786 }
 0x46e   :  { %9269 = vpow2.f32 %v799_v18  ;;  %v792_v22 = vsub.f32 %v768_v24, %v787_v20 }
 0x46f   :  { %v9264_v23 = vpop.eup %9263 }
 0x470   :  { %v801_v4 = vmul.f32 1.442695, %v792_v22  ;;  %v803_v25 = vsel %vm771_vm7, %v9264_v23, 0.0 }
 0x471   :  { %804 = vadd.xlane.f32.xlu1 %v803_v25 }
 0x472   :  { %9271 = vpow2.f32 %v801_v4 }
 0x473   :  { %v9266_v9 = vpop.eup %9265 }
 0x474   :  { %v806_v26 = vsel %vm771_vm7, %v9266_v9, 0.0 }
 0x475   :  { %807 = vadd.xlane.f32.xlu0 %v806_v26 }
 0x477   :  { %v9268_v28 = vpop.eup %9267 }
 0x478   :  { %v809_v14 = vsel %vm771_vm7, %v9268_v28, 0.0 }
 0x479   :  { %810 = vadd.xlane.f32.xlu1 %v809_v14 }
 0x47b   :  { %v9270_v34 = vpop.eup %9269 }
 0x47c   :  { %v812_v19 = vsel %vm771_vm7, %v9270_v34, 0.0 }
 0x47d   :  { %813 = vadd.xlane.f32.xlu0 %v812_v19 }
 0x47f   :  { %v9272_v37 = vpop.eup %9271 }
 0x480   :  { %v815_v24 = vsel %vm784_vm8, %v9272_v37, 0.0 }
 0x481   :  { %816 = vadd.xlane.f32.xlu1 %v815_v24 }
 0x4fa   :  { %v805_v40 = vpop.xlane.xlu1 %804 }
 0x4fb   :  { %9273 = vrcp.f32 %v805_v40  ;;  %v7048_v40 = vld [vmem:[%s12088_s11 + $0x1] ss:$0 sm:$0xff] }
 0x4fe   :  { %v808_v42 = vpop.xlane.xlu0 %807 }
 0x4ff   :  { %9275 = vrcp.f32 %v808_v42 }
 0x502   :  { %v811_v44 = vpop.xlane.xlu1 %810 }
 0x503   :  { %9277 = vrcp.f32 %v811_v44  ;;  %v1017_v44 = vadd.f32 %v7048_v40, %v10056_v27 }
 0x506   :  { %v814_v45 = vpop.xlane.xlu0 %813 }
 0x507   :  { %9279 = vrcp.f32 %v814_v45 }
 0x508   :  { %v9274_v46 = vpop.eup %9273 }
 0x509   :  { %v823_v47 = vmul.f32 %v9274_v46, %v9264_v23  ;;  %v1040_v46 = vmul.f32 0.35355338, %v1017_v44 }
 0x50a   :  { %v817_v50 = vpop.xlane.xlu1 %816 }
 0x50b   :  { %9281 = vrcp.f32 %v817_v50  ;;  %8108 = vmatmul.mubr.msk.f32.vlgmr.msra.gmra.mxu1 %vm771_vm7, %v823_v47  ;;  %v1022_v47 = vadd.f32 %v7048_v40, %v10058_v32  ;;  %v1027_v50 = vadd.f32 %v7048_v40, %v10060_v36 }
 0x50c   :  { %v9276_v53 = vpop.eup %9275  ;;  %8146 = vmatpush3.msra.mxu1 %v7057_v48  ;;  %8110 = vmatprep.mubr.msk.f32.mxu1 %vm9513_vm5, %v9512_v2 }
 0x50d   :  { %v824_v55 = vmul.f32 %v9276_v53, %v9266_v9  ;;  %8147 = vmatprep.subr.mxu1 %v9512_v2  ;;  %v1041_v48 = vmul.f32 0.35355338, %v1022_v47  ;;  %v1042_v27 = vmul.f32 0.35355338, %v1027_v50  ;;  %v1037_v53 = vadd.f32 %v7048_v40, %v10064_v41 }
 0x50e   :  { %8148 = vmatpush3.msra.mxu1 %v7056_v52  ;;  %v1032_v52 = vadd.f32 %v7048_v40, %v10062_v39 }
 0x50f   :  { %8111 = vmatmul.mubr.msk.f32.gmra.mxu1 %vm771_vm7, %v824_v55  ;;  %8149 = vmatprep.subr.mxu1 %v9512_v2  ;;  %v1044_v36 = vmul.f32 0.35355338, %v1037_v53 }
 0x510   :  { %v9278_v58 = vpop.eup %9277  ;;  %8113 = vmatprep.mubr.msk.f32.mxu1 %vm9513_vm5, %v9512_v2  ;;  %8150 = vmatpush3.msra.mxu1 %v7055_v56  ;;  %v1043_v32 = vmul.f32 0.35355338, %v1032_v52 }
 0x511   :  { %v825_v59 = vmul.f32 %v9278_v58, %v9268_v28  ;;  %8151 = vmatprep.subr.mxu1 %v9512_v2  ;;  %v7059_v28 = vld [vmem:[%s12089_s12 + $0x1] ss:$0 sm:$0xff] }
 0x512   :  { %8152 = vmatpush3.msra.mxu1 %v7054_v57 }
 0x513   :  { %8114 = vmatmul.mubr.msk.f32.gmra.mxu1 %vm771_vm7, %v825_v59  ;;  %8191 = vmatprep.subr.mxu1 %v9512_v2 }
 0x514   :  { %v9280_v60 = vpop.eup %9279  ;;  %8116 = vmatprep.mubr.msk.f32.mxu1 %vm9513_vm5, %v9512_v2 }
 0x515   :  { %v826_v61 = vmul.f32 %v9280_v60, %v9270_v34 }
 0x517   :  { %8117 = vmatmul.mubr.msk.f32.gmra.mxu1 %vm771_vm7, %v826_v61 }
 0x518   :  { %v9282_v62 = vpop.eup %9281  ;;  %8119 = vmatprep.mubr.msk.f32.mxu1 %vm9513_vm5, %v9512_v2 }
 0x519   :  { %v827_v63 = vmul.f32 %v9282_v62, %v9272_v37 }
 0x51b   :  { %8120 = vmatmul.mubr.msk.f32.gmra.mxu1 %vm771_vm7, %v827_v63 }
 0x51c   :  { %8153 = vmatprep.mubr.msk.f32.mxu1 %vm9513_vm5, %v9512_v2 }
 0x51f   :  { %8154 = vmatmul.mubr.msk.f32.vlgmr.msra.gmra.mxu1 %vm237_vm1, %v9782_v30 }
 0x520   :  { %8156 = vmatprep.mubr.msk.f32.mxu1 %vm9513_vm5, %v9512_v2 }
 0x523   :  { %8157 = vmatmul.mubr.msk.f32.gmra.mxu1 %vm237_vm1, %v9797_v43 }
 0x524   :  { %8159 = vmatprep.mubr.msk.f32.mxu1 %vm9513_vm5, %v9512_v2 }
 0x527   :  { %8160 = vmatmul.mubr.msk.f32.gmra.mxu1 %vm237_vm1, %v9812_v49 }
 0x528   :  { %8162 = vmatprep.mubr.msk.f32.mxu1 %vm9513_vm5, %v9512_v2 }
 0x52b   :  { %8163 = vmatmul.mubr.msk.f32.gmra.mxu1 %vm237_vm1, %v9814_v51 }
 0x52c   :  { %8165 = vmatprep.mubr.msk.f32.mxu1 %vm9513_vm5, %v9512_v2 }
 0x52f   :  { %8166 = vmatmul.mubr.msk.f32.gmra.mxu1 %vm237_vm1, %v9829_v54 }
 0x530   :  { %8201 = vmatprep.mubr.msk.f32.mxu1 %vm9513_vm5, %v9512_v2 }
 0x5cb   :  { %v10134_v0 = vpop.f32.mrf.mxu1 }
 0x5cd   :  { %v8109_v3 = vpop.f32.mrf.mxu1 }
 0x5cf   :  { %v10136_v5 = vpop.f32.mrf.mxu1 }
 0x5d1   :  { %v8112_v7 = vpop.f32.mrf.mxu1 }
 0x5d3   :  { %v10138_v8 = vpop.f32.mrf.mxu1 }
 0x5d5   :  { %v8115_v10 = vpop.f32.mrf.mxu1 }
 0x5d7   :  { %v10140_v12 = vpop.f32.mrf.mxu1 }
 0x5d9   :  { %v8118_v13 = vpop.f32.mrf.mxu1 }
 0x5db   :  { %v10142_v15 = vpop.f32.mrf.mxu1 }
 0x5dd   :  { %v8121_v17 = vpop.f32.mrf.mxu1 }
 0x5df   :  { %v1124_v18 = vpop.f32.mrf.mxu1 }
 0x5e0   :  { %v1125_v45 = vadd.f32 %v7059_v28, %v1124_v18 }
 0x5e1   :  { %v8155_v20 = vpop.f32.mrf.mxu1 }
 0x5e3   :  { %v1129_v22 = vpop.f32.mrf.mxu1 }
 0x5e4   :  { %v1130_v42 = vadd.f32 %v7059_v28, %v1129_v22 }
 0x5e5   :  { %v8158_v23 = vpop.f32.mrf.mxu1 }
 0x5e7   :  { %v1134_v4 = vpop.f32.mrf.mxu1 }
 0x5e8   :  { %v1135_v24 = vadd.f32 %v7059_v28, %v1134_v4 }
 0x5e9   :  { %v8161_v25 = vpop.f32.mrf.mxu1 }
 0x5eb   :  { %v1139_v9 = vpop.f32.mrf.mxu1 }
 0x5ec   :  { %v1140_v37 = vadd.f32 %v7059_v28, %v1139_v9 }
 0x5ed   :  { %v8164_v26 = vpop.f32.mrf.mxu1 }
 0x5ef   :  { %v1144_v14 = vpop.f32.mrf.mxu1 }
 0x5f0   :  { %v1145_v34 = vadd.f32 %v7059_v28, %v1144_v14 }
 0x5f1   :  { %v8167_v19 = vpop.f32.mrf.mxu1 }
 0x5f2   :  { %8192 = vmatpush3.xpose.msk.msra.mxu1 %vm650_vm6, %v1145_v34 }
 0x5f3   :  { %8193 = vmatprep.subr.mxu1 %v9512_v2 }
 0x5f6   :  { %8194 = vmatpush3.xpose.msk.msra.mxu1 %vm650_vm6, %v1140_v37 }
 0x5f7   :  { %8195 = vmatprep.subr.mxu1 %v9512_v2 }
 0x5fa   :  { %8196 = vmatpush3.xpose.msk.msra.mxu1 %vm650_vm6, %v1135_v24 }
 0x5fb   :  { %8197 = vmatprep.subr.mxu1 %v9512_v2 }
 0x5fe   :  { %8198 = vmatpush3.xpose.msk.msra.mxu1 %vm650_vm6, %v1130_v42 }
 0x5ff   :  { %8199 = vmatprep.subr.mxu1 %v9512_v2 }
 0x602   :  { %8200 = vmatpush3.xpose.msk.msra.mxu1 %vm650_vm6, %v1125_v45 }
 0x603   :  { %8241 = vmatprep.subr.mxu1 %v9512_v2 }
 0x605   :  { %8202 = vmatmul.mubr.msk.f32.vlgmr.msra.gmra.mxu1 %vm650_vm6, %v1040_v46 }
 0x606   :  { %8204 = vmatprep.mubr.msk.f32.mxu1 %vm9513_vm5, %v9512_v2 }
 0x609   :  { %8205 = vmatmul.mubr.msk.f32.gmra.mxu1 %vm650_vm6, %v1041_v48 }
 0x60a   :  { %8207 = vmatprep.mubr.msk.f32.mxu1 %vm9513_vm5, %v9512_v2 }
 0x60d   :  { %8208 = vmatmul.mubr.msk.f32.gmra.mxu1 %vm650_vm6, %v1042_v27 }
 0x60e   :  { %8210 = vmatprep.mubr.msk.f32.mxu1 %vm9513_vm5, %v9512_v2 }
 0x611   :  { %8211 = vmatmul.mubr.msk.f32.gmra.mxu1 %vm650_vm6, %v1043_v32 }
 0x612   :  { %8213 = vmatprep.mubr.msk.f32.mxu1 %vm9513_vm5, %v9512_v2 }
 0x615   :  { %8214 = vmatmul.mubr.msk.f32.gmra.mxu1 %vm650_vm6, %v1044_v36 }
 0x616   :  { %8243 = vmatprep.mubr.msk.f32.mxu1 %vm9513_vm5, %v9512_v2 }
 0x6c5   :  { %v1347_v39 = vpop.f32.mrf.mxu1 }
 0x6c6   :  { %v1348_v55 = vadd.f32 %v1347_v39, %v10015_v1 }
 0x6c7   :  { %v8203_v56 = vpop.f32.mrf.mxu1 }
 0x6c8   :  { %v1371_v57 = vsel %vm771_vm7, %v1348_v55, -inf  ;;  %v7092_v56 = vld [vmem:[%s12091_s14 + $0x8] sm:$0xff] }
 0x6c9   :  { %1372 = vmax.xlane.f32.xlu0 %v1371_v57  ;;  %v1352_v58 = vpop.f32.mrf.mxu1  ;;  %8242 = vmatpush3.msra.mxu1 %v7092_v56 }
 0x6ca   :  { %v1353_v41 = vadd.f32 %v1352_v58, %v10023_v6  ;;  %8275 = vmatprep.subr.mxu1 %v9512_v2 }
 0x6cb   :  { %v8206_v59 = vpop.f32.mrf.mxu1 }
 0x6cc   :  { %v1374_v60 = vsel %vm771_vm7, %v1353_v41, -inf }
 0x6cd   :  { %1375 = vmax.xlane.f32.xlu1 %v1374_v60  ;;  %v1357_v61 = vpop.f32.mrf.mxu1 }
 0x6ce   :  { %v1358_v62 = vadd.f32 %v1357_v61, %v10033_v11 }
 0x6cf   :  { %v8209_v63 = vpop.f32.mrf.mxu1 }
 0x6d0   :  { %v1377_v3 = vsel %vm771_vm7, %v1358_v62, -inf }
 0x6d1   :  { %1378 = vmax.xlane.f32.xlu0 %v1377_v3  ;;  %v1362_v7 = vpop.f32.mrf.mxu1 }
 0x6d2   :  { %v1363_v10 = vadd.f32 %v1362_v7, %v10043_v16 }
 0x6d3   :  { %v8212_v13 = vpop.f32.mrf.mxu1 }
 0x6d4   :  { %v1380_v17 = vsel %vm771_vm7, %v1363_v10, -inf }
 0x6d5   :  { %1381 = vmax.xlane.f32.xlu1 %v1380_v17  ;;  %v1367_v18 = vpop.f32.mrf.mxu1 }
 0x6d6   :  { %v1368_v20 = vadd.f32 %v1367_v18, %v10051_v21 }
 0x6d7   :  { %v8215_v22 = vpop.f32.mrf.mxu1 }
 0x6d8   :  { %v1383_v23 = vsel %vm784_vm8, %v1368_v20, -inf }
 0x6d9   :  { %1384 = vmax.xlane.f32.xlu0 %v1383_v23  ;;  %v7117_v23 = vld [vmem:[%s12132_s0 + $0x58] sm:$0xff] }
 0x752   :  { %v1373_v4 = vpop.xlane.xlu0 %1372 }
 0x753   :  { %v1386_v25 = vsub.f32 %v1348_v55, %v1373_v4  ;;  %v7116_v4 = vld [vmem:[%s12132_s0 + $0x50] sm:$0xff] }
 0x755   :  { %v1391_v9 = vmul.f32 1.442695, %v1386_v25  ;;  %v7115_v25 = vld [vmem:[%s12132_s0 + $0x48] sm:$0xff] }
 0x756   :  { %v1376_v26 = vpop.xlane.xlu1 %1375 }
 0x757   :  { %9283 = vpow2.f32 %v1391_v9  ;;  %v1387_v28 = vsub.f32 %v1353_v41, %v1376_v26  ;;  %v7104_v9 = vld [vmem:[%s12129_s29 + $0x48] sm:$0xff] }
 0x759   :  { %v1393_v14 = vmul.f32 1.442695, %v1387_v28  ;;  %v7103_v28 = vld [vmem:[%s12129_s29 + $0x40] sm:$0xff] }
 0x75a   :  { %v1379_v34 = vpop.xlane.xlu0 %1378 }
 0x75b   :  { %9285 = vpow2.f32 %v1393_v14  ;;  %v1388_v19 = vsub.f32 %v1358_v62, %v1379_v34  ;;  %v936_v62 = vld [vmem:[%s12091_s14] sm:$0xff] }
 0x75d   :  { %v1395_v37 = vmul.f32 1.442695, %v1388_v19 }
 0x75e   :  { %v1382_v24 = vpop.xlane.xlu1 %1381 }
 0x75f   :  { %9287 = vpow2.f32 %v1395_v37  ;;  %v1389_v40 = vsub.f32 %v1363_v10, %v1382_v24 }
 0x761   :  { %v1397_v42 = vmul.f32 1.442695, %v1389_v40 }
 0x762   :  { %v1385_v44 = vpop.xlane.xlu0 %1384 }
 0x763   :  { %9289 = vpow2.f32 %v1397_v42  ;;  %v1390_v45 = vsub.f32 %v1368_v20, %v1385_v44  ;;  %v7128_v44 = vld [vmem:[%s12133_s3 + $0x58] sm:$0xff] }
 0x764   :  { %v9284_v46 = vpop.eup %9283 }
 0x765   :  { %v1399_v47 = vmul.f32 1.442695, %v1390_v45  ;;  %v1401_v48 = vsel %vm771_vm7, %v9284_v46, 0.0 }
 0x766   :  { %1402 = vadd.xlane.f32.xlu1 %v1401_v48  ;;  %v7126_v48 = vld [vmem:[%s12133_s3 + $0x48] sm:$0xff] }
 0x767   :  { %9291 = vpow2.f32 %v1399_v47 }
 0x768   :  { %v9286_v50 = vpop.eup %9285 }
 0x769   :  { %v1404_v27 = vsel %vm771_vm7, %v9286_v50, 0.0 }
 0x76a   :  { %1405 = vadd.xlane.f32.xlu0 %v1404_v27  ;;  %v7125_v27 = vld [vmem:[%s12133_s3 + $0x40] sm:$0xff] }
 0x76c   :  { %v9288_v52 = vpop.eup %9287 }
 0x76d   :  { %v1407_v32 = vsel %vm771_vm7, %v9288_v52, 0.0 }
 0x76e   :  { %1408 = vadd.xlane.f32.xlu1 %v1407_v32 }
 0x770   :  { %v9290_v53 = vpop.eup %9289 }
 0x771   :  { %v1410_v36 = vsel %vm771_vm7, %v9290_v53, 0.0 }
 0x772   :  { %1411 = vadd.xlane.f32.xlu0 %v1410_v36 }
 0x774   :  { %v9292_v39 = vpop.eup %9291 }
 0x775   :  { %v1413_v55 = vsel %vm784_vm8, %v9292_v39, 0.0 }
 0x776   :  { %1414 = vadd.xlane.f32.xlu1 %v1413_v55 }
 0x7ef   :  { %v1403_v57 = vpop.xlane.xlu1 %1402 }
 0x7f0   :  { %9293 = vrcp.f32 %v1403_v57 }
 0x7f3   :  { %v1406_v58 = vpop.xlane.xlu0 %1405 }
 0x7f4   :  { %9295 = vrcp.f32 %v1406_v58 }
 0x7f7   :  { %v1409_v41 = vpop.xlane.xlu1 %1408 }
 0x7f8   :  { %9297 = vrcp.f32 %v1409_v41 }
 0x7fb   :  { %v1412_v59 = vpop.xlane.xlu0 %1411 }
 0x7fc   :  { %9299 = vrcp.f32 %v1412_v59 }
 0x7fd   :  { %v9294_v60 = vpop.eup %9293 }
 0x7fe   :  { %v1421_v61 = vmul.f32 %v9294_v60, %v9284_v46  ;;  %v7127_v46 = vld [vmem:[%s12133_s3 + $0x50] sm:$0xff] }
 0x7ff   :  { %v1415_v63 = vpop.xlane.xlu1 %1414 }
 0x800   :  { %9301 = vrcp.f32 %v1415_v63  ;;  %8227 = vmatmul.mubr.msk.f32.vlgmr.msra.gmra.mxu0 %vm771_vm7, %v1421_v61 }
 0x801   :  { %v9296_v3 = vpop.eup %9295  ;;  %8229 = vmatprep.mubr.msk.f32.mxu0 %vm9513_vm5, %v9512_v2  ;;  %8259 = vmatpush3.msra.mxu0 %v936_v62 }
 0x802   :  { %v1422_v7 = vmul.f32 %v9296_v3, %v9286_v50  ;;  %8298 = vmatprep.subr.mxu0 %v9512_v2  ;;  %v7119_v3 = vld [vmem:[%s12089_s12 + $0x2] ss:$0 sm:$0xff] }
 0x804   :  { %8230 = vmatmul.mubr.msk.f32.gmra.mxu0 %vm771_vm7, %v1422_v7 }
 0x805   :  { %v9298_v10 = vpop.eup %9297  ;;  %8232 = vmatprep.mubr.msk.f32.mxu0 %vm9513_vm5, %v9512_v2 }
 0x806   :  { %v1423_v13 = vmul.f32 %v9298_v10, %v9288_v52 }
 0x808   :  { %8233 = vmatmul.mubr.msk.f32.gmra.mxu0 %vm771_vm7, %v1423_v13 }
 0x809   :  { %v9300_v17 = vpop.eup %9299  ;;  %8235 = vmatprep.mubr.msk.f32.mxu0 %vm9513_vm5, %v9512_v2 }
 0x80a   :  { %v1424_v18 = vmul.f32 %v9300_v17, %v9290_v53 }
 0x80c   :  { %8236 = vmatmul.mubr.msk.f32.gmra.mxu0 %vm771_vm7, %v1424_v18 }
 0x80d   :  { %v9302_v20 = vpop.eup %9301  ;;  %8238 = vmatprep.mubr.msk.f32.mxu0 %vm9513_vm5, %v9512_v2 }
 0x80e   :  { %v1425_v22 = vmul.f32 %v9302_v20, %v9292_v39 }
 0x810   :  { %8239 = vmatmul.mubr.msk.f32.gmra.mxu0 %vm771_vm7, %v1425_v22 }
 0x811   :  { %8260 = vmatprep.mubr.msk.f32.mxu0 %vm9513_vm5, %v9512_v2 }
 0x814   :  { %8261 = vmatmul.mubr.msk.f32.vlgmr.msra.gmra.mxu0 %vm650_vm6, %v10134_v0  ;;  %v7114_v0 = vld [vmem:[%s12132_s0 + $0x40] sm:$0xff] }
 0x815   :  { %8263 = vmatprep.mubr.msk.f32.mxu0 %vm9513_vm5, %v9512_v2  ;;  %8299 = vmatpush3.msra.mxu0 %v7117_v23 }
 0x816   :  { %8300 = vmatprep.subr.mxu0 %v9512_v2 }
 0x817   :  { %8301 = vmatpush3.msra.mxu0 %v7116_v4 }
 0x818   :  { %8264 = vmatmul.mubr.msk.f32.gmra.mxu0 %vm650_vm6, %v10136_v5  ;;  %8302 = vmatprep.subr.mxu0 %v9512_v2  ;;  %v7106_v5 = vld [vmem:[%s12129_s29 + $0x58] sm:$0xff] }
 0x819   :  { %8266 = vmatprep.mubr.msk.f32.mxu0 %vm9513_vm5, %v9512_v2  ;;  %8303 = vmatpush3.msra.mxu0 %v7115_v25 }
 0x81a   :  { %8304 = vmatprep.subr.mxu0 %v9512_v2 }
 0x81b   :  { %8305 = vmatpush3.msra.mxu0 %v7114_v0 }
 0x81c   :  { %8267 = vmatmul.mubr.msk.f32.gmra.mxu0 %vm650_vm6, %v10138_v8  ;;  %8344 = vmatprep.subr.mxu0 %v9512_v2 }
 0x81d   :  { %8269 = vmatprep.mubr.msk.f32.mxu0 %vm9513_vm5, %v9512_v2 }
 0x820   :  { %8270 = vmatmul.mubr.msk.f32.gmra.mxu0 %vm650_vm6, %v10140_v12  ;;  %v7105_v12 = vld [vmem:[%s12129_s29 + $0x50] sm:$0xff] }
 0x821   :  { %8272 = vmatprep.mubr.msk.f32.mxu0 %vm9513_vm5, %v9512_v2 }
 0x824   :  { %8273 = vmatmul.mubr.msk.f32.gmra.mxu0 %vm650_vm6, %v10142_v15 }
 0x825   :  { %8306 = vmatprep.mubr.msk.f32.mxu0 %vm9513_vm5, %v9512_v2 }
 0x828   :  { %8307 = vmatmul.mubr.msk.f32.vlgmr.msra.gmra.mxu0 %vm237_vm1, %v9782_v30 }
 0x829   :  { %8309 = vmatprep.mubr.msk.f32.mxu0 %vm9513_vm5, %v9512_v2 }
 0x82c   :  { %8310 = vmatmul.mubr.msk.f32.gmra.mxu0 %vm237_vm1, %v9797_v43 }
 0x82d   :  { %8312 = vmatprep.mubr.msk.f32.mxu0 %vm9513_vm5, %v9512_v2 }
 0x830   :  { %8313 = vmatmul.mubr.msk.f32.gmra.mxu0 %vm237_vm1, %v9812_v49 }
 0x831   :  { %8315 = vmatprep.mubr.msk.f32.mxu0 %vm9513_vm5, %v9512_v2 }
 0x834   :  { %8316 = vmatmul.mubr.msk.f32.gmra.mxu0 %vm237_vm1, %v9814_v51 }
 0x835   :  { %8318 = vmatprep.mubr.msk.f32.mxu0 %vm9513_vm5, %v9512_v2 }
 0x838   :  { %8319 = vmatmul.mubr.msk.f32.gmra.mxu0 %vm237_vm1, %v9829_v54 }
 0x839   :  { %8354 = vmatprep.mubr.msk.f32.mxu0 %vm9513_vm5, %v9512_v2 }
 0x8c0   :  { %v1510_v8 = vpop.f32.mrf.mxu0 }
 0x8c1   :  { %8244 = vmatmul.mubr.msk.f32.vlgmr.msra.gmra.mxu1 %vm650_vm6, %v1510_v8 }
 0x8c2   :  { %v8228_v15 = vpop.f32.mrf.mxu0  ;;  %8276 = vmatpush3.msra.mxu1 %v7106_v5  ;;  %8246 = vmatprep.mubr.msk.f32.mxu1 %vm9513_vm5, %v9512_v2 }
 0x8c3   :  { %8277 = vmatprep.subr.mxu1 %v9512_v2 }
 0x8c4   :  { %v1515_v26 = vpop.f32.mrf.mxu0  ;;  %8278 = vmatpush3.msra.mxu1 %v7105_v12 }
 0x8c5   :  { %8247 = vmatmul.mubr.msk.f32.gmra.mxu1 %vm650_vm6, %v1515_v26  ;;  %8279 = vmatprep.subr.mxu1 %v9512_v2 }
 0x8c6   :  { %v8231_v14 = vpop.f32.mrf.mxu0  ;;  %8249 = vmatprep.mubr.msk.f32.mxu1 %vm9513_vm5, %v9512_v2  ;;  %8280 = vmatpush3.msra.mxu1 %v7104_v9 }
 0x8c7   :  { %8281 = vmatprep.subr.mxu1 %v9512_v2 }
 0x8c8   :  { %v1520_v34 = vpop.f32.mrf.mxu0  ;;  %8282 = vmatpush3.msra.mxu1 %v7103_v28  ;;  %v7108_v28 = vld [vmem:[%s12088_s11 + $0x2] ss:$0 sm:$0xff] }
 0x8c9   :  { %8250 = vmatmul.mubr.msk.f32.gmra.mxu1 %vm650_vm6, %v1520_v34  ;;  %8321 = vmatprep.subr.mxu1 %v9512_v2 }
 0x8ca   :  { %v8234_v19 = vpop.f32.mrf.mxu0  ;;  %8252 = vmatprep.mubr.msk.f32.mxu1 %vm9513_vm5, %v9512_v2 }
 0x8cc   :  { %v1525_v37 = vpop.f32.mrf.mxu0 }
 0x8cd   :  { %8253 = vmatmul.mubr.msk.f32.gmra.mxu1 %vm650_vm6, %v1525_v37 }
 0x8ce   :  { %v8237_v24 = vpop.f32.mrf.mxu0  ;;  %8255 = vmatprep.mubr.msk.f32.mxu1 %vm9513_vm5, %v9512_v2 }
 0x8d0   :  { %v1530_v40 = vpop.f32.mrf.mxu0 }
 0x8d1   :  { %8256 = vmatmul.mubr.msk.f32.gmra.mxu1 %vm650_vm6, %v1530_v40 }
 0x8d2   :  { %v8240_v42 = vpop.f32.mrf.mxu0  ;;  %8283 = vmatprep.mubr.msk.f32.mxu1 %vm9513_vm5, %v9512_v2 }
 0x8d4   :  { %v10308_v45 = vpop.f32.mrf.mxu0 }
 0x8d5   :  { %8284 = vmatmul.mubr.msk.f32.vlgmr.msra.gmra.mxu1 %vm237_vm1, %v9782_v30 }
 0x8d6   :  { %v8262_v47 = vpop.f32.mrf.mxu0  ;;  %8286 = vmatprep.mubr.msk.f32.mxu1 %vm9513_vm5, %v9512_v2  ;;  %8322 = vmatpush3.msra.mxu1 %v7128_v44 }
 0x8d7   :  { %8323 = vmatprep.subr.mxu1 %v9512_v2 }
 0x8d8   :  { %v10321_v50 = vpop.f32.mrf.mxu0  ;;  %8324 = vmatpush3.msra.mxu1 %v7127_v46 }
 0x8d9   :  { %8287 = vmatmul.mubr.msk.f32.gmra.mxu1 %vm237_vm1, %v9797_v43  ;;  %8325 = vmatprep.subr.mxu1 %v9512_v2 }
 0x8da   :  { %v8265_v52 = vpop.f32.mrf.mxu0  ;;  %8289 = vmatprep.mubr.msk.f32.mxu1 %vm9513_vm5, %v9512_v2  ;;  %8326 = vmatpush3.msra.mxu1 %v7126_v48 }
 0x8db   :  { %8327 = vmatprep.subr.mxu1 %v9512_v2 }
 0x8dc   :  { %v10332_v32 = vpop.f32.mrf.mxu0  ;;  %8328 = vmatpush3.msra.mxu1 %v7125_v27 }
 0x8dd   :  { %8290 = vmatmul.mubr.msk.f32.gmra.mxu1 %vm237_vm1, %v9812_v49  ;;  %8369 = vmatprep.subr.mxu1 %v9512_v2 }
 0x8de   :  { %v8268_v53 = vpop.f32.mrf.mxu0  ;;  %8292 = vmatprep.mubr.msk.f32.mxu1 %vm9513_vm5, %v9512_v2 }
 0x8e0   :  { %v10339_v36 = vpop.f32.mrf.mxu0 }
 0x8e1   :  { %8293 = vmatmul.mubr.msk.f32.gmra.mxu1 %vm237_vm1, %v9814_v51 }
 0x8e2   :  { %v8271_v39 = vpop.f32.mrf.mxu0  ;;  %8295 = vmatprep.mubr.msk.f32.mxu1 %vm9513_vm5, %v9512_v2 }
 0x8e4   :  { %v10345_v55 = vpop.f32.mrf.mxu0 }
 0x8e5   :  { %8296 = vmatmul.mubr.msk.f32.gmra.mxu1 %vm237_vm1, %v9829_v54 }
 0x8e6   :  { %v8274_v56 = vpop.f32.mrf.mxu0  ;;  %8329 = vmatprep.mubr.msk.f32.mxu1 %vm9513_vm5, %v9512_v2 }
 0x8e8   :  { %v1933_v57 = vpop.f32.mrf.mxu0 }
 0x8e9   :  { %8330 = vmatmul.mubr.msk.f32.vlgmr.msra.gmra.mxu1 %vm237_vm1, %v9782_v30  ;;  %v1934_v22 = vadd.f32 %v7119_v3, %v1933_v57 }
 0x8ea   :  { %v8308_v58 = vpop.f32.mrf.mxu0  ;;  %8332 = vmatprep.mubr.msk.f32.mxu1 %vm9513_vm5, %v9512_v2 }
 0x8ec   :  { %v1938_v41 = vpop.f32.mrf.mxu0 }
 0x8ed   :  { %8333 = vmatmul.mubr.msk.f32.gmra.mxu1 %vm237_vm1, %v9797_v43  ;;  %v1939_v20 = vadd.f32 %v7119_v3, %v1938_v41 }
 0x8ee   :  { %v8311_v59 = vpop.f32.mrf.mxu0  ;;  %8335 = vmatprep.mubr.msk.f32.mxu1 %vm9513_vm5, %v9512_v2 }
 0x8f0   :  { %v1943_v60 = vpop.f32.mrf.mxu0 }
 0x8f1   :  { %8336 = vmatmul.mubr.msk.f32.gmra.mxu1 %vm237_vm1, %v9812_v49  ;;  %v1944_v18 = vadd.f32 %v7119_v3, %v1943_v60 }
 0x8f2   :  { %v8314_v61 = vpop.f32.mrf.mxu0  ;;  %8338 = vmatprep.mubr.msk.f32.mxu1 %vm9513_vm5, %v9512_v2 }
 0x8f4   :  { %v1948_v62 = vpop.f32.mrf.mxu0 }
 0x8f5   :  { %8339 = vmatmul.mubr.msk.f32.gmra.mxu1 %vm237_vm1, %v9814_v51  ;;  %v1949_v17 = vadd.f32 %v7119_v3, %v1948_v62 }
 0x8f6   :  { %v8317_v63 = vpop.f32.mrf.mxu0  ;;  %8341 = vmatprep.mubr.msk.f32.mxu1 %vm9513_vm5, %v9512_v2 }
 0x8f8   :  { %v1953_v7 = vpop.f32.mrf.mxu0 }
 0x8f9   :  { %v1954_v10 = vadd.f32 %v7119_v3, %v1953_v7  ;;  %8342 = vmatmul.mubr.msk.f32.gmra.mxu1 %vm237_vm1, %v9829_v54 }
 0x8fa   :  { %v8320_v13 = vpop.f32.mrf.mxu0  ;;  %8379 = vmatprep.mubr.msk.f32.mxu1 %vm9513_vm5, %v9512_v2 }
 0x8fb   :  { %8345 = vmatpush3.xpose.msk.msra.mxu0 %vm650_vm6, %v1954_v10 }
 0x8fc   :  { %8346 = vmatprep.subr.mxu0 %v9512_v2 }
 0x8ff   :  { %8347 = vmatpush3.xpose.msk.msra.mxu0 %vm650_vm6, %v1949_v17  ;;  %v7130_v17 = vld [vmem:[%s12090_s13 + $0x2] ss:$0 sm:$0xff] }
 0x900   :  { %8348 = vmatprep.subr.mxu0 %v9512_v2 }
 0x903   :  { %8349 = vmatpush3.xpose.msk.msra.mxu0 %vm650_vm6, %v1944_v18 }
 0x904   :  { %8350 = vmatprep.subr.mxu0 %v9512_v2 }
 0x907   :  { %8351 = vmatpush3.xpose.msk.msra.mxu0 %vm650_vm6, %v1939_v20 }
 0x908   :  { %8352 = vmatprep.subr.mxu0 %v9512_v2 }
 0x90b   :  { %8353 = vmatpush3.xpose.msk.msra.mxu0 %vm650_vm6, %v1934_v22 }
 0x90c   :  { %8394 = vmatprep.subr.mxu0 %v9512_v2 }
 0x981   :  { %v10384_v23 = vpop.f32.mrf.mxu1 }
 0x983   :  { %v8245_v4 = vpop.f32.mrf.mxu1 }
 0x985   :  { %v10386_v25 = vpop.f32.mrf.mxu1 }
 0x987   :  { %v8248_v0 = vpop.f32.mrf.mxu1 }
 0x989   :  { %v10388_v5 = vpop.f32.mrf.mxu1 }
 0x98b   :  { %v8251_v8 = vpop.f32.mrf.mxu1 }
 0x98d   :  { %v10390_v12 = vpop.f32.mrf.mxu1 }
 0x98f   :  { %v8254_v15 = vpop.f32.mrf.mxu1 }
 0x991   :  { %v10392_v9 = vpop.f32.mrf.mxu1 }
 0x993   :  { %v8257_v26 = vpop.f32.mrf.mxu1 }
 0x995   :  { %v1825_v14 = vpop.f32.mrf.mxu1 }
 0x996   :  { %v1826_v34 = vadd.f32 %v7108_v28, %v1825_v14 }
 0x997   :  { %v8285_v19 = vpop.f32.mrf.mxu1 }
 0x998   :  { %v1849_v37 = vmul.f32 0.35355338, %v1826_v34 }
 0x999   :  { %v1830_v24 = vpop.f32.mrf.mxu1 }
 0x99a   :  { %v1831_v40 = vadd.f32 %v7108_v28, %v1830_v24  ;;  %8355 = vmatmul.mubr.msk.f32.vlgmr.msra.gmra.mxu0 %vm650_vm6, %v1849_v37 }
 0x99b   :  { %v8288_v42 = vpop.f32.mrf.mxu1  ;;  %8357 = vmatprep.mubr.msk.f32.mxu0 %vm9513_vm5, %v9512_v2 }
 0x99c   :  { %v1850_v44 = vmul.f32 0.35355338, %v1831_v40 }
 0x99d   :  { %v1835_v46 = vpop.f32.mrf.mxu1 }
 0x99e   :  { %v1836_v47 = vadd.f32 %v7108_v28, %v1835_v46  ;;  %8358 = vmatmul.mubr.msk.f32.gmra.mxu0 %vm650_vm6, %v1850_v44 }
 0x99f   :  { %v8291_v48 = vpop.f32.mrf.mxu1  ;;  %8360 = vmatprep.mubr.msk.f32.mxu0 %vm9513_vm5, %v9512_v2 }
 0x9a0   :  { %v1851_v27 = vmul.f32 0.35355338, %v1836_v47 }
 0x9a1   :  { %v1840_v52 = vpop.f32.mrf.mxu1 }
 0x9a2   :  { %v1841_v53 = vadd.f32 %v7108_v28, %v1840_v52  ;;  %8361 = vmatmul.mubr.msk.f32.gmra.mxu0 %vm650_vm6, %v1851_v27 }
 0x9a3   :  { %v8294_v39 = vpop.f32.mrf.mxu1  ;;  %8363 = vmatprep.mubr.msk.f32.mxu0 %vm9513_vm5, %v9512_v2 }
 0x9a4   :  { %v1852_v56 = vmul.f32 0.35355338, %v1841_v53 }
 0x9a5   :  { %v1845_v57 = vpop.f32.mrf.mxu1 }
 0x9a6   :  { %v1846_v58 = vadd.f32 %v7108_v28, %v1845_v57  ;;  %8364 = vmatmul.mubr.msk.f32.gmra.mxu0 %vm650_vm6, %v1852_v56 }
 0x9a7   :  { %v8297_v41 = vpop.f32.mrf.mxu1  ;;  %8366 = vmatprep.mubr.msk.f32.mxu0 %vm9513_vm5, %v9512_v2 }
 0x9a8   :  { %v1853_v59 = vmul.f32 0.35355338, %v1846_v58 }
 0x9a9   :  { %v2036_v60 = vpop.f32.mrf.mxu1 }
 0x9aa   :  { %8367 = vmatmul.mubr.msk.f32.gmra.mxu0 %vm650_vm6, %v1853_v59  ;;  %v2037_v15 = vadd.f32 %v7130_v17, %v2036_v60 }
 0x9ab   :  { %v8331_v61 = vpop.f32.mrf.mxu1  ;;  %8396 = vmatprep.mubr.msk.f32.mxu0 %vm9513_vm5, %v9512_v2 }
 0x9ad   :  { %v2041_v62 = vpop.f32.mrf.mxu1 }
 0x9ae   :  { %v2042_v8 = vadd.f32 %v7130_v17, %v2041_v62 }
 0x9af   :  { %v8334_v63 = vpop.f32.mrf.mxu1 }
 0x9b1   :  { %v2046_v3 = vpop.f32.mrf.mxu1 }
 0x9b2   :  { %v2047_v0 = vadd.f32 %v7130_v17, %v2046_v3 }
 0x9b3   :  { %v8337_v7 = vpop.f32.mrf.mxu1 }
 0x9b5   :  { %v2051_v10 = vpop.f32.mrf.mxu1 }
 0x9b6   :  { %v2052_v4 = vadd.f32 %v7130_v17, %v2051_v10 }
 0x9b7   :  { %v8340_v13 = vpop.f32.mrf.mxu1 }
 0x9b9   :  { %v2056_v18 = vpop.f32.mrf.mxu1 }
 0x9ba   :  { %v2057_v20 = vadd.f32 %v7130_v17, %v2056_v18 }
 0x9bb   :  { %v8343_v22 = vpop.f32.mrf.mxu1 }
 0x9bc   :  { %8370 = vmatpush3.msk.msra.mxu1 %vm220_vm3, %v2057_v20 }
 0x9bd   :  { %8371 = vmatprep.subr.mxu1 %v9512_v2 }
 0x9be   :  { %8372 = vmatpush3.msra.mxu1 %v2052_v4 }
 0x9bf   :  { %8373 = vmatprep.subr.mxu1 %v9512_v2 }
 0x9c0   :  { %8374 = vmatpush3.msra.mxu1 %v2047_v0 }
 0x9c1   :  { %8375 = vmatprep.subr.mxu1 %v9512_v2 }
 0x9c2   :  { %8376 = vmatpush3.msra.mxu1 %v2042_v8 }
 0x9c3   :  { %8377 = vmatprep.subr.mxu1 %v9512_v2 }
 0x9c4   :  { %8378 = vmatpush3.msra.mxu1 %v2037_v15 }
 0x9c5   :  { %8411 = vmatprep.subr.mxu1 %v9512_v2 }
 0xa5a   :  { %v2156_v26 = vpop.f32.mrf.mxu0 }
 0xa5b   :  { %v2157_v28 = vadd.f32 %v2156_v26, %v10015_v1 }
 0xa5c   :  { %v8356_v14 = vpop.f32.mrf.mxu0 }
 0xa5d   :  { %v2180_v34 = vsel %vm771_vm7, %v2157_v28, -inf  ;;  %v7152_v14 = vld [vmem:[%s12091_s14 + $0x10] sm:$0xff] }
 0xa5e   :  { %2181 = vmax.xlane.f32.xlu0 %v2180_v34  ;;  %v2161_v19 = vpop.f32.mrf.mxu0  ;;  %8395 = vmatpush3.msra.mxu0 %v7152_v14 }
 0xa5f   :  { %v2162_v37 = vadd.f32 %v2161_v19, %v10023_v6  ;;  %8434 = vmatprep.subr.mxu0 %v9512_v2 }
 0xa60   :  { %v8359_v24 = vpop.f32.mrf.mxu0 }
 0xa61   :  { %v2183_v40 = vsel %vm771_vm7, %v2162_v37, -inf }
 0xa62   :  { %2184 = vmax.xlane.f32.xlu1 %v2183_v40  ;;  %v2166_v42 = vpop.f32.mrf.mxu0 }
 0xa63   :  { %v2167_v44 = vadd.f32 %v2166_v42, %v10033_v11 }
 0xa64   :  { %v8362_v46 = vpop.f32.mrf.mxu0 }
 0xa65   :  { %v2186_v47 = vsel %vm771_vm7, %v2167_v44, -inf }
 0xa66   :  { %2187 = vmax.xlane.f32.xlu0 %v2186_v47  ;;  %v2171_v48 = vpop.f32.mrf.mxu0  ;;  %v7160_v47 = vld [vmem:[%s12129_s29 + $0x70] sm:$0xff] }
 0xa67   :  { %v2172_v1 = vadd.f32 %v2171_v48, %v10043_v16 }
 0xa68   :  { %v8365_v27 = vpop.f32.mrf.mxu0 }
 0xa69   :  { %v2189_v52 = vsel %vm771_vm7, %v2172_v1, -inf  ;;  %v7159_v27 = vld [vmem:[%s12129_s29 + $0x68] sm:$0xff] }
 0xa6a   :  { %2190 = vmax.xlane.f32.xlu1 %v2189_v52  ;;  %v2176_v53 = vpop.f32.mrf.mxu0  ;;  %v7158_v52 = vld [vmem:[%s12129_s29 + $0x60] sm:$0xff] }
 0xa6b   :  { %v2177_v6 = vadd.f32 %v2176_v53, %v10051_v21 }
 0xa6c   :  { %v8368_v39 = vpop.f32.mrf.mxu0 }
 0xa6d   :  { %v2192_v56 = vsel %vm784_vm8, %v2177_v6, -inf }
 0xa6e   :  { %2193 = vmax.xlane.f32.xlu0 %v2192_v56 }
 0xae7   :  { %v2182_v57 = vpop.xlane.xlu0 %2181 }
 0xae8   :  { %v2195_v11 = vsub.f32 %v2157_v28, %v2182_v57 }
 0xaea   :  { %v2200_v58 = vmul.f32 1.442695, %v2195_v11 }
 0xaeb   :  { %v2185_v41 = vpop.xlane.xlu1 %2184 }
 0xaec   :  { %9303 = vpow2.f32 %v2200_v58  ;;  %v2196_v59 = vsub.f32 %v2162_v37, %v2185_v41  ;;  %v7183_v58 = vld [vmem:[%s12133_s3 + $0x78] sm:$0xff]  ;;  %v7182_v41 = vld [vmem:[%s12133_s3 + $0x70] sm:$0xff] }
 0xaee   :  { %v2202_v60 = vmul.f32 1.442695, %v2196_v59  ;;  %v7181_v59 = vld [vmem:[%s12133_s3 + $0x68] sm:$0xff] }
 0xaef   :  { %v2188_v61 = vpop.xlane.xlu0 %2187 }
 0xaf0   :  { %9305 = vpow2.f32 %v2202_v60  ;;  %v2197_v16 = vsub.f32 %v2167_v44, %v2188_v61  ;;  %v7161_v44 = vld [vmem:[%s12129_s29 + $0x78] sm:$0xff]  ;;  %v7180_v60 = vld [vmem:[%s12133_s3 + $0x60] sm:$0xff] }
 0xaf1   :  { %v7172_v61 = vld [vmem:[%s12132_s0 + $0x78] sm:$0xff] }
 0xaf2   :  { %v2204_v62 = vmul.f32 1.442695, %v2197_v16 }
 0xaf3   :  { %v2191_v63 = vpop.xlane.xlu1 %2190 }
 0xaf4   :  { %9307 = vpow2.f32 %v2204_v62  ;;  %v2198_v3 = vsub.f32 %v2172_v1, %v2191_v63  ;;  %v7171_v62 = vld [vmem:[%s12132_s0 + $0x70] sm:$0xff] }
 0xaf6   :  { %v2206_v7 = vmul.f32 1.442695, %v2198_v3  ;;  %v7170_v3 = vld [vmem:[%s12132_s0 + $0x68] sm:$0xff] }
 0xaf7   :  { %v2194_v21 = vpop.xlane.xlu0 %2193 }
 0xaf8   :  { %9309 = vpow2.f32 %v2206_v7  ;;  %v2199_v10 = vsub.f32 %v2177_v6, %v2194_v21  ;;  %v7169_v21 = vld [vmem:[%s12132_s0 + $0x60] sm:$0xff] }
 0xaf9   :  { %v9304_v13 = vpop.eup %9303 }
 0xafa   :  { %v2208_v17 = vmul.f32 1.442695, %v2199_v10  ;;  %v2210_v18 = vsel %vm771_vm7, %v9304_v13, 0.0 }
 0xafb   :  { %2211 = vadd.xlane.f32.xlu1 %v2210_v18 }
 0xafc   :  { %9311 = vpow2.f32 %v2208_v17 }
 0xafd   :  { %v9306_v20 = vpop.eup %9305 }
 0xafe   :  { %v2213_v22 = vsel %vm771_vm7, %v9306_v20, 0.0 }
 0xaff   :  { %2214 = vadd.xlane.f32.xlu0 %v2213_v22 }
 0xb01   :  { %v9308_v4 = vpop.eup %9307 }
 0xb02   :  { %v2216_v0 = vsel %vm771_vm7, %v9308_v4, 0.0 }
 0xb03   :  { %2217 = vadd.xlane.f32.xlu1 %v2216_v0 }
 0xb05   :  { %v9310_v8 = vpop.eup %9309 }
 0xb06   :  { %v2219_v15 = vsel %vm771_vm7, %v9310_v8, 0.0 }
 0xb07   :  { %2220 = vadd.xlane.f32.xlu0 %v2219_v15 }
 0xb09   :  { %v9312_v26 = vpop.eup %9311 }
 0xb0a   :  { %v2222_v28 = vsel %vm784_vm8, %v9312_v26, 0.0 }
 0xb0b   :  { %2223 = vadd.xlane.f32.xlu1 %v2222_v28 }
 0xb84   :  { %v2212_v34 = vpop.xlane.xlu1 %2211 }
 0xb85   :  { %9313 = vrcp.f32 %v2212_v34 }
 0xb88   :  { %v2215_v19 = vpop.xlane.xlu0 %2214 }
 0xb89   :  { %9315 = vrcp.f32 %v2215_v19 }
 0xb8c   :  { %v2218_v37 = vpop.xlane.xlu1 %2217 }
 0xb8d   :  { %9317 = vrcp.f32 %v2218_v37 }
 0xb90   :  { %v2221_v24 = vpop.xlane.xlu0 %2220 }
 0xb91   :  { %9319 = vrcp.f32 %v2221_v24 }
 0xb92   :  { %v9314_v40 = vpop.eup %9313 }
 0xb93   :  { %v2230_v42 = vmul.f32 %v9314_v40, %v9304_v13 }
 0xb94   :  { %v2224_v46 = vpop.xlane.xlu1 %2223 }
 0xb95   :  { %9321 = vrcp.f32 %v2224_v46  ;;  %8380 = vmatmul.mubr.msk.f32.vlgmr.msra.gmra.mxu1 %vm771_vm7, %v2230_v42 }
 0xb96   :  { %v9316_v48 = vpop.eup %9315  ;;  %8382 = vmatprep.mubr.msk.f32.mxu1 %vm9513_vm5, %v9512_v2  ;;  %8412 = vmatpush3.msra.mxu1 %v7161_v44 }
 0xb97   :  { %v2231_v1 = vmul.f32 %v9316_v48, %v9306_v20  ;;  %8413 = vmatprep.subr.mxu1 %v9512_v2 }
 0xb98   :  { %8414 = vmatpush3.msra.mxu1 %v7160_v47  ;;  %v7185_v47 = vld [vmem:[%s12090_s13 + $0x3] ss:$0 sm:$0xff] }
 0xb99   :  { %8383 = vmatmul.mubr.msk.f32.gmra.mxu1 %vm771_vm7, %v2231_v1  ;;  %8415 = vmatprep.subr.mxu1 %v9512_v2 }
 0xb9a   :  { %v9318_v53 = vpop.eup %9317  ;;  %8385 = vmatprep.mubr.msk.f32.mxu1 %vm9513_vm5, %v9512_v2  ;;  %8416 = vmatpush3.msra.mxu1 %v7159_v27 }
 0xb9b   :  { %v2232_v6 = vmul.f32 %v9318_v53, %v9308_v4  ;;  %8417 = vmatprep.subr.mxu1 %v9512_v2 }
 0xb9c   :  { %8418 = vmatpush3.msra.mxu1 %v7158_v52 }
 0xb9d   :  { %8386 = vmatmul.mubr.msk.f32.gmra.mxu1 %vm771_vm7, %v2232_v6  ;;  %8457 = vmatprep.subr.mxu1 %v9512_v2 }
 0xb9e   :  { %v9320_v39 = vpop.eup %9319  ;;  %8388 = vmatprep.mubr.msk.f32.mxu1 %vm9513_vm5, %v9512_v2 }
 0xb9f   :  { %v2233_v56 = vmul.f32 %v9320_v39, %v9310_v8  ;;  %v1723_v39 = vadd.f32 %v10308_v45, %v10384_v23  ;;  %v1738_v45 = vadd.f32 %v10339_v36, %v10390_v12  ;;  %v7174_v36 = vld [vmem:[%s12089_s12 + $0x3] ss:$0 sm:$0xff] }
 0xba1   :  { %8389 = vmatmul.mubr.msk.f32.gmra.mxu1 %vm771_vm7, %v2233_v56 }
 0xba2   :  { %v9322_v57 = vpop.eup %9321  ;;  %8391 = vmatprep.mubr.msk.f32.mxu1 %vm9513_vm5, %v9512_v2 }
 0xba3   :  { %v2234_v11 = vmul.f32 %v9322_v57, %v9312_v26 }
 0xba5   :  { %8392 = vmatmul.mubr.msk.f32.gmra.mxu1 %vm771_vm7, %v2234_v11 }
 0xba6   :  { %8419 = vmatprep.mubr.msk.f32.mxu1 %vm9513_vm5, %v9512_v2 }
 0xba9   :  { %8420 = vmatmul.mubr.msk.f32.vlgmr.msra.gmra.mxu1 %vm237_vm1, %v9782_v30 }
 0xbaa   :  { %8422 = vmatprep.mubr.msk.f32.mxu1 %vm9513_vm5, %v9512_v2  ;;  %8458 = vmatpush3.msra.mxu1 %v7183_v58  ;;  %v1728_v58 = vadd.f32 %v10321_v50, %v10386_v25  ;;  %v1743_v50 = vadd.f32 %v10345_v55, %v10392_v9 }
 0xbab   :  { %8459 = vmatprep.subr.mxu1 %v9512_v2 }
 0xbac   :  { %8460 = vmatpush3.msra.mxu1 %v7182_v41 }
 0xbad   :  { %8423 = vmatmul.mubr.msk.f32.gmra.mxu1 %vm237_vm1, %v9797_v43  ;;  %8461 = vmatprep.subr.mxu1 %v9512_v2 }
 0xbae   :  { %8425 = vmatprep.mubr.msk.f32.mxu1 %vm9513_vm5, %v9512_v2  ;;  %8462 = vmatpush3.msra.mxu1 %v7181_v59 }
 0xbaf   :  { %8463 = vmatprep.subr.mxu1 %v9512_v2 }
 0xbb0   :  { %8464 = vmatpush3.msra.mxu1 %v7180_v60 }
 0xbb1   :  { %8426 = vmatmul.mubr.msk.f32.gmra.mxu1 %vm237_vm1, %v9812_v49  ;;  %8505 = vmatprep.subr.mxu1 %v9512_v2 }
 0xbb2   :  { %8428 = vmatprep.mubr.msk.f32.mxu1 %vm9513_vm5, %v9512_v2 }
 0xbb5   :  { %8429 = vmatmul.mubr.msk.f32.gmra.mxu1 %vm237_vm1, %v9814_v51 }
 0xbb6   :  { %8431 = vmatprep.mubr.msk.f32.mxu1 %vm9513_vm5, %v9512_v2 }
 0xbb9   :  { %8432 = vmatmul.mubr.msk.f32.gmra.mxu1 %vm237_vm1, %v9829_v54 }
 0xbba   :  { %8465 = vmatprep.mubr.msk.f32.mxu1 %vm9513_vm5, %v9512_v2 }
 0xbbd   :  { %8466 = vmatmul.mubr.msk.f32.vlgmr.msra.gmra.mxu1 %vm237_vm1, %v9782_v30 }
 0xbbe   :  { %8468 = vmatprep.mubr.msk.f32.mxu1 %vm9513_vm5, %v9512_v2 }
 0xbc1   :  { %8469 = vmatmul.mubr.msk.f32.gmra.mxu1 %vm237_vm1, %v9797_v43 }
 0xbc2   :  { %8471 = vmatprep.mubr.msk.f32.mxu1 %vm9513_vm5, %v9512_v2 }
 0xbc5   :  { %8472 = vmatmul.mubr.msk.f32.gmra.mxu1 %vm237_vm1, %v9812_v49 }
 0xbc6   :  { %8474 = vmatprep.mubr.msk.f32.mxu1 %vm9513_vm5, %v9512_v2 }
 0xbc9   :  { %8475 = vmatmul.mubr.msk.f32.gmra.mxu1 %vm237_vm1, %v9814_v51 }
 0xbca   :  { %8477 = vmatprep.mubr.msk.f32.mxu1 %vm9513_vm5, %v9512_v2 }
 0xbcd   :  { %8478 = vmatmul.mubr.msk.f32.gmra.mxu1 %vm237_vm1, %v9829_v54 }
 0xbce   :  { %8515 = vmatprep.mubr.msk.f32.mxu1 %vm9513_vm5, %v9512_v2 }
 0xc55   :  { %v2319_v16 = vpop.f32.mrf.mxu1 }
 0xc56   :  { %8397 = vmatmul.mubr.msk.f32.vlgmr.msra.gmra.mxu0 %vm650_vm6, %v2319_v16 }
 0xc57   :  { %v8381_v63 = vpop.f32.mrf.mxu1  ;;  %8435 = vmatpush3.msra.mxu0 %v7172_v61  ;;  %8399 = vmatprep.mubr.msk.f32.mxu0 %vm9513_vm5, %v9512_v2  ;;  %v1733_v61 = vadd.f32 %v10332_v32, %v10388_v5 }
 0xc58   :  { %8436 = vmatprep.subr.mxu0 %v9512_v2 }
 0xc59   :  { %v2324_v7 = vpop.f32.mrf.mxu1  ;;  %8437 = vmatpush3.msra.mxu0 %v7171_v62 }
 0xc5a   :  { %8400 = vmatmul.mubr.msk.f32.gmra.mxu0 %vm650_vm6, %v2324_v7  ;;  %8438 = vmatprep.subr.mxu0 %v9512_v2 }
 0xc5b   :  { %v8384_v10 = vpop.f32.mrf.mxu1  ;;  %8402 = vmatprep.mubr.msk.f32.mxu0 %vm9513_vm5, %v9512_v2  ;;  %8439 = vmatpush3.msra.mxu0 %v7170_v3 }
 0xc5c   :  { %8440 = vmatprep.subr.mxu0 %v9512_v2 }
 0xc5d   :  { %v2329_v13 = vpop.f32.mrf.mxu1  ;;  %8441 = vmatpush3.msra.mxu0 %v7169_v21 }
 0xc5e   :  { %8403 = vmatmul.mubr.msk.f32.gmra.mxu0 %vm650_vm6, %v2329_v13  ;;  %8480 = vmatprep.subr.mxu0 %v9512_v2 }
 0xc5f   :  { %v8387_v17 = vpop.f32.mrf.mxu1  ;;  %8405 = vmatprep.mubr.msk.f32.mxu0 %vm9513_vm5, %v9512_v2 }
 0xc61   :  { %v2334_v18 = vpop.f32.mrf.mxu1 }
 0xc62   :  { %8406 = vmatmul.mubr.msk.f32.gmra.mxu0 %vm650_vm6, %v2334_v18 }
 0xc63   :  { %v8390_v20 = vpop.f32.mrf.mxu1  ;;  %8408 = vmatprep.mubr.msk.f32.mxu0 %vm9513_vm5, %v9512_v2 }
 0xc65   :  { %v2339_v22 = vpop.f32.mrf.mxu1 }
 0xc66   :  { %8409 = vmatmul.mubr.msk.f32.gmra.mxu0 %vm650_vm6, %v2339_v22 }
 0xc67   :  { %v8393_v4 = vpop.f32.mrf.mxu1  ;;  %8442 = vmatprep.mubr.msk.f32.mxu0 %vm9513_vm5, %v9512_v2 }
 0xc69   :  { %v10558_v0 = vpop.f32.mrf.mxu1 }
 0xc6a   :  { %8443 = vmatmul.mubr.msk.f32.vlgmr.msra.gmra.mxu0 %vm237_vm1, %v9782_v30 }
 0xc6b   :  { %v8421_v8 = vpop.f32.mrf.mxu1  ;;  %8445 = vmatprep.mubr.msk.f32.mxu0 %vm9513_vm5, %v9512_v2 }
 0xc6d   :  { %v10564_v15 = vpop.f32.mrf.mxu1 }
 0xc6e   :  { %8446 = vmatmul.mubr.msk.f32.gmra.mxu0 %vm237_vm1, %v9797_v43 }
 0xc6f   :  { %v8424_v26 = vpop.f32.mrf.mxu1  ;;  %8448 = vmatprep.mubr.msk.f32.mxu0 %vm9513_vm5, %v9512_v2 }
 0xc71   :  { %v10570_v28 = vpop.f32.mrf.mxu1 }
 0xc72   :  { %8449 = vmatmul.mubr.msk.f32.gmra.mxu0 %vm237_vm1, %v9812_v49 }
 0xc73   :  { %v8427_v14 = vpop.f32.mrf.mxu1  ;;  %8451 = vmatprep.mubr.msk.f32.mxu0 %vm9513_vm5, %v9512_v2 }
 0xc74   :  { %v7163_v14 = vld [vmem:[%s12088_s11 + $0x3] ss:$0 sm:$0xff] }
 0xc75   :  { %v10576_v30 = vpop.f32.mrf.mxu1 }
 0xc76   :  { %8452 = vmatmul.mubr.msk.f32.gmra.mxu0 %vm237_vm1, %v9814_v51 }
 0xc77   :  { %v8430_v34 = vpop.f32.mrf.mxu1  ;;  %8454 = vmatprep.mubr.msk.f32.mxu0 %vm9513_vm5, %v9512_v2 }
 0xc79   :  { %v10582_v43 = vpop.f32.mrf.mxu1 }
 0xc7a   :  { %8455 = vmatmul.mubr.msk.f32.gmra.mxu0 %vm237_vm1, %v9829_v54 }
 0xc7b   :  { %v8433_v19 = vpop.f32.mrf.mxu1  ;;  %8490 = vmatprep.mubr.msk.f32.mxu0 %vm9513_vm5, %v9512_v2 }
 0xc7c   :  { %v2535_v19 = vadd.f32 %v7163_v14, %v10558_v0 }
 0xc7d   :  { %v2745_v49 = vpop.f32.mrf.mxu1 }
 0xc7e   :  { %v2746_v6 = vadd.f32 %v7185_v47, %v2745_v49 }
 0xc7f   :  { %v8467_v37 = vpop.f32.mrf.mxu1 }
 0xc80   :  { %v2558_v37 = vmul.f32 0.35355338, %v2535_v19 }
 0xc81   :  { %v2750_v24 = vpop.f32.mrf.mxu1 }
 0xc82   :  { %v2751_v53 = vadd.f32 %v7185_v47, %v2750_v24  ;;  %v2540_v24 = vadd.f32 %v7163_v14, %v10564_v15 }
 0xc83   :  { %v8470_v40 = vpop.f32.mrf.mxu1 }
 0xc84   :  { %v2559_v40 = vmul.f32 0.35355338, %v2540_v24 }
 0xc85   :  { %v2755_v42 = vpop.f32.mrf.mxu1 }
 0xc86   :  { %v2756_v52 = vadd.f32 %v7185_v47, %v2755_v42  ;;  %v2545_v42 = vadd.f32 %v7163_v14, %v10570_v28 }
 0xc87   :  { %v8473_v44 = vpop.f32.mrf.mxu1 }
 0xc88   :  { %v2560_v0 = vmul.f32 0.35355338, %v2545_v42  ;;  %v2550_v44 = vadd.f32 %v7163_v14, %v10576_v30 }
 0xc89   :  { %v2760_v51 = vpop.f32.mrf.mxu1 }
 0xc8a   :  { %v2761_v54 = vadd.f32 %v7185_v47, %v2760_v51  ;;  %v2561_v15 = vmul.f32 0.35355338, %v2550_v44  ;;  %v2555_v51 = vadd.f32 %v7163_v14, %v10582_v43 }
 0xc8b   :  { %v8476_v46 = vpop.f32.mrf.mxu1 }
 0xc8c   :  { %v2562_v28 = vmul.f32 0.35355338, %v2555_v51  ;;  %v9475_v46 = vld [vmem:[%s12134_s8] sm:$0xff] }
 0xc8d   :  { %v2765_v48 = vpop.f32.mrf.mxu1 }
 0xc8e   :  { %v2766_v1 = vadd.f32 %v7185_v47, %v2765_v48 }
 0xc8f   :  { %v8479_v27 = vpop.f32.mrf.mxu1 }
 0xc90   :  { %8506 = vmatpush3.msk.msra.mxu1 %vm220_vm3, %v2766_v1  ;;  %v9476_v27 = vld [vmem:[%s12134_s8 + $0x8] sm:$0xff] }
 0xc91   :  { %8507 = vmatprep.subr.mxu1 %v9512_v2 }
 0xc92   :  { %8508 = vmatpush3.msra.mxu1 %v2761_v54 }
 0xc93   :  { %8509 = vmatprep.subr.mxu1 %v9512_v2 }
 0xc94   :  { %8510 = vmatpush3.msra.mxu1 %v2756_v52 }
 0xc95   :  { %8511 = vmatprep.subr.mxu1 %v9512_v2 }
 0xc96   :  { %8512 = vmatpush3.msra.mxu1 %v2751_v53 }
 0xc97   :  { %8513 = vmatprep.subr.mxu1 %v9512_v2 }
 0xc98   :  { %8514 = vmatpush3.msra.mxu1 %v2746_v6 }
 0xc99   :  { %8547 = vmatprep.subr.mxu1 %v9512_v2 }
 0xd16   :  { %v2426_v56 = vpop.f32.mrf.mxu0 }
 0xd17   :  { %v10599_v57 = vadd.f32 %v2426_v56, %v1723_v39  ;;  %v9477_v39 = vld [vmem:[%s12134_s8 + $0x10] sm:$0xff] }
 0xd18   :  { %v8398_v11 = vpop.f32.mrf.mxu0 }
 0xd1a   :  { %v2431_v41 = vpop.f32.mrf.mxu0 }
 0xd1b   :  { %v10603_v59 = vadd.f32 %v2431_v41, %v1728_v58 }
 0xd1c   :  { %v8401_v60 = vpop.f32.mrf.mxu0 }
 0xd1d   :  { %v9478_v60 = vld [vmem:[%s12134_s8 + $0x18] sm:$0xff] }
 0xd1e   :  { %v2436_v16 = vpop.f32.mrf.mxu0 }
 0xd1f   :  { %v10607_v62 = vadd.f32 %v2436_v16, %v1733_v61 }
 0xd20   :  { %v8404_v63 = vpop.f32.mrf.mxu0 }
 0xd22   :  { %v2441_v23 = vpop.f32.mrf.mxu0 }
 0xd23   :  { %v10611_v3 = vadd.f32 %v2441_v23, %v1738_v45  ;;  %v9479_v23 = vld [vmem:[%s12134_s8 + $0x20] sm:$0xf] }
 0xd24   :  { %v8407_v7 = vpop.f32.mrf.mxu0 }
 0xd26   :  { %v2446_v25 = vpop.f32.mrf.mxu0 }
 0xd27   :  { %v10615_v21 = vadd.f32 %v2446_v25, %v1743_v50 }
 0xd28   :  { %v8410_v10 = vpop.f32.mrf.mxu0 }
 0xd2a   :  { %v2642_v13 = vpop.f32.mrf.mxu0 }
 0xd2b   :  { %v2643_v49 = vadd.f32 %v7174_v36, %v2642_v13 }
 0xd2c   :  { %v8444_v32 = vpop.f32.mrf.mxu0 }
 0xd2e   :  { %v2647_v5 = vpop.f32.mrf.mxu0 }
 0xd2f   :  { %v2648_v34 = vadd.f32 %v7174_v36, %v2647_v5 }
 0xd30   :  { %v8447_v17 = vpop.f32.mrf.mxu0 }
 0xd32   :  { %v2652_v18 = vpop.f32.mrf.mxu0 }
 0xd33   :  { %v2653_v9 = vadd.f32 %v7174_v36, %v2652_v18 }
 0xd34   :  { %v8450_v20 = vpop.f32.mrf.mxu0 }
 0xd36   :  { %v2657_v22 = vpop.f32.mrf.mxu0 }
 0xd37   :  { %v2658_v55 = vadd.f32 %v7174_v36, %v2657_v22 }
 0xd38   :  { %v8453_v4 = vpop.f32.mrf.mxu0 }
 0xd3a   :  { %v2662_v12 = vpop.f32.mrf.mxu0 }
 0xd3b   :  { %v2663_v8 = vadd.f32 %v7174_v36, %v2662_v12 }
 0xd3c   :  { %v8456_v26 = vpop.f32.mrf.mxu0 }
 0xd3d   :  { %8481 = vmatpush3.xpose.msk.msra.mxu0 %vm650_vm6, %v2663_v8 }
 0xd3e   :  { %8482 = vmatprep.subr.mxu0 %v9512_v2 }
 0xd41   :  { %8483 = vmatpush3.xpose.msk.msra.mxu0 %vm650_vm6, %v2658_v55 }
 0xd42   :  { %8484 = vmatprep.subr.mxu0 %v9512_v2 }
 0xd45   :  { %8485 = vmatpush3.xpose.msk.msra.mxu0 %vm650_vm6, %v2653_v9 }
 0xd46   :  { %8486 = vmatprep.subr.mxu0 %v9512_v2 }
 0xd49   :  { %8487 = vmatpush3.xpose.msk.msra.mxu0 %vm650_vm6, %v2648_v34 }
 0xd4a   :  { %8488 = vmatprep.subr.mxu0 %v9512_v2 }
 0xd4d   :  { %8489 = vmatpush3.xpose.msk.msra.mxu0 %vm650_vm6, %v2643_v49 }
 0xd4e   :  { %8530 = vmatprep.subr.mxu0 %v9512_v2 }
 0xd50   :  { %8491 = vmatmul.mubr.msk.f32.vlgmr.msra.gmra.mxu0 %vm650_vm6, %v2558_v37 }
 0xd51   :  { %8493 = vmatprep.mubr.msk.f32.mxu0 %vm9513_vm5, %v9512_v2 }
 0xd54   :  { %8494 = vmatmul.mubr.msk.f32.gmra.mxu0 %vm650_vm6, %v2559_v40 }
 0xd55   :  { %8496 = vmatprep.mubr.msk.f32.mxu0 %vm9513_vm5, %v9512_v2 }
 0xd58   :  { %8497 = vmatmul.mubr.msk.f32.gmra.mxu0 %vm650_vm6, %v2560_v0 }
 0xd59   :  { %8499 = vmatprep.mubr.msk.f32.mxu0 %vm9513_vm5, %v9512_v2 }
 0xd5c   :  { %8500 = vmatmul.mubr.msk.f32.gmra.mxu0 %vm650_vm6, %v2561_v15  ;;  %v7207_v15 = vld [vmem:[%s12091_s14 + $0x18] sm:$0xff] }
 0xd5d   :  { %8502 = vmatprep.mubr.msk.f32.mxu0 %vm9513_vm5, %v9512_v2  ;;  %8531 = vmatpush3.msra.mxu0 %v7207_v15 }
 0xd5e   :  { %8570 = vmatprep.subr.mxu0 %v9512_v2 }
 0xd60   :  { %8503 = vmatmul.mubr.msk.f32.gmra.mxu0 %vm650_vm6, %v2562_v28 }
 0xd61   :  { %8532 = vmatprep.mubr.msk.f32.mxu0 %vm9513_vm5, %v9512_v2 }
 0xe10   :  { %v2865_v30 = vpop.f32.mrf.mxu0 }
 0xe11   :  { %v2866_v47 = vadd.f32 %v9475_v46, %v2865_v30 }
 0xe12   :  { %v8492_v48 = vpop.f32.mrf.mxu0 }
 0xe13   :  { %v2889_v43 = vsel %vm771_vm7, %v2866_v47, -inf }
 0xe14   :  { %2890 = vmax.xlane.f32.xlu0 %v2889_v43  ;;  %v2870_v1 = vpop.f32.mrf.mxu0 }
 0xe15   :  { %v2871_v54 = vadd.f32 %v9476_v27, %v2870_v1 }
 0xe16   :  { %v8495_v52 = vpop.f32.mrf.mxu0 }
 0xe17   :  { %v2892_v53 = vsel %vm771_vm7, %v2871_v54, -inf }
 0xe18   :  { %2893 = vmax.xlane.f32.xlu1 %v2892_v53  ;;  %v2875_v6 = vpop.f32.mrf.mxu0 }
 0xe19   :  { %v2876_v56 = vadd.f32 %v9477_v39, %v2875_v6 }
 0xe1a   :  { %v8498_v11 = vpop.f32.mrf.mxu0 }
 0xe1b   :  { %v2895_v58 = vsel %vm771_vm7, %v2876_v56, -inf }
 0xe1c   :  { %2896 = vmax.xlane.f32.xlu0 %v2895_v58  ;;  %v2880_v41 = vpop.f32.mrf.mxu0 }
 0xe1d   :  { %v2881_v61 = vadd.f32 %v9478_v60, %v2880_v41 }
 0xe1e   :  { %v8501_v16 = vpop.f32.mrf.mxu0 }
 0xe1f   :  { %v2898_v63 = vsel %vm771_vm7, %v2881_v61, -inf }
 0xe20   :  { %2899 = vmax.xlane.f32.xlu1 %v2898_v63  ;;  %v2885_v45 = vpop.f32.mrf.mxu0 }
 0xe21   :  { %v2886_v7 = vadd.f32 %v9479_v23, %v2885_v45 }
 0xe22   :  { %v8504_v50 = vpop.f32.mrf.mxu0 }
 0xe23   :  { %v2901_v25 = vsel %vm784_vm8, %v2886_v7, -inf }
 0xe24   :  { %2902 = vmax.xlane.f32.xlu0 %v2901_v25 }
 0xe9d   :  { %v2891_v10 = vpop.xlane.xlu0 %2890 }
 0xe9e   :  { %v2904_v13 = vsub.f32 %v2866_v47, %v2891_v10  ;;  %v7213_v10 = vld [vmem:[%s12092_s15] ss:$0 sm:$0xff] }
 0xea0   :  { %v2909_v32 = vmul.f32 1.442695, %v2904_v13 }
 0xea1   :  { %v2894_v5 = vpop.xlane.xlu1 %2893 }
 0xea2   :  { %9323 = vpow2.f32 %v2909_v32  ;;  %v2905_v17 = vsub.f32 %v2871_v54, %v2894_v5 }
 0xea4   :  { %v2911_v18 = vmul.f32 1.442695, %v2905_v17 }
 0xea5   :  { %v2897_v20 = vpop.xlane.xlu0 %2896 }
 0xea6   :  { %9325 = vpow2.f32 %v2911_v18  ;;  %v2906_v22 = vsub.f32 %v2876_v56, %v2897_v20 }
 0xea8   :  { %v2913_v4 = vmul.f32 1.442695, %v2906_v22 }
 0xea9   :  { %v2900_v36 = vpop.xlane.xlu1 %2899 }
 0xeaa   :  { %9327 = vpow2.f32 %v2913_v4  ;;  %v2907_v12 = vsub.f32 %v2881_v61, %v2900_v36 }
 0xeac   :  { %v2915_v8 = vmul.f32 1.442695, %v2907_v12 }
 0xead   :  { %v2903_v26 = vpop.xlane.xlu0 %2902 }
 0xeae   :  { %9329 = vpow2.f32 %v2915_v8  ;;  %v2908_v55 = vsub.f32 %v2886_v7, %v2903_v26 }
 0xeaf   :  { %v9324_v9 = vpop.eup %9323 }
 0xeb0   :  { %v2917_v14 = vmul.f32 1.442695, %v2908_v55  ;;  %v2919_v34 = vsel %vm771_vm7, %v9324_v9, 0.0 }
 0xeb1   :  { %2920 = vadd.xlane.f32.xlu1 %v2919_v34 }
 0xeb2   :  { %9331 = vpow2.f32 %v2917_v14 }
 0xeb3   :  { %v9326_v19 = vpop.eup %9325 }
 0xeb4   :  { %v2922_v49 = vsel %vm771_vm7, %v9326_v19, 0.0 }
 0xeb5   :  { %2923 = vadd.xlane.f32.xlu0 %v2922_v49 }
 0xeb7   :  { %v9328_v37 = vpop.eup %9327 }
 0xeb8   :  { %v2925_v24 = vsel %vm771_vm7, %v9328_v37, 0.0 }
 0xeb9   :  { %2926 = vadd.xlane.f32.xlu1 %v2925_v24 }
 0xebb   :  { %v9330_v40 = vpop.eup %9329 }
 0xebc   :  { %v2928_v42 = vsel %vm771_vm7, %v9330_v40, 0.0 }
 0xebd   :  { %2929 = vadd.xlane.f32.xlu0 %v2928_v42 }
 0xebf   :  { %v9332_v0 = vpop.eup %9331 }
 0xec0   :  { %v2931_v44 = vsel %vm784_vm8, %v9332_v0, 0.0 }
 0xec1   :  { %2932 = vadd.xlane.f32.xlu1 %v2931_v44 }
 0xf3a   :  { %v2921_v51 = vpop.xlane.xlu1 %2920 }
 0xf3b   :  { %9333 = vrcp.f32 %v2921_v51 }
 0xf3e   :  { %v2924_v28 = vpop.xlane.xlu0 %2923 }
 0xf3f   :  { %9335 = vrcp.f32 %v2924_v28 }
 0xf42   :  { %v2927_v30 = vpop.xlane.xlu1 %2926 }
 0xf43   :  { %9337 = vrcp.f32 %v2927_v30 }
 0xf46   :  { %v2930_v46 = vpop.xlane.xlu0 %2929 }
 0xf47   :  { %9339 = vrcp.f32 %v2930_v46 }
 0xf48   :  { %v9334_v47 = vpop.eup %9333 }
 0xf49   :  { %v2939_v48 = vmul.f32 %v9334_v47, %v9324_v9 }
 0xf4a   :  { %v2933_v43 = vpop.xlane.xlu1 %2932 }
 0xf4b   :  { %9341 = vrcp.f32 %v2933_v43  ;;  %8516 = vmatmul.mubr.msk.f32.vlgmr.msra.gmra.mxu1 %vm771_vm7, %v2939_v48 }
 0xf4c   :  { %v9336_v1 = vpop.eup %9335  ;;  %8518 = vmatprep.mubr.msk.f32.mxu1 %vm9513_vm5, %v9512_v2 }
 0xf4d   :  { %v2940_v27 = vmul.f32 %v9336_v1, %v9326_v19 }
 0xf4f   :  { %8519 = vmatmul.mubr.msk.f32.gmra.mxu1 %vm771_vm7, %v2940_v27 }
 0xf50   :  { %v9338_v54 = vpop.eup %9337  ;;  %8521 = vmatprep.mubr.msk.f32.mxu1 %vm9513_vm5, %v9512_v2 }
 0xf51   :  { %v2941_v52 = vmul.f32 %v9338_v54, %v9328_v37 }
 0xf53   :  { %8522 = vmatmul.mubr.msk.f32.gmra.mxu1 %vm771_vm7, %v2941_v52 }
 0xf54   :  { %v9340_v53 = vpop.eup %9339  ;;  %8524 = vmatprep.mubr.msk.f32.mxu1 %vm9513_vm5, %v9512_v2 }
 0xf55   :  { %v2942_v6 = vmul.f32 %v9340_v53, %v9330_v40 }
 0xf57   :  { %8525 = vmatmul.mubr.msk.f32.gmra.mxu1 %vm771_vm7, %v2942_v6 }
 0xf58   :  { %v9342_v39 = vpop.eup %9341  ;;  %8527 = vmatprep.mubr.msk.f32.mxu1 %vm9513_vm5, %v9512_v2 }
 0xf59   :  { %v2943_v56 = vmul.f32 %v9342_v39, %v9332_v0 }
 0xf5b   :  { %8528 = vmatmul.mubr.msk.f32.gmra.mxu1 %vm771_vm7, %v2943_v56 }
 0xf5c   :  { %8555 = vmatprep.mubr.msk.f32.mxu1 %vm9513_vm5, %v9512_v2 }
0x100b   :  { %v3028_v11 = vpop.f32.mrf.mxu1 }
0x100c   :  { %8533 = vmatmul.mubr.msk.f32.vlgmr.msra.gmra.mxu0 %vm650_vm6, %v3028_v11 }
0x100d   :  { %v8517_v58 = vpop.f32.mrf.mxu1  ;;  %8535 = vmatprep.mubr.msk.f32.mxu0 %vm9513_vm5, %v9512_v2 }
0x100f   :  { %v3033_v41 = vpop.f32.mrf.mxu1 }
0x1010   :  { %8536 = vmatmul.mubr.msk.f32.gmra.mxu0 %vm650_vm6, %v3033_v41 }
0x1011   :  { %v8520_v60 = vpop.f32.mrf.mxu1  ;;  %8538 = vmatprep.mubr.msk.f32.mxu0 %vm9513_vm5, %v9512_v2 }
0x1012   :  { %v3273_v60 = vld [vmem:[%s12095_s18 + $0x18] sm:$0xff] }
0x1013   :  { %v3038_v61 = vpop.f32.mrf.mxu1  ;;  %8548 = vmatpush3.msra.mxu1 %v3273_v60 }
0x1014   :  { %8539 = vmatmul.mubr.msk.f32.gmra.mxu0 %vm650_vm6, %v3038_v61  ;;  %8549 = vmatprep.subr.mxu1 %v9512_v2  ;;  %v3272_v61 = vld [vmem:[%s12095_s18 + $0x10] sm:$0xff] }
0x1015   :  { %v8523_v16 = vpop.f32.mrf.mxu1  ;;  %8541 = vmatprep.mubr.msk.f32.mxu0 %vm9513_vm5, %v9512_v2  ;;  %8550 = vmatpush3.msra.mxu1 %v3272_v61 }
0x1016   :  { %8551 = vmatprep.subr.mxu1 %v9512_v2  ;;  %v3271_v16 = vld [vmem:[%s12095_s18 + $0x8] sm:$0xff] }
0x1017   :  { %v3043_v63 = vpop.f32.mrf.mxu1  ;;  %8552 = vmatpush3.msra.mxu1 %v3271_v16 }
0x1018   :  { %8542 = vmatmul.mubr.msk.f32.gmra.mxu0 %vm650_vm6, %v3043_v63  ;;  %8553 = vmatprep.subr.mxu1 %v9512_v2  ;;  %v3270_v63 = vld [vmem:[%s12095_s18] sm:$0xff] }
0x1019   :  { %v8526_v45 = vpop.f32.mrf.mxu1  ;;  %8544 = vmatprep.mubr.msk.f32.mxu0 %vm9513_vm5, %v9512_v2  ;;  %8554 = vmatpush3.msra.mxu1 %v3270_v63 }
0x101a   :  { %8617 = vmatprep.subr.mxu1 %v9512_v2 }
0x101b   :  { %v3048_v23 = vpop.f32.mrf.mxu1 }
0x101c   :  { %8545 = vmatmul.mubr.msk.f32.gmra.mxu0 %vm650_vm6, %v3048_v23 }
0x101d   :  { %v8529_v7 = vpop.f32.mrf.mxu1  ;;  %8602 = vmatprep.mubr.msk.f32.mxu0 %vm9513_vm5, %v9512_v2 }
0x10cc   :  { %v3135_v50 = vpop.f32.mrf.mxu0 }
0x10cd   :  { %v3159_v25 = vadd.f32 %v3135_v50, %v10599_v57 }
0x10ce   :  { %v8534_v13 = vpop.f32.mrf.mxu0 }
0x10cf   :  { %v3164_v32 = vadd.f32 %v3159_v25, %v9696_v29 }
0x10d0   :  { %v3140_v5 = vpop.f32.mrf.mxu0 }
0x10d1   :  { %v10717_v17 = vadd.f32 %v7213_v10, %v3164_v32  ;;  %v3160_v18 = vadd.f32 %v3140_v5, %v10603_v59 }
0x10d2   :  { %v8537_v20 = vpop.f32.mrf.mxu0 }
0x10d3   :  { %v3165_v22 = vadd.f32 %v3160_v18, %v9702_v33  ;;  %v3183_v4 = vsel %vm237_vm1, %v10717_v17, 0.0 }
0x10d4   :  { %3184 = vadd.xlane.f32.xlu0 %v3183_v4  ;;  %v3145_v57 = vpop.f32.mrf.mxu0 }
0x10d5   :  { %v10723_v36 = vadd.f32 %v7213_v10, %v3165_v22  ;;  %v3161_v12 = vadd.f32 %v3145_v57, %v10607_v62 }
0x10d6   :  { %v8540_v8 = vpop.f32.mrf.mxu0 }
0x10d7   :  { %v3166_v29 = vadd.f32 %v3161_v12, %v9705_v35  ;;  %v3186_v26 = vsel %vm237_vm1, %v10723_v36, 0.0  ;;  %v7214_v8 = vld [vmem:[%s12093_s16] ss:$0 sm:$0xff] }
0x10d8   :  { %3187 = vadd.xlane.f32.xlu1 %v3186_v26  ;;  %v3150_v59 = vpop.f32.mrf.mxu0 }
0x10d9   :  { %v10729_v55 = vadd.f32 %v7213_v10, %v3166_v29  ;;  %v3162_v33 = vadd.f32 %v3150_v59, %v10611_v3  ;;  %v7215_v59 = vld [vmem:[%s12094_s17] ss:$0 sm:$0xff] }
0x10da   :  { %v8543_v9 = vpop.f32.mrf.mxu0 }
0x10db   :  { %v3167_v14 = vadd.f32 %v3162_v33, %v9713_v38  ;;  %v3189_v34 = vsel %vm237_vm1, %v10729_v55, 0.0 }
0x10dc   :  { %3190 = vadd.xlane.f32.xlu0 %v3189_v34  ;;  %v3155_v62 = vpop.f32.mrf.mxu0 }
0x10dd   :  { %v10735_v19 = vadd.f32 %v7213_v10, %v3167_v14  ;;  %v3163_v35 = vadd.f32 %v3155_v62, %v10615_v21 }
0x10de   :  { %v8546_v49 = vpop.f32.mrf.mxu0 }
0x10df   :  { %v3168_v37 = vadd.f32 %v3163_v35, %v9700_v31  ;;  %v3192_v24 = vsel %vm237_vm1, %v10735_v19, 0.0 }
0x10e0   :  { %3193 = vadd.xlane.f32.xlu1 %v3192_v24 }
0x10e1   :  { %v10741_v3 = vadd.f32 %v7213_v10, %v3168_v37 }
0x10e3   :  { %v3195_v38 = vsel %vm250_vm4, %v10741_v3, 0.0 }
0x10e4   :  { %3196 = vadd.xlane.f32.xlu0 %v3195_v38 }
0x115d   :  { %v3185_v40 = vpop.xlane.xlu0 %3184 }
0x115e   :  { %v3198_v42 = vmul.f32 0.03125, %v3185_v40 }
0x1160   :  { %v3203_v0 = vsub.f32 %v10717_v17, %v3198_v42 }
0x1161   :  { %v3188_v44 = vpop.xlane.xlu1 %3187 }
0x1162   :  { %v3199_v15 = vmul.f32 0.03125, %v3188_v44  ;;  %v3208_v21 = vmul.f32 %v3203_v0, %v3203_v0 }
0x1164   :  { %v10747_v51 = vsub.f32 %v10723_v36, %v3199_v15  ;;  %v3213_v31 = vsel %vm237_vm1, %v3208_v21, 0.0 }
0x1165   :  { %v3191_v28 = vpop.xlane.xlu0 %3190  ;;  %3214 = vadd.xlane.f32.xlu1 %v3213_v31 }
0x1166   :  { %v3200_v30 = vmul.f32 0.03125, %v3191_v28  ;;  %v3209_v46 = vmul.f32 %v10747_v51, %v10747_v51  ;;  %v3446_v28 = vld [vmem:[%s12097_s20 + $0x78] sm:$0xff] }
0x1167   :  { %8571 = vmatpush3.msra.mxu0 %v3446_v28 }
0x1168   :  { %v3205_v47 = vsub.f32 %v10729_v55, %v3200_v30  ;;  %v3216_v48 = vsel %vm237_vm1, %v3209_v46, 0.0  ;;  %8572 = vmatprep.subr.mxu0 %v9512_v2  ;;  %v3445_v30 = vld [vmem:[%s12097_s20 + $0x70] sm:$0xff]  ;;  %v3444_v46 = vld [vmem:[%s12097_s20 + $0x68] sm:$0xff] }
0x1169   :  { %v3194_v43 = vpop.xlane.xlu1 %3193  ;;  %3217 = vadd.xlane.f32.xlu0 %v3216_v48  ;;  %8573 = vmatpush3.msra.mxu0 %v3445_v30  ;;  %v3442_v48 = vld [vmem:[%s12097_s20 + $0x58] sm:$0xff] }
0x116a   :  { %v3201_v1 = vmul.f32 0.03125, %v3194_v43  ;;  %v3210_v27 = vmul.f32 %v3205_v47, %v3205_v47  ;;  %8574 = vmatprep.subr.mxu0 %v9512_v2  ;;  %v3441_v43 = vld [vmem:[%s12097_s20 + $0x50] sm:$0xff] }
0x116b   :  { %8575 = vmatpush3.msra.mxu0 %v3444_v46 }
0x116c   :  { %v3206_v54 = vsub.f32 %v10735_v19, %v3201_v1  ;;  %v3219_v52 = vsel %vm237_vm1, %v3210_v27, 0.0  ;;  %8576 = vmatprep.subr.mxu0 %v9512_v2  ;;  %v3440_v1 = vld [vmem:[%s12097_s20 + $0x48] sm:$0xff]  ;;  %v3439_v27 = vld [vmem:[%s12097_s20 + $0x40] sm:$0xff] }
0x116d   :  { %3220 = vadd.xlane.f32.xlu1 %v3219_v52  ;;  %v3197_v53 = vpop.xlane.xlu0 %3196  ;;  %v3437_v52 = vld [vmem:[%s12097_s20 + $0x30] sm:$0xff] }
0x116e   :  { %v3202_v6 = vmul.f32 0.03125, %v3197_v53  ;;  %v3211_v39 = vmul.f32 %v3206_v54, %v3206_v54  ;;  %v3436_v53 = vld [vmem:[%s12097_s20 + $0x28] sm:$0xff] }
0x1170   :  { %v3207_v56 = vsub.f32 %v10741_v3, %v3202_v6  ;;  %v3222_v11 = vsel %vm237_vm1, %v3211_v39, 0.0  ;;  %v3435_v6 = vld [vmem:[%s12097_s20 + $0x20] sm:$0xff]  ;;  %v3434_v39 = vld [vmem:[%s12097_s20 + $0x18] sm:$0xff] }
0x1171   :  { %3223 = vadd.xlane.f32.xlu0 %v3222_v11  ;;  %v3432_v11 = vld [vmem:[%s12097_s20 + $0x8] sm:$0xff] }
0x1172   :  { %v3212_v58 = vmul.f32 %v3207_v56, %v3207_v56 }
0x1174   :  { %v3225_v41 = vsel %vm250_vm4, %v3212_v58, 0.0  ;;  %v3431_v58 = vld [vmem:[%s12097_s20] sm:$0xff] }
0x1175   :  { %3226 = vadd.xlane.f32.xlu1 %v3225_v41  ;;  %v7216_v41 = vld [vmem:[%s12096_s19] ss:$0 sm:$0xff] }
0x11ee   :  { %v3215_v45 = vpop.xlane.xlu1 %3214 }
0x11ef   :  { %v3228_v23 = vmul.f32 0.03125, %v3215_v45 }
0x11f1   :  { %v3233_v7 = vadd.f32 1e-06, %v3228_v23 }
0x11f2   :  { %v3218_v50 = vpop.xlane.xlu0 %3217 }
0x11f3   :  { %9343 = vrsqrt.f32 %v3233_v7  ;;  %v3229_v25 = vmul.f32 0.03125, %v3218_v50 }
0x11f5   :  { %v3234_v10 = vadd.f32 1e-06, %v3229_v25 }
0x11f6   :  { %v3221_v13 = vpop.xlane.xlu1 %3220 }
0x11f7   :  { %9345 = vrsqrt.f32 %v3234_v10  ;;  %v3230_v32 = vmul.f32 0.03125, %v3221_v13 }
0x11f9   :  { %v3235_v5 = vadd.f32 1e-06, %v3230_v32 }
0x11fa   :  { %v3224_v18 = vpop.xlane.xlu0 %3223 }
0x11fb   :  { %9347 = vrsqrt.f32 %v3235_v5  ;;  %v3231_v20 = vmul.f32 0.03125, %v3224_v18 }
0x11fd   :  { %v3236_v22 = vadd.f32 1e-06, %v3231_v20 }
0x11fe   :  { %v3227_v4 = vpop.xlane.xlu1 %3226 }
0x11ff   :  { %9349 = vrsqrt.f32 %v3236_v22  ;;  %v3232_v57 = vmul.f32 0.03125, %v3227_v4 }
0x1200   :  { %v9344_v12 = vpop.eup %9343 }
0x1201   :  { %v3243_v29 = vmul.f32 %v9344_v12, %v3203_v0  ;;  %v3237_v26 = vadd.f32 1e-06, %v3232_v57 }
0x1203   :  { %v3254_v33 = vmul.f32 %v7214_v8, %v3243_v29  ;;  %9351 = vrsqrt.f32 %v3237_v26 }
0x1204   :  { %v9346_v9 = vpop.eup %9345 }
0x1205   :  { %v3265_v14 = vadd.f32 %v7215_v59, %v3254_v33  ;;  %v3244_v34 = vmul.f32 %v9346_v9, %v10747_v51 }
0x1207   :  { %8556 = vmatmul.mubr.msk.f32.vlgmr.msra.gmra.mxu1 %vm237_vm1, %v3265_v14  ;;  %v3255_v62 = vmul.f32 %v7214_v8, %v3244_v34 }
0x1208   :  { %v9348_v35 = vpop.eup %9347  ;;  %8558 = vmatprep.mubr.msk.f32.mxu1 %vm9513_vm5, %v9512_v2 }
0x1209   :  { %v3245_v49 = vmul.f32 %v9348_v35, %v3205_v47  ;;  %v3266_v37 = vadd.f32 %v7215_v59, %v3255_v62  ;;  %v3443_v47 = vld [vmem:[%s12097_s20 + $0x60] sm:$0xff] }
0x120a   :  { %8577 = vmatpush3.msra.mxu0 %v3443_v47 }
0x120b   :  { %8559 = vmatmul.mubr.msk.f32.gmra.mxu1 %vm237_vm1, %v3266_v37  ;;  %v3256_v24 = vmul.f32 %v7214_v8, %v3245_v49  ;;  %8578 = vmatprep.subr.mxu0 %v9512_v2 }
0x120c   :  { %v9350_v38 = vpop.eup %9349  ;;  %8561 = vmatprep.mubr.msk.f32.mxu1 %vm9513_vm5, %v9512_v2  ;;  %8579 = vmatpush3.msra.mxu0 %v3442_v48 }
0x120d   :  { %v3246_v40 = vmul.f32 %v9350_v38, %v3206_v54  ;;  %v3267_v42 = vadd.f32 %v7215_v59, %v3256_v24  ;;  %8580 = vmatprep.subr.mxu0 %v9512_v2  ;;  %v3438_v54 = vld [vmem:[%s12097_s20 + $0x38] sm:$0xff] }
0x120e   :  { %8581 = vmatpush3.msra.mxu0 %v3441_v43 }
0x120f   :  { %8562 = vmatmul.mubr.msk.f32.gmra.mxu1 %vm237_vm1, %v3267_v42  ;;  %v3257_v0 = vmul.f32 %v7214_v8, %v3246_v40  ;;  %8582 = vmatprep.subr.mxu0 %v9512_v2 }
0x1210   :  { %v9352_v44 = vpop.eup %9351  ;;  %8564 = vmatprep.mubr.msk.f32.mxu1 %vm9513_vm5, %v9512_v2  ;;  %8583 = vmatpush3.msra.mxu0 %v3440_v1 }
0x1211   :  { %v3247_v15 = vmul.f32 %v9352_v44, %v3207_v56  ;;  %v3268_v21 = vadd.f32 %v7215_v59, %v3257_v0  ;;  %8584 = vmatprep.subr.mxu0 %v9512_v2  ;;  %v3433_v56 = vld [vmem:[%s12097_s20 + $0x10] sm:$0xff] }
0x1212   :  { %8585 = vmatpush3.msra.mxu0 %v3439_v27 }
0x1213   :  { %8565 = vmatmul.mubr.msk.f32.gmra.mxu1 %vm237_vm1, %v3268_v21  ;;  %v3258_v51 = vmul.f32 %v7214_v8, %v3247_v15  ;;  %8586 = vmatprep.subr.mxu0 %v9512_v2 }
0x1214   :  { %8567 = vmatprep.mubr.msk.f32.mxu1 %vm9513_vm5, %v9512_v2  ;;  %8587 = vmatpush3.msra.mxu0 %v3438_v54 }
0x1215   :  { %v3269_v31 = vadd.f32 %v7215_v59, %v3258_v51  ;;  %8588 = vmatprep.subr.mxu0 %v9512_v2 }
0x1216   :  { %8589 = vmatpush3.msra.mxu0 %v3437_v52 }
0x1217   :  { %8568 = vmatmul.mubr.msk.f32.gmra.mxu1 %vm237_vm1, %v3269_v31  ;;  %8590 = vmatprep.subr.mxu0 %v9512_v2 }
0x1218   :  { %8625 = vmatprep.mubr.msk.f32.mxu1 %vm9513_vm5, %v9512_v2  ;;  %8591 = vmatpush3.msra.mxu0 %v3436_v53 }
0x1219   :  { %8592 = vmatprep.subr.mxu0 %v9512_v2 }
0x121a   :  { %8593 = vmatpush3.msra.mxu0 %v3435_v6 }
0x121b   :  { %8594 = vmatprep.subr.mxu0 %v9512_v2 }
0x121c   :  { %8595 = vmatpush3.msra.mxu0 %v3434_v39 }
0x121d   :  { %8596 = vmatprep.subr.mxu0 %v9512_v2 }
0x121e   :  { %8597 = vmatpush3.msra.mxu0 %v3433_v56 }
0x121f   :  { %8598 = vmatprep.subr.mxu0 %v9512_v2 }
0x1220   :  { %8599 = vmatpush3.msra.mxu0 %v3432_v11 }
0x1221   :  { %8600 = vmatprep.subr.mxu0 %v9512_v2 }
0x1222   :  { %8601 = vmatpush3.msra.mxu0 %v3431_v58 }
0x1223   :  { %8663 = vmatprep.subr.mxu0 %v9512_v2 }
0x12c7   :  { %v3362_v60 = vpop.f32.mrf.mxu1 }
0x12c8   :  { %v3363_v61 = vadd.f32 %v7216_v41, %v3362_v60 }
0x12c9   :  { %v8557_v16 = vpop.f32.mrf.mxu1 }
0x12ca   :  { %v3391_v63 = vmul.f32 0.044715, %v3363_v61  ;;  %v3386_v31 = vmul.f32 0.5, %v3363_v61  ;;  %v7222_v16 = vld [vmem:[%s12098_s21] ss:$0 sm:$0xff] }
0x12cb   :  { %v3367_v45 = vpop.f32.mrf.mxu1 }
0x12cc   :  { %v3396_v23 = vmul.f32 %v3391_v63, %v3363_v61  ;;  %v3368_v7 = vadd.f32 %v7216_v41, %v3367_v45 }
0x12cd   :  { %v8560_v50 = vpop.f32.mrf.mxu1 }
0x12ce   :  { %v3401_v25 = vmul.f32 %v3396_v23, %v3363_v61  ;;  %v3392_v10 = vmul.f32 0.044715, %v3368_v7  ;;  %v3387_v48 = vmul.f32 0.5, %v3368_v7 }
0x12cf   :  { %v3372_v13 = vpop.f32.mrf.mxu1 }
0x12d0   :  { %v3406_v32 = vadd.f32 %v3401_v25, %v3363_v61  ;;  %v3397_v5 = vmul.f32 %v3392_v10, %v3368_v7  ;;  %v3373_v18 = vadd.f32 %v7216_v41, %v3372_v13 }
0x12d1   :  { %v8563_v20 = vpop.f32.mrf.mxu1 }
0x12d2   :  { %v3411_v22 = vmul.f32 0.7978846, %v3406_v32  ;;  %v3402_v4 = vmul.f32 %v3397_v5, %v3368_v7  ;;  %v3393_v57 = vmul.f32 0.044715, %v3373_v18  ;;  %v3388_v54 = vmul.f32 0.5, %v3373_v18 }
0x12d3   :  { %v3377_v12 = vpop.f32.mrf.mxu1 }
0x12d4   :  { %9353 = vtanh.f32 %v3411_v22  ;;  %v3407_v8 = vadd.f32 %v3402_v4, %v3368_v7  ;;  %v3398_v29 = vmul.f32 %v3393_v57, %v3373_v18  ;;  %v3378_v26 = vadd.f32 %v7216_v41, %v3377_v12 }
0x12d5   :  { %v8566_v59 = vpop.f32.mrf.mxu1 }
0x12d6   :  { %v3403_v33 = vmul.f32 %v3398_v29, %v3373_v18  ;;  %v3394_v9 = vmul.f32 0.044715, %v3378_v26  ;;  %v3412_v14 = vmul.f32 0.7978846, %v3407_v8  ;;  %v3389_v39 = vmul.f32 0.5, %v3378_v26 }
0x12d7   :  { %v3382_v34 = vpop.f32.mrf.mxu1 }
0x12d8   :  { %v3408_v62 = vadd.f32 %v3403_v33, %v3373_v18  ;;  %v3399_v35 = vmul.f32 %v3394_v9, %v3378_v26  ;;  %v3383_v49 = vadd.f32 %v7216_v41, %v3382_v34  ;;  %9355 = vtanh.f32 %v3412_v14 }
0x12d9   :  { %v8569_v37 = vpop.f32.mrf.mxu1 }
0x12da   :  { %v3404_v24 = vmul.f32 %v3399_v35, %v3378_v26  ;;  %v3395_v38 = vmul.f32 0.044715, %v3383_v49  ;;  %v3413_v40 = vmul.f32 0.7978846, %v3408_v62  ;;  %v3390_v41 = vmul.f32 0.5, %v3383_v49 }
0x12dc   :  { %v3409_v42 = vadd.f32 %v3404_v24, %v3378_v26  ;;  %v3400_v0 = vmul.f32 %v3395_v38, %v3383_v49  ;;  %9357 = vtanh.f32 %v3413_v40 }
0x12de   :  { %v3405_v44 = vmul.f32 %v3400_v0, %v3383_v49  ;;  %v3414_v15 = vmul.f32 0.7978846, %v3409_v42 }
0x12e0   :  { %v3410_v21 = vadd.f32 %v3405_v44, %v3383_v49  ;;  %9359 = vtanh.f32 %v3414_v15 }
0x12e1   :  { %v9354_v51 = vpop.eup %9353 }
0x12e2   :  { %v3421_v28 = vadd.f32 1.0, %v9354_v51  ;;  %v3415_v30 = vmul.f32 0.7978846, %v3410_v21 }
0x12e4   :  { %v3426_v46 = vmul.f32 %v3421_v28, %v3386_v31  ;;  %9361 = vtanh.f32 %v3415_v30 }
0x12e5   :  { %v9356_v47 = vpop.eup %9355 }
0x12e6   :  { %8603 = vmatmul.mubr.f32.vlgmr.msra.gmra.mxu0 %v3426_v46  ;;  %v3422_v43 = vadd.f32 1.0, %v9356_v47 }
0x12e7   :  { %8605 = vmatprep.mubr.msk.f32.mxu0 %vm9513_vm5, %v9512_v2 }
0x12e8   :  { %v3427_v1 = vmul.f32 %v3422_v43, %v3387_v48 }
0x12e9   :  { %v9358_v27 = vpop.eup %9357 }
0x12ea   :  { %8606 = vmatmul.mubr.f32.gmra.mxu0 %v3427_v1  ;;  %v3423_v52 = vadd.f32 1.0, %v9358_v27  ;;  %v7230_v27 = vld [vmem:[%s12129_s29 + $0x98] sm:$0xff] }
0x12eb   :  { %8608 = vmatprep.mubr.msk.f32.mxu0 %vm9513_vm5, %v9512_v2  ;;  %8618 = vmatpush3.msra.mxu1 %v7230_v27 }
0x12ec   :  { %v3428_v53 = vmul.f32 %v3423_v52, %v3388_v54  ;;  %v7252_v54 = vld [vmem:[%s12133_s3 + $0x98] sm:$0xff]  ;;  %8619 = vmatprep.subr.mxu1 %v9512_v2  ;;  %v7229_v52 = vld [vmem:[%s12129_s29 + $0x90] sm:$0xff] }
0x12ed   :  { %v9360_v6 = vpop.eup %9359  ;;  %8664 = vmatpush3.msra.mxu0 %v7252_v54  ;;  %8620 = vmatpush3.msra.mxu1 %v7229_v52 }
0x12ee   :  { %8609 = vmatmul.mubr.f32.gmra.mxu0 %v3428_v53  ;;  %v3424_v56 = vadd.f32 1.0, %v9360_v6  ;;  %8665 = vmatprep.subr.mxu0 %v9512_v2  ;;  %v7251_v53 = vld [vmem:[%s12133_s3 + $0x90] sm:$0xff]  ;;  %v7228_v6 = vld [vmem:[%s12129_s29 + $0x88] sm:$0xff] }
0x12ef   :  { %8611 = vmatprep.mubr.msk.f32.mxu0 %vm9513_vm5, %v9512_v2  ;;  %8666 = vmatpush3.msra.mxu0 %v7251_v53 }
0x12f0   :  { %v3429_v11 = vmul.f32 %v3424_v56, %v3389_v39  ;;  %8621 = vmatprep.subr.mxu1 %v9512_v2  ;;  %8667 = vmatprep.subr.mxu0 %v9512_v2  ;;  %v7250_v39 = vld [vmem:[%s12133_s3 + $0x88] sm:$0xff]  ;;  %v7227_v56 = vld [vmem:[%s12129_s29 + $0x80] sm:$0xff] }
0x12f1   :  { %v9362_v58 = vpop.eup %9361  ;;  %8622 = vmatpush3.msra.mxu1 %v7228_v6  ;;  %8668 = vmatpush3.msra.mxu0 %v7250_v39 }
0x12f2   :  { %8612 = vmatmul.mubr.f32.gmra.mxu0 %v3429_v11  ;;  %v3425_v60 = vadd.f32 1.0, %v9362_v58  ;;  %8623 = vmatprep.subr.mxu1 %v9512_v2  ;;  %v7249_v11 = vld [vmem:[%s12133_s3 + $0x80] sm:$0xff] }
0x12f3   :  { %8614 = vmatprep.mubr.msk.f32.mxu0 %vm9513_vm5, %v9512_v2  ;;  %8669 = vmatprep.subr.mxu0 %v9512_v2 }
0x12f4   :  { %v3430_v61 = vmul.f32 %v3425_v60, %v3390_v41  ;;  %8624 = vmatpush3.msra.mxu1 %v7227_v56  ;;  %8670 = vmatpush3.msra.mxu0 %v7249_v11  ;;  %v7254_v11 = vld [vmem:[%s12090_s13 + $0x4] ss:$0 sm:$0xff] }
0x12f5   :  { %8640 = vmatprep.subr.mxu1 %v9512_v2  ;;  %8711 = vmatprep.subr.mxu0 %v9512_v2 }
0x12f6   :  { %8615 = vmatmul.mubr.f32.gmra.mxu0 %v3430_v61 }
0x12f7   :  { %8671 = vmatprep.mubr.msk.f32.mxu0 %vm9513_vm5, %v9512_v2 }
0x13a6   :  { %v3520_v63 = vpop.f32.mrf.mxu0 }
0x13a7   :  { %v3521_v45 = vadd.f32 %v7222_v16, %v3520_v63 }
0x13a8   :  { %v8604_v23 = vpop.f32.mrf.mxu0 }
0x13a9   :  { %v10878_v7 = vadd.f32 %v3521_v45, %v10717_v17 }
0x13aa   :  { %v3525_v50 = vpop.f32.mrf.mxu0 }
0x13ab   :  { %v3526_v25 = vadd.f32 %v7222_v16, %v3525_v50  ;;  %v3553_v10 = vsel %vm237_vm1, %v10878_v7, 0.0 }
0x13ac   :  { %3554 = vadd.xlane.f32.xlu0 %v3553_v10  ;;  %v8607_v13 = vpop.f32.mrf.mxu0 }
0x13ad   :  { %v10883_v32 = vadd.f32 %v3526_v25, %v10723_v36 }
0x13ae   :  { %v3530_v5 = vpop.f32.mrf.mxu0 }
0x13af   :  { %v3531_v18 = vadd.f32 %v7222_v16, %v3530_v5  ;;  %v3556_v20 = vsel %vm237_vm1, %v10883_v32, 0.0 }
0x13b0   :  { %3557 = vadd.xlane.f32.xlu1 %v3556_v20  ;;  %v8610_v22 = vpop.f32.mrf.mxu0 }
0x13b1   :  { %v10888_v17 = vadd.f32 %v3531_v18, %v10729_v55  ;;  %v7225_v22 = vld [vmem:[%s12130_s27 + $0x1] ss:$0 sm:$0xff] }
0x13b2   :  { %v3535_v4 = vpop.f32.mrf.mxu0 }
0x13b3   :  { %v3536_v57 = vadd.f32 %v7222_v16, %v3535_v4  ;;  %v3559_v12 = vsel %vm237_vm1, %v10888_v17, 0.0 }
0x13b4   :  { %3560 = vadd.xlane.f32.xlu0 %v3559_v12  ;;  %v8613_v8 = vpop.f32.mrf.mxu0  ;;  %v7226_v12 = vld [vmem:[%s12131_s28 + $0x1] ss:$0 sm:$0xff] }
0x13b5   :  { %v10893_v36 = vadd.f32 %v3536_v57, %v10735_v19 }
0x13b6   :  { %v3540_v29 = vpop.f32.mrf.mxu0 }
0x13b7   :  { %v3541_v26 = vadd.f32 %v7222_v16, %v3540_v29  ;;  %v3562_v59 = vsel %vm237_vm1, %v10893_v36, 0.0 }
0x13b8   :  { %3563 = vadd.xlane.f32.xlu1 %v3562_v59  ;;  %v8616_v33 = vpop.f32.mrf.mxu0 }
0x13b9   :  { %v10898_v55 = vadd.f32 %v3541_v26, %v10741_v3  ;;  %v7241_v33 = vld [vmem:[%s12132_s0 + $0x98] sm:$0xff] }
0x13bb   :  { %v3565_v9 = vsel %vm250_vm4, %v10898_v55, 0.0 }
0x13bc   :  { %3566 = vadd.xlane.f32.xlu0 %v3565_v9 }
0x1435   :  { %v3555_v14 = vpop.xlane.xlu0 %3554 }
0x1436   :  { %v3568_v34 = vmul.f32 0.03125, %v3555_v14  ;;  %v7240_v14 = vld [vmem:[%s12132_s0 + $0x90] sm:$0xff] }
0x1438   :  { %v10903_v62 = vsub.f32 %v10878_v7, %v3568_v34 }
0x1439   :  { %v3558_v19 = vpop.xlane.xlu1 %3557 }
0x143a   :  { %v3569_v35 = vmul.f32 0.03125, %v3558_v19  ;;  %v3578_v49 = vmul.f32 %v10903_v62, %v10903_v62 }
0x143c   :  { %v10908_v37 = vsub.f32 %v10883_v32, %v3569_v35  ;;  %v3583_v3 = vsel %vm237_vm1, %v3578_v49, 0.0  ;;  %v7239_v49 = vld [vmem:[%s12132_s0 + $0x88] sm:$0xff] }
0x143d   :  { %v3561_v24 = vpop.xlane.xlu0 %3560  ;;  %3584 = vadd.xlane.f32.xlu1 %v3583_v3 }
0x143e   :  { %v3570_v38 = vmul.f32 0.03125, %v3561_v24  ;;  %v3579_v40 = vmul.f32 %v10908_v37, %v10908_v37 }
0x1440   :  { %v10914_v42 = vsub.f32 %v10888_v17, %v3570_v38  ;;  %v3586_v0 = vsel %vm237_vm1, %v3579_v40, 0.0  ;;  %v7238_v40 = vld [vmem:[%s12132_s0 + $0x80] sm:$0xff] }
0x1441   :  { %v3564_v44 = vpop.xlane.xlu1 %3563  ;;  %3587 = vadd.xlane.f32.xlu0 %v3586_v0 }
0x1442   :  { %v3571_v15 = vmul.f32 0.03125, %v3564_v44  ;;  %v3580_v21 = vmul.f32 %v10914_v42, %v10914_v42 }
0x1444   :  { %v10920_v51 = vsub.f32 %v10893_v36, %v3571_v15  ;;  %v3589_v31 = vsel %vm237_vm1, %v3580_v21, 0.0 }
0x1445   :  { %3590 = vadd.xlane.f32.xlu1 %v3589_v31  ;;  %v3567_v28 = vpop.xlane.xlu0 %3566 }
0x1446   :  { %v3572_v30 = vmul.f32 0.03125, %v3567_v28  ;;  %v3581_v46 = vmul.f32 %v10920_v51, %v10920_v51 }
0x1448   :  { %v10926_v47 = vsub.f32 %v10898_v55, %v3572_v30  ;;  %v3592_v48 = vsel %vm237_vm1, %v3581_v46, 0.0 }
0x1449   :  { %3593 = vadd.xlane.f32.xlu0 %v3592_v48 }
0x144a   :  { %v3582_v43 = vmul.f32 %v10926_v47, %v10926_v47 }
0x144c   :  { %v3595_v1 = vsel %vm250_vm4, %v3582_v43, 0.0 }
0x144d   :  { %3596 = vadd.xlane.f32.xlu1 %v3595_v1 }
0x14c6   :  { %v3585_v58 = vpop.xlane.xlu1 %3584 }
0x14c7   :  { %v3598_v41 = vmul.f32 0.03125, %v3585_v58 }
0x14c9   :  { %v3603_v60 = vadd.f32 1e-06, %v3598_v41 }
0x14ca   :  { %v3588_v61 = vpop.xlane.xlu0 %3587 }
0x14cb   :  { %9363 = vrsqrt.f32 %v3603_v60  ;;  %v3599_v16 = vmul.f32 0.03125, %v3588_v61 }
0x14cd   :  { %v3604_v63 = vadd.f32 1e-06, %v3599_v16 }
0x14ce   :  { %v3591_v45 = vpop.xlane.xlu1 %3590 }
0x14cf   :  { %9365 = vrsqrt.f32 %v3604_v63  ;;  %v3600_v23 = vmul.f32 0.03125, %v3591_v45 }
0x14d1   :  { %v3605_v50 = vadd.f32 1e-06, %v3600_v23 }
0x14d2   :  { %v3594_v25 = vpop.xlane.xlu0 %3593 }
0x14d3   :  { %9367 = vrsqrt.f32 %v3605_v50  ;;  %v3601_v10 = vmul.f32 0.03125, %v3594_v25 }
0x14d5   :  { %v3606_v13 = vadd.f32 1e-06, %v3601_v10 }
0x14d6   :  { %v3597_v5 = vpop.xlane.xlu1 %3596 }
0x14d7   :  { %9369 = vrsqrt.f32 %v3606_v13  ;;  %v3602_v18 = vmul.f32 0.03125, %v3597_v5 }
0x14d8   :  { %v9364_v20 = vpop.eup %9363 }
0x14d9   :  { %v3613_v4 = vmul.f32 %v9364_v20, %v10903_v62  ;;  %v3607_v57 = vadd.f32 1e-06, %v3602_v18 }
0x14db   :  { %v3624_v8 = vmul.f32 %v7225_v22, %v3613_v4  ;;  %9371 = vrsqrt.f32 %v3607_v57  ;;  %v7243_v57 = vld [vmem:[%s12089_s12 + $0x4] ss:$0 sm:$0xff] }
0x14dc   :  { %v9366_v29 = vpop.eup %9365 }
0x14dd   :  { %v10971_v26 = vadd.f32 %v7226_v12, %v3624_v8  ;;  %v3614_v59 = vmul.f32 %v9366_v29, %v10908_v37 }
0x14df   :  { %v3625_v9 = vmul.f32 %v7225_v22, %v3614_v59  ;;  %8626 = vmatmul.mubr.msk.f32.vlgmr.msra.gmra.mxu1 %vm237_vm1, %v10971_v26  ;;  %8672 = vmatmul.mubr.msk.f32.vlgmr.msra.gmra.mxu0 %vm237_vm1, %v10971_v26 }
0x14e0   :  { %v9368_v34 = vpop.eup %9367  ;;  %8641 = vmatpush3.msra.mxu1 %v7241_v33  ;;  %8628 = vmatprep.mubr.msk.f32.mxu1 %vm9513_vm5, %v9512_v2 }
0x14e1   :  { %v10986_v62 = vadd.f32 %v7226_v12, %v3625_v9  ;;  %v3615_v19 = vmul.f32 %v9368_v34, %v10914_v42  ;;  %8674 = vmatprep.mubr.msk.f32.mxu0 %vm9513_vm5, %v9512_v2  ;;  %8642 = vmatprep.subr.mxu1 %v9512_v2  ;;  %v7232_v9 = vld [vmem:[%s12088_s11 + $0x4] ss:$0 sm:$0xff] }
0x14e2   :  { %8643 = vmatpush3.msra.mxu1 %v7240_v14 }
0x14e3   :  { %v3626_v35 = vmul.f32 %v7225_v22, %v3615_v19  ;;  %8629 = vmatmul.mubr.msk.f32.gmra.mxu1 %vm237_vm1, %v10986_v62  ;;  %8675 = vmatmul.mubr.msk.f32.gmra.mxu0 %vm237_vm1, %v10986_v62 }
0x14e4   :  { %v9370_v37 = vpop.eup %9369  ;;  %8631 = vmatprep.mubr.msk.f32.mxu1 %vm9513_vm5, %v9512_v2  ;;  %8677 = vmatprep.mubr.msk.f32.mxu0 %vm9513_vm5, %v9512_v2 }
0x14e5   :  { %v11003_v3 = vadd.f32 %v7226_v12, %v3626_v35  ;;  %v3616_v24 = vmul.f32 %v9370_v37, %v10920_v51  ;;  %8644 = vmatprep.subr.mxu1 %v9512_v2  ;;  %v7280_v37 = vld [vmem:[%s12129_s29 + $0xb8] sm:$0xff] }
0x14e6   :  { %8645 = vmatpush3.msra.mxu1 %v7239_v49 }
0x14e7   :  { %v3627_v38 = vmul.f32 %v7225_v22, %v3616_v24  ;;  %8632 = vmatmul.mubr.msk.f32.gmra.mxu1 %vm237_vm1, %v11003_v3  ;;  %8678 = vmatmul.mubr.msk.f32.gmra.mxu0 %vm237_vm1, %v11003_v3  ;;  %v7279_v24 = vld [vmem:[%s12129_s29 + $0xb0] sm:$0xff] }
0x14e8   :  { %v9372_v42 = vpop.eup %9371  ;;  %8634 = vmatprep.mubr.msk.f32.mxu1 %vm9513_vm5, %v9512_v2  ;;  %8680 = vmatprep.mubr.msk.f32.mxu0 %vm9513_vm5, %v9512_v2 }
0x14e9   :  { %v11018_v0 = vadd.f32 %v7226_v12, %v3627_v38  ;;  %v3617_v44 = vmul.f32 %v9372_v42, %v10926_v47  ;;  %8646 = vmatprep.subr.mxu1 %v9512_v2  ;;  %v7278_v42 = vld [vmem:[%s12129_s29 + $0xa8] sm:$0xff] }
0x14ea   :  { %8647 = vmatpush3.msra.mxu1 %v7238_v40 }
0x14eb   :  { %v3628_v15 = vmul.f32 %v7225_v22, %v3617_v44  ;;  %8635 = vmatmul.mubr.msk.f32.gmra.mxu1 %vm237_vm1, %v11018_v0  ;;  %8681 = vmatmul.mubr.msk.f32.gmra.mxu0 %vm237_vm1, %v11018_v0  ;;  %v7277_v44 = vld [vmem:[%s12129_s29 + $0xa0] sm:$0xff] }
0x14ec   :  { %8637 = vmatprep.mubr.msk.f32.mxu1 %vm9513_vm5, %v9512_v2  ;;  %8683 = vmatprep.mubr.msk.f32.mxu0 %vm9513_vm5, %v9512_v2 }
0x14ed   :  { %v11030_v21 = vadd.f32 %v7226_v12, %v3628_v15  ;;  %8686 = vmatprep.subr.mxu1 %v9512_v2 }
0x14ef   :  { %8638 = vmatmul.mubr.msk.f32.gmra.mxu1 %vm237_vm1, %v11030_v21  ;;  %8684 = vmatmul.mubr.msk.f32.gmra.mxu0 %vm237_vm1, %v11030_v21 }
0x14f0   :  { %8648 = vmatprep.mubr.msk.f32.mxu1 %vm9513_vm5, %v9512_v2  ;;  %8721 = vmatprep.mubr.msk.f32.mxu0 %vm9513_vm5, %v9512_v2 }
0x14f3   :  { %8649 = vmatmul.mubr.msk.f32.vlgmr.msra.gmra.mxu1 %vm237_vm1, %v10971_v26 }
0x14f4   :  { %8651 = vmatprep.mubr.msk.f32.mxu1 %vm9513_vm5, %v9512_v2 }
0x14f7   :  { %8652 = vmatmul.mubr.msk.f32.gmra.mxu1 %vm237_vm1, %v10986_v62 }
0x14f8   :  { %8654 = vmatprep.mubr.msk.f32.mxu1 %vm9513_vm5, %v9512_v2 }
0x14fb   :  { %8655 = vmatmul.mubr.msk.f32.gmra.mxu1 %vm237_vm1, %v11003_v3 }
0x14fc   :  { %8657 = vmatprep.mubr.msk.f32.mxu1 %vm9513_vm5, %v9512_v2 }
0x14ff   :  { %8658 = vmatmul.mubr.msk.f32.gmra.mxu1 %vm237_vm1, %v11018_v0 }
0x1500   :  { %8660 = vmatprep.mubr.msk.f32.mxu1 %vm9513_vm5, %v9512_v2 }
0x1503   :  { %8661 = vmatmul.mubr.msk.f32.gmra.mxu1 %vm237_vm1, %v11030_v21 }
0x1504   :  { %8696 = vmatprep.mubr.msk.f32.mxu1 %vm9513_vm5, %v9512_v2 }
0x159f   :  { %v3734_v51 = vpop.f32.mrf.mxu1  ;;  %v3945_v31 = vpop.f32.mrf.mxu0 }
0x15a0   :  { %v3946_v13 = vadd.f32 %v7254_v11, %v3945_v31  ;;  %v3735_v34 = vadd.f32 %v7232_v9, %v3734_v51 }
0x15a1   :  { %v8627_v28 = vpop.f32.mrf.mxu1  ;;  %v8673_v30 = vpop.f32.mrf.mxu0 }
0x15a2   :  { %v3758_v35 = vmul.f32 0.35355338, %v3735_v34 }
0x15a3   :  { %v3739_v46 = vpop.f32.mrf.mxu1  ;;  %v3950_v47 = vpop.f32.mrf.mxu0 }
0x15a4   :  { %v3951_v25 = vadd.f32 %v7254_v11, %v3950_v47  ;;  %v3740_v49 = vadd.f32 %v7232_v9, %v3739_v46  ;;  %v7302_v46 = vld [vmem:[%s12133_s3 + $0xb8] sm:$0xff]  ;;  %v7301_v47 = vld [vmem:[%s12133_s3 + $0xb0] sm:$0xff] }
0x15a5   :  { %v8630_v48 = vpop.f32.mrf.mxu1  ;;  %v8676_v43 = vpop.f32.mrf.mxu0 }
0x15a6   :  { %v3759_v38 = vmul.f32 0.35355338, %v3740_v49  ;;  %v7300_v48 = vld [vmem:[%s12133_s3 + $0xa8] sm:$0xff]  ;;  %v7299_v43 = vld [vmem:[%s12133_s3 + $0xa0] sm:$0xff] }
0x15a7   :  { %v11061_v1 = vpop.f32.mrf.mxu1  ;;  %v3955_v27 = vpop.f32.mrf.mxu0 }
0x15a8   :  { %v3956_v23 = vadd.f32 %v7254_v11, %v3955_v27  ;;  %v3745_v40 = vadd.f32 %v7232_v9, %v11061_v1  ;;  %v11185_v27 = vld [vmem:[%s12134_s8] sm:$0xff] }
0x15a9   :  { %v8633_v54 = vpop.f32.mrf.mxu1  ;;  %v8679_v52 = vpop.f32.mrf.mxu0 }
0x15aa   :  { %v3760_v15 = vmul.f32 0.35355338, %v3745_v40 }
0x15ab   :  { %v11063_v53 = vpop.f32.mrf.mxu1  ;;  %v3960_v6 = vpop.f32.mrf.mxu0 }
0x15ac   :  { %v3961_v63 = vadd.f32 %v7254_v11, %v3960_v6  ;;  %v3750_v51 = vadd.f32 %v7232_v9, %v11063_v53 }
0x15ad   :  { %v8636_v39 = vpop.f32.mrf.mxu1  ;;  %v8682_v56 = vpop.f32.mrf.mxu0 }
0x15ae   :  { %v3761_v31 = vmul.f32 0.35355338, %v3750_v51  ;;  %v11195_v39 = vld [vmem:[%s12134_s8 + $0x8] sm:$0xff] }
0x15af   :  { %v11068_v58 = vpop.f32.mrf.mxu1  ;;  %v3965_v41 = vpop.f32.mrf.mxu0 }
0x15b0   :  { %v3966_v60 = vadd.f32 %v7254_v11, %v3965_v41  ;;  %v3755_v28 = vadd.f32 %v7232_v9, %v11068_v58 }
0x15b1   :  { %v8639_v61 = vpop.f32.mrf.mxu1  ;;  %v8685_v16 = vpop.f32.mrf.mxu0 }
0x15b2   :  { %8712 = vmatpush3.msk.msra.mxu0 %vm220_vm3, %v3966_v60  ;;  %v3762_v30 = vmul.f32 0.35355338, %v3755_v28  ;;  %v11205_v60 = vld [vmem:[%s12134_s8 + $0x10] sm:$0xff] }
0x15b3   :  { %v3842_v45 = vpop.f32.mrf.mxu1  ;;  %8713 = vmatprep.subr.mxu0 %v9512_v2 }
0x15b4   :  { %8714 = vmatpush3.msra.mxu0 %v3961_v63  ;;  %v3843_v19 = vadd.f32 %v7243_v57, %v3842_v45 }
0x15b5   :  { %v8650_v50 = vpop.f32.mrf.mxu1  ;;  %8715 = vmatprep.subr.mxu0 %v9512_v2 }
0x15b6   :  { %8716 = vmatpush3.msra.mxu0 %v3956_v23  ;;  %v11212_v23 = vld [vmem:[%s12134_s8 + $0x18] sm:$0xff] }
0x15b7   :  { %v3847_v10 = vpop.f32.mrf.mxu1  ;;  %8717 = vmatprep.subr.mxu0 %v9512_v2 }
0x15b8   :  { %8718 = vmatpush3.msra.mxu0 %v3951_v25  ;;  %v3848_v14 = vadd.f32 %v7243_v57, %v3847_v10 }
0x15b9   :  { %v8653_v5 = vpop.f32.mrf.mxu1  ;;  %8719 = vmatprep.subr.mxu0 %v9512_v2 }
0x15ba   :  { %8720 = vmatpush3.msra.mxu0 %v3946_v13  ;;  %v11219_v5 = vld [vmem:[%s12134_s8 + $0x20] sm:$0xf] }
0x15bb   :  { %v3852_v18 = vpop.f32.mrf.mxu1  ;;  %8759 = vmatprep.subr.mxu0 %v9512_v2 }
0x15bc   :  { %v3853_v33 = vadd.f32 %v7243_v57, %v3852_v18 }
0x15bd   :  { %v8656_v20 = vpop.f32.mrf.mxu1 }
0x15bf   :  { %v3857_v22 = vpop.f32.mrf.mxu1 }
0x15c0   :  { %v3858_v59 = vadd.f32 %v7243_v57, %v3857_v22 }
0x15c1   :  { %v8659_v4 = vpop.f32.mrf.mxu1 }
0x15c3   :  { %v3862_v12 = vpop.f32.mrf.mxu1 }
0x15c4   :  { %v3863_v8 = vadd.f32 %v7243_v57, %v3862_v12 }
0x15c5   :  { %v8662_v29 = vpop.f32.mrf.mxu1 }
0x15c6   :  { %8687 = vmatpush3.xpose.msk.msra.mxu1 %vm650_vm6, %v3863_v8 }
0x15c7   :  { %8688 = vmatprep.subr.mxu1 %v9512_v2 }
0x15ca   :  { %8689 = vmatpush3.xpose.msk.msra.mxu1 %vm650_vm6, %v3858_v59 }
0x15cb   :  { %8690 = vmatprep.subr.mxu1 %v9512_v2 }
0x15ce   :  { %8691 = vmatpush3.xpose.msk.msra.mxu1 %vm650_vm6, %v3853_v33 }
0x15cf   :  { %8692 = vmatprep.subr.mxu1 %v9512_v2 }
0x15d2   :  { %8693 = vmatpush3.xpose.msk.msra.mxu1 %vm650_vm6, %v3848_v14 }
0x15d3   :  { %8694 = vmatprep.subr.mxu1 %v9512_v2 }
0x15d6   :  { %8695 = vmatpush3.xpose.msk.msra.mxu1 %vm650_vm6, %v3843_v19 }
0x15d7   :  { %8736 = vmatprep.subr.mxu1 %v9512_v2 }
0x15d9   :  { %8697 = vmatmul.mubr.msk.f32.vlgmr.msra.gmra.mxu1 %vm650_vm6, %v3758_v35 }
0x15da   :  { %8699 = vmatprep.mubr.msk.f32.mxu1 %vm9513_vm5, %v9512_v2  ;;  %8737 = vmatpush3.msra.mxu1 %v7280_v37 }
0x15db   :  { %8738 = vmatprep.subr.mxu1 %v9512_v2 }
0x15dc   :  { %8739 = vmatpush3.msra.mxu1 %v7279_v24 }
0x15dd   :  { %8700 = vmatmul.mubr.msk.f32.gmra.mxu1 %vm650_vm6, %v3759_v38  ;;  %8740 = vmatprep.subr.mxu1 %v9512_v2 }
0x15de   :  { %8702 = vmatprep.mubr.msk.f32.mxu1 %vm9513_vm5, %v9512_v2  ;;  %8741 = vmatpush3.msra.mxu1 %v7278_v42 }
0x15df   :  { %8742 = vmatprep.subr.mxu1 %v9512_v2 }
0x15e0   :  { %8743 = vmatpush3.msra.mxu1 %v7277_v44  ;;  %v7304_v44 = vld [vmem:[%s12090_s13 + $0x5] ss:$0 sm:$0xff] }
0x15e1   :  { %8703 = vmatmul.mubr.msk.f32.gmra.mxu1 %vm650_vm6, %v3760_v15  ;;  %8782 = vmatprep.subr.mxu1 %v9512_v2 }
0x15e2   :  { %8705 = vmatprep.mubr.msk.f32.mxu1 %vm9513_vm5, %v9512_v2 }
0x15e5   :  { %8706 = vmatmul.mubr.msk.f32.gmra.mxu1 %vm650_vm6, %v3761_v31 }
0x15e6   :  { %8708 = vmatprep.mubr.msk.f32.mxu1 %vm9513_vm5, %v9512_v2 }
0x15e9   :  { %8709 = vmatmul.mubr.msk.f32.gmra.mxu1 %vm650_vm6, %v3762_v30 }
0x15ea   :  { %8744 = vmatprep.mubr.msk.f32.mxu1 %vm9513_vm5, %v9512_v2 }
0x15ed   :  { %8745 = vmatmul.mubr.msk.f32.vlgmr.msra.gmra.mxu1 %vm237_vm1, %v10971_v26 }
0x15ee   :  { %8747 = vmatprep.mubr.msk.f32.mxu1 %vm9513_vm5, %v9512_v2  ;;  %8783 = vmatpush3.msra.mxu1 %v7302_v46 }
0x15ef   :  { %8784 = vmatprep.subr.mxu1 %v9512_v2 }
0x15f0   :  { %8785 = vmatpush3.msra.mxu1 %v7301_v47 }
0x15f1   :  { %8748 = vmatmul.mubr.msk.f32.gmra.mxu1 %vm237_vm1, %v10986_v62  ;;  %8786 = vmatprep.subr.mxu1 %v9512_v2 }
0x15f2   :  { %8750 = vmatprep.mubr.msk.f32.mxu1 %vm9513_vm5, %v9512_v2  ;;  %8787 = vmatpush3.msra.mxu1 %v7300_v48 }
0x15f3   :  { %8788 = vmatprep.subr.mxu1 %v9512_v2 }
0x15f4   :  { %8789 = vmatpush3.msra.mxu1 %v7299_v43 }
0x15f5   :  { %8751 = vmatmul.mubr.msk.f32.gmra.mxu1 %vm237_vm1, %v11003_v3  ;;  %8830 = vmatprep.subr.mxu1 %v9512_v2 }
0x15f6   :  { %8753 = vmatprep.mubr.msk.f32.mxu1 %vm9513_vm5, %v9512_v2 }
0x15f9   :  { %8754 = vmatmul.mubr.msk.f32.gmra.mxu1 %vm237_vm1, %v11018_v0 }
0x15fa   :  { %8756 = vmatprep.mubr.msk.f32.mxu1 %vm9513_vm5, %v9512_v2 }
0x15fd   :  { %8757 = vmatmul.mubr.msk.f32.gmra.mxu1 %vm237_vm1, %v11030_v21 }
0x15fe   :  { %8790 = vmatprep.mubr.msk.f32.mxu1 %vm9513_vm5, %v9512_v2 }
0x1601   :  { %8791 = vmatmul.mubr.msk.f32.vlgmr.msra.gmra.mxu1 %vm237_vm1, %v10971_v26 }
0x1602   :  { %8793 = vmatprep.mubr.msk.f32.mxu1 %vm9513_vm5, %v9512_v2 }
0x1605   :  { %8794 = vmatmul.mubr.msk.f32.gmra.mxu1 %vm237_vm1, %v10986_v62 }
0x1606   :  { %8796 = vmatprep.mubr.msk.f32.mxu1 %vm9513_vm5, %v9512_v2 }
0x1609   :  { %8797 = vmatmul.mubr.msk.f32.gmra.mxu1 %vm237_vm1, %v11003_v3 }
0x160a   :  { %8799 = vmatprep.mubr.msk.f32.mxu1 %vm9513_vm5, %v9512_v2 }
0x160d   :  { %8800 = vmatmul.mubr.msk.f32.gmra.mxu1 %vm237_vm1, %v11018_v0 }
0x160e   :  { %8802 = vmatprep.mubr.msk.f32.mxu1 %vm9513_vm5, %v9512_v2 }
0x1611   :  { %8803 = vmatmul.mubr.msk.f32.gmra.mxu1 %vm237_vm1, %v11030_v21 }
0x1612   :  { %8840 = vmatprep.mubr.msk.f32.mxu1 %vm9513_vm5, %v9512_v2 }
0x1699   :  { %v4065_v1 = vpop.f32.mrf.mxu1 }
0x169a   :  { %v11188_v54 = vadd.f32 %v11185_v27, %v4065_v1 }
0x169b   :  { %v8698_v52 = vpop.f32.mrf.mxu1 }
0x169c   :  { %v4089_v53 = vsel %vm771_vm7, %v11188_v54, -inf }
0x169d   :  { %4090 = vmax.xlane.f32.xlu0 %v4089_v53  ;;  %v4070_v6 = vpop.f32.mrf.mxu1 }
0x169e   :  { %v11198_v56 = vadd.f32 %v11195_v39, %v4070_v6 }
0x169f   :  { %v8701_v11 = vpop.f32.mrf.mxu1 }
0x16a0   :  { %v4092_v58 = vsel %vm771_vm7, %v11198_v56, -inf }
0x16a1   :  { %4093 = vmax.xlane.f32.xlu1 %v4092_v58  ;;  %v4075_v41 = vpop.f32.mrf.mxu1 }
0x16a2   :  { %v4076_v61 = vadd.f32 %v11205_v60, %v4075_v41 }
0x16a3   :  { %v8704_v16 = vpop.f32.mrf.mxu1 }
0x16a4   :  { %v4095_v63 = vsel %vm771_vm7, %v4076_v61, -inf }
0x16a5   :  { %4096 = vmax.xlane.f32.xlu0 %v4095_v63  ;;  %v4080_v45 = vpop.f32.mrf.mxu1 }
0x16a6   :  { %v4081_v50 = vadd.f32 %v11212_v23, %v4080_v45 }
0x16a7   :  { %v8707_v25 = vpop.f32.mrf.mxu1 }
0x16a8   :  { %v4098_v10 = vsel %vm771_vm7, %v4081_v50, -inf }
0x16a9   :  { %4099 = vmax.xlane.f32.xlu1 %v4098_v10  ;;  %v4085_v13 = vpop.f32.mrf.mxu1 }
0x16aa   :  { %v4086_v18 = vadd.f32 %v11219_v5, %v4085_v13 }
0x16ab   :  { %v8710_v20 = vpop.f32.mrf.mxu1 }
0x16ac   :  { %v4101_v22 = vsel %vm784_vm8, %v4086_v18, -inf }
0x16ad   :  { %4102 = vmax.xlane.f32.xlu0 %v4101_v22  ;;  %v11223_v4 = vpop.f32.mrf.mxu1 }
0x16af   :  { %v8746_v57 = vpop.f32.mrf.mxu1 }
0x16b1   :  { %v11225_v12 = vpop.f32.mrf.mxu1 }
0x16b3   :  { %v8749_v8 = vpop.f32.mrf.mxu1 }
0x16b5   :  { %v11227_v29 = vpop.f32.mrf.mxu1 }
0x16b7   :  { %v8752_v59 = vpop.f32.mrf.mxu1 }
0x16b9   :  { %v11229_v33 = vpop.f32.mrf.mxu1 }
0x16bb   :  { %v8755_v9 = vpop.f32.mrf.mxu1 }
0x16bd   :  { %v11231_v14 = vpop.f32.mrf.mxu1 }
0x16bf   :  { %v8758_v34 = vpop.f32.mrf.mxu1 }
0x16c1   :  { %v4544_v19 = vpop.f32.mrf.mxu1 }
0x16c2   :  { %v4545_v47 = vadd.f32 %v7304_v44, %v4544_v19 }
0x16c3   :  { %v8792_v35 = vpop.f32.mrf.mxu1 }
0x16c5   :  { %v4549_v49 = vpop.f32.mrf.mxu1 }
0x16c6   :  { %v4550_v46 = vadd.f32 %v7304_v44, %v4549_v49 }
0x16c7   :  { %v8795_v37 = vpop.f32.mrf.mxu1 }
0x16c9   :  { %v4554_v24 = vpop.f32.mrf.mxu1 }
0x16ca   :  { %v4555_v30 = vadd.f32 %v7304_v44, %v4554_v24  ;;  %v7291_v24 = vld [vmem:[%s12132_s0 + $0xb8] sm:$0xff] }
0x16cb   :  { %v8798_v38 = vpop.f32.mrf.mxu1 }
0x16cd   :  { %v4559_v40 = vpop.f32.mrf.mxu1 }
0x16ce   :  { %v4560_v28 = vadd.f32 %v7304_v44, %v4559_v40  ;;  %v7290_v40 = vld [vmem:[%s12132_s0 + $0xb0] sm:$0xff] }
0x16cf   :  { %v8801_v42 = vpop.f32.mrf.mxu1 }
0x16d1   :  { %v4564_v15 = vpop.f32.mrf.mxu1 }
0x16d2   :  { %v4565_v51 = vadd.f32 %v7304_v44, %v4564_v15  ;;  %v7289_v15 = vld [vmem:[%s12132_s0 + $0xa8] sm:$0xff] }
0x16d3   :  { %v8804_v31 = vpop.f32.mrf.mxu1 }
0x16d4   :  { %8831 = vmatpush3.msk.msra.mxu1 %vm220_vm3, %v4565_v51  ;;  %v7288_v51 = vld [vmem:[%s12132_s0 + $0xa0] sm:$0xff] }
0x16d5   :  { %8832 = vmatprep.subr.mxu1 %v9512_v2 }
0x16d6   :  { %8833 = vmatpush3.msra.mxu1 %v4560_v28 }
0x16d7   :  { %8834 = vmatprep.subr.mxu1 %v9512_v2 }
0x16d8   :  { %8835 = vmatpush3.msra.mxu1 %v4555_v30 }
0x16d9   :  { %8836 = vmatprep.subr.mxu1 %v9512_v2 }
0x16da   :  { %8837 = vmatpush3.msra.mxu1 %v4550_v46 }
0x16db   :  { %8838 = vmatprep.subr.mxu1 %v9512_v2 }
0x16dc   :  { %8839 = vmatpush3.msra.mxu1 %v4545_v47 }
0x16dd   :  { %8872 = vmatprep.subr.mxu1 %v9512_v2 }
0x1726   :  { %v4091_v48 = vpop.xlane.xlu0 %4090 }
0x1727   :  { %v4104_v43 = vsub.f32 %v11188_v54, %v4091_v48 }
0x1729   :  { %v4109_v1 = vmul.f32 1.442695, %v4104_v43 }
0x172a   :  { %v4094_v52 = vpop.xlane.xlu1 %4093 }
0x172b   :  { %9373 = vpow2.f32 %v4109_v1  ;;  %v4105_v53 = vsub.f32 %v11198_v56, %v4094_v52 }
0x172d   :  { %v4111_v6 = vmul.f32 1.442695, %v4105_v53 }
0x172e   :  { %v4097_v11 = vpop.xlane.xlu0 %4096 }
0x172f   :  { %9375 = vpow2.f32 %v4111_v6  ;;  %v4106_v58 = vsub.f32 %v4076_v61, %v4097_v11 }
0x1731   :  { %v4113_v41 = vmul.f32 1.442695, %v4106_v58 }
0x1732   :  { %v4100_v16 = vpop.xlane.xlu1 %4099 }
0x1733   :  { %9377 = vpow2.f32 %v4113_v41  ;;  %v4107_v63 = vsub.f32 %v4081_v50, %v4100_v16 }
0x1735   :  { %v4115_v45 = vmul.f32 1.442695, %v4107_v63 }
0x1736   :  { %v4103_v25 = vpop.xlane.xlu0 %4102 }
0x1737   :  { %9379 = vpow2.f32 %v4115_v45  ;;  %v4108_v10 = vsub.f32 %v4086_v18, %v4103_v25 }
0x1738   :  { %v9374_v13 = vpop.eup %9373 }
0x1739   :  { %v4117_v20 = vmul.f32 1.442695, %v4108_v10  ;;  %v4119_v54 = vsel %vm771_vm7, %v9374_v13, 0.0 }
0x173a   :  { %4120 = vadd.xlane.f32.xlu1 %v4119_v54 }
0x173b   :  { %9381 = vpow2.f32 %v4117_v20 }
0x173c   :  { %v9376_v22 = vpop.eup %9375 }
0x173d   :  { %v4122_v56 = vsel %vm771_vm7, %v9376_v22, 0.0 }
0x173e   :  { %4123 = vadd.xlane.f32.xlu0 %v4122_v56 }
0x1740   :  { %v9378_v57 = vpop.eup %9377 }
0x1741   :  { %v4125_v61 = vsel %vm771_vm7, %v9378_v57, 0.0 }
0x1742   :  { %4126 = vadd.xlane.f32.xlu1 %v4125_v61 }
0x1744   :  { %v9380_v8 = vpop.eup %9379 }
0x1745   :  { %v4128_v50 = vsel %vm771_vm7, %v9380_v8, 0.0 }
0x1746   :  { %4129 = vadd.xlane.f32.xlu0 %v4128_v50 }
0x1748   :  { %v9382_v59 = vpop.eup %9381 }
0x1749   :  { %v4131_v18 = vsel %vm784_vm8, %v9382_v59, 0.0 }
0x174a   :  { %4132 = vadd.xlane.f32.xlu1 %v4131_v18 }
0x17c3   :  { %v4121_v9 = vpop.xlane.xlu1 %4120 }
0x17c4   :  { %9383 = vrcp.f32 %v4121_v9  ;;  %v7282_v9 = vld [vmem:[%s12088_s11 + $0x5] ss:$0 sm:$0xff] }
0x17c7   :  { %v4124_v34 = vpop.xlane.xlu0 %4123 }
0x17c8   :  { %9385 = vrcp.f32 %v4124_v34 }
0x17cb   :  { %v4127_v19 = vpop.xlane.xlu1 %4126 }
0x17cc   :  { %9387 = vrcp.f32 %v4127_v19  ;;  %v4334_v19 = vadd.f32 %v7282_v9, %v11223_v4 }
0x17cf   :  { %v4130_v35 = vpop.xlane.xlu0 %4129 }
0x17d0   :  { %9389 = vrcp.f32 %v4130_v35 }
0x17d1   :  { %v9384_v49 = vpop.eup %9383 }
0x17d2   :  { %v4139_v37 = vmul.f32 %v9384_v49, %v9374_v13  ;;  %v4357_v49 = vmul.f32 0.35355338, %v4334_v19 }
0x17d3   :  { %v4133_v38 = vpop.xlane.xlu1 %4132 }
0x17d4   :  { %9391 = vrcp.f32 %v4133_v38  ;;  %8722 = vmatmul.mubr.msk.f32.vlgmr.msra.gmra.mxu0 %vm771_vm7, %v4139_v37  ;;  %v4339_v37 = vadd.f32 %v7282_v9, %v11225_v12  ;;  %v4344_v38 = vadd.f32 %v7282_v9, %v11227_v29 }
0x17d5   :  { %v9386_v42 = vpop.eup %9385  ;;  %8760 = vmatpush3.msra.mxu0 %v7291_v24  ;;  %8724 = vmatprep.mubr.msk.f32.mxu0 %vm9513_vm5, %v9512_v2 }
0x17d6   :  { %v4140_v44 = vmul.f32 %v9386_v42, %v9376_v22  ;;  %8761 = vmatprep.subr.mxu0 %v9512_v2  ;;  %v4358_v24 = vmul.f32 0.35355338, %v4339_v37  ;;  %v4359_v4 = vmul.f32 0.35355338, %v4344_v38  ;;  %v4354_v42 = vadd.f32 %v7282_v9, %v11231_v14 }
0x17d7   :  { %8762 = vmatpush3.msra.mxu0 %v7290_v40  ;;  %v4349_v40 = vadd.f32 %v7282_v9, %v11229_v33 }
0x17d8   :  { %8725 = vmatmul.mubr.msk.f32.gmra.mxu0 %vm771_vm7, %v4140_v44  ;;  %8763 = vmatprep.subr.mxu0 %v9512_v2  ;;  %v4361_v29 = vmul.f32 0.35355338, %v4354_v42 }
0x17d9   :  { %v9388_v31 = vpop.eup %9387  ;;  %8727 = vmatprep.mubr.msk.f32.mxu0 %vm9513_vm5, %v9512_v2  ;;  %8764 = vmatpush3.msra.mxu0 %v7289_v15  ;;  %v4360_v12 = vmul.f32 0.35355338, %v4349_v40 }
0x17da   :  { %v4141_v28 = vmul.f32 %v9388_v31, %v9378_v57  ;;  %8765 = vmatprep.subr.mxu0 %v9512_v2  ;;  %v7293_v57 = vld [vmem:[%s12089_s12 + $0x5] ss:$0 sm:$0xff] }
0x17db   :  { %8766 = vmatpush3.msra.mxu0 %v7288_v51 }
0x17dc   :  { %8728 = vmatmul.mubr.msk.f32.gmra.mxu0 %vm771_vm7, %v4141_v28  ;;  %8805 = vmatprep.subr.mxu0 %v9512_v2 }
0x17dd   :  { %v9390_v30 = vpop.eup %9389  ;;  %8730 = vmatprep.mubr.msk.f32.mxu0 %vm9513_vm5, %v9512_v2 }
0x17de   :  { %v4142_v46 = vmul.f32 %v9390_v30, %v9380_v8 }
0x17e0   :  { %8731 = vmatmul.mubr.msk.f32.gmra.mxu0 %vm771_vm7, %v4142_v46 }
0x17e1   :  { %v9392_v47 = vpop.eup %9391  ;;  %8733 = vmatprep.mubr.msk.f32.mxu0 %vm9513_vm5, %v9512_v2 }
0x17e2   :  { %v4143_v48 = vmul.f32 %v9392_v47, %v9382_v59 }
0x17e4   :  { %8734 = vmatmul.mubr.msk.f32.gmra.mxu0 %vm771_vm7, %v4143_v48 }
0x17e5   :  { %8767 = vmatprep.mubr.msk.f32.mxu0 %vm9513_vm5, %v9512_v2 }
0x17e8   :  { %8768 = vmatmul.mubr.msk.f32.vlgmr.msra.gmra.mxu0 %vm237_vm1, %v10971_v26 }
0x17e9   :  { %8770 = vmatprep.mubr.msk.f32.mxu0 %vm9513_vm5, %v9512_v2 }
0x17ec   :  { %8771 = vmatmul.mubr.msk.f32.gmra.mxu0 %vm237_vm1, %v10986_v62 }
0x17ed   :  { %8773 = vmatprep.mubr.msk.f32.mxu0 %vm9513_vm5, %v9512_v2 }
0x17f0   :  { %8774 = vmatmul.mubr.msk.f32.gmra.mxu0 %vm237_vm1, %v11003_v3 }
0x17f1   :  { %8776 = vmatprep.mubr.msk.f32.mxu0 %vm9513_vm5, %v9512_v2 }
0x17f4   :  { %8777 = vmatmul.mubr.msk.f32.gmra.mxu0 %vm237_vm1, %v11018_v0 }
0x17f5   :  { %8779 = vmatprep.mubr.msk.f32.mxu0 %vm9513_vm5, %v9512_v2 }
0x17f8   :  { %8780 = vmatmul.mubr.msk.f32.gmra.mxu0 %vm237_vm1, %v11030_v21 }
0x17f9   :  { %8815 = vmatprep.mubr.msk.f32.mxu0 %vm9513_vm5, %v9512_v2 }
0x1894   :  { %v11300_v43 = vpop.f32.mrf.mxu0 }
0x1896   :  { %v8723_v1 = vpop.f32.mrf.mxu0 }
0x1898   :  { %v11302_v52 = vpop.f32.mrf.mxu0 }
0x189a   :  { %v8726_v53 = vpop.f32.mrf.mxu0 }
0x189c   :  { %v11304_v6 = vpop.f32.mrf.mxu0 }
0x189e   :  { %v8729_v11 = vpop.f32.mrf.mxu0 }
0x18a0   :  { %v11306_v58 = vpop.f32.mrf.mxu0 }
0x18a2   :  { %v8732_v41 = vpop.f32.mrf.mxu0 }
0x18a4   :  { %v11308_v16 = vpop.f32.mrf.mxu0 }
0x18a6   :  { %v8735_v63 = vpop.f32.mrf.mxu0 }
0x18a8   :  { %v4441_v45 = vpop.f32.mrf.mxu0 }
0x18a9   :  { %v4442_v35 = vadd.f32 %v7293_v57, %v4441_v45 }
0x18aa   :  { %v8769_v25 = vpop.f32.mrf.mxu0 }
0x18ac   :  { %v4446_v10 = vpop.f32.mrf.mxu0 }
0x18ad   :  { %v4447_v34 = vadd.f32 %v7293_v57, %v4446_v10 }
0x18ae   :  { %v8772_v13 = vpop.f32.mrf.mxu0 }
0x18b0   :  { %v4451_v20 = vpop.f32.mrf.mxu0 }
0x18b1   :  { %v4452_v18 = vadd.f32 %v7293_v57, %v4451_v20 }
0x18b2   :  { %v8775_v54 = vpop.f32.mrf.mxu0 }
0x18b4   :  { %v4456_v22 = vpop.f32.mrf.mxu0 }
0x18b5   :  { %v4457_v59 = vadd.f32 %v7293_v57, %v4456_v22 }
0x18b6   :  { %v8778_v56 = vpop.f32.mrf.mxu0 }
0x18b8   :  { %v4461_v61 = vpop.f32.mrf.mxu0 }
0x18b9   :  { %v4462_v8 = vadd.f32 %v7293_v57, %v4461_v61 }
0x18ba   :  { %v8781_v50 = vpop.f32.mrf.mxu0 }
0x18bb   :  { %8806 = vmatpush3.xpose.msk.msra.mxu0 %vm650_vm6, %v4462_v8 }
0x18bc   :  { %8807 = vmatprep.subr.mxu0 %v9512_v2 }
0x18bf   :  { %8808 = vmatpush3.xpose.msk.msra.mxu0 %vm650_vm6, %v4457_v59 }
0x18c0   :  { %8809 = vmatprep.subr.mxu0 %v9512_v2 }
0x18c3   :  { %8810 = vmatpush3.xpose.msk.msra.mxu0 %vm650_vm6, %v4452_v18 }
0x18c4   :  { %8811 = vmatprep.subr.mxu0 %v9512_v2 }
0x18c7   :  { %8812 = vmatpush3.xpose.msk.msra.mxu0 %vm650_vm6, %v4447_v34 }
0x18c8   :  { %8813 = vmatprep.subr.mxu0 %v9512_v2 }
0x18cb   :  { %8814 = vmatpush3.xpose.msk.msra.mxu0 %vm650_vm6, %v4442_v35 }
0x18cc   :  { %8855 = vmatprep.subr.mxu0 %v9512_v2 }
0x18ce   :  { %8816 = vmatmul.mubr.msk.f32.vlgmr.msra.gmra.mxu0 %vm650_vm6, %v4357_v49 }
0x18cf   :  { %8818 = vmatprep.mubr.msk.f32.mxu0 %vm9513_vm5, %v9512_v2 }
0x18d2   :  { %8819 = vmatmul.mubr.msk.f32.gmra.mxu0 %vm650_vm6, %v4358_v24 }
0x18d3   :  { %8821 = vmatprep.mubr.msk.f32.mxu0 %vm9513_vm5, %v9512_v2 }
0x18d6   :  { %8822 = vmatmul.mubr.msk.f32.gmra.mxu0 %vm650_vm6, %v4359_v4 }
0x18d7   :  { %8824 = vmatprep.mubr.msk.f32.mxu0 %vm9513_vm5, %v9512_v2 }
0x18da   :  { %8825 = vmatmul.mubr.msk.f32.gmra.mxu0 %vm650_vm6, %v4360_v12 }
0x18db   :  { %8827 = vmatprep.mubr.msk.f32.mxu0 %vm9513_vm5, %v9512_v2 }
0x18de   :  { %8828 = vmatmul.mubr.msk.f32.gmra.mxu0 %vm650_vm6, %v4361_v29 }
0x18df   :  { %8857 = vmatprep.mubr.msk.f32.mxu0 %vm9513_vm5, %v9512_v2 }
0x198e   :  { %v4664_v33 = vpop.f32.mrf.mxu0 }
0x198f   :  { %v4665_v44 = vadd.f32 %v11185_v27, %v4664_v33 }
0x1990   :  { %v8817_v15 = vpop.f32.mrf.mxu0 }
0x1991   :  { %v4688_v51 = vsel %vm771_vm7, %v4665_v44, -inf  ;;  %v7326_v15 = vld [vmem:[%s12091_s14 + $0x28] sm:$0xff] }
0x1992   :  { %4689 = vmax.xlane.f32.xlu0 %v4688_v51  ;;  %v4669_v31 = vpop.f32.mrf.mxu0  ;;  %8856 = vmatpush3.msra.mxu0 %v7326_v15 }
0x1993   :  { %v4670_v14 = vadd.f32 %v11195_v39, %v4669_v31  ;;  %8889 = vmatprep.subr.mxu0 %v9512_v2 }
0x1994   :  { %v8820_v28 = vpop.f32.mrf.mxu0 }
0x1995   :  { %v4691_v30 = vsel %vm771_vm7, %v4670_v14, -inf }
0x1996   :  { %4692 = vmax.xlane.f32.xlu1 %v4691_v30  ;;  %v4674_v46 = vpop.f32.mrf.mxu0 }
0x1997   :  { %v4675_v47 = vadd.f32 %v11205_v60, %v4674_v46 }
0x1998   :  { %v8823_v48 = vpop.f32.mrf.mxu0 }
0x1999   :  { %v4694_v1 = vsel %vm771_vm7, %v4675_v47, -inf }
0x199a   :  { %4695 = vmax.xlane.f32.xlu0 %v4694_v1  ;;  %v4679_v53 = vpop.f32.mrf.mxu0 }
0x199b   :  { %v4680_v11 = vadd.f32 %v11212_v23, %v4679_v53 }
0x199c   :  { %v8826_v41 = vpop.f32.mrf.mxu0 }
0x199d   :  { %v4697_v63 = vsel %vm771_vm7, %v4680_v11, -inf }
0x199e   :  { %4698 = vmax.xlane.f32.xlu1 %v4697_v63  ;;  %v4684_v45 = vpop.f32.mrf.mxu0 }
0x199f   :  { %v4685_v25 = vadd.f32 %v11219_v5, %v4684_v45 }
0x19a0   :  { %v8829_v10 = vpop.f32.mrf.mxu0 }
0x19a1   :  { %v4700_v13 = vsel %vm784_vm8, %v4685_v25, -inf }
0x19a2   :  { %4701 = vmax.xlane.f32.xlu0 %v4700_v13  ;;  %v7351_v13 = vld [vmem:[%s12132_s0 + $0xd8] sm:$0xff] }
0x1a1b   :  { %v4690_v20 = vpop.xlane.xlu0 %4689 }
0x1a1c   :  { %v4703_v54 = vsub.f32 %v4665_v44, %v4690_v20  ;;  %v7350_v20 = vld [vmem:[%s12132_s0 + $0xd0] sm:$0xff] }
0x1a1e   :  { %v4708_v22 = vmul.f32 1.442695, %v4703_v54  ;;  %v7349_v54 = vld [vmem:[%s12132_s0 + $0xc8] sm:$0xff] }
0x1a1f   :  { %v4693_v56 = vpop.xlane.xlu1 %4692 }
0x1a20   :  { %9393 = vpow2.f32 %v4708_v22  ;;  %v4704_v57 = vsub.f32 %v4670_v14, %v4693_v56  ;;  %v7338_v22 = vld [vmem:[%s12129_s29 + $0xc8] sm:$0xff] }
0x1a22   :  { %v4710_v61 = vmul.f32 1.442695, %v4704_v57  ;;  %v7337_v57 = vld [vmem:[%s12129_s29 + $0xc0] sm:$0xff] }
0x1a23   :  { %v4696_v8 = vpop.xlane.xlu0 %4695 }
0x1a24   :  { %9395 = vpow2.f32 %v4710_v61  ;;  %v4705_v50 = vsub.f32 %v4675_v47, %v4696_v8  ;;  %v7276_v47 = vld [vmem:[%s12091_s14 + $0x20] sm:$0xff] }
0x1a26   :  { %v4712_v59 = vmul.f32 1.442695, %v4705_v50 }
0x1a27   :  { %v4699_v18 = vpop.xlane.xlu1 %4698 }
0x1a28   :  { %9397 = vpow2.f32 %v4712_v59  ;;  %v4706_v9 = vsub.f32 %v4680_v11, %v4699_v18 }
0x1a2a   :  { %v4714_v34 = vmul.f32 1.442695, %v4706_v9 }
0x1a2b   :  { %v4702_v19 = vpop.xlane.xlu0 %4701 }
0x1a2c   :  { %9399 = vpow2.f32 %v4714_v34  ;;  %v4707_v35 = vsub.f32 %v4685_v25, %v4702_v19  ;;  %v7362_v19 = vld [vmem:[%s12133_s3 + $0xd8] sm:$0xff] }
0x1a2d   :  { %v9394_v49 = vpop.eup %9393 }
0x1a2e   :  { %v4716_v37 = vmul.f32 1.442695, %v4707_v35  ;;  %v4718_v24 = vsel %vm771_vm7, %v9394_v49, 0.0 }
0x1a2f   :  { %4719 = vadd.xlane.f32.xlu1 %v4718_v24  ;;  %v7360_v24 = vld [vmem:[%s12133_s3 + $0xc8] sm:$0xff] }
0x1a30   :  { %9401 = vpow2.f32 %v4716_v37 }
0x1a31   :  { %v9396_v38 = vpop.eup %9395 }
0x1a32   :  { %v4721_v4 = vsel %vm771_vm7, %v9396_v38, 0.0 }
0x1a33   :  { %4722 = vadd.xlane.f32.xlu0 %v4721_v4  ;;  %v7359_v4 = vld [vmem:[%s12133_s3 + $0xc0] sm:$0xff] }
0x1a35   :  { %v9398_v40 = vpop.eup %9397 }
0x1a36   :  { %v4724_v12 = vsel %vm771_vm7, %v9398_v40, 0.0 }
0x1a37   :  { %4725 = vadd.xlane.f32.xlu1 %v4724_v12 }
0x1a39   :  { %v9400_v42 = vpop.eup %9399 }
0x1a3a   :  { %v4727_v29 = vsel %vm771_vm7, %v9400_v42, 0.0 }
0x1a3b   :  { %4728 = vadd.xlane.f32.xlu0 %v4727_v29 }
0x1a3d   :  { %v9402_v33 = vpop.eup %9401 }
0x1a3e   :  { %v4730_v44 = vsel %vm784_vm8, %v9402_v33, 0.0 }
0x1a3f   :  { %4731 = vadd.xlane.f32.xlu1 %v4730_v44 }
0x1ab8   :  { %v4720_v51 = vpop.xlane.xlu1 %4719 }
0x1ab9   :  { %9403 = vrcp.f32 %v4720_v51 }
0x1abc   :  { %v4723_v31 = vpop.xlane.xlu0 %4722 }
0x1abd   :  { %9405 = vrcp.f32 %v4723_v31 }
0x1ac0   :  { %v4726_v14 = vpop.xlane.xlu1 %4725 }
0x1ac1   :  { %9407 = vrcp.f32 %v4726_v14 }
0x1ac4   :  { %v4729_v28 = vpop.xlane.xlu0 %4728 }
0x1ac5   :  { %9409 = vrcp.f32 %v4729_v28 }
0x1ac6   :  { %v9404_v30 = vpop.eup %9403 }
0x1ac7   :  { %v4738_v46 = vmul.f32 %v9404_v30, %v9394_v49  ;;  %v7361_v49 = vld [vmem:[%s12133_s3 + $0xd0] sm:$0xff] }
0x1ac8   :  { %v4732_v48 = vpop.xlane.xlu1 %4731 }
0x1ac9   :  { %9411 = vrcp.f32 %v4732_v48  ;;  %8841 = vmatmul.mubr.msk.f32.vlgmr.msra.gmra.mxu1 %vm771_vm7, %v4738_v46 }
0x1aca   :  { %v9406_v1 = vpop.eup %9405  ;;  %8843 = vmatprep.mubr.msk.f32.mxu1 %vm9513_vm5, %v9512_v2  ;;  %8873 = vmatpush3.msra.mxu1 %v7276_v47 }
0x1acb   :  { %v4739_v53 = vmul.f32 %v9406_v1, %v9396_v38  ;;  %8912 = vmatprep.subr.mxu1 %v9512_v2  ;;  %v7353_v1 = vld [vmem:[%s12089_s12 + $0x6] ss:$0 sm:$0xff] }
0x1acd   :  { %8844 = vmatmul.mubr.msk.f32.gmra.mxu1 %vm771_vm7, %v4739_v53 }
0x1ace   :  { %v9408_v11 = vpop.eup %9407  ;;  %8846 = vmatprep.mubr.msk.f32.mxu1 %vm9513_vm5, %v9512_v2 }
0x1acf   :  { %v4740_v41 = vmul.f32 %v9408_v11, %v9398_v40 }
0x1ad1   :  { %8847 = vmatmul.mubr.msk.f32.gmra.mxu1 %vm771_vm7, %v4740_v41 }
0x1ad2   :  { %v9410_v63 = vpop.eup %9409  ;;  %8849 = vmatprep.mubr.msk.f32.mxu1 %vm9513_vm5, %v9512_v2 }
0x1ad3   :  { %v4741_v45 = vmul.f32 %v9410_v63, %v9400_v42 }
0x1ad5   :  { %8850 = vmatmul.mubr.msk.f32.gmra.mxu1 %vm771_vm7, %v4741_v45 }
0x1ad6   :  { %v9412_v25 = vpop.eup %9411  ;;  %8852 = vmatprep.mubr.msk.f32.mxu1 %vm9513_vm5, %v9512_v2 }
0x1ad7   :  { %v4742_v10 = vmul.f32 %v9412_v25, %v9402_v33 }
0x1ad9   :  { %8853 = vmatmul.mubr.msk.f32.gmra.mxu1 %vm771_vm7, %v4742_v10 }
0x1ada   :  { %8874 = vmatprep.mubr.msk.f32.mxu1 %vm9513_vm5, %v9512_v2 }
0x1add   :  { %8875 = vmatmul.mubr.msk.f32.vlgmr.msra.gmra.mxu1 %vm650_vm6, %v11300_v43  ;;  %v7348_v43 = vld [vmem:[%s12132_s0 + $0xc0] sm:$0xff] }
0x1ade   :  { %8877 = vmatprep.mubr.msk.f32.mxu1 %vm9513_vm5, %v9512_v2  ;;  %8913 = vmatpush3.msra.mxu1 %v7351_v13 }
0x1adf   :  { %8914 = vmatprep.subr.mxu1 %v9512_v2 }
0x1ae0   :  { %8915 = vmatpush3.msra.mxu1 %v7350_v20 }
0x1ae1   :  { %8878 = vmatmul.mubr.msk.f32.gmra.mxu1 %vm650_vm6, %v11302_v52  ;;  %8916 = vmatprep.subr.mxu1 %v9512_v2  ;;  %v7340_v52 = vld [vmem:[%s12129_s29 + $0xd8] sm:$0xff] }
0x1ae2   :  { %8880 = vmatprep.mubr.msk.f32.mxu1 %vm9513_vm5, %v9512_v2  ;;  %8917 = vmatpush3.msra.mxu1 %v7349_v54 }
0x1ae3   :  { %8918 = vmatprep.subr.mxu1 %v9512_v2 }
0x1ae4   :  { %8919 = vmatpush3.msra.mxu1 %v7348_v43 }
0x1ae5   :  { %8881 = vmatmul.mubr.msk.f32.gmra.mxu1 %vm650_vm6, %v11304_v6  ;;  %8958 = vmatprep.subr.mxu1 %v9512_v2 }
0x1ae6   :  { %8883 = vmatprep.mubr.msk.f32.mxu1 %vm9513_vm5, %v9512_v2 }
0x1ae9   :  { %8884 = vmatmul.mubr.msk.f32.gmra.mxu1 %vm650_vm6, %v11306_v58  ;;  %v7339_v58 = vld [vmem:[%s12129_s29 + $0xd0] sm:$0xff] }
0x1aea   :  { %8886 = vmatprep.mubr.msk.f32.mxu1 %vm9513_vm5, %v9512_v2 }
0x1aed   :  { %8887 = vmatmul.mubr.msk.f32.gmra.mxu1 %vm650_vm6, %v11308_v16 }
0x1aee   :  { %8920 = vmatprep.mubr.msk.f32.mxu1 %vm9513_vm5, %v9512_v2 }
0x1af1   :  { %8921 = vmatmul.mubr.msk.f32.vlgmr.msra.gmra.mxu1 %vm237_vm1, %v10971_v26 }
0x1af2   :  { %8923 = vmatprep.mubr.msk.f32.mxu1 %vm9513_vm5, %v9512_v2 }
0x1af5   :  { %8924 = vmatmul.mubr.msk.f32.gmra.mxu1 %vm237_vm1, %v10986_v62 }
0x1af6   :  { %8926 = vmatprep.mubr.msk.f32.mxu1 %vm9513_vm5, %v9512_v2 }
0x1af9   :  { %8927 = vmatmul.mubr.msk.f32.gmra.mxu1 %vm237_vm1, %v11003_v3 }
0x1afa   :  { %8929 = vmatprep.mubr.msk.f32.mxu1 %vm9513_vm5, %v9512_v2 }
0x1afd   :  { %8930 = vmatmul.mubr.msk.f32.gmra.mxu1 %vm237_vm1, %v11018_v0 }
0x1afe   :  { %8932 = vmatprep.mubr.msk.f32.mxu1 %vm9513_vm5, %v9512_v2 }
0x1b01   :  { %8933 = vmatmul.mubr.msk.f32.gmra.mxu1 %vm237_vm1, %v11030_v21 }
0x1b02   :  { %8968 = vmatprep.mubr.msk.f32.mxu1 %vm9513_vm5, %v9512_v2 }
0x1b89   :  { %v4827_v6 = vpop.f32.mrf.mxu1 }
0x1b8a   :  { %8858 = vmatmul.mubr.msk.f32.vlgmr.msra.gmra.mxu0 %vm650_vm6, %v4827_v6 }
0x1b8b   :  { %v8842_v16 = vpop.f32.mrf.mxu1  ;;  %8890 = vmatpush3.msra.mxu0 %v7340_v52  ;;  %8860 = vmatprep.mubr.msk.f32.mxu0 %vm9513_vm5, %v9512_v2 }
0x1b8c   :  { %8891 = vmatprep.subr.mxu0 %v9512_v2 }
0x1b8d   :  { %v4832_v56 = vpop.f32.mrf.mxu1  ;;  %8892 = vmatpush3.msra.mxu0 %v7339_v58 }
0x1b8e   :  { %8861 = vmatmul.mubr.msk.f32.gmra.mxu0 %vm650_vm6, %v4832_v56  ;;  %8893 = vmatprep.subr.mxu0 %v9512_v2 }
0x1b8f   :  { %v8845_v61 = vpop.f32.mrf.mxu1  ;;  %8863 = vmatprep.mubr.msk.f32.mxu0 %vm9513_vm5, %v9512_v2  ;;  %8894 = vmatpush3.msra.mxu0 %v7338_v22 }
0x1b90   :  { %8895 = vmatprep.subr.mxu0 %v9512_v2 }
0x1b91   :  { %v4837_v8 = vpop.f32.mrf.mxu1  ;;  %8896 = vmatpush3.msra.mxu0 %v7337_v57  ;;  %v7342_v57 = vld [vmem:[%s12088_s11 + $0x6] ss:$0 sm:$0xff] }
0x1b92   :  { %8864 = vmatmul.mubr.msk.f32.gmra.mxu0 %vm650_vm6, %v4837_v8  ;;  %8935 = vmatprep.subr.mxu0 %v9512_v2 }
0x1b93   :  { %v8848_v50 = vpop.f32.mrf.mxu1  ;;  %8866 = vmatprep.mubr.msk.f32.mxu0 %vm9513_vm5, %v9512_v2 }
0x1b95   :  { %v4842_v59 = vpop.f32.mrf.mxu1 }
0x1b96   :  { %8867 = vmatmul.mubr.msk.f32.gmra.mxu0 %vm650_vm6, %v4842_v59 }
0x1b97   :  { %v8851_v18 = vpop.f32.mrf.mxu1  ;;  %8869 = vmatprep.mubr.msk.f32.mxu0 %vm9513_vm5, %v9512_v2 }
0x1b99   :  { %v4847_v9 = vpop.f32.mrf.mxu1 }
0x1b9a   :  { %8870 = vmatmul.mubr.msk.f32.gmra.mxu0 %vm650_vm6, %v4847_v9 }
0x1b9b   :  { %v8854_v34 = vpop.f32.mrf.mxu1  ;;  %8897 = vmatprep.mubr.msk.f32.mxu0 %vm9513_vm5, %v9512_v2 }
0x1b9d   :  { %v11474_v35 = vpop.f32.mrf.mxu1 }
0x1b9e   :  { %8898 = vmatmul.mubr.msk.f32.vlgmr.msra.gmra.mxu0 %vm237_vm1, %v10971_v26 }
0x1b9f   :  { %v8876_v37 = vpop.f32.mrf.mxu1  ;;  %8900 = vmatprep.mubr.msk.f32.mxu0 %vm9513_vm5, %v9512_v2  ;;  %8936 = vmatpush3.msra.mxu0 %v7362_v19 }
0x1ba0   :  { %8937 = vmatprep.subr.mxu0 %v9512_v2 }
0x1ba1   :  { %v11487_v38 = vpop.f32.mrf.mxu1  ;;  %8938 = vmatpush3.msra.mxu0 %v7361_v49 }
0x1ba2   :  { %8901 = vmatmul.mubr.msk.f32.gmra.mxu0 %vm237_vm1, %v10986_v62  ;;  %8939 = vmatprep.subr.mxu0 %v9512_v2 }
0x1ba3   :  { %v8879_v40 = vpop.f32.mrf.mxu1  ;;  %8903 = vmatprep.mubr.msk.f32.mxu0 %vm9513_vm5, %v9512_v2  ;;  %8940 = vmatpush3.msra.mxu0 %v7360_v24 }
0x1ba4   :  { %8941 = vmatprep.subr.mxu0 %v9512_v2 }
0x1ba5   :  { %v11498_v12 = vpop.f32.mrf.mxu1  ;;  %8942 = vmatpush3.msra.mxu0 %v7359_v4 }
0x1ba6   :  { %8904 = vmatmul.mubr.msk.f32.gmra.mxu0 %vm237_vm1, %v11003_v3  ;;  %8983 = vmatprep.subr.mxu0 %v9512_v2 }
0x1ba7   :  { %v8882_v42 = vpop.f32.mrf.mxu1  ;;  %8906 = vmatprep.mubr.msk.f32.mxu0 %vm9513_vm5, %v9512_v2 }
0x1ba9   :  { %v11505_v29 = vpop.f32.mrf.mxu1 }
0x1baa   :  { %8907 = vmatmul.mubr.msk.f32.gmra.mxu0 %vm237_vm1, %v11018_v0 }
0x1bab   :  { %v8885_v33 = vpop.f32.mrf.mxu1  ;;  %8909 = vmatprep.mubr.msk.f32.mxu0 %vm9513_vm5, %v9512_v2 }
0x1bad   :  { %v11511_v44 = vpop.f32.mrf.mxu1 }
0x1bae   :  { %8910 = vmatmul.mubr.msk.f32.gmra.mxu0 %vm237_vm1, %v11030_v21 }
0x1baf   :  { %v8888_v15 = vpop.f32.mrf.mxu1  ;;  %8943 = vmatprep.mubr.msk.f32.mxu0 %vm9513_vm5, %v9512_v2 }
0x1bb1   :  { %v5250_v51 = vpop.f32.mrf.mxu1 }
0x1bb2   :  { %8944 = vmatmul.mubr.msk.f32.vlgmr.msra.gmra.mxu0 %vm237_vm1, %v10971_v26  ;;  %v5251_v10 = vadd.f32 %v7353_v1, %v5250_v51 }
0x1bb3   :  { %v8922_v31 = vpop.f32.mrf.mxu1  ;;  %8946 = vmatprep.mubr.msk.f32.mxu0 %vm9513_vm5, %v9512_v2 }
0x1bb5   :  { %v5255_v14 = vpop.f32.mrf.mxu1 }
0x1bb6   :  { %8947 = vmatmul.mubr.msk.f32.gmra.mxu0 %vm237_vm1, %v10986_v62  ;;  %v5256_v25 = vadd.f32 %v7353_v1, %v5255_v14 }
0x1bb7   :  { %v8925_v28 = vpop.f32.mrf.mxu1  ;;  %8949 = vmatprep.mubr.msk.f32.mxu0 %vm9513_vm5, %v9512_v2 }
0x1bb9   :  { %v5260_v30 = vpop.f32.mrf.mxu1 }
0x1bba   :  { %8950 = vmatmul.mubr.msk.f32.gmra.mxu0 %vm237_vm1, %v11003_v3  ;;  %v5261_v45 = vadd.f32 %v7353_v1, %v5260_v30 }
0x1bbb   :  { %v8928_v46 = vpop.f32.mrf.mxu1  ;;  %8952 = vmatprep.mubr.msk.f32.mxu0 %vm9513_vm5, %v9512_v2 }
0x1bbd   :  { %v5265_v47 = vpop.f32.mrf.mxu1 }
0x1bbe   :  { %8953 = vmatmul.mubr.msk.f32.gmra.mxu0 %vm237_vm1, %v11018_v0  ;;  %v5266_v63 = vadd.f32 %v7353_v1, %v5265_v47 }
0x1bbf   :  { %v8931_v48 = vpop.f32.mrf.mxu1  ;;  %8955 = vmatprep.mubr.msk.f32.mxu0 %vm9513_vm5, %v9512_v2 }
0x1bc1   :  { %v5270_v53 = vpop.f32.mrf.mxu1 }
0x1bc2   :  { %v5271_v11 = vadd.f32 %v7353_v1, %v5270_v53  ;;  %8956 = vmatmul.mubr.msk.f32.gmra.mxu0 %vm237_vm1, %v11030_v21 }
0x1bc3   :  { %v8934_v41 = vpop.f32.mrf.mxu1  ;;  %8993 = vmatprep.mubr.msk.f32.mxu0 %vm9513_vm5, %v9512_v2 }
0x1bc4   :  { %8959 = vmatpush3.xpose.msk.msra.mxu1 %vm650_vm6, %v5271_v11 }
0x1bc5   :  { %8960 = vmatprep.subr.mxu1 %v9512_v2 }
0x1bc8   :  { %8961 = vmatpush3.xpose.msk.msra.mxu1 %vm650_vm6, %v5266_v63  ;;  %v7364_v63 = vld [vmem:[%s12090_s13 + $0x6] ss:$0 sm:$0xff] }
0x1bc9   :  { %8962 = vmatprep.subr.mxu1 %v9512_v2 }
0x1bcc   :  { %8963 = vmatpush3.xpose.msk.msra.mxu1 %vm650_vm6, %v5261_v45 }
0x1bcd   :  { %8964 = vmatprep.subr.mxu1 %v9512_v2 }
0x1bd0   :  { %8965 = vmatpush3.xpose.msk.msra.mxu1 %vm650_vm6, %v5256_v25 }
0x1bd1   :  { %8966 = vmatprep.subr.mxu1 %v9512_v2 }
0x1bd4   :  { %8967 = vmatpush3.xpose.msk.msra.mxu1 %vm650_vm6, %v5251_v10 }
0x1bd5   :  { %9008 = vmatprep.subr.mxu1 %v9512_v2 }
0x1c4a   :  { %v11550_v13 = vpop.f32.mrf.mxu0 }
0x1c4c   :  { %v8859_v20 = vpop.f32.mrf.mxu0 }
0x1c4e   :  { %v11552_v54 = vpop.f32.mrf.mxu0 }
0x1c50   :  { %v8862_v43 = vpop.f32.mrf.mxu0 }
0x1c52   :  { %v11554_v52 = vpop.f32.mrf.mxu0 }
0x1c54   :  { %v8865_v6 = vpop.f32.mrf.mxu0 }
0x1c56   :  { %v11556_v58 = vpop.f32.mrf.mxu0 }
0x1c58   :  { %v8868_v16 = vpop.f32.mrf.mxu0 }
0x1c5a   :  { %v11558_v22 = vpop.f32.mrf.mxu0 }
0x1c5c   :  { %v8871_v56 = vpop.f32.mrf.mxu0 }
0x1c5e   :  { %v5142_v61 = vpop.f32.mrf.mxu0 }
0x1c5f   :  { %v5143_v8 = vadd.f32 %v7342_v57, %v5142_v61 }
0x1c60   :  { %v8899_v50 = vpop.f32.mrf.mxu0 }
0x1c61   :  { %v5166_v59 = vmul.f32 0.35355338, %v5143_v8 }
0x1c62   :  { %v5147_v18 = vpop.f32.mrf.mxu0 }
0x1c63   :  { %v5148_v9 = vadd.f32 %v7342_v57, %v5147_v18  ;;  %8969 = vmatmul.mubr.msk.f32.vlgmr.msra.gmra.mxu1 %vm650_vm6, %v5166_v59 }
0x1c64   :  { %v8902_v34 = vpop.f32.mrf.mxu0  ;;  %8971 = vmatprep.mubr.msk.f32.mxu1 %vm9513_vm5, %v9512_v2 }
0x1c65   :  { %v5167_v19 = vmul.f32 0.35355338, %v5148_v9 }
0x1c66   :  { %v5152_v49 = vpop.f32.mrf.mxu0 }
0x1c67   :  { %v5153_v37 = vadd.f32 %v7342_v57, %v5152_v49  ;;  %8972 = vmatmul.mubr.msk.f32.gmra.mxu1 %vm650_vm6, %v5167_v19 }
0x1c68   :  { %v8905_v24 = vpop.f32.mrf.mxu0  ;;  %8974 = vmatprep.mubr.msk.f32.mxu1 %vm9513_vm5, %v9512_v2 }
0x1c69   :  { %v5168_v4 = vmul.f32 0.35355338, %v5153_v37 }
0x1c6a   :  { %v5157_v40 = vpop.f32.mrf.mxu0 }
0x1c6b   :  { %v5158_v42 = vadd.f32 %v7342_v57, %v5157_v40  ;;  %8975 = vmatmul.mubr.msk.f32.gmra.mxu1 %vm650_vm6, %v5168_v4 }
0x1c6c   :  { %v8908_v33 = vpop.f32.mrf.mxu0  ;;  %8977 = vmatprep.mubr.msk.f32.mxu1 %vm9513_vm5, %v9512_v2 }
0x1c6d   :  { %v5169_v15 = vmul.f32 0.35355338, %v5158_v42 }
0x1c6e   :  { %v5162_v51 = vpop.f32.mrf.mxu0 }
0x1c6f   :  { %v5163_v31 = vadd.f32 %v7342_v57, %v5162_v51  ;;  %8978 = vmatmul.mubr.msk.f32.gmra.mxu1 %vm650_vm6, %v5169_v15 }
0x1c70   :  { %v8911_v14 = vpop.f32.mrf.mxu0  ;;  %8980 = vmatprep.mubr.msk.f32.mxu1 %vm9513_vm5, %v9512_v2 }
0x1c71   :  { %v5170_v28 = vmul.f32 0.35355338, %v5163_v31 }
0x1c72   :  { %v5353_v30 = vpop.f32.mrf.mxu0 }
0x1c73   :  { %8981 = vmatmul.mubr.msk.f32.gmra.mxu1 %vm650_vm6, %v5170_v28  ;;  %v5354_v16 = vadd.f32 %v7364_v63, %v5353_v30 }
0x1c74   :  { %v8945_v46 = vpop.f32.mrf.mxu0  ;;  %9010 = vmatprep.mubr.msk.f32.mxu1 %vm9513_vm5, %v9512_v2 }
0x1c76   :  { %v5358_v47 = vpop.f32.mrf.mxu0 }
0x1c77   :  { %v5359_v6 = vadd.f32 %v7364_v63, %v5358_v47 }
0x1c78   :  { %v8948_v48 = vpop.f32.mrf.mxu0 }
0x1c7a   :  { %v5363_v1 = vpop.f32.mrf.mxu0 }
0x1c7b   :  { %v5364_v43 = vadd.f32 %v7364_v63, %v5363_v1 }
0x1c7c   :  { %v8951_v53 = vpop.f32.mrf.mxu0 }
0x1c7e   :  { %v5368_v11 = vpop.f32.mrf.mxu0 }
0x1c7f   :  { %v5369_v20 = vadd.f32 %v7364_v63, %v5368_v11 }
0x1c80   :  { %v8954_v41 = vpop.f32.mrf.mxu0 }
0x1c82   :  { %v5373_v45 = vpop.f32.mrf.mxu0 }
0x1c83   :  { %v5374_v25 = vadd.f32 %v7364_v63, %v5373_v45 }
0x1c84   :  { %v8957_v10 = vpop.f32.mrf.mxu0 }
0x1c85   :  { %8984 = vmatpush3.msk.msra.mxu0 %vm220_vm3, %v5374_v25 }
0x1c86   :  { %8985 = vmatprep.subr.mxu0 %v9512_v2 }
0x1c87   :  { %8986 = vmatpush3.msra.mxu0 %v5369_v20 }
0x1c88   :  { %8987 = vmatprep.subr.mxu0 %v9512_v2 }
0x1c89   :  { %8988 = vmatpush3.msra.mxu0 %v5364_v43 }
0x1c8a   :  { %8989 = vmatprep.subr.mxu0 %v9512_v2 }
0x1c8b   :  { %8990 = vmatpush3.msra.mxu0 %v5359_v6 }
0x1c8c   :  { %8991 = vmatprep.subr.mxu0 %v9512_v2 }
0x1c8d   :  { %8992 = vmatpush3.msra.mxu0 %v5354_v16 }
0x1c8e   :  { %9025 = vmatprep.subr.mxu0 %v9512_v2 }
0x1d23   :  { %v5473_v56 = vpop.f32.mrf.mxu1 }
0x1d24   :  { %v5474_v57 = vadd.f32 %v11185_v27, %v5473_v56 }
0x1d25   :  { %v8970_v61 = vpop.f32.mrf.mxu1 }
0x1d26   :  { %v5497_v8 = vsel %vm771_vm7, %v5474_v57, -inf  ;;  %v7386_v61 = vld [vmem:[%s12091_s14 + $0x30] sm:$0xff] }
0x1d27   :  { %5498 = vmax.xlane.f32.xlu0 %v5497_v8  ;;  %v5478_v50 = vpop.f32.mrf.mxu1  ;;  %9009 = vmatpush3.msra.mxu1 %v7386_v61 }
0x1d28   :  { %v5479_v59 = vadd.f32 %v11195_v39, %v5478_v50  ;;  %9048 = vmatprep.subr.mxu1 %v9512_v2 }
0x1d29   :  { %v8973_v18 = vpop.f32.mrf.mxu1 }
0x1d2a   :  { %v5500_v9 = vsel %vm771_vm7, %v5479_v59, -inf }
0x1d2b   :  { %5501 = vmax.xlane.f32.xlu1 %v5500_v9  ;;  %v5483_v34 = vpop.f32.mrf.mxu1 }
0x1d2c   :  { %v5484_v19 = vadd.f32 %v11205_v60, %v5483_v34 }
0x1d2d   :  { %v8976_v49 = vpop.f32.mrf.mxu1 }
0x1d2e   :  { %v5503_v37 = vsel %vm771_vm7, %v5484_v19, -inf }
0x1d2f   :  { %5504 = vmax.xlane.f32.xlu0 %v5503_v37  ;;  %v5488_v24 = vpop.f32.mrf.mxu1  ;;  %v7394_v37 = vld [vmem:[%s12129_s29 + $0xf0] sm:$0xff] }
0x1d30   :  { %v5489_v27 = vadd.f32 %v11212_v23, %v5488_v24 }
0x1d31   :  { %v8979_v4 = vpop.f32.mrf.mxu1 }
0x1d32   :  { %v5506_v40 = vsel %vm771_vm7, %v5489_v27, -inf  ;;  %v7393_v4 = vld [vmem:[%s12129_s29 + $0xe8] sm:$0xff] }
0x1d33   :  { %5507 = vmax.xlane.f32.xlu1 %v5506_v40  ;;  %v5493_v42 = vpop.f32.mrf.mxu1  ;;  %v7392_v40 = vld [vmem:[%s12129_s29 + $0xe0] sm:$0xff] }
0x1d34   :  { %v5494_v39 = vadd.f32 %v11219_v5, %v5493_v42 }
0x1d35   :  { %v8982_v33 = vpop.f32.mrf.mxu1 }
0x1d36   :  { %v5509_v15 = vsel %vm784_vm8, %v5494_v39, -inf }
0x1d37   :  { %5510 = vmax.xlane.f32.xlu0 %v5509_v15 }
0x1db0   :  { %v5499_v51 = vpop.xlane.xlu0 %5498 }
0x1db1   :  { %v5512_v60 = vsub.f32 %v5474_v57, %v5499_v51 }
0x1db3   :  { %v5517_v31 = vmul.f32 1.442695, %v5512_v60 }
0x1db4   :  { %v5502_v14 = vpop.xlane.xlu1 %5501 }
0x1db5   :  { %9413 = vpow2.f32 %v5517_v31  ;;  %v5513_v28 = vsub.f32 %v5479_v59, %v5502_v14  ;;  %v7417_v31 = vld [vmem:[%s12133_s3 + $0xf8] sm:$0xff]  ;;  %v7416_v14 = vld [vmem:[%s12133_s3 + $0xf0] sm:$0xff] }
0x1db7   :  { %v5519_v30 = vmul.f32 1.442695, %v5513_v28  ;;  %v7415_v28 = vld [vmem:[%s12133_s3 + $0xe8] sm:$0xff] }
0x1db8   :  { %v5505_v46 = vpop.xlane.xlu0 %5504 }
0x1db9   :  { %9415 = vpow2.f32 %v5519_v30  ;;  %v5514_v23 = vsub.f32 %v5484_v19, %v5505_v46  ;;  %v7395_v19 = vld [vmem:[%s12129_s29 + $0xf8] sm:$0xff]  ;;  %v7414_v30 = vld [vmem:[%s12133_s3 + $0xe0] sm:$0xff] }
0x1dba   :  { %v7406_v46 = vld [vmem:[%s12132_s0 + $0xf8] sm:$0xff] }
0x1dbb   :  { %v5521_v47 = vmul.f32 1.442695, %v5514_v23 }
0x1dbc   :  { %v5508_v48 = vpop.xlane.xlu1 %5507 }
0x1dbd   :  { %9417 = vpow2.f32 %v5521_v47  ;;  %v5515_v1 = vsub.f32 %v5489_v27, %v5508_v48  ;;  %v7405_v47 = vld [vmem:[%s12132_s0 + $0xf0] sm:$0xff] }
0x1dbf   :  { %v5523_v53 = vmul.f32 1.442695, %v5515_v1  ;;  %v7404_v1 = vld [vmem:[%s12132_s0 + $0xe8] sm:$0xff] }
0x1dc0   :  { %v5511_v5 = vpop.xlane.xlu0 %5510 }
0x1dc1   :  { %9419 = vpow2.f32 %v5523_v53  ;;  %v5516_v11 = vsub.f32 %v5494_v39, %v5511_v5  ;;  %v7403_v5 = vld [vmem:[%s12132_s0 + $0xe0] sm:$0xff] }
0x1dc2   :  { %v9414_v41 = vpop.eup %9413 }
0x1dc3   :  { %v5525_v63 = vmul.f32 1.442695, %v5516_v11  ;;  %v5527_v45 = vsel %vm771_vm7, %v9414_v41, 0.0 }
0x1dc4   :  { %5528 = vadd.xlane.f32.xlu1 %v5527_v45 }
0x1dc5   :  { %9421 = vpow2.f32 %v5525_v63 }
0x1dc6   :  { %v9416_v25 = vpop.eup %9415 }
0x1dc7   :  { %v5530_v10 = vsel %vm771_vm7, %v9416_v25, 0.0 }
0x1dc8   :  { %5531 = vadd.xlane.f32.xlu0 %v5530_v10 }
0x1dca   :  { %v9418_v20 = vpop.eup %9417 }
0x1dcb   :  { %v5533_v43 = vsel %vm771_vm7, %v9418_v20, 0.0 }
0x1dcc   :  { %5534 = vadd.xlane.f32.xlu1 %v5533_v43 }
0x1dce   :  { %v9420_v6 = vpop.eup %9419 }
0x1dcf   :  { %v5536_v16 = vsel %vm771_vm7, %v9420_v6, 0.0 }
0x1dd0   :  { %5537 = vadd.xlane.f32.xlu0 %v5536_v16 }
0x1dd2   :  { %v9422_v56 = vpop.eup %9421 }
0x1dd3   :  { %v5539_v57 = vsel %vm784_vm8, %v9422_v56, 0.0 }
0x1dd4   :  { %5540 = vadd.xlane.f32.xlu1 %v5539_v57 }
0x1e4d   :  { %v5529_v8 = vpop.xlane.xlu1 %5528 }
0x1e4e   :  { %9423 = vrcp.f32 %v5529_v8 }
0x1e51   :  { %v5532_v50 = vpop.xlane.xlu0 %5531 }
0x1e52   :  { %9425 = vrcp.f32 %v5532_v50 }
0x1e55   :  { %v5535_v59 = vpop.xlane.xlu1 %5534 }
0x1e56   :  { %9427 = vrcp.f32 %v5535_v59 }
0x1e59   :  { %v5538_v18 = vpop.xlane.xlu0 %5537 }
0x1e5a   :  { %9429 = vrcp.f32 %v5538_v18 }
0x1e5b   :  { %v9424_v9 = vpop.eup %9423 }
0x1e5c   :  { %v5547_v34 = vmul.f32 %v9424_v9, %v9414_v41 }
0x1e5d   :  { %v5541_v49 = vpop.xlane.xlu1 %5540 }
0x1e5e   :  { %9431 = vrcp.f32 %v5541_v49  ;;  %8994 = vmatmul.mubr.msk.f32.vlgmr.msra.gmra.mxu0 %vm771_vm7, %v5547_v34 }
0x1e5f   :  { %v9426_v24 = vpop.eup %9425  ;;  %8996 = vmatprep.mubr.msk.f32.mxu0 %vm9513_vm5, %v9512_v2  ;;  %9026 = vmatpush3.msra.mxu0 %v7395_v19 }
0x1e60   :  { %v5548_v27 = vmul.f32 %v9426_v24, %v9416_v25  ;;  %9027 = vmatprep.subr.mxu0 %v9512_v2 }
0x1e61   :  { %9028 = vmatpush3.msra.mxu0 %v7394_v37  ;;  %v7419_v37 = vld [vmem:[%s12090_s13 + $0x7] ss:$0 sm:$0xff] }
0x1e62   :  { %8997 = vmatmul.mubr.msk.f32.gmra.mxu0 %vm771_vm7, %v5548_v27  ;;  %9029 = vmatprep.subr.mxu0 %v9512_v2 }
0x1e63   :  { %v9428_v42 = vpop.eup %9427  ;;  %8999 = vmatprep.mubr.msk.f32.mxu0 %vm9513_vm5, %v9512_v2  ;;  %9030 = vmatpush3.msra.mxu0 %v7393_v4 }
0x1e64   :  { %v5549_v39 = vmul.f32 %v9428_v42, %v9418_v20  ;;  %9031 = vmatprep.subr.mxu0 %v9512_v2 }
0x1e65   :  { %9032 = vmatpush3.msra.mxu0 %v7392_v40 }
0x1e66   :  { %9000 = vmatmul.mubr.msk.f32.gmra.mxu0 %vm771_vm7, %v5549_v39  ;;  %9071 = vmatprep.subr.mxu0 %v9512_v2 }
0x1e67   :  { %v9430_v33 = vpop.eup %9429  ;;  %9002 = vmatprep.mubr.msk.f32.mxu0 %vm9513_vm5, %v9512_v2 }
0x1e68   :  { %v5550_v15 = vmul.f32 %v9430_v33, %v9420_v6  ;;  %v5040_v33 = vadd.f32 %v11474_v35, %v11550_v13  ;;  %v5055_v35 = vadd.f32 %v11505_v29, %v11556_v58  ;;  %v7408_v29 = vld [vmem:[%s12089_s12 + $0x7] ss:$0 sm:$0xff] }
0x1e6a   :  { %9003 = vmatmul.mubr.msk.f32.gmra.mxu0 %vm771_vm7, %v5550_v15 }
0x1e6b   :  { %v9432_v51 = vpop.eup %9431  ;;  %9005 = vmatprep.mubr.msk.f32.mxu0 %vm9513_vm5, %v9512_v2 }
0x1e6c   :  { %v5551_v60 = vmul.f32 %v9432_v51, %v9422_v56 }
0x1e6e   :  { %9006 = vmatmul.mubr.msk.f32.gmra.mxu0 %vm771_vm7, %v5551_v60 }
0x1e6f   :  { %9033 = vmatprep.mubr.msk.f32.mxu0 %vm9513_vm5, %v9512_v2 }
0x1e72   :  { %9034 = vmatmul.mubr.msk.f32.vlgmr.msra.gmra.mxu0 %vm237_vm1, %v10971_v26 }
0x1e73   :  { %9036 = vmatprep.mubr.msk.f32.mxu0 %vm9513_vm5, %v9512_v2  ;;  %9072 = vmatpush3.msra.mxu0 %v7417_v31  ;;  %v5045_v31 = vadd.f32 %v11487_v38, %v11552_v54  ;;  %v5060_v38 = vadd.f32 %v11511_v44, %v11558_v22 }
0x1e74   :  { %9073 = vmatprep.subr.mxu0 %v9512_v2 }
0x1e75   :  { %9074 = vmatpush3.msra.mxu0 %v7416_v14 }
0x1e76   :  { %9037 = vmatmul.mubr.msk.f32.gmra.mxu0 %vm237_vm1, %v10986_v62  ;;  %9075 = vmatprep.subr.mxu0 %v9512_v2 }
0x1e77   :  { %9039 = vmatprep.mubr.msk.f32.mxu0 %vm9513_vm5, %v9512_v2  ;;  %9076 = vmatpush3.msra.mxu0 %v7415_v28 }
0x1e78   :  { %9077 = vmatprep.subr.mxu0 %v9512_v2 }
0x1e79   :  { %9078 = vmatpush3.msra.mxu0 %v7414_v30 }
0x1e7a   :  { %9040 = vmatmul.mubr.msk.f32.gmra.mxu0 %vm237_vm1, %v11003_v3  ;;  %9119 = vmatprep.subr.mxu0 %v9512_v2 }
0x1e7b   :  { %9042 = vmatprep.mubr.msk.f32.mxu0 %vm9513_vm5, %v9512_v2 }
0x1e7e   :  { %9043 = vmatmul.mubr.msk.f32.gmra.mxu0 %vm237_vm1, %v11018_v0 }
0x1e7f   :  { %9045 = vmatprep.mubr.msk.f32.mxu0 %vm9513_vm5, %v9512_v2 }
0x1e82   :  { %9046 = vmatmul.mubr.msk.f32.gmra.mxu0 %vm237_vm1, %v11030_v21 }
0x1e83   :  { %9079 = vmatprep.mubr.msk.f32.mxu0 %vm9513_vm5, %v9512_v2 }
0x1e86   :  { %9080 = vmatmul.mubr.msk.f32.vlgmr.msra.gmra.mxu0 %vm237_vm1, %v10971_v26 }
0x1e87   :  { %9082 = vmatprep.mubr.msk.f32.mxu0 %vm9513_vm5, %v9512_v2 }
0x1e8a   :  { %9083 = vmatmul.mubr.msk.f32.gmra.mxu0 %vm237_vm1, %v10986_v62 }
0x1e8b   :  { %9085 = vmatprep.mubr.msk.f32.mxu0 %vm9513_vm5, %v9512_v2 }
0x1e8e   :  { %9086 = vmatmul.mubr.msk.f32.gmra.mxu0 %vm237_vm1, %v11003_v3 }
0x1e8f   :  { %9088 = vmatprep.mubr.msk.f32.mxu0 %vm9513_vm5, %v9512_v2 }
0x1e92   :  { %9089 = vmatmul.mubr.msk.f32.gmra.mxu0 %vm237_vm1, %v11018_v0 }
0x1e93   :  { %9091 = vmatprep.mubr.msk.f32.mxu0 %vm9513_vm5, %v9512_v2 }
0x1e96   :  { %9092 = vmatmul.mubr.msk.f32.gmra.mxu0 %vm237_vm1, %v11030_v21 }
0x1e97   :  { %9129 = vmatprep.mubr.msk.f32.mxu0 %vm9513_vm5, %v9512_v2 }
0x1f1e   :  { %v5636_v23 = vpop.f32.mrf.mxu0 }
0x1f1f   :  { %9011 = vmatmul.mubr.msk.f32.vlgmr.msra.gmra.mxu1 %vm650_vm6, %v5636_v23 }
0x1f20   :  { %v8995_v48 = vpop.f32.mrf.mxu0  ;;  %9049 = vmatpush3.msra.mxu1 %v7406_v46  ;;  %9013 = vmatprep.mubr.msk.f32.mxu1 %vm9513_vm5, %v9512_v2  ;;  %v5050_v46 = vadd.f32 %v11498_v12, %v11554_v52 }
0x1f21   :  { %9050 = vmatprep.subr.mxu1 %v9512_v2 }
0x1f22   :  { %v5641_v53 = vpop.f32.mrf.mxu0  ;;  %9051 = vmatpush3.msra.mxu1 %v7405_v47 }
0x1f23   :  { %9014 = vmatmul.mubr.msk.f32.gmra.mxu1 %vm650_vm6, %v5641_v53  ;;  %9052 = vmatprep.subr.mxu1 %v9512_v2 }
0x1f24   :  { %v8998_v11 = vpop.f32.mrf.mxu0  ;;  %9016 = vmatprep.mubr.msk.f32.mxu1 %vm9513_vm5, %v9512_v2  ;;  %9053 = vmatpush3.msra.mxu1 %v7404_v1 }
0x1f25   :  { %9054 = vmatprep.subr.mxu1 %v9512_v2 }
0x1f26   :  { %v5646_v41 = vpop.f32.mrf.mxu0  ;;  %9055 = vmatpush3.msra.mxu1 %v7403_v5 }
0x1f27   :  { %9017 = vmatmul.mubr.msk.f32.gmra.mxu1 %vm650_vm6, %v5646_v41  ;;  %9094 = vmatprep.subr.mxu1 %v9512_v2 }
0x1f28   :  { %v9001_v63 = vpop.f32.mrf.mxu0  ;;  %9019 = vmatprep.mubr.msk.f32.mxu1 %vm9513_vm5, %v9512_v2 }
0x1f2a   :  { %v5651_v45 = vpop.f32.mrf.mxu0 }
0x1f2b   :  { %9020 = vmatmul.mubr.msk.f32.gmra.mxu1 %vm650_vm6, %v5651_v45 }
0x1f2c   :  { %v9004_v25 = vpop.f32.mrf.mxu0  ;;  %9022 = vmatprep.mubr.msk.f32.mxu1 %vm9513_vm5, %v9512_v2 }
0x1f2e   :  { %v5656_v10 = vpop.f32.mrf.mxu0 }
0x1f2f   :  { %9023 = vmatmul.mubr.msk.f32.gmra.mxu1 %vm650_vm6, %v5656_v10 }
0x1f30   :  { %v9007_v20 = vpop.f32.mrf.mxu0  ;;  %9056 = vmatprep.mubr.msk.f32.mxu1 %vm9513_vm5, %v9512_v2 }
0x1f32   :  { %v11724_v43 = vpop.f32.mrf.mxu0 }
0x1f33   :  { %9057 = vmatmul.mubr.msk.f32.vlgmr.msra.gmra.mxu1 %vm237_vm1, %v10971_v26 }
0x1f34   :  { %v9035_v6 = vpop.f32.mrf.mxu0  ;;  %9059 = vmatprep.mubr.msk.f32.mxu1 %vm9513_vm5, %v9512_v2 }
0x1f36   :  { %v11730_v16 = vpop.f32.mrf.mxu0 }
0x1f37   :  { %9060 = vmatmul.mubr.msk.f32.gmra.mxu1 %vm237_vm1, %v10986_v62 }
0x1f38   :  { %v9038_v56 = vpop.f32.mrf.mxu0  ;;  %9062 = vmatprep.mubr.msk.f32.mxu1 %vm9513_vm5, %v9512_v2 }
0x1f3a   :  { %v11736_v57 = vpop.f32.mrf.mxu0 }
0x1f3b   :  { %9063 = vmatmul.mubr.msk.f32.gmra.mxu1 %vm237_vm1, %v11003_v3 }
0x1f3c   :  { %v9041_v61 = vpop.f32.mrf.mxu0  ;;  %9065 = vmatprep.mubr.msk.f32.mxu1 %vm9513_vm5, %v9512_v2 }
0x1f3d   :  { %v7397_v61 = vld [vmem:[%s12088_s11 + $0x7] ss:$0 sm:$0xff] }
0x1f3e   :  { %v11742_v26 = vpop.f32.mrf.mxu0 }
0x1f3f   :  { %9066 = vmatmul.mubr.msk.f32.gmra.mxu1 %vm237_vm1, %v11018_v0 }
0x1f40   :  { %v9044_v8 = vpop.f32.mrf.mxu0  ;;  %9068 = vmatprep.mubr.msk.f32.mxu1 %vm9513_vm5, %v9512_v2 }
0x1f42   :  { %v11748_v62 = vpop.f32.mrf.mxu0 }
0x1f43   :  { %9069 = vmatmul.mubr.msk.f32.gmra.mxu1 %vm237_vm1, %v11030_v21 }
0x1f44   :  { %v9047_v50 = vpop.f32.mrf.mxu0  ;;  %9104 = vmatprep.mubr.msk.f32.mxu1 %vm9513_vm5, %v9512_v2 }
0x1f45   :  { %v5852_v50 = vadd.f32 %v7397_v61, %v11724_v43 }
0x1f46   :  { %v6062_v3 = vpop.f32.mrf.mxu0 }
0x1f47   :  { %v6063_v39 = vadd.f32 %v7419_v37, %v6062_v3 }
0x1f48   :  { %v9081_v59 = vpop.f32.mrf.mxu0 }
0x1f49   :  { %v5875_v59 = vmul.f32 0.35355338, %v5852_v50 }
0x1f4a   :  { %v6067_v18 = vpop.f32.mrf.mxu0 }
0x1f4b   :  { %v6068_v42 = vadd.f32 %v7419_v37, %v6067_v18  ;;  %v5857_v18 = vadd.f32 %v7397_v61, %v11730_v16 }
0x1f4c   :  { %v9084_v9 = vpop.f32.mrf.mxu0 }
0x1f4d   :  { %v5876_v9 = vmul.f32 0.35355338, %v5857_v18 }
0x1f4e   :  { %v6072_v34 = vpop.f32.mrf.mxu0 }
0x1f4f   :  { %v6073_v40 = vadd.f32 %v7419_v37, %v6072_v34  ;;  %v5862_v34 = vadd.f32 %v7397_v61, %v11736_v57 }
0x1f50   :  { %v9087_v19 = vpop.f32.mrf.mxu0 }
0x1f51   :  { %v5877_v43 = vmul.f32 0.35355338, %v5862_v34  ;;  %v5867_v19 = vadd.f32 %v7397_v61, %v11742_v26 }
0x1f52   :  { %v6077_v0 = vpop.f32.mrf.mxu0 }
0x1f53   :  { %v6078_v21 = vadd.f32 %v7419_v37, %v6077_v0  ;;  %v5878_v16 = vmul.f32 0.35355338, %v5867_v19  ;;  %v5872_v0 = vadd.f32 %v7397_v61, %v11748_v62 }
0x1f54   :  { %v9090_v49 = vpop.f32.mrf.mxu0 }
0x1f55   :  { %v5879_v57 = vmul.f32 0.35355338, %v5872_v0  ;;  %v9485_v49 = vld [vmem:[%s12134_s8] sm:$0xff] }
0x1f56   :  { %v6082_v24 = vpop.f32.mrf.mxu0 }
0x1f57   :  { %v6083_v27 = vadd.f32 %v7419_v37, %v6082_v24 }
0x1f58   :  { %v9093_v4 = vpop.f32.mrf.mxu0 }
0x1f59   :  { %9120 = vmatpush3.msk.msra.mxu0 %vm220_vm3, %v6083_v27  ;;  %v9486_v4 = vld [vmem:[%s12134_s8 + $0x8] sm:$0xff] }
0x1f5a   :  { %9121 = vmatprep.subr.mxu0 %v9512_v2 }
0x1f5b   :  { %9122 = vmatpush3.msra.mxu0 %v6078_v21 }
0x1f5c   :  { %9123 = vmatprep.subr.mxu0 %v9512_v2 }
0x1f5d   :  { %9124 = vmatpush3.msra.mxu0 %v6073_v40 }
0x1f5e   :  { %9125 = vmatprep.subr.mxu0 %v9512_v2 }
0x1f5f   :  { %9126 = vmatpush3.msra.mxu0 %v6068_v42 }
0x1f60   :  { %9127 = vmatprep.subr.mxu0 %v9512_v2 }
0x1f61   :  { %9128 = vmatpush3.msra.mxu0 %v6063_v39 }
0x1f62   :  { %9161 = vmatprep.subr.mxu0 %v9512_v2 }
0x1fdf   :  { %v5743_v15 = vpop.f32.mrf.mxu1 }
0x1fe0   :  { %v11765_v51 = vadd.f32 %v5743_v15, %v5040_v33  ;;  %v9487_v33 = vld [vmem:[%s12134_s8 + $0x10] sm:$0xff] }
0x1fe1   :  { %v9012_v60 = vpop.f32.mrf.mxu1 }
0x1fe3   :  { %v5748_v14 = vpop.f32.mrf.mxu1 }
0x1fe4   :  { %v11769_v28 = vadd.f32 %v5748_v14, %v5045_v31 }
0x1fe5   :  { %v9015_v30 = vpop.f32.mrf.mxu1 }
0x1fe7   :  { %v5753_v23 = vpop.f32.mrf.mxu1 }
0x1fe8   :  { %v11773_v47 = vadd.f32 %v5753_v23, %v5050_v46 }
0x1fe9   :  { %v9018_v48 = vpop.f32.mrf.mxu1 }
0x1feb   :  { %v5758_v13 = vpop.f32.mrf.mxu1 }
0x1fec   :  { %v11777_v1 = vadd.f32 %v5758_v13, %v5055_v35 }
0x1fed   :  { %v9021_v53 = vpop.f32.mrf.mxu1 }
0x1fef   :  { %v5763_v54 = vpop.f32.mrf.mxu1 }
0x1ff0   :  { %v11781_v5 = vadd.f32 %v5763_v54, %v5060_v38 }
0x1ff1   :  { %v9024_v11 = vpop.f32.mrf.mxu1 }
0x1ff3   :  { %v5959_v41 = vpop.f32.mrf.mxu1 }
0x1ff4   :  { %v5960_v3 = vadd.f32 %v7408_v29, %v5959_v41 }
0x1ff5   :  { %v9058_v12 = vpop.f32.mrf.mxu1 }
0x1ff7   :  { %v5964_v52 = vpop.f32.mrf.mxu1 }
0x1ff8   :  { %v5965_v8 = vadd.f32 %v7408_v29, %v5964_v52 }
0x1ff9   :  { %v9061_v63 = vpop.f32.mrf.mxu1 }
0x1ffb   :  { %v5969_v45 = vpop.f32.mrf.mxu1 }
0x1ffc   :  { %v5970_v22 = vadd.f32 %v7408_v29, %v5969_v45 }
0x1ffd   :  { %v9064_v25 = vpop.f32.mrf.mxu1 }
0x1ffe   :  { %v9488_v25 = vld [vmem:[%s12134_s8 + $0x18] sm:$0xff] }
0x1fff   :  { %v5974_v10 = vpop.f32.mrf.mxu1 }
0x2000   :  { %v5975_v44 = vadd.f32 %v7408_v29, %v5974_v10 }
0x2001   :  { %v9067_v20 = vpop.f32.mrf.mxu1 }
0x2003   :  { %v5979_v58 = vpop.f32.mrf.mxu1 }
0x2004   :  { %v5980_v6 = vadd.f32 %v7408_v29, %v5979_v58  ;;  %v9489_v58 = vld [vmem:[%s12134_s8 + $0x20] sm:$0xf] }
0x2005   :  { %v9070_v56 = vpop.f32.mrf.mxu1 }
0x2006   :  { %9095 = vmatpush3.xpose.msk.msra.mxu1 %vm650_vm6, %v5980_v6 }
0x2007   :  { %9096 = vmatprep.subr.mxu1 %v9512_v2 }
0x200a   :  { %9097 = vmatpush3.xpose.msk.msra.mxu1 %vm650_vm6, %v5975_v44 }
0x200b   :  { %9098 = vmatprep.subr.mxu1 %v9512_v2 }
0x200e   :  { %9099 = vmatpush3.xpose.msk.msra.mxu1 %vm650_vm6, %v5970_v22 }
0x200f   :  { %9100 = vmatprep.subr.mxu1 %v9512_v2 }
0x2012   :  { %9101 = vmatpush3.xpose.msk.msra.mxu1 %vm650_vm6, %v5965_v8 }
0x2013   :  { %9102 = vmatprep.subr.mxu1 %v9512_v2 }
0x2016   :  { %9103 = vmatpush3.xpose.msk.msra.mxu1 %vm650_vm6, %v5960_v3 }
0x2017   :  { %9144 = vmatprep.subr.mxu1 %v9512_v2 }
0x2019   :  { %9105 = vmatmul.mubr.msk.f32.vlgmr.msra.gmra.mxu1 %vm650_vm6, %v5875_v59 }
0x201a   :  { %9107 = vmatprep.mubr.msk.f32.mxu1 %vm9513_vm5, %v9512_v2 }
0x201d   :  { %9108 = vmatmul.mubr.msk.f32.gmra.mxu1 %vm650_vm6, %v5876_v9 }
0x201e   :  { %9110 = vmatprep.mubr.msk.f32.mxu1 %vm9513_vm5, %v9512_v2 }
0x2021   :  { %9111 = vmatmul.mubr.msk.f32.gmra.mxu1 %vm650_vm6, %v5877_v43 }
0x2022   :  { %9113 = vmatprep.mubr.msk.f32.mxu1 %vm9513_vm5, %v9512_v2 }
0x2025   :  { %9114 = vmatmul.mubr.msk.f32.gmra.mxu1 %vm650_vm6, %v5878_v16 }
0x2026   :  { %9116 = vmatprep.mubr.msk.f32.mxu1 %vm9513_vm5, %v9512_v2 }
0x2029   :  { %9117 = vmatmul.mubr.msk.f32.gmra.mxu1 %vm650_vm6, %v5879_v57 }
0x202a   :  { %9146 = vmatprep.mubr.msk.f32.mxu1 %vm9513_vm5, %v9512_v2 }
0x20d9   :  { %v6182_v26 = vpop.f32.mrf.mxu1 }
0x20da   :  { %v6183_v37 = vadd.f32 %v9485_v49, %v6182_v26 }
0x20db   :  { %v9106_v24 = vpop.f32.mrf.mxu1 }
0x20dc   :  { %v6206_v62 = vsel %vm771_vm7, %v6183_v37, -inf }
0x20dd   :  { %6207 = vmax.xlane.f32.xlu0 %v6206_v62  ;;  %v6187_v27 = vpop.f32.mrf.mxu1 }
0x20de   :  { %v6188_v21 = vadd.f32 %v9486_v4, %v6187_v27  ;;  %v7441_v4 = vld [vmem:[%s12091_s14 + $0x38] sm:$0xff] }
0x20df   :  { %v9109_v40 = vpop.f32.mrf.mxu1  ;;  %9145 = vmatpush3.msra.mxu1 %v7441_v4 }
0x20e0   :  { %v6209_v42 = vsel %vm771_vm7, %v6188_v21, -inf  ;;  %9184 = vmatprep.subr.mxu1 %v9512_v2 }
0x20e1   :  { %6210 = vmax.xlane.f32.xlu1 %v6209_v42  ;;  %v6192_v39 = vpop.f32.mrf.mxu1 }
0x20e2   :  { %v6193_v15 = vadd.f32 %v9487_v33, %v6192_v39 }
0x20e3   :  { %v9112_v60 = vpop.f32.mrf.mxu1 }
0x20e4   :  { %v6212_v31 = vsel %vm771_vm7, %v6193_v15, -inf }
0x20e5   :  { %6213 = vmax.xlane.f32.xlu0 %v6212_v31  ;;  %v6197_v14 = vpop.f32.mrf.mxu1 }
0x20e6   :  { %v6198_v10 = vadd.f32 %v9488_v25, %v6197_v14 }
0x20e7   :  { %v9115_v30 = vpop.f32.mrf.mxu1 }
0x20e8   :  { %v6215_v44 = vsel %vm771_vm7, %v6198_v10, -inf }
0x20e9   :  { %v6202_v46 = vpop.f32.mrf.mxu1 }
0x20ea   :  { %v6203_v6 = vadd.f32 %v9489_v58, %v6202_v46 }
0x20eb   :  { %v9118_v23 = vpop.f32.mrf.mxu1 }
0x20ec   :  { %v6218_v22 = vsel %vm784_vm8, %v6203_v6, -inf }
0x2166   :  { %v6208_v48 = vpop.xlane.xlu0 %6207 }
0x2167   :  { %v6221_v35 = vsub.f32 %v6183_v37, %v6208_v48 }
0x2169   :  { %v6226_v13 = vmul.f32 1.442695, %v6221_v35 }
0x216a   :  { %v6211_v53 = vpop.xlane.xlu1 %6210 }
0x216b   :  { %9433 = vpow2.f32 %v6226_v13  ;;  %v6222_v38 = vsub.f32 %v6188_v21, %v6211_v53 }
0x216d   :  { %v6228_v54 = vmul.f32 1.442695, %v6222_v38 }
0x216e   :  { %v6214_v11 = vpop.xlane.xlu0 %6213 }
0x216f   :  { %9435 = vpow2.f32 %v6228_v54  ;;  %v6223_v41 = vsub.f32 %v6193_v15, %v6214_v11  ;;  %v7448_v11 = vld [vmem:[%s12092_s15 + $0x1] ss:$0 sm:$0xff] }
0x2171   :  { %v6230_v12 = vmul.f32 1.442695, %v6223_v41 }
0x2173   :  { %9437 = vpow2.f32 %v6230_v12 }
0x2178   :  { %v9434_v52 = vpop.eup %9433 }
0x2179   :  { %v6236_v63 = vsel %vm771_vm7, %v9434_v52, 0.0 }
0x217a   :  { %6237 = vadd.xlane.f32.xlu1 %v6236_v63 }
0x217c   :  { %v9436_v45 = vpop.eup %9435 }
0x217d   :  { %v6239_v20 = vsel %vm771_vm7, %v9436_v45, 0.0 }
0x217e   :  { %6240 = vadd.xlane.f32.xlu0 %v6239_v20 }
0x2180   :  { %v9438_v29 = vpop.eup %9437 }
0x2181   :  { %v6242_v56 = vsel %vm771_vm7, %v9438_v29, 0.0 }
0x2182   :  { %6243 = vadd.xlane.f32.xlu1 %v6242_v56  ;;  %6216 = vmax.xlane.f32.xlu0 %v6215_v44 }
0x2186   :  { %6219 = vmax.xlane.f32.xlu1 %v6218_v22 }
0x2203   :  { %v6238_v61 = vpop.xlane.xlu1 %6237 }
0x2204   :  { %9439 = vrcp.f32 %v6238_v61 }
0x2207   :  { %v6241_v8 = vpop.xlane.xlu0 %6240 }
0x2208   :  { %9441 = vrcp.f32 %v6241_v8 }
0x220b   :  { %v6244_v50 = vpop.xlane.xlu1 %6243  ;;  %v6217_v3 = vpop.xlane.xlu0 %6216 }
0x220c   :  { %9443 = vrcp.f32 %v6244_v50  ;;  %v6224_v59 = vsub.f32 %v6198_v10, %v6217_v3 }
0x220e   :  { %v6232_v18 = vmul.f32 1.442695, %v6224_v59 }
0x220f   :  { %v6220_v9 = vpop.xlane.xlu1 %6219 }
0x2210   :  { %9445 = vpow2.f32 %v6232_v18  ;;  %v6225_v34 = vsub.f32 %v6203_v6, %v6220_v9 }
0x2211   :  { %v9440_v43 = vpop.eup %9439 }
0x2212   :  { %v6256_v19 = vmul.f32 %v9440_v43, %v9434_v52  ;;  %v6234_v16 = vmul.f32 1.442695, %v6225_v34 }
0x2214   :  { %9447 = vpow2.f32 %v6234_v16  ;;  %9130 = vmatmul.mubr.msk.f32.vlgmr.msra.gmra.mxu0 %vm771_vm7, %v6256_v19 }
0x2215   :  { %v9442_v0 = vpop.eup %9441  ;;  %9132 = vmatprep.mubr.msk.f32.mxu0 %vm9513_vm5, %v9512_v2 }
0x2216   :  { %v6257_v57 = vmul.f32 %v9442_v0, %v9436_v45 }
0x2218   :  { %9133 = vmatmul.mubr.msk.f32.gmra.mxu0 %vm771_vm7, %v6257_v57 }
0x2219   :  { %v9444_v26 = vpop.eup %9443  ;;  %9135 = vmatprep.mubr.msk.f32.mxu0 %vm9513_vm5, %v9512_v2 }
0x221a   :  { %v6258_v49 = vmul.f32 %v9444_v26, %v9438_v29 }
0x221c   :  { %9136 = vmatmul.mubr.msk.f32.gmra.mxu0 %vm771_vm7, %v6258_v49 }
0x221d   :  { %v9446_v37 = vpop.eup %9445  ;;  %9138 = vmatprep.mubr.msk.f32.mxu0 %vm9513_vm5, %v9512_v2 }
0x221e   :  { %v6245_v24 = vsel %vm771_vm7, %v9446_v37, 0.0 }
0x221f   :  { %6246 = vadd.xlane.f32.xlu0 %v6245_v24 }
0x2221   :  { %v9448_v62 = vpop.eup %9447 }
0x2222   :  { %v6248_v27 = vsel %vm784_vm8, %v9448_v62, 0.0 }
0x2223   :  { %6249 = vadd.xlane.f32.xlu1 %v6248_v27 }
0x22a8   :  { %v6247_v21 = vpop.xlane.xlu0 %6246 }
0x22a9   :  { %9449 = vrcp.f32 %v6247_v21 }
0x22ac   :  { %v6250_v40 = vpop.xlane.xlu1 %6249 }
0x22ad   :  { %9451 = vrcp.f32 %v6250_v40 }
0x22b6   :  { %v9450_v42 = vpop.eup %9449 }
0x22b7   :  { %v6259_v39 = vmul.f32 %v9450_v42, %v9446_v37 }
0x22b9   :  { %9139 = vmatmul.mubr.msk.f32.gmra.mxu0 %vm771_vm7, %v6259_v39 }
0x22ba   :  { %v9452_v33 = vpop.eup %9451  ;;  %9141 = vmatprep.mubr.msk.f32.mxu0 %vm9513_vm5, %v9512_v2 }
0x22bb   :  { %v6260_v15 = vmul.f32 %v9452_v33, %v9448_v62 }
0x22bd   :  { %9142 = vmatmul.mubr.msk.f32.gmra.mxu0 %vm771_vm7, %v6260_v15 }
0x22be   :  { %9169 = vmatprep.mubr.msk.f32.mxu0 %vm9513_vm5, %v9512_v2 }
0x22d4   :  { %v6345_v60 = vpop.f32.mrf.mxu0 }
0x22d5   :  { %9147 = vmatmul.mubr.msk.f32.vlgmr.msra.gmra.mxu1 %vm650_vm6, %v6345_v60 }
0x22d6   :  { %v9131_v31 = vpop.f32.mrf.mxu0  ;;  %9149 = vmatprep.mubr.msk.f32.mxu1 %vm9513_vm5, %v9512_v2 }
0x22d8   :  { %v6350_v14 = vpop.f32.mrf.mxu0 }
0x22d9   :  { %9150 = vmatmul.mubr.msk.f32.gmra.mxu1 %vm650_vm6, %v6350_v14 }
0x22da   :  { %v9134_v30 = vpop.f32.mrf.mxu0  ;;  %9152 = vmatprep.mubr.msk.f32.mxu1 %vm9513_vm5, %v9512_v2 }
0x22dc   :  { %v6355_v46 = vpop.f32.mrf.mxu0 }
0x22dd   :  { %9153 = vmatmul.mubr.msk.f32.gmra.mxu1 %vm650_vm6, %v6355_v46 }
0x22de   :  { %v9137_v23 = vpop.f32.mrf.mxu0  ;;  %9155 = vmatprep.mubr.msk.f32.mxu1 %vm9513_vm5, %v9512_v2 }
0x2379   :  { %v6360_v48 = vpop.f32.mrf.mxu0 }
0x237a   :  { %9156 = vmatmul.mubr.msk.f32.gmra.mxu1 %vm650_vm6, %v6360_v48 }
0x237b   :  { %v9140_v35 = vpop.f32.mrf.mxu0  ;;  %9158 = vmatprep.mubr.msk.f32.mxu1 %vm9513_vm5, %v9512_v2 }
0x237c   :  { %v11926_v35 = vld [vmem:[%s12093_s16 + $0x1] ss:$0 sm:$0xff]  ;;  %s9514_s16 = smov [#allocation2]  }
0x237d   :  { %v6365_v13 = vpop.f32.mrf.mxu0 }
0x237e   :  { %9159 = vmatmul.mubr.msk.f32.gmra.mxu1 %vm650_vm6, %v6365_v13 }
0x237f   :  { %v9143_v53 = vpop.f32.mrf.mxu0  ;;  %9216 = vmatprep.mubr.msk.f32.mxu1 %vm9513_vm5, %v9512_v2 }
0x2380   :  { %v11931_v53 = vld [vmem:[%s12094_s17 + $0x1] ss:$0 sm:$0xff]  ;;  %s6994_s17 = sshll.u32 %s9514_s16, 4  ;;  %s6995_s17 = int_to_ptr.vmem [resolvable:$true] %s6994_s17 }
0x2381   :  { %p9495_p1 = scmp.lt.s32.totalorder %s6995_s17, %s6995_s17 }
0x2395   :  { %v6452_v38 = vpop.f32.mrf.mxu1 }
0x2396   :  { %v6476_v54 = vadd.f32 %v6452_v38, %v11765_v51 }
0x2397   :  { %v9148_v41 = vpop.f32.mrf.mxu1 }
0x2398   :  { %v6481_v12 = vadd.f32 %v6476_v54, %v10878_v7 }
0x2399   :  { %v6457_v52 = vpop.f32.mrf.mxu1 }
0x239a   :  { %v11883_v63 = vadd.f32 %v7448_v11, %v6481_v12  ;;  %v6477_v45 = vadd.f32 %v6457_v52, %v11769_v28 }
0x239b   :  { %v9151_v25 = vpop.f32.mrf.mxu1 }
0x239c   :  { %v6482_v10 = vadd.f32 %v6477_v45, %v10883_v32  ;;  %v6503_v20 = vsel %vm237_vm1, %v11883_v63, 0.0 }
0x239d   :  { %6504 = vadd.xlane.f32.xlu0 %v6503_v20  ;;  %v6462_v51 = vpop.f32.mrf.mxu1 }
0x239e   :  { %v6478_v29 = vadd.f32 %v6462_v51, %v11773_v47  ;;  %v6495_v58 = vadd.f32 %v7448_v11, %v6482_v10 }
0x239f   :  { %v9154_v6 = vpop.f32.mrf.mxu1 }
0x23a0   :  { %v6483_v56 = vadd.f32 %v6478_v29, %v10888_v17  ;;  %v6506_v7 = vsel %vm237_vm1, %v6495_v58, 0.0 }
0x23a1   :  { %6507 = vadd.xlane.f32.xlu1 %v6506_v7 }
0x23a2   :  { %v11892_v44 = vadd.f32 %v7448_v11, %v6483_v56 }
0x23a4   :  { %v6509_v28 = vsel %vm237_vm1, %v11892_v44, 0.0 }
0x23a5   :  { %6510 = vadd.xlane.f32.xlu0 %v6509_v28 }
0x2426   :  { %v6505_v32 = vpop.xlane.xlu0 %6504 }
0x2427   :  { %v6518_v22 = vmul.f32 0.03125, %v6505_v32 }
0x2429   :  { %v6523_v61 = vsub.f32 %v11883_v63, %v6518_v22 }
0x242a   :  { %v6508_v8 = vpop.xlane.xlu1 %6507 }
0x242b   :  { %v6519_v50 = vmul.f32 0.03125, %v6508_v8  ;;  %v6528_v47 = vmul.f32 %v6523_v61, %v6523_v61  ;;  %v7479_v8 = vld [vmem:[%s12097_s20 + $0xf8] sm:$0xff] }
0x242c   :  { %9185 = vmatpush3.msra.mxu1 %v7479_v8 }
0x242d   :  { %v6524_v3 = vsub.f32 %v6495_v58, %v6519_v50  ;;  %v6533_v59 = vsel %vm237_vm1, %v6528_v47, 0.0  ;;  %9186 = vmatprep.subr.mxu1 %v9512_v2  ;;  %v7478_v50 = vld [vmem:[%s12097_s20 + $0xf0] sm:$0xff]  ;;  %v7477_v47 = vld [vmem:[%s12097_s20 + $0xe8] sm:$0xff] }
0x242e   :  { %6534 = vadd.xlane.f32.xlu1 %v6533_v59  ;;  %v6511_v17 = vpop.xlane.xlu0 %6510  ;;  %9187 = vmatpush3.msra.mxu1 %v7478_v50  ;;  %v7475_v59 = vld [vmem:[%s12097_s20 + $0xd8] sm:$0xff] }
0x242f   :  { %v6520_v18 = vmul.f32 0.03125, %v6511_v17  ;;  %v6529_v9 = vmul.f32 %v6524_v3, %v6524_v3  ;;  %9188 = vmatprep.subr.mxu1 %v9512_v2  ;;  %v7474_v17 = vld [vmem:[%s12097_s20 + $0xd0] sm:$0xff] }
0x2430   :  { %9189 = vmatpush3.msra.mxu1 %v7477_v47 }
0x2431   :  { %v6525_v34 = vsub.f32 %v11892_v44, %v6520_v18  ;;  %v6536_v43 = vsel %vm237_vm1, %v6529_v9, 0.0  ;;  %9190 = vmatprep.subr.mxu1 %v9512_v2  ;;  %v7473_v18 = vld [vmem:[%s12097_s20 + $0xc8] sm:$0xff]  ;;  %v7472_v9 = vld [vmem:[%s12097_s20 + $0xc0] sm:$0xff] }
0x2432   :  { %6537 = vadd.xlane.f32.xlu0 %v6536_v43  ;;  %v7470_v43 = vld [vmem:[%s12097_s20 + $0xb0] sm:$0xff] }
0x2433   :  { %v6530_v19 = vmul.f32 %v6525_v34, %v6525_v34 }
0x2435   :  { %v6539_v16 = vsel %vm237_vm1, %v6530_v19, 0.0  ;;  %v7469_v19 = vld [vmem:[%s12097_s20 + $0xa8] sm:$0xff] }
0x2436   :  { %6540 = vadd.xlane.f32.xlu1 %v6539_v16  ;;  %v7468_v16 = vld [vmem:[%s12097_s20 + $0xa0] sm:$0xff] }
0x243a   :  { %v6467_v0 = vpop.f32.mrf.mxu1 }
0x243b   :  { %v6479_v57 = vadd.f32 %v6467_v0, %v11777_v1  ;;  %v7456_v1 = vld [vmem:[%s12095_s18 + $0x38] sm:$0xff] }
0x243c   :  { %v9157_v26 = vpop.f32.mrf.mxu1  ;;  %9162 = vmatpush3.msra.mxu0 %v7456_v1  ;;  %v7467_v0 = vld [vmem:[%s12097_s20 + $0x98] sm:$0xff] }
0x243d   :  { %v6484_v49 = vadd.f32 %v6479_v57, %v10893_v36  ;;  %9163 = vmatprep.subr.mxu0 %v9512_v2  ;;  %v7455_v36 = vld [vmem:[%s12095_s18 + $0x30] sm:$0xff]  ;;  %v7465_v26 = vld [vmem:[%s12097_s20 + $0x88] sm:$0xff] }
0x243e   :  { %v6472_v37 = vpop.f32.mrf.mxu1  ;;  %9164 = vmatpush3.msra.mxu0 %v7455_v36  ;;  %v7466_v57 = vld [vmem:[%s12097_s20 + $0x90] sm:$0xff] }
0x243f   :  { %v6480_v24 = vadd.f32 %v6472_v37, %v11781_v5  ;;  %v6497_v62 = vadd.f32 %v7448_v11, %v6484_v49  ;;  %9165 = vmatprep.subr.mxu0 %v9512_v2  ;;  %v7453_v5 = vld [vmem:[%s12095_s18 + $0x20] sm:$0xff] }
0x2440   :  { %v9160_v27 = vpop.f32.mrf.mxu1  ;;  %v7464_v49 = vld [vmem:[%s12097_s20 + $0x80] sm:$0xff] }
0x2441   :  { %v6485_v4 = vadd.f32 %v6480_v24, %v10898_v55  ;;  %v6512_v21 = vsel %vm237_vm1, %v6497_v62, 0.0  ;;  %v7454_v55 = vld [vmem:[%s12095_s18 + $0x28] sm:$0xff] }
0x2442   :  { %6513 = vadd.xlane.f32.xlu0 %v6512_v21  ;;  %9166 = vmatpush3.msra.mxu0 %v7454_v55 }
0x2443   :  { %v6498_v40 = vadd.f32 %v7448_v11, %v6485_v4  ;;  %9167 = vmatprep.subr.mxu0 %v9512_v2 }
0x2444   :  { %9168 = vmatpush3.msra.mxu0 %v7453_v5 }
0x2445   :  { %v6515_v42 = vsel %vm250_vm4, %v6498_v40, 0.0  ;;  %9231 = vmatprep.subr.mxu0 %v9512_v2 }
0x2446   :  { %6516 = vadd.xlane.f32.xlu1 %v6515_v42 }
0x24b7   :  { %v6535_v39 = vpop.xlane.xlu1 %6534 }
0x24b8   :  { %v6548_v33 = vmul.f32 0.03125, %v6535_v39 }
0x24ba   :  { %v6553_v15 = vadd.f32 1e-06, %v6548_v33 }
0x24bb   :  { %v6538_v60 = vpop.xlane.xlu0 %6537 }
0x24bc   :  { %9453 = vrsqrt.f32 %v6553_v15  ;;  %v6549_v31 = vmul.f32 0.03125, %v6538_v60  ;;  %v7458_v15 = vld [vmem:[%s12096_s19 + $0x1] ss:$0 sm:$0xff] }
0x24be   :  { %v6554_v14 = vadd.f32 1e-06, %v6549_v31 }
0x24bf   :  { %v6541_v30 = vpop.xlane.xlu1 %6540 }
0x24c0   :  { %9455 = vrsqrt.f32 %v6554_v14  ;;  %v6550_v46 = vmul.f32 0.03125, %v6541_v30 }
0x24c2   :  { %v6555_v23 = vadd.f32 1e-06, %v6550_v46 }
0x24c4   :  { %9457 = vrsqrt.f32 %v6555_v23 }
0x24c9   :  { %v9454_v48 = vpop.eup %9453 }
0x24ca   :  { %v6563_v13 = vmul.f32 %v9454_v48, %v6523_v61 }
0x24cb   :  { %v6514_v38 = vpop.xlane.xlu0 %6513 }
0x24cc   :  { %v6574_v54 = vmul.f32 %v11926_v35, %v6563_v13  ;;  %v6521_v11 = vmul.f32 0.03125, %v6514_v38 }
0x24cd   :  { %v9456_v41 = vpop.eup %9455 }
0x24ce   :  { %v6585_v12 = vadd.f32 %v11931_v53, %v6574_v54  ;;  %v6564_v52 = vmul.f32 %v9456_v41, %v6524_v3  ;;  %v11935_v45 = vsub.f32 %v6497_v62, %v6521_v11  ;;  %v7476_v3 = vld [vmem:[%s12097_s20 + $0xe0] sm:$0xff] }
0x24cf   :  { %v6517_v25 = vpop.xlane.xlu1 %6516  ;;  %9191 = vmatpush3.msra.mxu1 %v7476_v3 }
0x24d0   :  { %v6522_v10 = vmul.f32 0.03125, %v6517_v25  ;;  %9170 = vmatmul.mubr.msk.f32.vlgmr.msra.gmra.mxu0 %vm237_vm1, %v6585_v12  ;;  %v6531_v20 = vmul.f32 %v11935_v45, %v11935_v45  ;;  %v6575_v51 = vmul.f32 %v11926_v35, %v6564_v52  ;;  %9192 = vmatprep.subr.mxu1 %v9512_v2 }
0x24d1   :  { %v9458_v29 = vpop.eup %9457  ;;  %9172 = vmatprep.mubr.msk.f32.mxu0 %vm9513_vm5, %v9512_v2  ;;  %9193 = vmatpush3.msra.mxu1 %v7475_v59 }
0x24d2   :  { %v6565_v58 = vmul.f32 %v9458_v29, %v6525_v34  ;;  %v11943_v6 = vsub.f32 %v6498_v40, %v6522_v10  ;;  %v6542_v56 = vsel %vm237_vm1, %v6531_v20, 0.0  ;;  %v6586_v7 = vadd.f32 %v11931_v53, %v6575_v51  ;;  %9194 = vmatprep.subr.mxu1 %v9512_v2  ;;  %v7471_v34 = vld [vmem:[%s12097_s20 + $0xb8] sm:$0xff] }
0x24d3   :  { %6543 = vadd.xlane.f32.xlu0 %v6542_v56  ;;  %9195 = vmatpush3.msra.mxu1 %v7474_v17 }
0x24d4   :  { %9173 = vmatmul.mubr.msk.f32.gmra.mxu0 %vm237_vm1, %v6586_v7  ;;  %v6532_v28 = vmul.f32 %v11943_v6, %v11943_v6  ;;  %v6576_v32 = vmul.f32 %v11926_v35, %v6565_v58  ;;  %9196 = vmatprep.subr.mxu1 %v9512_v2 }
0x24d5   :  { %9175 = vmatprep.mubr.msk.f32.mxu0 %vm9513_vm5, %v9512_v2  ;;  %9197 = vmatpush3.msra.mxu1 %v7473_v18 }
0x24d6   :  { %v6545_v22 = vsel %vm250_vm4, %v6532_v28, 0.0  ;;  %v6587_v61 = vadd.f32 %v11931_v53, %v6576_v32  ;;  %9198 = vmatprep.subr.mxu1 %v9512_v2 }
0x24d7   :  { %6546 = vadd.xlane.f32.xlu1 %v6545_v22  ;;  %9199 = vmatpush3.msra.mxu1 %v7472_v9 }
0x24d8   :  { %9176 = vmatmul.mubr.msk.f32.gmra.mxu0 %vm237_vm1, %v6587_v61  ;;  %9200 = vmatprep.subr.mxu1 %v9512_v2 }
0x24d9   :  { %9178 = vmatprep.mubr.msk.f32.mxu0 %vm9513_vm5, %v9512_v2  ;;  %9201 = vmatpush3.msra.mxu1 %v7471_v34 }
0x24da   :  { %9202 = vmatprep.subr.mxu1 %v9512_v2 }
0x24db   :  { %9203 = vmatpush3.msra.mxu1 %v7470_v43 }
0x24dc   :  { %9204 = vmatprep.subr.mxu1 %v9512_v2 }
0x24dd   :  { %9205 = vmatpush3.msra.mxu1 %v7469_v19 }
0x24de   :  { %9206 = vmatprep.subr.mxu1 %v9512_v2 }
0x24df   :  { %9207 = vmatpush3.msra.mxu1 %v7468_v16 }
0x24e0   :  { %9208 = vmatprep.subr.mxu1 %v9512_v2 }
0x24e1   :  { %9209 = vmatpush3.msra.mxu1 %v7467_v0 }
0x24e2   :  { %9210 = vmatprep.subr.mxu1 %v9512_v2 }
0x24e3   :  { %9211 = vmatpush3.msra.mxu1 %v7466_v57 }
0x24e4   :  { %9212 = vmatprep.subr.mxu1 %v9512_v2 }
0x24e5   :  { %9213 = vmatpush3.msra.mxu1 %v7465_v26 }
0x24e6   :  { %9214 = vmatprep.subr.mxu1 %v9512_v2 }
0x24e7   :  { %9215 = vmatpush3.msra.mxu1 %v7464_v49 }
0x255c   :  { %v6544_v37 = vpop.xlane.xlu0 %6543 }
0x255d   :  { %v6551_v24 = vmul.f32 0.03125, %v6544_v37 }
0x255f   :  { %v6556_v62 = vadd.f32 1e-06, %v6551_v24 }
0x2560   :  { %v6547_v27 = vpop.xlane.xlu1 %6546 }
0x2561   :  { %9459 = vrsqrt.f32 %v6556_v62  ;;  %v6552_v4 = vmul.f32 0.03125, %v6547_v27 }
0x2563   :  { %v6557_v21 = vadd.f32 1e-06, %v6552_v4 }
0x2565   :  { %9461 = vrsqrt.f32 %v6557_v21 }
0x256e   :  { %v9460_v40 = vpop.eup %9459 }
0x256f   :  { %v6566_v42 = vmul.f32 %v9460_v40, %v11935_v45 }
0x2571   :  { %v6577_v1 = vmul.f32 %v11926_v35, %v6566_v42 }
0x2572   :  { %v9462_v36 = vpop.eup %9461 }
0x2573   :  { %v6567_v55 = vmul.f32 %v9462_v36, %v11943_v6  ;;  %v6588_v5 = vadd.f32 %v11931_v53, %v6577_v1 }
0x2575   :  { %9179 = vmatmul.mubr.msk.f32.gmra.mxu0 %vm237_vm1, %v6588_v5  ;;  %v6578_v39 = vmul.f32 %v11926_v35, %v6567_v55 }
0x2576   :  { %9181 = vmatprep.mubr.msk.f32.mxu0 %vm9513_vm5, %v9512_v2 }
0x2577   :  { %v6589_v33 = vadd.f32 %v11931_v53, %v6578_v39 }
0x2579   :  { %9182 = vmatmul.mubr.msk.f32.gmra.mxu0 %vm237_vm1, %v6589_v33 }
0x257a   :  { %9239 = vmatprep.mubr.msk.f32.mxu0 %vm9513_vm5, %v9512_v2 }
0x2590   :  { %v6684_v60 = vpop.f32.mrf.mxu0 }
0x2591   :  { %v6685_v31 = vadd.f32 %v7458_v15, %v6684_v60 }
0x2592   :  { %v9171_v14 = vpop.f32.mrf.mxu0 }
0x2593   :  { %v6713_v30 = vmul.f32 0.044715, %v6685_v31  ;;  %v6708_v7 = vmul.f32 0.5, %v6685_v31  ;;  %v7481_v14 = vld [vmem:[%s12098_s21 + $0x1] ss:$0 sm:$0xff] }
0x2594   :  { %v6689_v46 = vpop.f32.mrf.mxu0 }
0x2595   :  { %v6718_v23 = vmul.f32 %v6713_v30, %v6685_v31  ;;  %v6690_v48 = vadd.f32 %v7458_v15, %v6689_v46 }
0x2596   :  { %v9174_v35 = vpop.f32.mrf.mxu0 }
0x2597   :  { %v6723_v13 = vmul.f32 %v6718_v23, %v6685_v31  ;;  %v6714_v38 = vmul.f32 0.044715, %v6690_v48  ;;  %v6709_v61 = vmul.f32 0.5, %v6690_v48 }
0x2598   :  { %v6694_v53 = vpop.f32.mrf.mxu0 }
0x2599   :  { %v6728_v54 = vadd.f32 %v6723_v13, %v6685_v31  ;;  %v6719_v11 = vmul.f32 %v6714_v38, %v6690_v48  ;;  %v6695_v41 = vadd.f32 %v7458_v15, %v6694_v53 }
0x259a   :  { %v9177_v12 = vpop.f32.mrf.mxu0 }
0x259b   :  { %v6733_v52 = vmul.f32 0.7978846, %v6728_v54  ;;  %v6724_v45 = vmul.f32 %v6719_v11, %v6690_v48  ;;  %v6715_v25 = vmul.f32 0.044715, %v6695_v41  ;;  %v6710_v3 = vmul.f32 0.5, %v6695_v41 }
0x259d   :  { %9463 = vtanh.f32 %v6733_v52  ;;  %v6729_v10 = vadd.f32 %v6724_v45, %v6690_v48  ;;  %v6720_v20 = vmul.f32 %v6715_v25, %v6695_v41 }
0x259f   :  { %v6725_v51 = vmul.f32 %v6720_v20, %v6695_v41  ;;  %v6734_v29 = vmul.f32 0.7978846, %v6729_v10 }
0x25a1   :  { %v6730_v58 = vadd.f32 %v6725_v51, %v6695_v41  ;;  %9465 = vtanh.f32 %v6734_v29 }
0x25a3   :  { %v6735_v6 = vmul.f32 0.7978846, %v6730_v58  ;;  %v6903_v58 = vld [vmem:[%s12101_s24 + $0x8] sm:$0xff] }
0x25a5   :  { %9467 = vtanh.f32 %v6735_v6  ;;  %v6902_v6 = vld [vmem:[%s12101_s24] sm:$0xff] }
0x25aa   :  { %v9464_v56 = vpop.eup %9463 }
0x25ab   :  { %v6743_v28 = vadd.f32 1.0, %v9464_v56 }
0x25ad   :  { %v6748_v32 = vmul.f32 %v6743_v28, %v6708_v7 }
0x25ae   :  { %v9466_v22 = vpop.eup %9465 }
0x25af   :  { %9217 = vmatmul.mubr.f32.vlgmr.msra.gmra.mxu1 %v6748_v32  ;;  %v6744_v8 = vadd.f32 1.0, %v9466_v22  ;;  %v7482_v22 = vld [vmem:[%s12099_s22] ss:$0 sm:$0xff]  ;;  %s9490_s22 = scalar_lea.vmem %s6995_s17, 32 }
0x25b0   :  { %9219 = vmatprep.mubr.msk.f32.mxu1 %vm9513_vm5, %v9512_v2  ;;  %p9491_p0 = scmp.ne.s32.totalorder %s6995_s17, %s9490_s22  ;;  %p9496_p2 = scmp.lt.s32.totalorder %s9490_s22, %s9490_s22 }
0x25b1   :  { %v6749_v50 = vmul.f32 %v6744_v8, %v6709_v61  ;;  %v7483_v8 = vld [vmem:[%s12100_s23] ss:$0 sm:$0xff] }
0x25b2   :  { %v9468_v47 = vpop.eup %9467  ;;  %p9497_p3 = por %p9496_p2, %p9495_p1 }
0x25b3   :  { %9220 = vmatmul.mubr.f32.gmra.mxu1 %v6749_v50  ;;  %v6745_v59 = vadd.f32 1.0, %v9468_v47 }
0x25b4   :  { %9222 = vmatprep.mubr.msk.f32.mxu1 %vm9513_vm5, %v9512_v2  ;;  %p9498_p4 = pnand %p9497_p3, %p9491_p0 }
0x25b5   :  { %v6750_v17 = vmul.f32 %v6745_v59, %v6710_v3 }
0x25b7   :  { %9223 = vmatmul.mubr.f32.gmra.mxu1 %v6750_v17 }
0x25b8   :  { %9225 = vmatprep.mubr.msk.f32.mxu1 %vm9513_vm5, %v9512_v2 }
0x2635   :  { %v6699_v18 = vpop.f32.mrf.mxu0 }
0x2636   :  { %v6700_v9 = vadd.f32 %v7458_v15, %v6699_v18 }
0x2637   :  { %v9180_v34 = vpop.f32.mrf.mxu0 }
0x2638   :  { %v6716_v43 = vmul.f32 0.044715, %v6700_v9  ;;  %v6711_v42 = vmul.f32 0.5, %v6700_v9 }
0x2639   :  { %v6704_v19 = vpop.f32.mrf.mxu0 }
0x263a   :  { %v6721_v16 = vmul.f32 %v6716_v43, %v6700_v9  ;;  %v6705_v0 = vadd.f32 %v7458_v15, %v6704_v19 }
0x263b   :  { %v9183_v57 = vpop.f32.mrf.mxu0 }
0x263c   :  { %v6726_v26 = vmul.f32 %v6721_v16, %v6700_v9  ;;  %v6717_v49 = vmul.f32 0.044715, %v6705_v0  ;;  %v6712_v5 = vmul.f32 0.5, %v6705_v0 }
0x263e   :  { %v6731_v37 = vadd.f32 %v6726_v26, %v6700_v9  ;;  %v6722_v24 = vmul.f32 %v6717_v49, %v6705_v0 }
0x2640   :  { %v6727_v62 = vmul.f32 %v6722_v24, %v6705_v0  ;;  %v6736_v27 = vmul.f32 0.7978846, %v6731_v37 }
0x2642   :  { %v6732_v4 = vadd.f32 %v6727_v62, %v6705_v0  ;;  %9469 = vtanh.f32 %v6736_v27 }
0x2644   :  { %v6737_v21 = vmul.f32 0.7978846, %v6732_v4 }
0x2646   :  { %9471 = vtanh.f32 %v6737_v21 }
0x264f   :  { %v9470_v40 = vpop.eup %9469 }
0x2650   :  { %v6746_v1 = vadd.f32 1.0, %v9470_v40 }
0x2652   :  { %v6751_v36 = vmul.f32 %v6746_v1, %v6711_v42 }
0x2653   :  { %v9472_v55 = vpop.eup %9471 }
0x2654   :  { %9226 = vmatmul.mubr.f32.gmra.mxu1 %v6751_v36  ;;  %v6747_v39 = vadd.f32 1.0, %v9472_v55 }
0x2655   :  { %9228 = vmatprep.mubr.msk.f32.mxu1 %vm9513_vm5, %v9512_v2 }
0x2656   :  { %v6752_v33 = vmul.f32 %v6747_v39, %v6712_v5 }
0x2658   :  { %9229 = vmatmul.mubr.f32.gmra.mxu1 %v6752_v33 }
0x266f   :  { %v6844_v15 = vpop.f32.mrf.mxu1 }
0x2670   :  { %v6845_v23 = vadd.f32 %v7481_v14, %v6844_v15 }
0x2671   :  { %v9218_v60 = vpop.f32.mrf.mxu1 }
0x2672   :  { %v6865_v38 = vadd.f32 %v6845_v23, %v11883_v63  ;;  %v6904_v63 = vld [vmem:[%s12101_s24 + $0x10] sm:$0xff] }
0x2673   :  { %v6849_v31 = vpop.f32.mrf.mxu1 }
0x2675   :  { %v9221_v30 = vpop.f32.mrf.mxu1 }
0x2677   :  { %v6853_v46 = vpop.f32.mrf.mxu1 }
0x2678   :  { %v6854_v48 = vadd.f32 %v7481_v14, %v6853_v46 }
0x2679   :  { %v9224_v35 = vpop.f32.mrf.mxu1 }
0x267a   :  { %v6866_v13 = vadd.f32 %v6854_v48, %v11892_v44  ;;  %v6905_v44 = vld [vmem:[%s12101_s24 + $0x18] sm:$0xff] }
0x267b   :  { %9232 = vmatpush3.msra.mxu0 %v6905_v44 }
0x267c   :  { %v6868_v53 = vrot.slane %v6866_v13, 1  ;;  %9233 = vmatprep.subr.mxu0 %v9512_v2 }
0x267d   :  { %9234 = vmatpush3.msra.mxu0 %v6904_v63 }
0x267e   :  { %v6871_v54 = vsel %vm6870_vm9, %v6865_v38, %v6868_v53  ;;  %9235 = vmatprep.subr.mxu0 %v9512_v2 }
0x267f   :  { %v6875_v11 = vsel %vm6874_vm10, %v6871_v54, 0.0  ;;  %9236 = vmatpush3.msra.mxu0 %v6903_v58 }
0x2680   :  { %6876 = vadd.xlane.f32.xlu0 %v6875_v11  ;;  %9237 = vmatprep.subr.mxu0 %v9512_v2  ;;  %v7484_v2 = vld [vmem:[%s12102_s25] ss:$0 sm:$0xff] }
0x2681   :  { %9238 = vmatpush3.msra.mxu0 %v6902_v6 }
0x2709   :  { %v6877_v41 = vpop.xlane.xlu0 %6876 }
0x270a   :  { %v6878_v12 = vmul.f32 0.03125, %v6877_v41 }
0x270c   :  { %v6879_v52 = vsub.f32 %v6871_v54, %v6878_v12 }
0x270e   :  { %v6880_v45 = vmul.f32 %v6879_v52, %v6879_v52 }
0x2710   :  { %v6881_v25 = vsel %vm6874_vm10, %v6880_v45, 0.0 }
0x2711   :  { %6882 = vadd.xlane.f32.xlu1 %v6881_v25 }
0x2714   :  { %v6858_v10 = vpop.f32.mrf.mxu1 }
0x2716   :  { %v9227_v20 = vpop.f32.mrf.mxu1 }
0x2718   :  { %v6862_v51 = vpop.f32.mrf.mxu1 }
0x271a   :  { %v9230_v29 = vpop.f32.mrf.mxu1 }
0x279a   :  { %v6883_v56 = vpop.xlane.xlu1 %6882 }
0x279b   :  { %v6884_v7 = vmul.f32 0.03125, %v6883_v56 }
0x279d   :  { %v6885_v28 = vadd.f32 1e-06, %v6884_v7 }
0x279f   :  { %9473 = vrsqrt.f32 %v6885_v28 }
0x27ac   :  { %v9474_v32 = vpop.eup %9473 }
0x27ad   :  { %v6887_v61 = vmul.f32 %v9474_v32, %v6879_v52 }
0x27af   :  { %v6894_v50 = vmul.f32 %v7482_v22, %v6887_v61 }
0x27b1   :  { %v6901_v47 = vadd.f32 %v7483_v8, %v6894_v50 }
0x27b3   :  { %9240 = vmatmul.mubr.msk.f32.vlgmr.msra.gmra.mxu0 %vm237_vm1, %v6901_v47 }
0x2873   :  { %v6982_v3 = vpop.f32.mrf.mxu0 }
0x2874   :  { %v6983_v59 = vadd.f32 %v7484_v2, %v6982_v3 }
0x2875   :  { %v9241_v17 = vpop.f32.mrf.mxu0 }
0x2876   :  { %6987 = vst.msk [vmem:[#allocation2] sm:$0x3] %vm6986_vm11, %v6983_v59 }
0x2877   :  { %9501 = shalt.err (!%p9498_p4)
}
0x2878   :  { %6997 = dma.vmem_to_hbm [thread:$0]  %s6995_s17, 32, %s12103_s26, [#allocation3]  }
0x2879   :  { %9510 = dma.done.wait [#allocation3], 32  }
0x287a   :  { %9511 = vsyncadd [#allocation3], 4294967264 }
0x287b   :  { %7001 = vsyncpa [#allocation3], 1 }

</bundles_post_ra>
